<compile_context>
chip_gen: v5e
topology: v5e:2x2
jax: 0.10.0
libtpu: 0.0.40
codegen_flags: <defaults>
</compile_context>

<pallas_src>
import jax
import jax.numpy as jnp
from jax.experimental import pallas as pl
from jax.experimental.pallas import tpu as pltpu

LANE = 128
SUBLANE = 8
# Keep 2 x (bf16 w1 tile) + z + b1/w2 tiles comfortably under ~16 MiB so the
# pipeline stays double-buffered on v7x (32 MiB scoped / 64 MiB physical VMEM).
_W1_TILE_BUDGET_BYTES = 7 * 1024 * 1024


def _round_up(x, m):
    return (x + m - 1) // m * m


def _choose_h_tile(d_pad, width):
    """Largest lane-multiple H tile with bf16 (d_pad, tn) <= budget; pad H to it."""
    max_tn = max(LANE, (_W1_TILE_BUDGET_BYTES // (d_pad * 2)) // LANE * LANE)
    h_pad_lane = _round_up(width, LANE)
    tn = min(max_tn, h_pad_lane)
    h_pad = _round_up(width, tn)
    return int(tn), int(h_pad)


# -----------------------------------------------------------------------------
# Kernel: (bf16 matmul -> bias -> ReLU -> dot with w2 row) per H-tile,
# accumulated into a (B, 1) f32 scratch; sigmoid + store at the last tile.
# -----------------------------------------------------------------------------
def _classifier_kernel(z_ref, w1_ref, b1_ref, w2_ref, b2_ref, out_ref, acc_ref):
    j = pl.program_id(0)

    @pl.when(j == 0)
    def _init():
        acc_ref[...] = jnp.zeros_like(acc_ref)

    # Linear1 (+ folded BatchNorm): bf16 inputs, f32 accumulation on the MXU.
    h = jnp.dot(z_ref[...], w1_ref[...], preferred_element_type=jnp.float32)
    h = h + b1_ref[...]
    h = jnp.maximum(h, 0.0)                      # ReLU (dropouts = identity)

    # Linear2 has a single output column -> VPU multiply + lane reduction,
    # accumulating this tile's contribution to the logits.
    acc_ref[...] += jnp.sum(h * w2_ref[...], axis=-1, keepdims=True)

    # NOTE: writing out_ref only on the last step is valid because the output
    # index_map is constant over the H axis (block stays resident) and the
    # axis is marked "arbitrary".  Do not mark it "parallel" or change the
    # output index_map without also changing this finalize logic.
    @pl.when(j == pl.num_programs(0) - 1)
    def _finalize():
        out_ref[...] = jax.nn.sigmoid(acc_ref[...] + b2_ref[0])


def classifier_forward(z, w1, b1, w2, b2, *, tn):
    """Runs the (folded) classification head + sigmoid in one Pallas kernel.

    z : (B, D_pad)  bf16      w1 : (D_pad, H_pad) bf16
    b1: (1, H_pad)  f32       w2 : (1, H_pad)     f32      b2: (1,) f32
    """
    B, d_pad = z.shape
    h_pad = w1.shape[1]
    assert h_pad % tn == 0 and d_pad % LANE == 0 and B % SUBLANE == 0
    grid = (h_pad // tn,)

    # TODO(synk): if B is batched up enough to become compute-limited, add a
    # leading batch-tile grid axis marked "parallel" so v7x's two TensorCores
    # split the work (do NOT do this while w1-bandwidth-bound).
    return pl.pallas_call(
        _classifier_kernel,
        out_shape=jax.ShapeDtypeStruct((B, 1), jnp.float32),
        grid=grid,
        in_specs=[
            pl.BlockSpec((B, d_pad), lambda j: (0, 0)),        # z resident
            pl.BlockSpec((d_pad, tn), lambda j: (0, j)),       # stream w1 tiles
            pl.BlockSpec((1, tn), lambda j: (0, j)),           # b1 tile
            pl.BlockSpec((1, tn), lambda j: (0, j)),           # w2 tile (row)
            pl.BlockSpec(memory_space=pltpu.MemorySpace.SMEM),  # b2 scalar
        ],
        out_specs=pl.BlockSpec((B, 1), lambda j: (0, 0)),
        scratch_shapes=[pltpu.VMEM((B, 1), jnp.float32)],
        compiler_params=pltpu.CompilerParams(
            dimension_semantics=("arbitrary",),   # H is a reduction axis
        ),
    )(z, w1, b1, w2, b2)


# -----------------------------------------------------------------------------
# Forward wrapper (embedding gathers + concat = glue, then the Pallas kernel).
# Tables are already bf16 and the sentence table is pre-padded, so the concat
# yields z directly at (B, d_pad) in bf16 with no extra pad/cast pass.
# -----------------------------------------------------------------------------
def hybrid_forward(params, e1_idx, rel_idx, e2_idx, sen_idx, split="training"):
    emb_head = params["ent_emb"][e1_idx]
    emb_rel = params["rel_emb"][rel_idx]
    emb_tail = params["ent_emb"][e2_idx]
    if "training" in split:
        emb_sen = params["sen_train"][sen_idx]
    elif "valid" in split:
        emb_sen = params["sen_valid"][sen_idx]
    else:
        emb_sen = params["sen_test"][sen_idx]

    # TODO(synk): reference forward calls self.dropout(z), which is never
    # defined in __init__ (would raise in PyTorch); treated as identity.
    # TODO(synk): gathers/concat could be fused into the kernel with
    # PrefetchScalarGridSpec row-gather (pl.Element index_map) if end-to-end
    # latency at large B ever matters.
    z = jnp.concatenate([emb_head, emb_rel, emb_tail, emb_sen], axis=1)

    # Pad batch rows to a sublane multiple for clean vreg packing.
    b = z.shape[0]
    b_pad = _round_up(max(b, SUBLANE), SUBLANE)
    if b_pad != b:
        z = jnp.pad(z, ((0, b_pad - b), (0, 0)))

    out = classifier_forward(z, params["w1"], params["b1"],
                             params["w2"], params["b2"], tn=params["tn"])
    return out[:b]


# -----------------------------------------------------------------------------
# Parameters: raw (PyTorch-equivalent) params + host-side fold/pad/cast prep.
# -----------------------------------------------------------------------------
def build_raw_params(key, embedding_dim, num_entities, num_relations,
                     n_train, n_valid, n_test):
    sentence_dim = 768 * 3
    shallom_width = int(25.6 * embedding_dim)
    in_dim = 3 * embedding_dim + sentence_dim

    keys = jax.random.split(key, 12)
    f32 = jnp.float32
    return {
        "ent_emb": jax.random.normal(keys[0], (num_entities, embedding_dim), f32),
        "rel_emb": jax.random.normal(keys[1], (num_relations, embedding_dim), f32),
        "sen_train": jax.random.normal(keys[2], (n_train, sentence_dim), f32),
        "sen_valid": jax.random.normal(keys[3], (n_valid, sentence_dim), f32),
        "sen_test": jax.random.normal(keys[4], (n_test, sentence_dim), f32),
        # Linear 1: (in_dim -> shallom_width), stored as (in, out).
        "w1": jax.random.normal(keys[5], (in_dim, shallom_width), f32)
              * (1.0 / jnp.sqrt(in_dim)),
        "b1": jax.random.normal(keys[6], (1, shallom_width), f32) * 0.01,
        # BatchNorm1d(shallom_width) running stats + affine params.
        "gamma": 1.0 + 0.1 * jax.random.normal(keys[7], (1, shallom_width), f32),
        "beta": 0.1 * jax.random.normal(keys[8], (1, shallom_width), f32),
        "mean": 0.1 * jax.random.normal(keys[9], (1, shallom_width), f32),
        "var": 1.0 + 0.1 * jax.random.uniform(keys[10], (1, shallom_width), f32),
        # Linear 2: (shallom_width -> 1).
        "w2": jax.random.normal(keys[11], (shallom_width, 1), f32)
              * (1.0 / jnp.sqrt(shallom_width)),
        "b2": jnp.zeros((1, 1), f32),
    }


def prepare_kernel_params(raw, eps=1e-5):
    """Fold BN into Linear1, pad in_dim/H, cast weights+tables to bf16, pick tn."""
    scale = raw["gamma"] * jax.lax.rsqrt(raw["var"] + eps)        # (1, H)
    w1 = raw["w1"] * scale                                        # column scale
    b1 = (raw["b1"] - raw["mean"]) * scale + raw["beta"]

    in_dim, width = w1.shape
    emb_dim = raw["ent_emb"].shape[1]
    sen_dim = raw["sen_train"].shape[1]
    d_pad = _round_up(in_dim, LANE)
    tn, h_pad = _choose_h_tile(d_pad, width)

    w1p = jnp.pad(w1, ((0, d_pad - in_dim), (0, h_pad - width))).astype(jnp.bfloat16)
    b1p = jnp.pad(b1, ((0, 0), (0, h_pad - width)))               # padded cols -> 0
    w2p = jnp.pad(raw["w2"].T, ((0, 0), (0, h_pad - width)))      # (1, H_pad), zeros
    b2p = raw["b2"].reshape((1,))

    # Pre-cast embedding tables to bf16; pad the (last-concatenated) sentence
    # tables with zero columns so gather+concat directly yields (B, d_pad).
    sen_pad_cols = d_pad - (3 * emb_dim + sen_dim)

    def _prep_sen(t):
        return jnp.pad(t, ((0, 0), (0, sen_pad_cols))).astype(jnp.bfloat16)

    return {
        "ent_emb": raw["ent_emb"].astype(jnp.bfloat16),
        "rel_emb": raw["rel_emb"].astype(jnp.bfloat16),
        "sen_train": _prep_sen(raw["sen_train"]),
        "sen_valid": _prep_sen(raw["sen_valid"]),
        "sen_test": _prep_sen(raw["sen_test"]),
        "w1": w1p, "b1": b1p, "w2": w2p, "b2": b2p,
        "tn": tn,
    }


def reference_forward(raw, e1_idx, rel_idx, e2_idx, sen_idx, split="training"):
    """Pure-JAX f32 reference matching the PyTorch module in eval mode."""
    emb_head = raw["ent_emb"][e1_idx]
    emb_rel = raw["rel_emb"][rel_idx]
    emb_tail = raw["ent_emb"][e2_idx]
    emb_sen = {"training": raw["sen_train"], "valid": raw["sen_valid"],
               "test": raw["sen_test"]}["training" if "training" in split
                                        else "valid" if "valid" in split
                                        else "test"][sen_idx]
    z = jnp.concatenate([emb_head, emb_rel, emb_tail, emb_sen], axis=1)
    h = z @ raw["w1"] + raw["b1"]
    h = (h - raw["mean"]) * jax.lax.rsqrt(raw["var"] + 1e-5) * raw["gamma"] + raw["beta"]
    h = jnp.maximum(h, 0.0)
    return jax.nn.sigmoid(h @ raw["w2"] + raw["b2"])


if __name__ == "__main__":
    embedding_dim = 32
    num_entities = 50
    num_relations = 10
    n_train, n_valid, n_test = 64, 16, 16
    batch = 8   # NOTE: for real deployments batch >=128/256 to amortize the
                # fixed w1 HBM streaming cost and fill MXU rows.

    key = jax.random.PRNGKey(0)
    pkey, ikey = jax.random.split(key)
    raw = build_raw_params(pkey, embedding_dim, num_entities, num_relations,
                           n_train, n_valid, n_test)
    params = prepare_kernel_params(raw)

    k1, k2, k3, k4 = jax.random.split(ikey, 4)
    e1_idx = jax.random.randint(k1, (batch,), 0, num_entities)
    rel_idx = jax.random.randint(k2, (batch,), 0, num_relations)
    e2_idx = jax.random.randint(k3, (batch,), 0, num_entities)
    sen_idx = jax.random.randint(k4, (batch,), 0, n_train)

    out = hybrid_forward(params, e1_idx, rel_idx, e2_idx, sen_idx,
                         split="training")
    out = jax.block_until_ready(out)

    ref = reference_forward(raw, e1_idx, rel_idx, e2_idx, sen_idx,
                            split="training")

    assert out.shape == (batch, 1)
    assert bool(jnp.all(jnp.isfinite(out)))
    assert bool(jnp.max(jnp.abs(out - ref)) < 5e-2)   # bf16 z/w1 tolerance
    print("KERNEL_OK")
</pallas_src>

<mosaic_0001>
module attributes {stable_mosaic.version = 11 : i64} {
  func.func @_classifier_kernel(%arg0: i32, %arg1: memref<8x2432xbf16, #tpu.memory_space<vmem>>, %arg2: memref<2432x896xbf16, #tpu.memory_space<vmem>>, %arg3: memref<1x896xf32, #tpu.memory_space<vmem>>, %arg4: memref<1x896xf32, #tpu.memory_space<vmem>>, %arg5: memref<1xf32, #tpu.memory_space<smem>>, %arg6: memref<8x1xf32, #tpu.memory_space<vmem>>, %arg7: memref<8x1xf32, #tpu.memory_space<vmem>>) attributes {dimension_semantics = [#tpu.dimension_semantics<arbitrary>], iteration_bounds = array<i64: 1>, scalar_prefetch = 0 : i64, scratch_operands = 1 : i64, tpu.core_type = #tpu.core_type<tc>, window_params = [{pipeline_mode = #tpu.pipeline_mode<synchronous>, transform_indices = @transform_0, window_bounds = array<i64: 8, 2432>}, {transform_indices = @transform_1, window_bounds = array<i64: 2432, 896>}, {transform_indices = @transform_2, window_bounds = array<i64: 1, 896>}, {transform_indices = @transform_3, window_bounds = array<i64: 1, 896>}, {transform_indices = @transform_4, window_bounds = array<i64: 1>}, {pipeline_mode = #tpu.pipeline_mode<synchronous>, transform_indices = @transform_5, window_bounds = array<i64: 8, 1>}]} {
    %c0_i32 = arith.constant 0 : i32
    %0 = arith.cmpi eq, %arg0, %c0_i32 : i32
    %1 = arith.extui %0 : i1 to i32
    %c0_i32_0 = arith.constant 0 : i32
    %2 = arith.cmpi ne, %1, %c0_i32_0 : i32
    scf.if %2 {
      %cst_16 = arith.constant 0.000000e+00 : f32
      %22 = vector.broadcast %cst_16 : f32 to vector<8x1xf32>
      %c0_17 = arith.constant 0 : index
      %c0_18 = arith.constant 0 : index
      %23 = vector.load %arg7[%c0_17, %c0_18] : memref<8x1xf32, #tpu.memory_space<vmem>>, vector<8x1xf32>
      tpu.vector_store %arg7[%c0_17, %c0_18], %22 {strides = array<i32>} : memref<8x1xf32, #tpu.memory_space<vmem>>, vector<8x1xf32>,
    } else {
    }
    %c0 = arith.constant 0 : index
    %c0_1 = arith.constant 0 : index
    %3 = vector.load %arg1[%c0, %c0_1] : memref<8x2432xbf16, #tpu.memory_space<vmem>>, vector<8x2432xbf16>
    %c0_2 = arith.constant 0 : index
    %c0_3 = arith.constant 0 : index
    %4 = vector.load %arg2[%c0_2, %c0_3] : memref<2432x896xbf16, #tpu.memory_space<vmem>>, vector<2432x896xbf16>
    %cst = arith.constant dense<0.000000e+00> : vector<8x896xf32>
    %5 = tpu.matmul %3, %4, %cst {dimension_numbers = #tpu.dot_dimension_numbers<[1], [0], [0], [1], [0, 0, 1, 1], [], []>} : vector<8x2432xbf16>, vector<2432x896xbf16>, vector<8x896xf32> -> vector<8x896xf32>
    %c0_4 = arith.constant 0 : index
    %c0_5 = arith.constant 0 : index
    %6 = vector.load %arg3[%c0_4, %c0_5] : memref<1x896xf32, #tpu.memory_space<vmem>>, vector<1x896xf32>
    %7 = vector.broadcast %6 : vector<1x896xf32> to vector<8x896xf32>
    %8 = arith.addf %5, %7 : vector<8x896xf32>
    %cst_6 = arith.constant 0.000000e+00 : f32
    %9 = vector.broadcast %cst_6 : f32 to vector<8x896xf32>
    %10 = arith.maximumf %8, %9 : vector<8x896xf32>
    %c0_7 = arith.constant 0 : index
    %c0_8 = arith.constant 0 : index
    %11 = vector.load %arg7[%c0_7, %c0_8] : memref<8x1xf32, #tpu.memory_space<vmem>>, vector<8x1xf32>
    %c0_9 = arith.constant 0 : index
    %c0_10 = arith.constant 0 : index
    %12 = vector.load %arg4[%c0_9, %c0_10] : memref<1x896xf32, #tpu.memory_space<vmem>>, vector<1x896xf32>
    %13 = vector.broadcast %12 : vector<1x896xf32> to vector<8x896xf32>
    %14 = arith.mulf %10, %13 : vector<8x896xf32>
    %cst_11 = arith.constant dense<0.000000e+00> : vector<8xf32>
    %15 = vector.multi_reduction <add>, %14, %cst_11 [1] : vector<8x896xf32> to vector<8xf32>
    %16 = vector.shape_cast %15 : vector<8xf32> to vector<8x1xf32>
    %17 = arith.addf %11, %16 : vector<8x1xf32>
    %c0_12 = arith.constant 0 : index
    %c0_13 = arith.constant 0 : index
    %18 = vector.load %arg7[%c0_12, %c0_13] : memref<8x1xf32, #tpu.memory_space<vmem>>, vector<8x1xf32>
    tpu.vector_store %arg7[%c0_12, %c0_13], %17 {strides = array<i32>} : memref<8x1xf32, #tpu.memory_space<vmem>>, vector<8x1xf32>,
    %c0_i32_14 = arith.constant 0 : i32
    %19 = arith.cmpi eq, %arg0, %c0_i32_14 : i32
    %20 = arith.extui %19 : i1 to i32
    %c0_i32_15 = arith.constant 0 : i32
    %21 = arith.cmpi ne, %20, %c0_i32_15 : i32
    scf.if %21 {
      %c0_16 = arith.constant 0 : index
      %c0_17 = arith.constant 0 : index
      %22 = vector.load %arg7[%c0_16, %c0_17] : memref<8x1xf32, #tpu.memory_space<vmem>>, vector<8x1xf32>
      %c0_18 = arith.constant 0 : index
      %23 = memref.load %arg5[%c0_18] : memref<1xf32, #tpu.memory_space<smem>>
      %24 = vector.broadcast %23 : f32 to vector<8x1xf32>
      %25 = arith.addf %22, %24 : vector<8x1xf32>
      %26 = arith.negf %25 : vector<8x1xf32>
      %27 = math.exp %26 : vector<8x1xf32>
      %cst_19 = arith.constant 1.000000e+00 : f32
      %28 = vector.broadcast %cst_19 : f32 to vector<8x1xf32>
      %29 = arith.addf %28, %27 : vector<8x1xf32>
      %30 = arith.divf %28, %29 : vector<8x1xf32>
      %c0_20 = arith.constant 0 : index
      %c0_21 = arith.constant 0 : index
      %31 = vector.load %arg6[%c0_20, %c0_21] : memref<8x1xf32, #tpu.memory_space<vmem>>, vector<8x1xf32>
      tpu.vector_store %arg6[%c0_20, %c0_21], %30 {strides = array<i32>} : memref<8x1xf32, #tpu.memory_space<vmem>>, vector<8x1xf32>,
    } else {
    }
    return
  }
  func.func @transform_0(%arg0: i32) -> (i32, i32) {
    %c0_i32 = arith.constant 0 : i32
    %c0_i32_0 = arith.constant 0 : i32
    %c0_i32_1 = arith.constant 0 : i32
    return %c0_i32, %c0_i32_0 : i32, i32
  }
  func.func @transform_1(%arg0: i32) -> (i32, i32) {
    %c0_i32 = arith.constant 0 : i32
    %c0_i32_0 = arith.constant 0 : i32
    return %c0_i32, %arg0 : i32, i32
  }
  func.func @transform_2(%arg0: i32) -> (i32, i32) {
    %c0_i32 = arith.constant 0 : i32
    %c0_i32_0 = arith.constant 0 : i32
    return %c0_i32, %arg0 : i32, i32
  }
  func.func @transform_3(%arg0: i32) -> (i32, i32) {
    %c0_i32 = arith.constant 0 : i32
    %c0_i32_0 = arith.constant 0 : i32
    return %c0_i32, %arg0 : i32, i32
  }
  func.func @transform_4(%arg0: i32) -> i32 {
    %c0_i32 = arith.constant 0 : i32
    %c0_i32_0 = arith.constant 0 : i32
    return %c0_i32 : i32
  }
  func.func @transform_5(%arg0: i32) -> (i32, i32) {
    %c0_i32 = arith.constant 0 : i32
    %c0_i32_0 = arith.constant 0 : i32
    %c0_i32_1 = arith.constant 0 : i32
    return %c0_i32, %c0_i32_0 : i32, i32
  }
}

</mosaic_0001>

<bundles_post_ra>
// kernel: tpu_custom_call.1
= control target key start
LH: loop header
LB: loop body
LE: loop exit
PB: predicated region body
PF: predicated region fallthrough
CT: control target
= control target key end

     0   :  { %11 = vsyncpa [#allocation5], 0  ;;  %s14443_s0 = inlined_call_operand.hbm [shape: bf16[8,2432], index: 0, kind: input, shape index: {}]   ;;  %s14444_s1 = inlined_call_operand.hbm [shape: bf16[2432,896], index: 1, kind: input, shape index: {}]   ;;  %s14445_s2 = inlined_call_operand.hbm [shape: f32[1,896], index: 2, kind: input, shape index: {}]   ;;  %s14446_s3 = inlined_call_operand.hbm [shape: f32[1,896], index: 3, kind: input, shape index: {}]   ;;  %s14447_s4 = inlined_call_operand.<no memory space> [shape: f32[1], index: 4, kind: input, shape index: {}]   ;;  %s14448_s5 = inlined_call_operand.vmem [shape: f32[8,1], index: 5, kind: output, shape index: {}]  }
   0x1   :  { %12 = vsyncpa [#allocation7], 0  ;;  %s29_s20 = sshll.u32 %s14444_s1, 4  ;;  %s30_s20 = int_to_ptr.hbm [resolvable:$true] %s29_s20 }
   0x2   :  { %13 = vsyncpa [#allocation10], 0  ;;  %s14114_s21 = smov [#allocation6]   ;;  %s19_s25 = sshll.u32 %s14443_s0, 4  ;;  %s20_s25 = int_to_ptr.hbm [resolvable:$true] %s19_s25 }
   0x3   :  { %s31_s22 = sshll.u32 %s14114_s21, 4  ;;  %s14115_s26 = smov 448   ;;  %s32_s22 = int_to_ptr.vmem [resolvable:$true] %s31_s22 }
   0x4   :  { %s14116_s27 = smov 28   ;;  %s14117_s28 = smov [#allocation4]  }
   0x5   :  { %37 = dma.hbm_to_vmem [thread:$0]  %s30_s20, 136192, %s32_s22, [#allocation7], %s14115_s26, %s14115_s26, %s14116_s27  }
   0x6   :  { %s21_s29 = sshll.u32 %s14117_s28, 4  ;;  %s43_s7 = sshll.u32 %s14445_s2, 4  ;;  %s22_s29 = int_to_ptr.vmem [resolvable:$true] %s21_s29  ;;  %s44_s7 = int_to_ptr.hbm [resolvable:$true] %s43_s7 }
   0x7   :  { %24 = dma.hbm_to_vmem [thread:$0]  %s20_s25, 1216, %s22_s29, [#allocation5]  }
   0x8   :  { %s54_s9 = sshll.u32 %s14446_s3, 4  ;;  %s14118_s10 = smov [#allocation8]   ;;  %s55_s9 = int_to_ptr.hbm [resolvable:$true] %s54_s9 }
   0x9   :  { %s45_s11 = sshll.u32 %s14118_s10, 4  ;;  %s14119_s0 = smov [#allocation9]   ;;  %s46_s11 = int_to_ptr.vmem [resolvable:$true] %s45_s11 }
   0xa   :  { %48 = dma.hbm_to_vmem [thread:$0]  %s44_s7, 112, %s46_s11, [#allocation7]  }
   0xb   :  { %s56_s12 = sshll.u32 %s14119_s0, 4  ;;  %s57_s12 = int_to_ptr.vmem [resolvable:$true] %s56_s12 }
   0xc   :  { %59 = dma.hbm_to_vmem [thread:$0]  %s55_s9, 112, %s57_s12, [#allocation10]  }
   0xd   :  { %14108 = dma.done.wait [#allocation5], 1216  }
   0xe   :  { %14109 = vsyncadd [#allocation5], 4294966080 }
   0xf   :  { %14110 = dma.done.wait [#allocation7], 136304  }
  0x10   :  { %14111 = vsyncadd [#allocation7], 4294830992 }
  0x11   :  { %14112 = dma.done.wait [#allocation10], 112  }
  0x12   :  { %14113 = vsyncadd [#allocation10], 4294967184  ;;  %v8868_v0 = vld [vmem:[#allocation6 + $0x188] sm:$0xf]  ;;  %v12979_v1 = vld [vmem:[#allocation6 + $0x1a0] sm:$0xf0] }
  0x13   :  { %v9316_v2 = vld [vmem:[#allocation6 + $0x508] sm:$0xf]  ;;  %v8869_v3 = vor.u32 %v12979_v1, %v8868_v0  ;;  %v13091_v4 = vld [vmem:[#allocation6 + $0x520] sm:$0xf0]  ;;  %v8840_v11 = vld [vmem:[#allocation6 + $0x150] sm:$0xf] }
  0x14   :  { %v9092_v5 = vld [vmem:[#allocation6 + $0x348] sm:$0xf]  ;;  %v13035_v6 = vld [vmem:[#allocation6 + $0x360] sm:$0xf0]  ;;  %v9317_v7 = vor.u32 %v13091_v4, %v9316_v2  ;;  %v12972_v13 = vld [vmem:[#allocation6 + $0x168] sm:$0xf0] }
  0x15   :  { %v9093_v8 = vor.u32 %v13035_v6, %v9092_v5  ;;  %v9540_v9 = vld [vmem:[#allocation6 + $0x6c8] sm:$0xf]  ;;  %v13147_v10 = vld [vmem:[#allocation6 + $0x6e0] sm:$0xf0]  ;;  %6865 = vmatpush.bf16.msra.mxu0 %v8869_v3  ;;  %v9288_v14 = vld [vmem:[#allocation6 + $0x4d0] sm:$0xf]  ;;  %v8841_v16 = vor.u32 %v12972_v13, %v8840_v11 }
  0x16   :  { %v9541_v12 = vor.u32 %v13147_v10, %v9540_v9  ;;  %v13084_v15 = vld [vmem:[#allocation6 + $0x4e8] sm:$0xf0]  ;;  %6891 = vmatpush.bf16.msra.mxu2 %v9317_v7  ;;  %v9064_v18 = vld [vmem:[#allocation6 + $0x310] sm:$0xf]  ;;  %v8812_v23 = vld [vmem:[#allocation6 + $0x118] sm:$0xf] }
  0x17   :  { %6878 = vmatpush.bf16.msra.mxu1 %v9093_v8  ;;  %v9289_v17 = vor.u32 %v13084_v15, %v9288_v14  ;;  %v13028_v19 = vld [vmem:[#allocation6 + $0x328] sm:$0xf0]  ;;  %v9512_v20 = vld [vmem:[#allocation6 + $0x690] sm:$0xf]  ;;  %v12965_v24 = vld [vmem:[#allocation6 + $0x130] sm:$0xf0] }
  0x18   :  { %6904 = vmatpush.bf16.msra.mxu3 %v9541_v12  ;;  %v9065_v21 = vor.u32 %v13028_v19, %v9064_v18  ;;  %v13140_v22 = vld [vmem:[#allocation6 + $0x6a8] sm:$0xf0]  ;;  %v9260_v26 = vld [vmem:[#allocation6 + $0x498] sm:$0xf]  ;;  %v13077_v27 = vld [vmem:[#allocation6 + $0x4b0] sm:$0xf0]  ;;  %v8813_v29 = vor.u32 %v12965_v24, %v8812_v23 }
  0x19   :  { %v9513_v25 = vor.u32 %v13140_v22, %v9512_v20  ;;  %v9036_v28 = vld [vmem:[#allocation6 + $0x2d8] sm:$0xf]  ;;  %6866 = vmatpush.bf16.msra.mxu0 %v8841_v16  ;;  %v13021_v30 = vld [vmem:[#allocation6 + $0x2f0] sm:$0xf0]  ;;  %v9261_v33 = vor.u32 %v13077_v27, %v9260_v26  ;;  %v8784_v35 = vld [vmem:[#allocation6 + $0xe0] sm:$0xf] }
  0x1a   :  { %v9484_v31 = vld [vmem:[#allocation6 + $0x658] sm:$0xf]  ;;  %v13133_v32 = vld [vmem:[#allocation6 + $0x670] sm:$0xf0]  ;;  %6892 = vmatpush.bf16.msra.mxu2 %v9289_v17  ;;  %v9037_v34 = vor.u32 %v13021_v30, %v9036_v28  ;;  %v12958_v36 = vld [vmem:[#allocation6 + $0xf8] sm:$0xf0] }
  0x1b   :  { %6879 = vmatpush.bf16.msra.mxu1 %v9065_v21  ;;  %v9232_v37 = vld [vmem:[#allocation6 + $0x460] sm:$0xf]  ;;  %v9485_v38 = vor.u32 %v13133_v32, %v9484_v31  ;;  %v13070_v39 = vld [vmem:[#allocation6 + $0x478] sm:$0xf0]  ;;  %v8785_v44 = vor.u32 %v12958_v36, %v8784_v35  ;;  %v8756_v47 = vld [vmem:[#allocation6 + $0xa8] sm:$0xf] }
  0x1c   :  { %6905 = vmatpush.bf16.msra.mxu3 %v9513_v25  ;;  %v9008_v40 = vld [vmem:[#allocation6 + $0x2a0] sm:$0xf]  ;;  %v13014_v41 = vld [vmem:[#allocation6 + $0x2b8] sm:$0xf0]  ;;  %v9233_v45 = vor.u32 %v13070_v39, %v9232_v37  ;;  %v12951_v48 = vld [vmem:[#allocation6 + $0xc0] sm:$0xf0] }
  0x1d   :  { %v9456_v42 = vld [vmem:[#allocation6 + $0x620] sm:$0xf]  ;;  %v13126_v43 = vld [vmem:[#allocation6 + $0x638] sm:$0xf0]  ;;  %6867 = vmatpush.bf16.msra.mxu0 %v8813_v29  ;;  %v9009_v46 = vor.u32 %v13014_v41, %v9008_v40  ;;  %v9204_v49 = vld [vmem:[#allocation6 + $0x428] sm:$0xf]  ;;  %v8757_v56 = vor.u32 %v12951_v48, %v8756_v47 }
  0x1e   :  { %6893 = vmatpush.bf16.msra.mxu2 %v9261_v33  ;;  %v9457_v50 = vor.u32 %v13126_v43, %v9456_v42  ;;  %v13063_v51 = vld [vmem:[#allocation6 + $0x440] sm:$0xf0]  ;;  %v8980_v52 = vld [vmem:[#allocation6 + $0x268] sm:$0xf]  ;;  %v8728_v59 = vld [vmem:[#allocation6 + $0x70] sm:$0xf] }
  0x1f   :  { %6880 = vmatpush.bf16.msra.mxu1 %v9037_v34  ;;  %v13007_v53 = vld [vmem:[#allocation6 + $0x280] sm:$0xf0]  ;;  %v9428_v54 = vld [vmem:[#allocation6 + $0x5e8] sm:$0xf]  ;;  %v9205_v57 = vor.u32 %v13063_v51, %v9204_v49  ;;  %v12944_v60 = vld [vmem:[#allocation6 + $0x88] sm:$0xf0] }
  0x20   :  { %6906 = vmatpush.bf16.msra.mxu3 %v9485_v38  ;;  %v13119_v55 = vld [vmem:[#allocation6 + $0x600] sm:$0xf0]  ;;  %v8981_v58 = vor.u32 %v13007_v53, %v8980_v52  ;;  %v9176_v61 = vld [vmem:[#allocation6 + $0x3f0] sm:$0xf]  ;;  %v13056_v63 = vld [vmem:[#allocation6 + $0x408] sm:$0xf0]  ;;  %v8729_v4 = vor.u32 %v12944_v60, %v8728_v59 }
  0x21   :  { %6868 = vmatpush.bf16.msra.mxu0 %v8785_v44  ;;  %v9429_v62 = vor.u32 %v13119_v55, %v9428_v54  ;;  %v8952_v0 = vld [vmem:[#allocation6 + $0x230] sm:$0xf]  ;;  %v13000_v1 = vld [vmem:[#allocation6 + $0x248] sm:$0xf0]  ;;  %v9177_v5 = vor.u32 %v13056_v63, %v9176_v61  ;;  %v8700_v7 = vld [vmem:[#allocation6 + $0x38] sm:$0xf] }
  0x22   :  { %6894 = vmatpush.bf16.msra.mxu2 %v9233_v45  ;;  %v9400_v2 = vld [vmem:[#allocation6 + $0x5b0] sm:$0xf]  ;;  %v13112_v3 = vld [vmem:[#allocation6 + $0x5c8] sm:$0xf0]  ;;  %v8953_v6 = vor.u32 %v13000_v1, %v8952_v0  ;;  %v12937_v8 = vld [vmem:[#allocation6 + $0x50] sm:$0xf0] }
  0x23   :  { %6881 = vmatpush.bf16.msra.mxu1 %v9009_v46  ;;  %v9148_v9 = vld [vmem:[#allocation6 + $0x3b8] sm:$0xf]  ;;  %v9401_v10 = vor.u32 %v13112_v3, %v9400_v2  ;;  %v13049_v11 = vld [vmem:[#allocation6 + $0x3d0] sm:$0xf0]  ;;  %v8701_v16 = vor.u32 %v12937_v8, %v8700_v7  ;;  %v8672_v17 = vld [vmem:[#allocation6] sm:$0xf] }
  0x24   :  { %6907 = vmatpush.bf16.msra.mxu3 %v9457_v50  ;;  %v8924_v12 = vld [vmem:[#allocation6 + $0x1f8] sm:$0xf]  ;;  %v12993_v13 = vld [vmem:[#allocation6 + $0x210] sm:$0xf0]  ;;  %v12930_v18 = vld [vmem:[#allocation6 + $0x18] sm:$0xf0]  ;;  %v9149_v19 = vor.u32 %v13049_v11, %v9148_v9 }
  0x25   :  { %6869 = vmatpush.bf16.msra.mxu0 %v8757_v56  ;;  %v9372_v14 = vld [vmem:[#allocation6 + $0x578] sm:$0xf]  ;;  %v13105_v15 = vld [vmem:[#allocation6 + $0x590] sm:$0xf0]  ;;  %v8925_v20 = vor.u32 %v12993_v13, %v8924_v12  ;;  %v9120_v21 = vld [vmem:[#allocation6 + $0x380] sm:$0xf]  ;;  %v8673_v31 = vor.u32 %v12930_v18, %v8672_v17 }
  0x26   :  { %6895 = vmatpush.bf16.msra.mxu2 %v9205_v57  ;;  %v13042_v22 = vld [vmem:[#allocation6 + $0x398] sm:$0xf0]  ;;  %v9764_v23 = vld [vmem:[#allocation6 + $0x888] sm:$0xf]  ;;  %v9373_v24 = vor.u32 %v13105_v15, %v9372_v14  ;;  %v13203_v25 = vld [vmem:[#allocation6 + $0x8a0] sm:$0xf0] }
  0x27   :  { %6882 = vmatpush.bf16.msra.mxu1 %v8981_v58  ;;  %v10212_v26 = vld [vmem:[#allocation6 + $0xc08] sm:$0xf]  ;;  %v13315_v27 = vld [vmem:[#allocation6 + $0xc20] sm:$0xf0]  ;;  %v8896_v28 = vld [vmem:[#allocation6 + $0x1c0] sm:$0xf]  ;;  %v9121_v35 = vor.u32 %v13042_v22, %v9120_v21  ;;  %v9765_v36 = vor.u32 %v13203_v25, %v9764_v23 }
  0x28   :  { %6908 = vmatpush.bf16.msra.mxu3 %v9429_v62  ;;  %v12986_v29 = vld [vmem:[#allocation6 + $0x1d8] sm:$0xf0]  ;;  %v9344_v30 = vld [vmem:[#allocation6 + $0x540] sm:$0xf]  ;;  %v9988_v33 = vld [vmem:[#allocation6 + $0xa48] sm:$0xf]  ;;  %v10213_v39 = vor.u32 %v13315_v27, %v10212_v26 }
  0x29   :  { %6870 = vmatpush.bf16.msra.mxu0 %v8729_v4  ;;  %v13098_v32 = vld [vmem:[#allocation6 + $0x558] sm:$0xf0]  ;;  %v13259_v34 = vld [vmem:[#allocation6 + $0xa60] sm:$0xf0]  ;;  %v10436_v37 = vld [vmem:[#allocation6 + $0xdc8] sm:$0xf]  ;;  %v8897_v40 = vor.u32 %v12986_v29, %v8896_v28 }
  0x2a   :  { %6896 = vmatpush.bf16.msra.mxu2 %v9177_v5  ;;  %v13371_v38 = vld [vmem:[#allocation6 + $0xde0] sm:$0xf0]  ;;  %v9736_v41 = vld [vmem:[#allocation6 + $0x850] sm:$0xf]  ;;  %v13196_v42 = vld [vmem:[#allocation6 + $0x868] sm:$0xf0]  ;;  %v9345_v43 = vor.u32 %v13098_v32, %v9344_v30  ;;  %v9989_v44 = vor.u32 %v13259_v34, %v9988_v33 }
  0x2b   :  { %6883 = vmatpush.bf16.msra.mxu1 %v8953_v6  ;;  %v10184_v45 = vld [vmem:[#allocation6 + $0xbd0] sm:$0xf]  ;;  %v13308_v46 = vld [vmem:[#allocation6 + $0xbe8] sm:$0xf0]  ;;  %v10437_v47 = vor.u32 %v13371_v38, %v10436_v37  ;;  %v9737_v50 = vor.u32 %v13196_v42, %v9736_v41  ;;  %v9708_v54 = vld [vmem:[#allocation6 + $0x818] sm:$0xf] }
  0x2c   :  { %6909 = vmatpush.bf16.msra.mxu3 %v9401_v10  ;;  %v9960_v48 = vld [vmem:[#allocation6 + $0xa10] sm:$0xf]  ;;  %v13252_v49 = vld [vmem:[#allocation6 + $0xa28] sm:$0xf0]  ;;  %v10185_v53 = vor.u32 %v13308_v46, %v10184_v45  ;;  %v13189_v55 = vld [vmem:[#allocation6 + $0x830] sm:$0xf0] }
  0x2d   :  { %6871 = vmatpush.bf16.msra.mxu0 %v8701_v16  ;;  %v10408_v51 = vld [vmem:[#allocation6 + $0xd90] sm:$0xf]  ;;  %v13364_v52 = vld [vmem:[#allocation6 + $0xda8] sm:$0xf0]  ;;  %v9961_v56 = vor.u32 %v13252_v49, %v9960_v48  ;;  %v10156_v57 = vld [vmem:[#allocation6 + $0xb98] sm:$0xf]  ;;  %v9709_v1 = vor.u32 %v13189_v55, %v9708_v54 }
  0x2e   :  { %6897 = vmatpush.bf16.msra.mxu2 %v9149_v19  ;;  %v13301_v58 = vld [vmem:[#allocation6 + $0xbb0] sm:$0xf0]  ;;  %v85_v59 = vld [vmem:[#allocation4 + $0x8] sm:$0xff]  ;;  %v10409_v60 = vor.u32 %v13364_v52, %v10408_v51  ;;  %v9932_v61 = vld [vmem:[#allocation6 + $0x9d8] sm:$0xf]  ;;  %vm82_vm0 = vcmask 7168  }
  0x2f   :  { %6884 = vmatpush.bf16.msra.mxu1 %v8925_v20  ;;  %v13245_v62 = vld [vmem:[#allocation6 + $0x9f0] sm:$0xf0]  ;;  %v1338_v63 = vunpack.c.l.b16 %v85_v59  ;;  %v1339_v0 = vunpack.c.h.b16 %v85_v59  ;;  %v10380_v2 = vld [vmem:[#allocation6 + $0xd58] sm:$0xf]  ;;  %v10157_v5 = vor.u32 %v13301_v58, %v10156_v57  ;;  %v9680_v6 = vld [vmem:[#allocation6 + $0x7e0] sm:$0xf] }
  0x30   :  { %6910 = vmatpush.bf16.msra.mxu3 %v9373_v24  ;;  %v13357_v3 = vld [vmem:[#allocation6 + $0xd70] sm:$0xf0]  ;;  %v13182_v7 = vld [vmem:[#allocation6 + $0x7f8] sm:$0xf0]  ;;  %v9933_v11 = vor.u32 %v13245_v62, %v9932_v61  ;;  %v10128_v12 = vld [vmem:[#allocation6 + $0xb60] sm:$0xf] }
  0x31   :  { %6872 = vmatpush.bf16.msra.mxu0 %v8673_v31  ;;  %v84_v4 = vld [vmem:[#allocation4] sm:$0xff]  ;;  %v14163_v8 = vpack.c.b16 %v1338_v63, %v1338_v63  ;;  %v14165_v10 = vpack.c.b16 %v1339_v0, %v1339_v0  ;;  %v13294_v13 = vld [vmem:[#allocation6 + $0xb78] sm:$0xf0]  ;;  %v10381_v15 = vor.u32 %v13357_v3, %v10380_v2  ;;  %v9904_v16 = vld [vmem:[#allocation6 + $0x9a0] sm:$0xf]  ;;  %v9681_v19 = vor.u32 %v13182_v7, %v9680_v6 }
  0x32   :  { %6898 = vmatpush.bf16.msra.mxu2 %v9121_v35  ;;  %v1336_v9 = vunpack.c.l.b16 %v84_v4  ;;  %v1337_v14 = vunpack.c.h.b16 %v84_v4  ;;  %v13238_v17 = vld [vmem:[#allocation6 + $0x9b8] sm:$0xf0]  ;;  %v10352_v20 = vld [vmem:[#allocation6 + $0xd20] sm:$0xf]  ;;  %v10129_v23 = vor.u32 %v13294_v13, %v10128_v12  ;;  %v9652_v24 = vld [vmem:[#allocation6 + $0x7a8] sm:$0xf] }
  0x33   :  { %6885 = vmatpush.bf16.msra.mxu1 %v8897_v40  ;;  %v13350_v21 = vld [vmem:[#allocation6 + $0xd38] sm:$0xf0]  ;;  %v13175_v25 = vld [vmem:[#allocation6 + $0x7c0] sm:$0xf0]  ;;  %v9905_v26 = vor.u32 %v13238_v17, %v9904_v16  ;;  %v10100_v27 = vld [vmem:[#allocation6 + $0xb28] sm:$0xf] }
  0x34   :  { %6911 = vmatpush.bf16.msra.mxu3 %v9345_v43  ;;  %v14168_v18 = vpack.c.b16 %v1336_v9, %v1336_v9  ;;  %v14171_v22 = vpack.c.b16 %v1337_v14, %v1337_v14  ;;  %v13287_v28 = vld [vmem:[#allocation6 + $0xb40] sm:$0xf0]  ;;  %v10353_v29 = vor.u32 %v13350_v21, %v10352_v20  ;;  %v9876_v30 = vld [vmem:[#allocation6 + $0x968] sm:$0xf]  ;;  %v9653_v32 = vor.u32 %v13175_v25, %v9652_v24  ;;  %v13168_v37 = vld [vmem:[#allocation6 + $0x788] sm:$0xf0] }
  0x35   :  { %6917 = vmatpush.bf16.msrb.mxu0 %v9765_v36  ;;  %6899 = vmatmul.bf16.vlgmr.msra.gmra.mxu2 %v14163_v8  ;;  %v13231_v31 = vld [vmem:[#allocation6 + $0x980] sm:$0xf0]  ;;  %v10324_v33 = vld [vmem:[#allocation6 + $0xce8] sm:$0xf]  ;;  %v10101_v35 = vor.u32 %v13287_v28, %v10100_v27  ;;  %v9624_v36 = vld [vmem:[#allocation6 + $0x770] sm:$0xf] }
  0x36   :  { %6943 = vmatpush.bf16.msrb.mxu2 %v10213_v39  ;;  %6873 = vmatmul.bf16.vlgmr.msra.gmra.mxu0 %v14168_v18  ;;  %v13343_v34 = vld [vmem:[#allocation6 + $0xd00] sm:$0xf0]  ;;  %v9877_v38 = vor.u32 %v13231_v31, %v9876_v30  ;;  %v10072_v39 = vld [vmem:[#allocation6 + $0xaf0] sm:$0xf]  ;;  %v13280_v40 = vld [vmem:[#allocation6 + $0xb08] sm:$0xf0] }
  0x37   :  { %6930 = vmatpush.bf16.msrb.mxu1 %v9989_v44  ;;  %6912 = vmatmul.bf16.vlgmr.msra.gmra.mxu3 %v14165_v10  ;;  %v10325_v41 = vor.u32 %v13343_v34, %v10324_v33  ;;  %v9848_v42 = vld [vmem:[#allocation6 + $0x930] sm:$0xf]  ;;  %v13224_v43 = vld [vmem:[#allocation6 + $0x948] sm:$0xf0]  ;;  %v9625_v44 = vor.u32 %v13168_v37, %v9624_v36  ;;  %v9596_v48 = vld [vmem:[#allocation6 + $0x738] sm:$0xf] }
  0x38   :  { %6956 = vmatpush.bf16.msrb.mxu3 %v10437_v47  ;;  %6886 = vmatmul.bf16.vlgmr.msra.gmra.mxu1 %v14171_v22  ;;  %v10296_v45 = vld [vmem:[#allocation6 + $0xcb0] sm:$0xf]  ;;  %v13336_v46 = vld [vmem:[#allocation6 + $0xcc8] sm:$0xf0]  ;;  %v10073_v47 = vor.u32 %v13280_v40, %v10072_v39  ;;  %v13161_v49 = vld [vmem:[#allocation6 + $0x750] sm:$0xf0]  ;;  %v9849_v51 = vor.u32 %v13224_v43, %v9848_v42 }
  0x39   :  { %6918 = vmatpush.bf16.msrb.mxu0 %v9737_v50  ;;  %v10044_v50 = vld [vmem:[#allocation6 + $0xab8] sm:$0xf]  ;;  %v13273_v52 = vld [vmem:[#allocation6 + $0xad0] sm:$0xf0]  ;;  %v10297_v55 = vor.u32 %v13336_v46, %v10296_v45  ;;  %v9568_v58 = vld [vmem:[#allocation6 + $0x700] sm:$0xf]  ;;  %v9597_v59 = vor.u32 %v13161_v49, %v9596_v48 }
  0x3a   :  { %6944 = vmatpush.bf16.msrb.mxu2 %v10185_v53  ;;  %v9820_v53 = vld [vmem:[#allocation6 + $0x8f8] sm:$0xf]  ;;  %v13217_v54 = vld [vmem:[#allocation6 + $0x910] sm:$0xf0]  ;;  %v10016_v61 = vld [vmem:[#allocation6 + $0xa80] sm:$0xf]  ;;  %v10045_v63 = vor.u32 %v13273_v52, %v10044_v50 }
  0x3b   :  { %6931 = vmatpush.bf16.msrb.mxu1 %v9961_v56  ;;  %v10268_v56 = vld [vmem:[#allocation6 + $0xc78] sm:$0xf]  ;;  %v13329_v57 = vld [vmem:[#allocation6 + $0xc90] sm:$0xf0]  ;;  %v13266_v62 = vld [vmem:[#allocation6 + $0xa98] sm:$0xf0]  ;;  %v9821_v3 = vor.u32 %v13217_v54, %v9820_v53 }
  0x3c   :  { %6957 = vmatpush.bf16.msrb.mxu3 %v10409_v60  ;;  %v13154_v60 = vld [vmem:[#allocation6 + $0x718] sm:$0xf0]  ;;  %v10660_v0 = vld [vmem:[#allocation6 + $0xf88] sm:$0xf]  ;;  %v87_v2 = vld [vmem:[#allocation4 + $0x18] sm:$0xff]  ;;  %v10269_v7 = vor.u32 %v13329_v57, %v10268_v56 }
  0x3d   :  { %6919 = vmatpush.bf16.msrb.mxu0 %v9709_v1  ;;  %v13427_v1 = vld [vmem:[#allocation6 + $0xfa0] sm:$0xf0]  ;;  %v11108_v4 = vld [vmem:[#allocation6 + $0x1308] sm:$0xf]  ;;  %v9792_v6 = vld [vmem:[#allocation6 + $0x8c0] sm:$0xf]  ;;  %v9569_v13 = vor.u32 %v13154_v60, %v9568_v58  ;;  %v1342_v17 = vunpack.c.l.b16 %v87_v2  ;;  %v1343_v34 = vunpack.c.h.b16 %v87_v2 }
  0x3e   :  { %6945 = vmatpush.bf16.msrb.mxu2 %v10157_v5  ;;  %v13539_v5 = vld [vmem:[#allocation6 + $0x1320] sm:$0xf0]  ;;  %v13210_v9 = vld [vmem:[#allocation6 + $0x8d8] sm:$0xf0]  ;;  %v10661_v20 = vor.u32 %v13427_v1, %v10660_v0  ;;  %v11332_v21 = vld [vmem:[#allocation6 + $0x14c8] sm:$0xf] }
  0x3f   :  { %6932 = vmatpush.bf16.msrb.mxu1 %v9933_v11  ;;  %v10240_v11 = vld [vmem:[#allocation6 + $0xc40] sm:$0xf]  ;;  %v86_v12 = vld [vmem:[#allocation4 + $0x10] sm:$0xff]  ;;  %v13322_v14 = vld [vmem:[#allocation6 + $0xc58] sm:$0xf0]  ;;  %v11109_v25 = vor.u32 %v13539_v5, %v11108_v4  ;;  %v14175_v36 = vpack.c.b16 %v1342_v17, %v1342_v17  ;;  %v14181_v48 = vpack.c.b16 %v1343_v34, %v1343_v34 }
  0x40   :  { %6958 = vmatpush.bf16.msrb.mxu3 %v10381_v15  ;;  %v10884_v15 = vld [vmem:[#allocation6 + $0x1148] sm:$0xf]  ;;  %v13483_v16 = vld [vmem:[#allocation6 + $0x1160] sm:$0xf0]  ;;  %v1341_v24 = vunpack.c.h.b16 %v86_v12  ;;  %v10632_v27 = vld [vmem:[#allocation6 + $0xf50] sm:$0xf]  ;;  %v10241_v30 = vor.u32 %v13322_v14, %v10240_v11 }
  0x41   :  { %6920 = vmatpush.bf16.msrb.mxu0 %v9681_v19  ;;  %v10017_v19 = vor.u32 %v13266_v62, %v10016_v61  ;;  %v13420_v28 = vld [vmem:[#allocation6 + $0xf68] sm:$0xf0]  ;;  %v10885_v31 = vor.u32 %v13483_v16, %v10884_v15  ;;  %v10856_v37 = vld [vmem:[#allocation6 + $0x1110] sm:$0xf]  ;;  %v10604_v45 = vld [vmem:[#allocation6 + $0xf18] sm:$0xf] }
  0x42   :  { %6946 = vmatpush.bf16.msrb.mxu2 %v10129_v23  ;;  %v13595_v23 = vld [vmem:[#allocation6 + $0x14e0] sm:$0xf0]  ;;  %v13532_v33 = vld [vmem:[#allocation6 + $0x12e8] sm:$0xf0]  ;;  %v10633_v39 = vor.u32 %v13420_v28, %v10632_v27  ;;  %v11304_v40 = vld [vmem:[#allocation6 + $0x1490] sm:$0xf]  ;;  %v14177_v42 = vpack.c.b16 %v1341_v24, %v1341_v24 }
  0x43   :  { %6933 = vmatpush.bf16.msrb.mxu1 %v9905_v26  ;;  %v9793_v26 = vor.u32 %v13210_v9, %v9792_v6  ;;  %v13413_v46 = vld [vmem:[#allocation6 + $0xf30] sm:$0xf0]  ;;  %v11052_v49 = vld [vmem:[#allocation6 + $0x1298] sm:$0xf]  ;;  %v10576_v58 = vld [vmem:[#allocation6 + $0xee0] sm:$0xf] }
  0x44   :  { %6959 = vmatpush.bf16.msrb.mxu3 %v10353_v29  ;;  %v1340_v29 = vunpack.c.l.b16 %v86_v12  ;;  %v13525_v50 = vld [vmem:[#allocation6 + $0x12b0] sm:$0xf0]  ;;  %v10828_v52 = vld [vmem:[#allocation6 + $0x10d8] sm:$0xf]  ;;  %v10605_v54 = vor.u32 %v13413_v46, %v10604_v45  ;;  %v11024_v61 = vld [vmem:[#allocation6 + $0x1260] sm:$0xf] }
  0x45   :  { %6921 = vmatpush.bf16.msrb.mxu0 %v9653_v32  ;;  %v11080_v32 = vld [vmem:[#allocation6 + $0x12d0] sm:$0xf]  ;;  %v13469_v53 = vld [vmem:[#allocation6 + $0x10f0] sm:$0xf0]  ;;  %v11053_v57 = vor.u32 %v13525_v50, %v11052_v49  ;;  %v13518_v62 = vld [vmem:[#allocation6 + $0x1278] sm:$0xf0] }
  0x46   :  { %6947 = vmatpush.bf16.msrb.mxu2 %v10101_v35  ;;  %v11333_v35 = vor.u32 %v13595_v23, %v11332_v21  ;;  %v11081_v43 = vor.u32 %v13532_v33, %v11080_v32  ;;  %v13581_v56 = vld [vmem:[#allocation6 + $0x1470] sm:$0xf0]  ;;  %v10829_v60 = vor.u32 %v13469_v53, %v10828_v52  ;;  %v10800_v0 = vld [vmem:[#allocation6 + $0x10a0] sm:$0xf]  ;;  %v13462_v1 = vld [vmem:[#allocation6 + $0x10b8] sm:$0xf0]  ;;  %v11025_v5 = vor.u32 %v13518_v62, %v11024_v61 }
  0x47   :  { %6934 = vmatpush.bf16.msrb.mxu1 %v9877_v38  ;;  %v13476_v38 = vld [vmem:[#allocation6 + $0x1128] sm:$0xf0]  ;;  %v13574_v4 = vld [vmem:[#allocation6 + $0x1438] sm:$0xf0]  ;;  %v10548_v6 = vld [vmem:[#allocation6 + $0xea8] sm:$0xf]  ;;  %v10801_v9 = vor.u32 %v13462_v1, %v10800_v0 }
  0x48   :  { %6960 = vmatpush.bf16.msrb.mxu3 %v10325_v41  ;;  %v13588_v41 = vld [vmem:[#allocation6 + $0x14a8] sm:$0xf0]  ;;  %v10996_v11 = vld [vmem:[#allocation6 + $0x1228] sm:$0xf]  ;;  %v13511_v12 = vld [vmem:[#allocation6 + $0x1240] sm:$0xf0] }
  0x49   :  { %6922 = vmatpush.bf16.msrb.mxu0 %v9625_v44  ;;  %v14179_v44 = vpack.c.b16 %v1340_v29, %v1340_v29  ;;  %v10772_v14 = vld [vmem:[#allocation6 + $0x1068] sm:$0xf]  ;;  %v13455_v15 = vld [vmem:[#allocation6 + $0x1080] sm:$0xf0]  ;;  %v10520_v21 = vld [vmem:[#allocation6 + $0xe70] sm:$0xf] }
  0x4a   :  { %6948 = vmatpush.bf16.msrb.mxu2 %v10073_v47  ;;  %v10857_v47 = vor.u32 %v13476_v38, %v10856_v37  ;;  %v11220_v17 = vld [vmem:[#allocation6 + $0x13e8] sm:$0xf]  ;;  %v13392_v23 = vld [vmem:[#allocation6 + $0xe88] sm:$0xf0]  ;;  %v10773_v24 = vor.u32 %v13455_v15, %v10772_v14  ;;  %v10744_v28 = vld [vmem:[#allocation6 + $0x1030] sm:$0xf] }
  0x4b   :  { %6935 = vmatpush.bf16.msrb.mxu1 %v9849_v51  ;;  %v11305_v51 = vor.u32 %v13588_v41, %v11304_v40  ;;  %v13448_v29 = vld [vmem:[#allocation6 + $0x1048] sm:$0xf0]  ;;  %v10492_v34 = vld [vmem:[#allocation6 + $0xe38] sm:$0xf]  ;;  %v13553_v46 = vld [vmem:[#allocation6 + $0x1390] sm:$0xf0] }
  0x4c   :  { %6961 = vmatpush.bf16.msrb.mxu3 %v10297_v55  ;;  %v11276_v55 = vld [vmem:[#allocation6 + $0x1458] sm:$0xf]  ;;  %v13560_v32 = vld [vmem:[#allocation6 + $0x13c8] sm:$0xf0]  ;;  %v10745_v37 = vor.u32 %v13448_v29, %v10744_v28  ;;  %v10464_v49 = vld [vmem:[#allocation6 + $0xe00] sm:$0xf] }
  0x4d   :  { %6923 = vmatpush.bf16.msrb.mxu0 %v9597_v59  ;;  %v13406_v59 = vld [vmem:[#allocation6 + $0xef8] sm:$0xf0]  ;;  %v10940_v38 = vld [vmem:[#allocation6 + $0x11b8] sm:$0xf]  ;;  %v10912_v53 = vld [vmem:[#allocation6 + $0x1180] sm:$0xf] }
  0x4e   :  { %6949 = vmatpush.bf16.msrb.mxu2 %v10045_v63  ;;  %v11277_v63 = vor.u32 %v13581_v56, %v11276_v55  ;;  %v10577_v2 = vor.u32 %v13406_v59, %v10576_v58  ;;  %v10716_v40 = vld [vmem:[#allocation6 + $0xff8] sm:$0xf]  ;;  %v13378_v50 = vld [vmem:[#allocation6 + $0xe18] sm:$0xf0]  ;;  %v13651_v58 = vld [vmem:[#allocation6 + $0x16a0] sm:$0xf0] }
  0x4f   :  { %6936 = vmatpush.bf16.msrb.mxu1 %v9821_v3  ;;  %v11248_v3 = vld [vmem:[#allocation6 + $0x1420] sm:$0xf]  ;;  %v11164_v45 = vld [vmem:[#allocation6 + $0x1378] sm:$0xf]  ;;  %v12004_v59 = vld [vmem:[#allocation6 + $0x1a08] sm:$0xf]  ;;  %v10465_v1 = vor.u32 %v13378_v50, %v10464_v49 }
  0x50   :  { %6962 = vmatpush.bf16.msrb.mxu3 %v10269_v7  ;;  %v13399_v7 = vld [vmem:[#allocation6 + $0xec0] sm:$0xf0]  ;;  %v89_v55 = vld [vmem:[#allocation4 + $0x28] sm:$0xff]  ;;  %v12228_v14 = vld [vmem:[#allocation6 + $0x1bc8] sm:$0xf] }
  0x51   :  { %6924 = vmatpush.bf16.msrb.mxu0 %v9569_v13  ;;  %v11249_v13 = vor.u32 %v13574_v4, %v11248_v3  ;;  %v10549_v16 = vor.u32 %v13399_v7, %v10548_v6  ;;  %v13763_v61 = vld [vmem:[#allocation6 + $0x1a20] sm:$0xf0]  ;;  %v10688_v62 = vld [vmem:[#allocation6 + $0xfc0] sm:$0xf]  ;;  %v13546_v3 = vld [vmem:[#allocation6 + $0x1358] sm:$0xf0]  ;;  %v1346_v4 = vunpack.c.l.b16 %v89_v55 }
  0x52   :  { %6950 = vmatpush.bf16.msrb.mxu2 %v10017_v19  ;;  %v13567_v19 = vld [vmem:[#allocation6 + $0x1400] sm:$0xf0]  ;;  %v11780_v7 = vld [vmem:[#allocation6 + $0x1848] sm:$0xf]  ;;  %v11752_v29 = vld [vmem:[#allocation6 + $0x1810] sm:$0xf] }
  0x53   :  { %6937 = vmatpush.bf16.msrb.mxu1 %v9793_v26  ;;  %v13504_v26 = vld [vmem:[#allocation6 + $0x1208] sm:$0xf0]  ;;  %v11221_v27 = vor.u32 %v13567_v19, %v11220_v17  ;;  %v13819_v15 = vld [vmem:[#allocation6 + $0x1be0] sm:$0xf0]  ;;  %v12172_v49 = vld [vmem:[#allocation6 + $0x1b58] sm:$0xf] }
  0x54   :  { %6963 = vmatpush.bf16.msrb.mxu3 %v10241_v30  ;;  %6925 = vmatmul.bf16.vlgmr.msrb.gmra.mxu0 %v14179_v44  ;;  %v10521_v30 = vor.u32 %v13392_v23, %v10520_v21  ;;  %v13644_v21 = vld [vmem:[#allocation6 + $0x1668] sm:$0xf0]  ;;  %v14189_v23 = vpack.c.b16 %v1346_v4, %v1346_v4  ;;  %v13805_v50 = vld [vmem:[#allocation6 + $0x1b70] sm:$0xf0]  ;;  %v13735_v4 = vld [vmem:[#allocation6 + $0x1940] sm:$0xf0] }
  0x55   :  { %6969 = vmatpush.bf16.msra.mxu0 %v10661_v20  ;;  %6951 = vmatmul.bf16.vlgmr.msrb.gmra.mxu2 %v14175_v36  ;;  %v10997_v20 = vor.u32 %v13511_v12, %v10996_v11  ;;  %v12005_v12 = vor.u32 %v13763_v61, %v12004_v59  ;;  %v13686_v59 = vld [vmem:[#allocation6 + $0x17b8] sm:$0xf0]  ;;  %v12144_v61 = vld [vmem:[#allocation6 + $0x1b20] sm:$0xf] }
  0x56   :  { %6995 = vmatpush.bf16.msra.mxu2 %v11109_v25  ;;  %6938 = vmatmul.bf16.vlgmr.msrb.gmra.mxu1 %v14177_v42  ;;  %v10968_v25 = vld [vmem:[#allocation6 + $0x11f0] sm:$0xf] }
  0x57   :  { %6982 = vmatpush.bf16.msra.mxu1 %v10885_v31  ;;  %6964 = vmatmul.bf16.vlgmr.msrb.gmra.mxu3 %v14181_v48  ;;  %v11192_v31 = vld [vmem:[#allocation6 + $0x13b0] sm:$0xf]  ;;  %v10969_v33 = vor.u32 %v13504_v26, %v10968_v25  ;;  %v13756_v26 = vld [vmem:[#allocation6 + $0x19e8] sm:$0xf0] }
  0x58   :  { %7008 = vmatpush.bf16.msra.mxu3 %v11333_v35  ;;  %v13385_v35 = vld [vmem:[#allocation6 + $0xe50] sm:$0xf0]  ;;  %v11193_v41 = vor.u32 %v13560_v32, %v11192_v31  ;;  %v11976_v25 = vld [vmem:[#allocation6 + $0x19d0] sm:$0xf] }
  0x59   :  { %6970 = vmatpush.bf16.msra.mxu0 %v10633_v39  ;;  %v13497_v39 = vld [vmem:[#allocation6 + $0x11d0] sm:$0xf0] }
  0x5a   :  { %6996 = vmatpush.bf16.msra.mxu2 %v11081_v43  ;;  %v13441_v43 = vld [vmem:[#allocation6 + $0x1010] sm:$0xf0]  ;;  %v10941_v52 = vor.u32 %v13497_v39, %v10940_v38 }
  0x5b   :  { %6983 = vmatpush.bf16.msra.mxu1 %v10857_v47  ;;  %v10493_v47 = vor.u32 %v13385_v35, %v10492_v34  ;;  %v10717_v56 = vor.u32 %v13441_v43, %v10716_v40  ;;  %v13812_v34 = vld [vmem:[#allocation6 + $0x1ba8] sm:$0xf0]  ;;  %v11977_v35 = vor.u32 %v13756_v26, %v11976_v25  ;;  %v13637_v38 = vld [vmem:[#allocation6 + $0x1630] sm:$0xf0]  ;;  %v11948_v40 = vld [vmem:[#allocation6 + $0x1998] sm:$0xf] }
  0x5c   :  { %7009 = vmatpush.bf16.msra.mxu3 %v11305_v51  ;;  %v88_v51 = vld [vmem:[#allocation4 + $0x20] sm:$0xff]  ;;  %v13672_v25 = vld [vmem:[#allocation6 + $0x1748] sm:$0xf0] }
  0x5d   :  { %6971 = vmatpush.bf16.msra.mxu0 %v10605_v54  ;;  %v13490_v54 = vld [vmem:[#allocation6 + $0x1198] sm:$0xf0]  ;;  %v1344_v0 = vunpack.c.l.b16 %v88_v51  ;;  %v1345_v11 = vunpack.c.h.b16 %v88_v51 }
  0x5e   :  { %6997 = vmatpush.bf16.msra.mxu2 %v11053_v57  ;;  %v11556_v57 = vld [vmem:[#allocation6 + $0x1688] sm:$0xf] }
  0x5f   :  { %6984 = vmatpush.bf16.msra.mxu1 %v10829_v60  ;;  %v11165_v60 = vor.u32 %v13553_v46, %v11164_v45  ;;  %v11557_v6 = vor.u32 %v13651_v58, %v11556_v57  ;;  %v14187_v19 = vpack.c.b16 %v1344_v0, %v1344_v0  ;;  %v14191_v28 = vpack.c.b16 %v1345_v11, %v1345_v11  ;;  %v11724_v45 = vld [vmem:[#allocation6 + $0x17d8] sm:$0xf]  ;;  %v13693_v46 = vld [vmem:[#allocation6 + $0x17f0] sm:$0xf0]  ;;  %v11696_v58 = vld [vmem:[#allocation6 + $0x17a0] sm:$0xf] }
  0x60   :  { %7010 = vmatpush.bf16.msra.mxu3 %v11277_v63  ;;  %v13434_v63 = vld [vmem:[#allocation6 + $0xfd8] sm:$0xf0]  ;;  %v12173_v57 = vor.u32 %v13805_v50, %v12172_v49  ;;  %v11444_v0 = vld [vmem:[#allocation6 + $0x15a8] sm:$0xf] }
  0x61   :  { %6972 = vmatpush.bf16.msra.mxu0 %v10577_v2  ;;  %v11136_v2 = vld [vmem:[#allocation6 + $0x1340] sm:$0xf]  ;;  %v12116_v11 = vld [vmem:[#allocation6 + $0x1ae8] sm:$0xf] }
  0x62   :  { %6998 = vmatpush.bf16.msra.mxu2 %v11025_v5  ;;  %v10913_v5 = vor.u32 %v13490_v54, %v10912_v53  ;;  %v11137_v17 = vor.u32 %v13546_v3, %v11136_v2  ;;  %v13630_v53 = vld [vmem:[#allocation6 + $0x15f8] sm:$0xf0]  ;;  %v11725_v54 = vor.u32 %v13693_v46, %v11724_v45  ;;  %v11697_v2 = vor.u32 %v13686_v59, %v11696_v58  ;;  %v11892_v3 = vld [vmem:[#allocation6 + $0x1928] sm:$0xf]  ;;  %v11360_v46 = vld [vmem:[#allocation6 + $0x1500] sm:$0xf] }
  0x63   :  { %6985 = vmatpush.bf16.msra.mxu1 %v10801_v9  ;;  %v13707_v9 = vld [vmem:[#allocation6 + $0x1860] sm:$0xf0] }
  0x64   :  { %7011 = vmatpush.bf16.msra.mxu3 %v11249_v13  ;;  %v10689_v13 = vor.u32 %v13434_v63, %v10688_v62  ;;  %v13798_v62 = vld [vmem:[#allocation6 + $0x1b38] sm:$0xf0]  ;;  %v90_v49 = vld [vmem:[#allocation4 + $0x30] sm:$0xff] }
  0x65   :  { %6973 = vmatpush.bf16.msra.mxu0 %v10549_v16  ;;  %v1347_v16 = vunpack.c.h.b16 %v89_v55  ;;  %v11920_v55 = vld [vmem:[#allocation6 + $0x1960] sm:$0xf]  ;;  %v13987_v59 = vld [vmem:[#allocation6 + $0x2120] sm:$0xf0] }
  0x66   :  { %6999 = vmatpush.bf16.msra.mxu2 %v10997_v20  ;;  %v11528_v20 = vld [vmem:[#allocation6 + $0x1650] sm:$0xf] }
  0x67   :  { %6986 = vmatpush.bf16.msra.mxu1 %v10773_v24  ;;  %v11781_v24 = vor.u32 %v13707_v9, %v11780_v7  ;;  %v14193_v31 = vpack.c.b16 %v1347_v16, %v1347_v16  ;;  %v11529_v32 = vor.u32 %v13644_v21, %v11528_v20  ;;  %v13679_v7 = vld [vmem:[#allocation6 + $0x1780] sm:$0xf0]  ;;  %v13728_v20 = vld [vmem:[#allocation6 + $0x1908] sm:$0xf0] }
  0x68   :  { %7012 = vmatpush.bf16.msra.mxu3 %v11221_v27  ;;  %v12229_v27 = vor.u32 %v13819_v15, %v12228_v14  ;;  %v11416_v14 = vld [vmem:[#allocation6 + $0x1570] sm:$0xf]  ;;  %v13616_v15 = vld [vmem:[#allocation6 + $0x1588] sm:$0xf0] }
  0x69   :  { %6974 = vmatpush.bf16.msra.mxu0 %v10521_v30  ;;  %v13700_v30 = vld [vmem:[#allocation6 + $0x1828] sm:$0xf0]  ;;  %v11417_v26 = vor.u32 %v13616_v15, %v11416_v14 }
  0x6a   :  { %7000 = vmatpush.bf16.msra.mxu2 %v10969_v33  ;;  %v12200_v33 = vld [vmem:[#allocation6 + $0x1b90] sm:$0xf]  ;;  %v11753_v39 = vor.u32 %v13700_v30, %v11752_v29  ;;  %v13784_v29 = vld [vmem:[#allocation6 + $0x1ac8] sm:$0xf0] }
  0x6b   :  { %6987 = vmatpush.bf16.msra.mxu1 %v10745_v37  ;;  %v11500_v37 = vld [vmem:[#allocation6 + $0x1618] sm:$0xf]  ;;  %v12201_v43 = vor.u32 %v13812_v34, %v12200_v33  ;;  %v13609_v33 = vld [vmem:[#allocation6 + $0x1550] sm:$0xf0] }
  0x6c   :  { %7013 = vmatpush.bf16.msra.mxu3 %v11193_v41  ;;  %v13749_v41 = vld [vmem:[#allocation6 + $0x19b0] sm:$0xf0] }
  0x6d   :  { %6975 = vmatpush.bf16.msra.mxu0 %v10493_v47  ;;  %v11501_v47 = vor.u32 %v13637_v38, %v11500_v37  ;;  %v11949_v51 = vor.u32 %v13749_v41, %v11948_v40  ;;  %v13721_v37 = vld [vmem:[#allocation6 + $0x18d0] sm:$0xf0]  ;;  %v11612_v38 = vld [vmem:[#allocation6 + $0x16f8] sm:$0xf] }
  0x6e   :  { %7001 = vmatpush.bf16.msra.mxu2 %v10941_v52  ;;  %v11472_v52 = vld [vmem:[#allocation6 + $0x15e0] sm:$0xf]  ;;  %v13665_v40 = vld [vmem:[#allocation6 + $0x1710] sm:$0xf0]  ;;  %v12060_v41 = vld [vmem:[#allocation6 + $0x1a78] sm:$0xf] }
  0x6f   :  { %6988 = vmatpush.bf16.msra.mxu1 %v10717_v56  ;;  %v13742_v56 = vld [vmem:[#allocation6 + $0x1978] sm:$0xf0] }
  0x70   :  { %7014 = vmatpush.bf16.msra.mxu3 %v11165_v60  ;;  %v11473_v60 = vor.u32 %v13630_v53, %v11472_v52  ;;  %v11921_v63 = vor.u32 %v13742_v56, %v11920_v55  ;;  %v13714_v52 = vld [vmem:[#allocation6 + $0x1898] sm:$0xf0]  ;;  %v91_v53 = vld [vmem:[#allocation4 + $0x38] sm:$0xff]  ;;  %v12452_v55 = vld [vmem:[#allocation6 + $0x1d88] sm:$0xf] }
  0x71   :  { %6976 = vmatpush.bf16.msra.mxu0 %v10465_v1  ;;  %v13623_v1 = vld [vmem:[#allocation6 + $0x15c0] sm:$0xf0]  ;;  %v1351_v14 = vunpack.c.h.b16 %v91_v53 }
  0x72   :  { %7002 = vmatpush.bf16.msra.mxu2 %v10913_v5  ;;  %v12145_v5 = vor.u32 %v13798_v62, %v12144_v61  ;;  %v11445_v9 = vor.u32 %v13623_v1, %v11444_v0  ;;  %v13875_v56 = vld [vmem:[#allocation6 + $0x1da0] sm:$0xf0]  ;;  %v13658_v61 = vld [vmem:[#allocation6 + $0x16d8] sm:$0xf0]  ;;  %v1348_v62 = vunpack.c.l.b16 %v90_v49  ;;  %v12032_v0 = vld [vmem:[#allocation6 + $0x1a40] sm:$0xf] }
  0x73   :  { %6989 = vmatpush.bf16.msra.mxu1 %v10689_v13  ;;  %v11893_v13 = vor.u32 %v13735_v4, %v11892_v3  ;;  %v13770_v1 = vld [vmem:[#allocation6 + $0x1a58] sm:$0xf0]  ;;  %v12453_v4 = vor.u32 %v13875_v56, %v12452_v55 }
  0x74   :  { %7015 = vmatpush.bf16.msra.mxu3 %v11137_v17  ;;  %6977 = vmatmul.bf16.vlgmr.msra.gmra.mxu0 %v14187_v19  ;;  %v11864_v17 = vld [vmem:[#allocation6 + $0x18f0] sm:$0xf]  ;;  %v12033_v15 = vor.u32 %v13770_v1, %v12032_v0  ;;  %v13854_v55 = vld [vmem:[#allocation6 + $0x1cf8] sm:$0xf0]  ;;  %v8786_v0 = vld [vmem:[#allocation6 + $0xfc] sm:$0xf0] }
  0x75   :  { %7021 = vmatpush.bf16.msrb.mxu0 %v11557_v6  ;;  %7003 = vmatmul.bf16.vlgmr.msra.gmra.mxu2 %v14189_v23  ;;  %v11668_v6 = vld [vmem:[#allocation6 + $0x1768] sm:$0xf]  ;;  %v11865_v30 = vor.u32 %v13728_v20, %v11864_v17  ;;  %v12424_v17 = vld [vmem:[#allocation6 + $0x1d50] sm:$0xf]  ;;  %v13868_v20 = vld [vmem:[#allocation6 + $0x1d68] sm:$0xf0] }
  0x76   :  { %7047 = vmatpush.bf16.msrb.mxu2 %v12005_v12  ;;  %6990 = vmatmul.bf16.vlgmr.msra.gmra.mxu1 %v14191_v28  ;;  %v13791_v12 = vld [vmem:[#allocation6 + $0x1b00] sm:$0xf0]  ;;  %v11669_v16 = vor.u32 %v13679_v7, %v11668_v6  ;;  %v1349_v7 = vunpack.c.h.b16 %v90_v49  ;;  %v13917_v49 = vld [vmem:[#allocation6 + $0x1ef0] sm:$0xf0] }
  0x77   :  { %7034 = vmatpush.bf16.msrb.mxu1 %v11781_v24  ;;  %7016 = vmatmul.bf16.vlgmr.msra.gmra.mxu3 %v14193_v31  ;;  %v12117_v21 = vor.u32 %v13791_v12, %v12116_v11  ;;  %v11640_v24 = vld [vmem:[#allocation6 + $0x1730] sm:$0xf]  ;;  %v13931_v6 = vld [vmem:[#allocation6 + $0x1f60] sm:$0xf0]  ;;  %v12976_v12 = vld [vmem:[#allocation6 + $0x18c] sm:$0xf] }
  0x78   :  { %7060 = vmatpush.bf16.msrb.mxu3 %v12229_v27  ;;  %v12088_v27 = vld [vmem:[#allocation6 + $0x1ab0] sm:$0xf]  ;;  %v11641_v34 = vor.u32 %v13672_v25, %v11640_v24 }
  0x79   :  { %7022 = vmatpush.bf16.msrb.mxu0 %v11529_v32  ;;  %v11388_v32 = vld [vmem:[#allocation6 + $0x1538] sm:$0xf]  ;;  %v12872_v25 = vld [vmem:[#allocation6 + $0x20d0] sm:$0xf] }
  0x7a   :  { %7048 = vmatpush.bf16.msrb.mxu2 %v11977_v35  ;;  %v11836_v35 = vld [vmem:[#allocation6 + $0x18b8] sm:$0xf]  ;;  %v11389_v45 = vor.u32 %v13609_v33, %v11388_v32  ;;  %v13924_v32 = vld [vmem:[#allocation6 + $0x1f28] sm:$0xf0]  ;;  %v14205_v33 = vpack.c.b16 %v1351_v14, %v1351_v14  ;;  %v8758_v14 = vld [vmem:[#allocation6 + $0xc4] sm:$0xf0] }
  0x7b   :  { %7035 = vmatpush.bf16.msrb.mxu1 %v11753_v39  ;;  %v12089_v39 = vor.u32 %v13784_v29, %v12088_v27  ;;  %v11837_v50 = vor.u32 %v13721_v37, %v11836_v35  ;;  %v14203_v29 = vpack.c.b16 %v1349_v7, %v1349_v7  ;;  %v12969_v35 = vld [vmem:[#allocation6 + $0x154] sm:$0xf]  ;;  %v8842_v37 = vld [vmem:[#allocation6 + $0x16c] sm:$0xf0] }
  0x7c   :  { %7061 = vmatpush.bf16.msrb.mxu3 %v12201_v43  ;;  %v13777_v43 = vld [vmem:[#allocation6 + $0x1a90] sm:$0xf0] }
  0x7d   :  { %7023 = vmatpush.bf16.msrb.mxu0 %v11501_v47  ;;  %v13602_v47 = vld [vmem:[#allocation6 + $0x1518] sm:$0xf0]  ;;  %v12061_v58 = vor.u32 %v13777_v43, %v12060_v41  ;;  %v12844_v43 = vld [vmem:[#allocation6 + $0x2098] sm:$0xf] }
  0x7e   :  { %7049 = vmatpush.bf16.msrb.mxu2 %v11949_v51  ;;  %v11808_v51 = vld [vmem:[#allocation6 + $0x1880] sm:$0xf] }
  0x7f   :  { %7036 = vmatpush.bf16.msrb.mxu1 %v11725_v54  ;;  %v11613_v54 = vor.u32 %v13665_v40, %v11612_v38  ;;  %v11809_v3 = vor.u32 %v13714_v52, %v11808_v51  ;;  %v13861_v40 = vld [vmem:[#allocation6 + $0x1d30] sm:$0xf0]  ;;  %v12962_v51 = vld [vmem:[#allocation6 + $0x11c] sm:$0xf]  ;;  %v8814_v52 = vld [vmem:[#allocation6 + $0x134] sm:$0xf0] }
  0x80   :  { %7062 = vmatpush.bf16.msrb.mxu3 %v12173_v57  ;;  %v12900_v57 = vld [vmem:[#allocation6 + $0x2108] sm:$0xf] }
  0x81   :  { %7024 = vmatpush.bf16.msrb.mxu0 %v11473_v60  ;;  %v11584_v60 = vld [vmem:[#allocation6 + $0x16c0] sm:$0xf] }
  0x82   :  { %7050 = vmatpush.bf16.msrb.mxu2 %v11921_v63  ;;  %v11361_v63 = vor.u32 %v13602_v47, %v11360_v46  ;;  %v11585_v11 = vor.u32 %v13658_v61, %v11584_v60  ;;  %v8845_v46 = vor.u32 %v12969_v35, %v8842_v37  ;;  %v12620_v47 = vld [vmem:[#allocation6 + $0x1ed8] sm:$0xf]  ;;  %v12592_v60 = vld [vmem:[#allocation6 + $0x1ea0] sm:$0xf]  ;;  %v13910_v61 = vld [vmem:[#allocation6 + $0x1eb8] sm:$0xf0] }
  0x83   :  { %7037 = vmatpush.bf16.msrb.mxu1 %v11697_v2  ;;  %v1350_v2 = vunpack.c.l.b16 %v91_v53  ;;  %v12621_v56 = vor.u32 %v13917_v49, %v12620_v47  ;;  %v12941_v35 = vld [vmem:[#allocation6 + $0x74] sm:$0xf]  ;;  %v8730_v37 = vld [vmem:[#allocation6 + $0x8c] sm:$0xf0] }
  0x84   :  { %7063 = vmatpush.bf16.msrb.mxu3 %v12145_v5  ;;  %v12676_v5 = vld [vmem:[#allocation6 + $0x1f48] sm:$0xf]  ;;  %v8733_v47 = vor.u32 %v12941_v35, %v8730_v37  ;;  %v13889_v49 = vld [vmem:[#allocation6 + $0x1e10] sm:$0xf0]  ;;  %v9514_v35 = vld [vmem:[#allocation6 + $0x6ac] sm:$0xf0] }
  0x85   :  { %7025 = vmatpush.bf16.msrb.mxu0 %v11445_v9  ;;  %v12901_v9 = vor.u32 %v13987_v59, %v12900_v57  ;;  %v12677_v24 = vor.u32 %v13931_v6, %v12676_v5  ;;  %v12816_v57 = vld [vmem:[#allocation6 + $0x2060] sm:$0xf]  ;;  %v8817_v59 = vor.u32 %v12962_v51, %v8814_v52  ;;  %v12788_v5 = vld [vmem:[#allocation6 + $0x2028] sm:$0xf]  ;;  %v13959_v6 = vld [vmem:[#allocation6 + $0x2040] sm:$0xf0] }
  0x86   :  { %7051 = vmatpush.bf16.msrb.mxu2 %v11893_v13  ;;  %v8870_v13 = vld [vmem:[#allocation6 + $0x1a4] sm:$0xf0]  ;;  %v8702_v51 = vld [vmem:[#allocation6 + $0x54] sm:$0xf0] }
  0x87   :  { %7038 = vmatpush.bf16.msrb.mxu1 %v11669_v16  ;;  %v14199_v16 = vpack.c.b16 %v1348_v62, %v1348_v62  ;;  %v8873_v27 = vor.u32 %v12976_v12, %v8870_v13  ;;  %v12948_v13 = vld [vmem:[#allocation6 + $0xac] sm:$0xf] }
  0x88   :  { %7064 = vmatpush.bf16.msrb.mxu3 %v12117_v21  ;;  %v14201_v21 = vpack.c.b16 %v1350_v2, %v1350_v2  ;;  %v12340_v2 = vld [vmem:[#allocation6 + $0x1ca8] sm:$0xf] }
  0x89   :  { %7026 = vmatpush.bf16.msrb.mxu0 %v11417_v26  ;;  %v13980_v26 = vld [vmem:[#allocation6 + $0x20e8] sm:$0xf0] }
  0x8a   :  { %7052 = vmatpush.bf16.msrb.mxu2 %v11865_v30  ;;  %v12648_v30 = vld [vmem:[#allocation6 + $0x1f10] sm:$0xf]  ;;  %v12873_v38 = vor.u32 %v13980_v26, %v12872_v25  ;;  %v13952_v26 = vld [vmem:[#allocation6 + $0x2008] sm:$0xf0] }
  0x8b   :  { %7039 = vmatpush.bf16.msrb.mxu1 %v11641_v34  ;;  %v12425_v34 = vor.u32 %v13868_v20, %v12424_v17  ;;  %v12649_v41 = vor.u32 %v13924_v32, %v12648_v30  ;;  %v12312_v17 = vld [vmem:[#allocation6 + $0x1c70] sm:$0xf]  ;;  %v13840_v20 = vld [vmem:[#allocation6 + $0x1c88] sm:$0xf0] }
  0x8c   :  { %7065 = vmatpush.bf16.msrb.mxu3 %v12089_v39  ;;  %v12396_v39 = vld [vmem:[#allocation6 + $0x1d18] sm:$0xf]  ;;  %v12760_v25 = vld [vmem:[#allocation6 + $0x1ff0] sm:$0xf]  ;;  %v13896_v32 = vld [vmem:[#allocation6 + $0x1e48] sm:$0xf0] }
  0x8d   :  { %7027 = vmatpush.bf16.msrb.mxu0 %v11389_v45  ;;  %v13973_v45 = vld [vmem:[#allocation6 + $0x20b0] sm:$0xf0]  ;;  %v12536_v30 = vld [vmem:[#allocation6 + $0x1e30] sm:$0xf] }
  0x8e   :  { %7053 = vmatpush.bf16.msrb.mxu2 %v11837_v50  ;;  %v12397_v50 = vor.u32 %v13861_v40, %v12396_v39  ;;  %v12845_v53 = vor.u32 %v13973_v45, %v12844_v43  ;;  %v12284_v39 = vld [vmem:[#allocation6 + $0x1c38] sm:$0xf]  ;;  %v13833_v40 = vld [vmem:[#allocation6 + $0x1c50] sm:$0xf0] }
  0x8f   :  { %7040 = vmatpush.bf16.msrb.mxu1 %v11613_v54  ;;  %v12368_v54 = vld [vmem:[#allocation6 + $0x1ce0] sm:$0xf]  ;;  %v12732_v43 = vld [vmem:[#allocation6 + $0x1fb8] sm:$0xf]  ;;  %v13945_v45 = vld [vmem:[#allocation6 + $0x1fd0] sm:$0xf0]  ;;  %v12285_v52 = vor.u32 %v13833_v40, %v12284_v39 }
  0x90   :  { %7066 = vmatpush.bf16.msrb.mxu3 %v12061_v58  ;;  %v13966_v58 = vld [vmem:[#allocation6 + $0x2078] sm:$0xf0]  ;;  %v12369_v62 = vor.u32 %v13854_v55, %v12368_v54  ;;  %v92_v55 = vld [vmem:[#allocation4 + $0x40] sm:$0xff] }
  0x91   :  { %7028 = vmatpush.bf16.msrb.mxu0 %v11361_v63  ;;  %v12955_v63 = vld [vmem:[#allocation6 + $0xe4] sm:$0xf]  ;;  %v12817_v1 = vor.u32 %v13966_v58, %v12816_v57  ;;  %v13826_v54 = vld [vmem:[#allocation6 + $0x1c18] sm:$0xf0]  ;;  %v12704_v57 = vld [vmem:[#allocation6 + $0x1f80] sm:$0xf] }
  0x92   :  { %7054 = vmatpush.bf16.msrb.mxu2 %v11809_v3  ;;  %v13847_v3 = vld [vmem:[#allocation6 + $0x1cc0] sm:$0xf0]  ;;  %v8789_v7 = vor.u32 %v12955_v63, %v8786_v0  ;;  %v13938_v58 = vld [vmem:[#allocation6 + $0x1f98] sm:$0xf0]  ;;  %v13144_v63 = vld [vmem:[#allocation6 + $0x6cc] sm:$0xf] }
  0x93   :  { %7041 = vmatpush.bf16.msrb.mxu1 %v11585_v11  ;;  %v13903_v11 = vld [vmem:[#allocation6 + $0x1e80] sm:$0xf0]  ;;  %v12341_v12 = vor.u32 %v13847_v3, %v12340_v2  ;;  %v12480_v2 = vld [vmem:[#allocation6 + $0x1dc0] sm:$0xf]  ;;  %v13882_v3 = vld [vmem:[#allocation6 + $0x1dd8] sm:$0xf0] }
  0x94   :  { %7067 = vmatpush.bf16.msrb.mxu3 %v12033_v15  ;;  %7029 = vmatmul.bf16.vlgmr.msrb.gmra.mxu0 %v14199_v16  ;;  %v12789_v15 = vor.u32 %v13959_v6, %v12788_v5  ;;  %v12927_v6 = vld [vmem:[#allocation6 + $0x4] sm:$0xf] }
  0x95   :  { %7073 = vmatpush.bf16.msra.mxu0 %v12453_v4  ;;  %7055 = vmatmul.bf16.vlgmr.msrb.gmra.mxu2 %v14201_v21  ;;  %v12593_v4 = vor.u32 %v13910_v61, %v12592_v60  ;;  %v13032_v61 = vld [vmem:[#allocation6 + $0x34c] sm:$0xf] }
  0x96   :  { %7099 = vmatpush.bf16.msra.mxu2 %v12901_v9  ;;  %7042 = vmatmul.bf16.vlgmr.msrb.gmra.mxu1 %v14203_v29  ;;  %v12564_v9 = vld [vmem:[#allocation6 + $0x1e68] sm:$0xf] }
  0x97   :  { %7086 = vmatpush.bf16.msra.mxu1 %v12677_v24  ;;  %7068 = vmatmul.bf16.vlgmr.msrb.gmra.mxu3 %v14205_v33  ;;  %v12565_v24 = vor.u32 %v13903_v11, %v12564_v9  ;;  %v12705_v11 = vor.u32 %v13938_v58, %v12704_v57  ;;  %v9262_v57 = vld [vmem:[#allocation6 + $0x4b4] sm:$0xf0] }
  0x98   :  { %7112 = vmatpush.bf16.msra.mxu3 %v8873_v27  ;;  %v8761_v27 = vor.u32 %v12948_v13, %v8758_v14  ;;  %v13088_v13 = vld [vmem:[#allocation6 + $0x50c] sm:$0xf]  ;;  %v9318_v14 = vld [vmem:[#allocation6 + $0x524] sm:$0xf0] }
  0x99   :  { %7074 = vmatpush.bf16.msra.mxu0 %v12425_v34  ;;  %v12313_v34 = vor.u32 %v13840_v20, %v12312_v17  ;;  %v12481_v20 = vor.u32 %v13882_v3, %v12480_v2 }
  0x9a   :  { %7100 = vmatpush.bf16.msra.mxu2 %v12873_v38  ;;  %v12761_v38 = vor.u32 %v13952_v26, %v12760_v25  ;;  %v9766_v25 = vld [vmem:[#allocation6 + $0x8a4] sm:$0xf0]  ;;  %v13025_v26 = vld [vmem:[#allocation6 + $0x314] sm:$0xf] }
  0x9b   :  { %7087 = vmatpush.bf16.msra.mxu1 %v12649_v41  ;;  %v12537_v41 = vor.u32 %v13896_v32, %v12536_v30  ;;  %v9066_v32 = vld [vmem:[#allocation6 + $0x32c] sm:$0xf0] }
  0x9c   :  { %7113 = vmatpush.bf16.msra.mxu3 %v8845_v46  ;;  %v12508_v46 = vld [vmem:[#allocation6 + $0x1df8] sm:$0xf] }
  0x9d   :  { %7075 = vmatpush.bf16.msra.mxu0 %v12397_v50  ;;  %v12934_v50 = vld [vmem:[#allocation6 + $0x3c] sm:$0xf]  ;;  %v12509_v60 = vor.u32 %v13889_v49, %v12508_v46  ;;  %v9738_v49 = vld [vmem:[#allocation6 + $0x86c] sm:$0xf0] }
  0x9e   :  { %7101 = vmatpush.bf16.msra.mxu2 %v12845_v53  ;;  %v12256_v53 = vld [vmem:[#allocation6 + $0x1c00] sm:$0xf]  ;;  %v8705_v0 = vor.u32 %v12934_v50, %v8702_v51  ;;  %v13018_v50 = vld [vmem:[#allocation6 + $0x2dc] sm:$0xf]  ;;  %v9038_v51 = vld [vmem:[#allocation6 + $0x2f4] sm:$0xf0] }
  0x9f   :  { %7088 = vmatpush.bf16.msra.mxu1 %v12621_v56  ;;  %v12733_v56 = vor.u32 %v13945_v45, %v12732_v43  ;;  %v12257_v5 = vor.u32 %v13826_v54, %v12256_v53  ;;  %v9290_v43 = vld [vmem:[#allocation6 + $0x4ec] sm:$0xf0]  ;;  %v9069_v45 = vor.u32 %v13025_v26, %v9066_v32  ;;  %v9486_v53 = vld [vmem:[#allocation6 + $0x674] sm:$0xf0]  ;;  %v9041_v58 = vor.u32 %v13018_v50, %v9038_v51  ;;  %v9206_v26 = vld [vmem:[#allocation6 + $0x444] sm:$0xf0] }
  0xa0   :  { %7114 = vmatpush.bf16.msra.mxu3 %v8817_v59  ;;  %v93_v59 = vld [vmem:[#allocation4 + $0x48] sm:$0xf]  ;;  %v9178_v50 = vld [vmem:[#allocation6 + $0x40c] sm:$0xf0] }
  0xa1   :  { %7076 = vmatpush.bf16.msra.mxu0 %v12369_v62  ;;  %v9094_v62 = vld [vmem:[#allocation6 + $0x364] sm:$0xf0]  ;;  %v1354_v9 = vunpack.c.l.b16 %v93_v59 }
  0xa2   :  { %7102 = vmatpush.bf16.msra.mxu2 %v12817_v1  ;;  %v9542_v1 = vld [vmem:[#allocation6 + $0x6e4] sm:$0xf0] }
  0xa3   :  { %7089 = vmatpush.bf16.msra.mxu1 %v12593_v4  ;;  %v1352_v4 = vunpack.c.l.b16 %v92_v55  ;;  %v9545_v17 = vor.u32 %v13144_v63, %v9542_v1  ;;  %v14213_v37 = vpack.c.b16 %v1354_v9, %v1354_v9  ;;  %v9010_v63 = vld [vmem:[#allocation6 + $0x2bc] sm:$0xf0] }
  0xa4   :  { %7115 = vmatpush.bf16.msra.mxu3 %v8789_v7  ;;  %v8674_v7 = vld [vmem:[#allocation6 + $0x1c] sm:$0xf0] }
  0xa5   :  { %7077 = vmatpush.bf16.msra.mxu0 %v12341_v12  ;;  %v9097_v12 = vor.u32 %v13032_v61, %v9094_v62  ;;  %v14211_v30 = vpack.c.b16 %v1352_v4, %v1352_v4  ;;  %v9710_v61 = vld [vmem:[#allocation6 + $0x834] sm:$0xf0]  ;;  %v13011_v62 = vld [vmem:[#allocation6 + $0x2a4] sm:$0xf]  ;;  %v9458_v1 = vld [vmem:[#allocation6 + $0x63c] sm:$0xf0] }
  0xa6   :  { %7103 = vmatpush.bf16.msra.mxu2 %v12789_v15  ;;  %v1353_v15 = vunpack.c.h.b16 %v92_v55  ;;  %v13067_v4 = vld [vmem:[#allocation6 + $0x464] sm:$0xf] }
  0xa7   :  { %7090 = vmatpush.bf16.msra.mxu1 %v12565_v24  ;;  %v13200_v24 = vld [vmem:[#allocation6 + $0x88c] sm:$0xf] }
  0xa8   :  { %7116 = vmatpush.bf16.msra.mxu3 %v8761_v27  ;;  %v8677_v27 = vor.u32 %v12927_v6, %v8674_v7  ;;  %v9769_v39 = vor.u32 %v13200_v24, %v9766_v25  ;;  %v14215_v40 = vpack.c.b16 %v1353_v15, %v1353_v15  ;;  %v13179_v6 = vld [vmem:[#allocation6 + $0x7e4] sm:$0xf]  ;;  %v9013_v7 = vor.u32 %v13011_v62, %v9010_v63  ;;  %v9430_v15 = vld [vmem:[#allocation6 + $0x604] sm:$0xf0]  ;;  %v13060_v25 = vld [vmem:[#allocation6 + $0x42c] sm:$0xf] }
  0xa9   :  { %7078 = vmatpush.bf16.msra.mxu0 %v12313_v34  ;;  %v13137_v34 = vld [vmem:[#allocation6 + $0x694] sm:$0xf] }
  0xaa   :  { %7104 = vmatpush.bf16.msra.mxu2 %v12761_v38  ;;  %v9321_v38 = vor.u32 %v13088_v13, %v9318_v14  ;;  %v9517_v46 = vor.u32 %v13137_v34, %v9514_v35  ;;  %v8982_v13 = vld [vmem:[#allocation6 + $0x284] sm:$0xf0]  ;;  %v13116_v14 = vld [vmem:[#allocation6 + $0x5ec] sm:$0xf] }
  0xab   :  { %7091 = vmatpush.bf16.msra.mxu1 %v12537_v41  ;;  %v13081_v41 = vld [vmem:[#allocation6 + $0x4d4] sm:$0xf]  ;;  %v9433_v34 = vor.u32 %v13116_v14, %v9430_v15  ;;  %v9654_v35 = vld [vmem:[#allocation6 + $0x7c4] sm:$0xf0]  ;;  %v13095_v14 = vld [vmem:[#allocation6 + $0x544] sm:$0xf] }
  0xac   :  { %7117 = vmatpush.bf16.msra.mxu3 %v8733_v47  ;;  %v13193_v47 = vld [vmem:[#allocation6 + $0x854] sm:$0xf]  ;;  %v9293_v54 = vor.u32 %v13081_v41, %v9290_v43  ;;  %v8954_v41 = vld [vmem:[#allocation6 + $0x24c] sm:$0xf0]  ;;  %v9346_v15 = vld [vmem:[#allocation6 + $0x55c] sm:$0xf0] }
  0xad   :  { %7079 = vmatpush.bf16.msra.mxu0 %v12285_v52  ;;  %v13130_v52 = vld [vmem:[#allocation6 + $0x65c] sm:$0xf]  ;;  %v9741_v55 = vor.u32 %v13193_v47, %v9738_v49  ;;  %v13109_v43 = vld [vmem:[#allocation6 + $0x5b4] sm:$0xf] }
  0xae   :  { %7105 = vmatpush.bf16.msra.mxu2 %v12733_v56  ;;  %v13074_v56 = vld [vmem:[#allocation6 + $0x49c] sm:$0xf]  ;;  %v9489_v59 = vor.u32 %v13130_v52, %v9486_v53  ;;  %v13053_v49 = vld [vmem:[#allocation6 + $0x3f4] sm:$0xf] }
  0xaf   :  { %7092 = vmatpush.bf16.msra.mxu1 %v12509_v60  ;;  %v13186_v60 = vld [vmem:[#allocation6 + $0x81c] sm:$0xf]  ;;  %v9265_v2 = vor.u32 %v13074_v56, %v9262_v57  ;;  %v9181_v62 = vor.u32 %v13053_v49, %v9178_v50 }
  0xb0   :  { %7118 = vmatpush.bf16.msra.mxu3 %v8705_v0  ;;  %v13123_v0 = vld [vmem:[#allocation6 + $0x624] sm:$0xf]  ;;  %v9713_v3 = vor.u32 %v13186_v60, %v9710_v61  ;;  %v12990_v56 = vld [vmem:[#allocation6 + $0x1fc] sm:$0xf]  ;;  %v9374_v60 = vld [vmem:[#allocation6 + $0x594] sm:$0xf0] }
  0xb1   :  { %7080 = vmatpush.bf16.msra.mxu0 %v12257_v5  ;;  %v9234_v5 = vld [vmem:[#allocation6 + $0x47c] sm:$0xf0]  ;;  %v9461_v9 = vor.u32 %v13123_v0, %v9458_v1  ;;  %v13046_v1 = vld [vmem:[#allocation6 + $0x3bc] sm:$0xf] }
  0xb2   :  { %7106 = vmatpush.bf16.msra.mxu2 %v12705_v11  ;;  %v9682_v11 = vld [vmem:[#allocation6 + $0x7fc] sm:$0xf0] }
  0xb3   :  { %7093 = vmatpush.bf16.msra.mxu1 %v12481_v20  ;;  %v9237_v20 = vor.u32 %v13067_v4, %v9234_v5  ;;  %v9685_v24 = vor.u32 %v13179_v6, %v9682_v11  ;;  %v6874_v51 = vpop.f32.mrf.mxu0  ;;  %v8898_v11 = vld [vmem:[#allocation6 + $0x1dc] sm:$0xf0] }
  0xb4   :  { %7119 = vmatpush.bf16.msra.mxu3 %v8677_v27  ;;  %7081 = vmatmul.bf16.vlgmr.msra.gmra.mxu0 %v14211_v30  ;;  %v13172_v27 = vld [vmem:[#allocation6 + $0x7ac] sm:$0xf] }
  0xb5   :  { %7125 = vmatpush.bf16.msrb.mxu0 %v9097_v12  ;;  %7107 = vmatmul.bf16.vlgmr.msra.gmra.mxu2 %v14213_v37  ;;  %v13004_v12 = vld [vmem:[#allocation6 + $0x26c] sm:$0xf]  ;;  %v9657_v47 = vor.u32 %v13172_v27, %v9654_v35  ;;  %v6887_v61 = vpop.f32.mrf.mxu1  ;;  %v9122_v35 = vld [vmem:[#allocation6 + $0x39c] sm:$0xf0] }
  0xb6   :  { %7151 = vmatpush.bf16.msrb.mxu2 %v9545_v17  ;;  %7094 = vmatmul.bf16.vlgmr.msra.gmra.mxu1 %v14215_v40  ;;  %v1310_v17 = vld [vmem:[#allocation8] sm:$0xff]  ;;  %v8985_v32 = vor.u32 %v13004_v12, %v8982_v13 }
  0xb7   :  { %7138 = vmatpush.bf16.msrb.mxu1 %v9321_v38  ;;  %7120 = vmatmul.bf16.vlgmr.msra.gmra.mxu3 %v14168_v18  ;;  %v12997_v38 = vld [vmem:[#allocation6 + $0x234] sm:$0xf] }
  0xb8   :  { %7164 = vmatpush.bf16.msrb.mxu3 %v9769_v39  ;;  %v1312_v39 = vperm.slane %v1310_v17, 0  ;;  %v8957_v52 = vor.u32 %v12997_v38, %v8954_v41  ;;  %v6900_v4 = vpop.f32.mrf.mxu2  ;;  %v13256_v17 = vld [vmem:[#allocation6 + $0xa4c] sm:$0xf]  ;;  %v13151_v38 = vld [vmem:[#allocation6 + $0x704] sm:$0xf] }
  0xb9   :  { %7126 = vmatpush.bf16.msrb.mxu0 %v9069_v45  ;;  %v9402_v45 = vld [vmem:[#allocation6 + $0x5cc] sm:$0xf0] }
  0xba   :  { %7152 = vmatpush.bf16.msrb.mxu2 %v9517_v46  ;;  %v9209_v46 = vor.u32 %v13060_v25, %v9206_v26  ;;  %v9405_v53 = vor.u32 %v13109_v43, %v9402_v45  ;;  %v6875_v57 = vadd.f32 %v6874_v51, %v1312_v39  ;;  %v6913_v13 = vpop.f32.mrf.mxu3  ;;  %v13368_v25 = vld [vmem:[#allocation6 + $0xdcc] sm:$0xf]  ;;  %v10438_v26 = vld [vmem:[#allocation6 + $0xde4] sm:$0xf0]  ;;  %v9349_v43 = vor.u32 %v13095_v14, %v9346_v15  ;;  %v9570_v45 = vld [vmem:[#allocation6 + $0x71c] sm:$0xf0] }
  0xbb   :  { %7139 = vmatpush.bf16.msrb.mxu1 %v9293_v54  ;;  %v13165_v54 = vld [vmem:[#allocation6 + $0x774] sm:$0xf]  ;;  %v6876_v39 = vpop.f32.mrf.mxu0  ;;  %v10441_v50 = vor.u32 %v13368_v25, %v10438_v26  ;;  %v13424_v51 = vld [vmem:[#allocation6 + $0xf8c] sm:$0xf]  ;;  %v13298_v14 = vld [vmem:[#allocation6 + $0xb9c] sm:$0xf] }
  0xbc   :  { %7165 = vmatpush.bf16.msrb.mxu3 %v9741_v55  ;;  %v9626_v55 = vld [vmem:[#allocation6 + $0x78c] sm:$0xf0]  ;;  %v6888_v63 = vadd.f32 %v6887_v61, %v6875_v57  ;;  %v13361_v57 = vld [vmem:[#allocation6 + $0xd94] sm:$0xf]  ;;  %v10158_v15 = vld [vmem:[#allocation6 + $0xbb4] sm:$0xf0] }
  0xbd   :  { %7127 = vmatpush.bf16.msrb.mxu0 %v9041_v58  ;;  %v8926_v58 = vld [vmem:[#allocation6 + $0x214] sm:$0xf0]  ;;  %v9629_v0 = vor.u32 %v13165_v54, %v9626_v55  ;;  %v6889_v54 = vpop.f32.mrf.mxu1  ;;  %v13235_v26 = vld [vmem:[#allocation6 + $0x9a4] sm:$0xf] }
  0xbe   :  { %7153 = vmatpush.bf16.msrb.mxu2 %v9489_v59  ;;  %v13102_v59 = vld [vmem:[#allocation6 + $0x57c] sm:$0xf]  ;;  %v8929_v5 = vor.u32 %v12990_v56, %v8926_v58  ;;  %v6901_v12 = vadd.f32 %v6900_v4, %v6888_v63  ;;  %v9962_v56 = vld [vmem:[#allocation6 + $0xa2c] sm:$0xf0]  ;;  %v13305_v63 = vld [vmem:[#allocation6 + $0xbd4] sm:$0xf] }
  0xbf   :  { %7140 = vmatpush.bf16.msrb.mxu1 %v9265_v2  ;;  %v9150_v2 = vld [vmem:[#allocation6 + $0x3d4] sm:$0xf0]  ;;  %v9377_v6 = vor.u32 %v13102_v59, %v9374_v60  ;;  %v10410_v58 = vld [vmem:[#allocation6 + $0xdac] sm:$0xf0]  ;;  %v9573_v59 = vor.u32 %v13151_v38, %v9570_v45  ;;  %v13417_v4 = vld [vmem:[#allocation6 + $0xf54] sm:$0xf]  ;;  %v10161_v38 = vor.u32 %v13298_v14, %v10158_v15 }
  0xc0   :  { %7166 = vmatpush.bf16.msrb.mxu3 %v9713_v3  ;;  %v13158_v3 = vld [vmem:[#allocation6 + $0x73c] sm:$0xf]  ;;  %v14221_v27 = vadd.f32 %v6913_v13, %v6901_v12  ;;  %v6902_v61 = vpop.f32.mrf.mxu2  ;;  %v10606_v25 = vld [vmem:[#allocation6 + $0xf34] sm:$0xf0] }
  0xc1   :  { %7128 = vmatpush.bf16.msrb.mxu0 %v9013_v7  ;;  %v9598_v7 = vld [vmem:[#allocation6 + $0x754] sm:$0xf0] }
  0xc2   :  { %7154 = vmatpush.bf16.msrb.mxu2 %v9461_v9  ;;  %v12983_v9 = vld [vmem:[#allocation6 + $0x1c4] sm:$0xf] }
  0xc3   :  { %7141 = vmatpush.bf16.msrb.mxu1 %v9237_v20  ;;  %v9153_v20 = vor.u32 %v13046_v1, %v9150_v2  ;;  %v8901_v41 = vor.u32 %v12983_v9, %v8898_v11  ;;  %v6915_v1 = vpop.f32.mrf.mxu3  ;;  %v13354_v9 = vld [vmem:[#allocation6 + $0xd5c] sm:$0xf]  ;;  %v10382_v11 = vld [vmem:[#allocation6 + $0xd74] sm:$0xf0] }
  0xc4   :  { %7167 = vmatpush.bf16.msrb.mxu3 %v9685_v24  ;;  %v9990_v24 = vld [vmem:[#allocation6 + $0xa64] sm:$0xf0]  ;;  %v13221_v1 = vld [vmem:[#allocation6 + $0x934] sm:$0xf] }
  0xc5   :  { %7129 = vmatpush.bf16.msrb.mxu0 %v8985_v32  ;;  %v9601_v32 = vor.u32 %v13158_v3, %v9598_v7  ;;  %v9993_v49 = vor.u32 %v13256_v17, %v9990_v24  ;;  %v10413_v3 = vor.u32 %v13361_v57, %v10410_v58  ;;  %v9934_v7 = vld [vmem:[#allocation6 + $0x9f4] sm:$0xf0]  ;;  %v13410_v24 = vld [vmem:[#allocation6 + $0xf1c] sm:$0xf]  ;;  %v13284_v58 = vld [vmem:[#allocation6 + $0xb2c] sm:$0xf] }
  0xc6   :  { %7155 = vmatpush.bf16.msrb.mxu2 %v9433_v34  ;;  %v13039_v34 = vld [vmem:[#allocation6 + $0x384] sm:$0xf]  ;;  %v10609_v39 = vor.u32 %v13410_v24, %v10606_v25  ;;  %v9822_v24 = vld [vmem:[#allocation6 + $0x914] sm:$0xf0]  ;;  %v13326_v25 = vld [vmem:[#allocation6 + $0xc7c] sm:$0xf] }
  0xc7   :  { %7142 = vmatpush.bf16.msrb.mxu1 %v9209_v46  ;;  %v13312_v46 = vld [vmem:[#allocation6 + $0xc0c] sm:$0xf]  ;;  %v9125_v55 = vor.u32 %v13039_v34, %v9122_v35  ;;  %v13347_v34 = vld [vmem:[#allocation6 + $0xd24] sm:$0xf]  ;;  %v10354_v35 = vld [vmem:[#allocation6 + $0xd3c] sm:$0xf0] }
  0xc8   :  { %7168 = vmatpush.bf16.msrb.mxu3 %v9657_v47  ;;  %v10214_v47 = vld [vmem:[#allocation6 + $0xc24] sm:$0xf0] }
  0xc9   :  { %7130 = vmatpush.bf16.msrb.mxu0 %v8957_v52  ;;  %v10662_v52 = vld [vmem:[#allocation6 + $0xfa4] sm:$0xf0]  ;;  %v10217_v60 = vor.u32 %v13312_v46, %v10214_v47  ;;  %v10357_v46 = vor.u32 %v13347_v34, %v10354_v35  ;;  %v13403_v47 = vld [vmem:[#allocation6 + $0xee4] sm:$0xf] }
  0xca   :  { %7156 = vmatpush.bf16.msrb.mxu2 %v9405_v53  ;;  %v13249_v53 = vld [vmem:[#allocation6 + $0xa14] sm:$0xf] }
  0xcb   :  { %7143 = vmatpush.bf16.msrb.mxu1 %v9181_v62  ;;  %v10665_v62 = vor.u32 %v13424_v51, %v10662_v52  ;;  %v9965_v2 = vor.u32 %v13249_v53, %v9962_v56  ;;  %v9878_v51 = vld [vmem:[#allocation6 + $0x984] sm:$0xf0]  ;;  %v13340_v52 = vld [vmem:[#allocation6 + $0xcec] sm:$0xf] }
  0xcc   :  { %7169 = vmatpush.bf16.msrb.mxu3 %v9629_v0  ;;  %v10186_v0 = vld [vmem:[#allocation6 + $0xbec] sm:$0xf0]  ;;  %v10326_v53 = vld [vmem:[#allocation6 + $0xd04] sm:$0xf0] }
  0xcd   :  { %7131 = vmatpush.bf16.msrb.mxu0 %v8929_v5  ;;  %v10634_v5 = vld [vmem:[#allocation6 + $0xf6c] sm:$0xf0]  ;;  %v10189_v12 = vor.u32 %v13305_v63, %v10186_v0  ;;  %v10329_v61 = vor.u32 %v13340_v52, %v10326_v53  ;;  %v13396_v63 = vld [vmem:[#allocation6 + $0xeac] sm:$0xf]  ;;  %v10550_v0 = vld [vmem:[#allocation6 + $0xec4] sm:$0xf0] }
  0xce   :  { %7157 = vmatpush.bf16.msrb.mxu2 %v9377_v6  ;;  %v13242_v6 = vld [vmem:[#allocation6 + $0x9dc] sm:$0xf]  ;;  %v10637_v13 = vor.u32 %v13417_v4, %v10634_v5  ;;  %v10298_v4 = vld [vmem:[#allocation6 + $0xccc] sm:$0xf0]  ;;  %v9794_v52 = vld [vmem:[#allocation6 + $0x8dc] sm:$0xf0] }
  0xcf   :  { %7144 = vmatpush.bf16.msrb.mxu1 %v9153_v20  ;;  %v9937_v17 = vor.u32 %v13242_v6, %v9934_v7  ;;  %v10385_v20 = vor.u32 %v13354_v9, %v10382_v11  ;;  %v10553_v7 = vor.u32 %v13396_v63, %v10550_v0  ;;  %v13277_v11 = vld [vmem:[#allocation6 + $0xaf4] sm:$0xf]  ;;  %v13319_v53 = vld [vmem:[#allocation6 + $0xc44] sm:$0xf] }
  0xd0   :  { %7170 = vmatpush.bf16.msrb.mxu3 %v9601_v32  ;;  %v9906_v32 = vld [vmem:[#allocation6 + $0x9bc] sm:$0xf0]  ;;  %v13375_v63 = vld [vmem:[#allocation6 + $0xe04] sm:$0xf] }
  0xd1   :  { %7132 = vmatpush.bf16.msrb.mxu0 %v8901_v41  ;;  %v13291_v41 = vld [vmem:[#allocation6 + $0xb64] sm:$0xf]  ;;  %v9909_v45 = vor.u32 %v13235_v26, %v9906_v32  ;;  %v6926_v57 = vpop.f32.mrf.mxu0  ;;  %v10270_v26 = vld [vmem:[#allocation6 + $0xc94] sm:$0xf0] }
  0xd2   :  { %7158 = vmatpush.bf16.msrb.mxu2 %v9349_v43  ;;  %v10130_v43 = vld [vmem:[#allocation6 + $0xb7c] sm:$0xf0] }
  0xd3   :  { %7145 = vmatpush.bf16.msrb.mxu1 %v9125_v55  ;;  %v10133_v54 = vor.u32 %v13291_v41, %v10130_v43  ;;  %v6939_v55 = vpop.f32.mrf.mxu1  ;;  %v13270_v41 = vld [vmem:[#allocation6 + $0xabc] sm:$0xf]  ;;  %v10046_v43 = vld [vmem:[#allocation6 + $0xad4] sm:$0xf0] }
  0xd4   :  { %7171 = vmatpush.bf16.msrb.mxu3 %v9573_v59  ;;  %7133 = vmatmul.bf16.vlgmr.msrb.gmra.mxu0 %v14171_v22  ;;  %v10102_v59 = vld [vmem:[#allocation6 + $0xb44] sm:$0xf0] }
  0xd5   :  { %7177 = vmatpush.bf16.msra.mxu0 %v9993_v49  ;;  %7159 = vmatmul.bf16.vlgmr.msrb.gmra.mxu2 %v14165_v10  ;;  %v10578_v49 = vld [vmem:[#allocation6 + $0xefc] sm:$0xf0]  ;;  %v10105_v5 = vor.u32 %v13284_v58, %v10102_v59  ;;  %v13592_v58 = vld [vmem:[#allocation6 + $0x14cc] sm:$0xf]  ;;  %v11334_v59 = vld [vmem:[#allocation6 + $0x14e4] sm:$0xf0] }
  0xd6   :  { %7203 = vmatpush.bf16.msra.mxu2 %v10441_v50  ;;  %7146 = vmatmul.bf16.vlgmr.msrb.gmra.mxu1 %v14163_v8  ;;  %v13228_v50 = vld [vmem:[#allocation6 + $0x96c] sm:$0xf]  ;;  %v10581_v56 = vor.u32 %v13403_v47, %v10578_v49  ;;  %v10273_v49 = vor.u32 %v13326_v25, %v10270_v26  ;;  %v13529_v26 = vld [vmem:[#allocation6 + $0x12d4] sm:$0xf] }
  0xd7   :  { %7190 = vmatpush.bf16.msra.mxu1 %v10217_v60  ;;  %7172 = vmatmul.bf16.vlgmr.msrb.gmra.mxu3 %v14179_v44  ;;  %v9881_v60 = vor.u32 %v13228_v50, %v9878_v51  ;;  %v10494_v50 = vld [vmem:[#allocation6 + $0xe54] sm:$0xf0]  ;;  %v13207_v51 = vld [vmem:[#allocation6 + $0x8c4] sm:$0xf] }
  0xd8   :  { %7216 = vmatpush.bf16.msra.mxu3 %v10665_v62  ;;  %v6927_v62 = vadd.f32 %v6926_v57, %v14221_v27  ;;  %v6952_v9 = vpop.f32.mrf.mxu2  ;;  %v13389_v27 = vld [vmem:[#allocation6 + $0xe74] sm:$0xf]  ;;  %v10886_v57 = vld [vmem:[#allocation6 + $0x1164] sm:$0xf0] }
  0xd9   :  { %7178 = vmatpush.bf16.msra.mxu0 %v9965_v2  ;;  %v9850_v2 = vld [vmem:[#allocation6 + $0x94c] sm:$0xf0] }
  0xda   :  { %7204 = vmatpush.bf16.msra.mxu2 %v10413_v3  ;;  %v13333_v3 = vld [vmem:[#allocation6 + $0xcb4] sm:$0xf]  ;;  %v6940_v6 = vadd.f32 %v6939_v55, %v6927_v62  ;;  %v6965_v34 = vpop.f32.mrf.mxu3  ;;  %v13480_v55 = vld [vmem:[#allocation6 + $0x114c] sm:$0xf]  ;;  %v10018_v62 = vld [vmem:[#allocation6 + $0xa9c] sm:$0xf0] }
  0xdb   :  { %7191 = vmatpush.bf16.msra.mxu1 %v10189_v12  ;;  %v10074_v12 = vld [vmem:[#allocation6 + $0xb0c] sm:$0xf0]  ;;  %v10301_v14 = vor.u32 %v13333_v3, %v10298_v4  ;;  %v6941_v35 = vpop.f32.mrf.mxu1  ;;  %v10466_v3 = vld [vmem:[#allocation6 + $0xe1c] sm:$0xf0]  ;;  %v13536_v4 = vld [vmem:[#allocation6 + $0x130c] sm:$0xf] }
  0xdc   :  { %7217 = vmatpush.bf16.msra.mxu3 %v10637_v13  ;;  %v9853_v13 = vor.u32 %v13221_v1, %v9850_v2  ;;  %v6953_v15 = vadd.f32 %v6952_v9, %v6940_v6  ;;  %v10077_v32 = vor.u32 %v13277_v11, %v10074_v12  ;;  %v9797_v1 = vor.u32 %v13207_v51, %v9794_v52  ;;  %v13648_v9 = vld [vmem:[#allocation6 + $0x168c] sm:$0xf]  ;;  %v11558_v11 = vld [vmem:[#allocation6 + $0x16a4] sm:$0xf0]  ;;  %v13473_v12 = vld [vmem:[#allocation6 + $0x1114] sm:$0xf] }
  0xdd   :  { %7179 = vmatpush.bf16.msra.mxu0 %v9937_v17  ;;  %v10522_v17 = vld [vmem:[#allocation6 + $0xe8c] sm:$0xf0]  ;;  %v10889_v6 = vor.u32 %v13480_v55, %v10886_v57  ;;  %v11561_v25 = vor.u32 %v13648_v9, %v11558_v11  ;;  %v13522_v51 = vld [vmem:[#allocation6 + $0x129c] sm:$0xf]  ;;  %v11054_v52 = vld [vmem:[#allocation6 + $0x12b4] sm:$0xf0] }
  0xde   :  { %7205 = vmatpush.bf16.msra.mxu2 %v10385_v20  ;;  %v13214_v20 = vld [vmem:[#allocation6 + $0x8fc] sm:$0xf]  ;;  %v13459_v57 = vld [vmem:[#allocation6 + $0x10a4] sm:$0xf]  ;;  %v10774_v9 = vld [vmem:[#allocation6 + $0x1084] sm:$0xf0] }
  0xdf   :  { %7192 = vmatpush.bf16.msra.mxu1 %v10161_v38  ;;  %v10525_v38 = vor.u32 %v13389_v27, %v10522_v17  ;;  %v9825_v47 = vor.u32 %v13214_v20, %v9822_v24  ;;  %v11306_v27 = vld [vmem:[#allocation6 + $0x14ac] sm:$0xf0]  ;;  %v10469_v20 = vor.u32 %v13375_v63, %v10466_v3  ;;  %v13634_v55 = vld [vmem:[#allocation6 + $0x161c] sm:$0xf]  ;;  %v13515_v63 = vld [vmem:[#allocation6 + $0x1264] sm:$0xf] }
  0xe0   :  { %7218 = vmatpush.bf16.msra.mxu3 %v10609_v39  ;;  %v14228_v39 = vadd.f32 %v6965_v34, %v6953_v15  ;;  %v6954_v0 = vpop.f32.mrf.mxu2  ;;  %v13585_v15 = vld [vmem:[#allocation6 + $0x1494] sm:$0xf]  ;;  %v13564_v11 = vld [vmem:[#allocation6 + $0x13ec] sm:$0xf] }
  0xe1   :  { %7180 = vmatpush.bf16.msra.mxu0 %v9909_v45  ;;  %v13382_v45 = vld [vmem:[#allocation6 + $0xe3c] sm:$0xf]  ;;  %v11309_v35 = vor.u32 %v13585_v15, %v11306_v27  ;;  %v11026_v0 = vld [vmem:[#allocation6 + $0x127c] sm:$0xf0] }
  0xe2   :  { %7206 = vmatpush.bf16.msra.mxu2 %v10357_v46  ;;  %v6928_v46 = vpop.f32.mrf.mxu0  ;;  %v6967_v17 = vpop.f32.mrf.mxu3 }
  0xe3   :  { %7193 = vmatpush.bf16.msra.mxu1 %v10133_v54  ;;  %v10242_v54 = vld [vmem:[#allocation6 + $0xc5c] sm:$0xf0]  ;;  %v13578_v46 = vld [vmem:[#allocation6 + $0x145c] sm:$0xf]  ;;  %v13508_v17 = vld [vmem:[#allocation6 + $0x122c] sm:$0xf] }
  0xe4   :  { %7219 = vmatpush.bf16.msra.mxu3 %v10581_v56  ;;  %v10049_v56 = vor.u32 %v13270_v41, %v10046_v43  ;;  %v10245_v2 = vor.u32 %v13319_v53, %v10242_v54  ;;  %v11530_v41 = vld [vmem:[#allocation6 + $0x166c] sm:$0xf0]  ;;  %v13466_v43 = vld [vmem:[#allocation6 + $0x10dc] sm:$0xf] }
  0xe5   :  { %7181 = vmatpush.bf16.msra.mxu0 %v9881_v60  ;;  %v10497_v60 = vor.u32 %v13382_v45, %v10494_v50  ;;  %v10830_v45 = vld [vmem:[#allocation6 + $0x10f4] sm:$0xf0] }
  0xe6   :  { %7207 = vmatpush.bf16.msra.mxu2 %v10329_v61  ;;  %v13263_v61 = vld [vmem:[#allocation6 + $0xa84] sm:$0xf]  ;;  %v10833_v53 = vor.u32 %v13466_v43, %v10830_v45 }
  0xe7   :  { %7194 = vmatpush.bf16.msra.mxu1 %v10105_v5  ;;  %v11110_v5 = vld [vmem:[#allocation6 + $0x1324] sm:$0xf0] }
  0xe8   :  { %7220 = vmatpush.bf16.msra.mxu3 %v10553_v7  ;;  %v11337_v7 = vor.u32 %v13592_v58, %v11334_v59  ;;  %v11113_v24 = vor.u32 %v13536_v4, %v11110_v5  ;;  %v10802_v58 = vld [vmem:[#allocation6 + $0x10bc] sm:$0xf0]  ;;  %v13571_v59 = vld [vmem:[#allocation6 + $0x1424] sm:$0xf] }
  0xe9   :  { %7182 = vmatpush.bf16.msra.mxu0 %v9853_v13  ;;  %v10021_v13 = vor.u32 %v13263_v61, %v10018_v62  ;;  %v11057_v61 = vor.u32 %v13522_v51, %v11054_v52  ;;  %v13627_v4 = vld [vmem:[#allocation6 + $0x15e4] sm:$0xf]  ;;  %v11474_v5 = vld [vmem:[#allocation6 + $0x15fc] sm:$0xf0]  ;;  %v13613_v52 = vld [vmem:[#allocation6 + $0x1574] sm:$0xf] }
  0xea   :  { %7208 = vmatpush.bf16.msra.mxu2 %v10301_v14  ;;  %v10858_v14 = vld [vmem:[#allocation6 + $0x112c] sm:$0xf0]  ;;  %v11477_v27 = vor.u32 %v13627_v4, %v11474_v5  ;;  %v11390_v5 = vld [vmem:[#allocation6 + $0x1554] sm:$0xf0] }
  0xeb   :  { %7195 = vmatpush.bf16.msra.mxu1 %v10077_v32  ;;  %v11082_v32 = vld [vmem:[#allocation6 + $0x12ec] sm:$0xf0]  ;;  %v10861_v34 = vor.u32 %v13473_v12, %v10858_v14  ;;  %v11222_v12 = vld [vmem:[#allocation6 + $0x1404] sm:$0xf0]  ;;  %v11029_v14 = vor.u32 %v13515_v63, %v11026_v0  ;;  %v13494_v0 = vld [vmem:[#allocation6 + $0x11bc] sm:$0xf] }
  0xec   :  { %7221 = vmatpush.bf16.msra.mxu3 %v10525_v38  ;;  %v13641_v38 = vld [vmem:[#allocation6 + $0x1654] sm:$0xf] }
  0xed   :  { %7183 = vmatpush.bf16.msra.mxu0 %v9825_v47  ;;  %v11278_v47 = vld [vmem:[#allocation6 + $0x1474] sm:$0xf0]  ;;  %v11533_v50 = vor.u32 %v13641_v38, %v11530_v41  ;;  %v11194_v38 = vld [vmem:[#allocation6 + $0x13cc] sm:$0xf0] }
  0xee   :  { %7209 = vmatpush.bf16.msra.mxu2 %v10273_v49  ;;  %v11085_v49 = vor.u32 %v13529_v26, %v11082_v32  ;;  %v11281_v54 = vor.u32 %v13578_v46, %v11278_v47  ;;  %v13620_v26 = vld [vmem:[#allocation6 + $0x15ac] sm:$0xf]  ;;  %v11446_v32 = vld [vmem:[#allocation6 + $0x15c4] sm:$0xf0]  ;;  %v13501_v46 = vld [vmem:[#allocation6 + $0x11f4] sm:$0xf] }
  0xef   :  { %7196 = vmatpush.bf16.msra.mxu1 %v10049_v56  ;;  %v11502_v56 = vld [vmem:[#allocation6 + $0x1634] sm:$0xf0]  ;;  %v11449_v45 = vor.u32 %v13620_v26, %v11446_v32  ;;  %v10970_v47 = vld [vmem:[#allocation6 + $0x120c] sm:$0xf0] }
  0xf0   :  { %7222 = vmatpush.bf16.msra.mxu3 %v10497_v60  ;;  %v11250_v60 = vld [vmem:[#allocation6 + $0x143c] sm:$0xf0]  ;;  %v11505_v62 = vor.u32 %v13634_v55, %v11502_v56 }
  0xf1   :  { %7184 = vmatpush.bf16.msra.mxu0 %v9797_v1  ;;  %v6978_v1 = vpop.f32.mrf.mxu0  ;;  %v11253_v3 = vor.u32 %v13571_v59, %v11250_v60  ;;  %v11166_v59 = vld [vmem:[#allocation6 + $0x1394] sm:$0xf0] }
  0xf2   :  { %7210 = vmatpush.bf16.msra.mxu2 %v10245_v2  ;;  %v10805_v2 = vor.u32 %v13459_v57, %v10802_v58  ;;  %v10718_v57 = vld [vmem:[#allocation6 + $0x1014] sm:$0xf0]  ;;  %v13550_v58 = vld [vmem:[#allocation6 + $0x137c] sm:$0xf] }
  0xf3   :  { %7197 = vmatpush.bf16.msra.mxu1 %v10021_v13  ;;  %v6991_v13 = vpop.f32.mrf.mxu1  ;;  %v11169_v4 = vor.u32 %v13550_v58, %v11166_v59  ;;  %v11978_v58 = vld [vmem:[#allocation6 + $0x19ec] sm:$0xf0] }
  0xf4   :  { %7223 = vmatpush.bf16.msra.mxu3 %v10469_v20  ;;  %7185 = vmatmul.bf16.vlgmr.msra.gmra.mxu0 %v14177_v42  ;;  %v10998_v20 = vld [vmem:[#allocation6 + $0x1244] sm:$0xf0] }
  0xf5   :  { %7229 = vmatpush.bf16.msrb.mxu0 %v10889_v6  ;;  %7211 = vmatmul.bf16.vlgmr.msra.gmra.mxu2 %v14181_v48  ;;  %v13452_v6 = vld [vmem:[#allocation6 + $0x106c] sm:$0xf]  ;;  %v11001_v41 = vor.u32 %v13508_v17, %v10998_v20  ;;  %v13487_v20 = vld [vmem:[#allocation6 + $0x1184] sm:$0xf] }
  0xf6   :  { %7255 = vmatpush.bf16.msrb.mxu2 %v11337_v7  ;;  %7198 = vmatmul.bf16.vlgmr.msra.gmra.mxu1 %v14175_v36  ;;  %v6979_v7 = vadd.f32 %v6978_v1, %v14228_v39  ;;  %v13557_v39 = vld [vmem:[#allocation6 + $0x13b4] sm:$0xf]  ;;  %v10942_v1 = vld [vmem:[#allocation6 + $0x11d4] sm:$0xf0] }
  0xf7   :  { %7242 = vmatpush.bf16.msrb.mxu1 %v11113_v24  ;;  %7224 = vmatmul.bf16.vlgmr.msra.gmra.mxu3 %v14187_v19  ;;  %v10777_v24 = vor.u32 %v13452_v6, %v10774_v9  ;;  %v11197_v51 = vor.u32 %v13557_v39, %v11194_v38  ;;  %v13431_v6 = vld [vmem:[#allocation6 + $0xfc4] sm:$0xf] }
  0xf8   :  { %7268 = vmatpush.bf16.msrb.mxu3 %v11561_v25  ;;  %v6992_v15 = vadd.f32 %v6991_v13, %v6979_v7  ;;  %v11225_v25 = vor.u32 %v13564_v11, %v11222_v12  ;;  %v7004_v43 = vpop.f32.mrf.mxu2  ;;  %v10690_v7 = vld [vmem:[#allocation6 + $0xfdc] sm:$0xf0]  ;;  %v13543_v9 = vld [vmem:[#allocation6 + $0x1344] sm:$0xf]  ;;  %v13704_v12 = vld [vmem:[#allocation6 + $0x184c] sm:$0xf]  ;;  %v10945_v13 = vor.u32 %v13494_v0, %v10942_v1 }
  0xf9   :  { %7230 = vmatpush.bf16.msrb.mxu0 %v10861_v34  ;;  %v13445_v34 = vld [vmem:[#allocation6 + $0x1034] sm:$0xf]  ;;  %v6980_v55 = vpop.f32.mrf.mxu0  ;;  %v11138_v11 = vld [vmem:[#allocation6 + $0x135c] sm:$0xf0]  ;;  %v10693_v26 = vor.u32 %v13431_v6, %v10690_v7  ;;  %v13690_v0 = vld [vmem:[#allocation6 + $0x17dc] sm:$0xf] }
  0xfa   :  { %7256 = vmatpush.bf16.msrb.mxu2 %v11309_v35  ;;  %v10746_v35 = vld [vmem:[#allocation6 + $0x104c] sm:$0xf0]  ;;  %v7017_v56 = vpop.f32.mrf.mxu3  ;;  %v11141_v32 = vor.u32 %v13543_v9, %v11138_v11  ;;  %v11726_v1 = vld [vmem:[#allocation6 + $0x17f4] sm:$0xf0]  ;;  %v13746_v6 = vld [vmem:[#allocation6 + $0x199c] sm:$0xf] }
  0xfb   :  { %7243 = vmatpush.bf16.msrb.mxu1 %v11085_v49  ;;  %v7005_v49 = vadd.f32 %v7004_v43, %v6992_v15  ;;  %v13816_v15 = vld [vmem:[#allocation6 + $0x1bcc] sm:$0xf]  ;;  %v12006_v43 = vld [vmem:[#allocation6 + $0x1a24] sm:$0xf0]  ;;  %v12202_v55 = vld [vmem:[#allocation6 + $0x1bac] sm:$0xf0]  ;;  %v11729_v9 = vor.u32 %v13690_v0, %v11726_v1 }
  0xfc   :  { %7269 = vmatpush.bf16.msrb.mxu3 %v11533_v50  ;;  %v10749_v50 = vor.u32 %v13445_v34, %v10746_v35  ;;  %v13599_v34 = vld [vmem:[#allocation6 + $0x1504] sm:$0xf]  ;;  %v11362_v35 = vld [vmem:[#allocation6 + $0x151c] sm:$0xf0]  ;;  %v11950_v7 = vld [vmem:[#allocation6 + $0x19b4] sm:$0xf0] }
  0xfd   :  { %7231 = vmatpush.bf16.msrb.mxu0 %v10833_v53  ;;  %v11418_v53 = vld [vmem:[#allocation6 + $0x158c] sm:$0xf0]  ;;  %v14235_v60 = vadd.f32 %v7017_v56, %v7005_v49  ;;  %v12454_v49 = vld [vmem:[#allocation6 + $0x1da4] sm:$0xf0]  ;;  %v13858_v11 = vld [vmem:[#allocation6 + $0x1d1c] sm:$0xf] }
  0xfe   :  { %7257 = vmatpush.bf16.msrb.mxu2 %v11281_v54  ;;  %v13438_v54 = vld [vmem:[#allocation6 + $0xffc] sm:$0xf]  ;;  %v11421_v63 = vor.u32 %v13613_v52, %v11418_v53  ;;  %v11754_v52 = vld [vmem:[#allocation6 + $0x182c] sm:$0xf0] }
  0xff   :  { %7244 = vmatpush.bf16.msrb.mxu1 %v11057_v61  ;;  %v10973_v61 = vor.u32 %v13501_v46, %v10970_v47  ;;  %v13872_v47 = vld [vmem:[#allocation6 + $0x1d8c] sm:$0xf] }
 0x100   :  { %7270 = vmatpush.bf16.msrb.mxu3 %v11505_v62  ;;  %v6993_v62 = vpop.f32.mrf.mxu1  ;;  %v12457_v56 = vor.u32 %v13872_v47, %v12454_v49  ;;  %v13788_v49 = vld [vmem:[#allocation6 + $0x1aec] sm:$0xf] }
 0x101   :  { %7232 = vmatpush.bf16.msrb.mxu0 %v10805_v2  ;;  %v13606_v2 = vld [vmem:[#allocation6 + $0x153c] sm:$0xf]  ;;  %v12426_v62 = vld [vmem:[#allocation6 + $0x1d6c] sm:$0xf0] }
 0x102   :  { %7258 = vmatpush.bf16.msrb.mxu2 %v11253_v3  ;;  %v10721_v3 = vor.u32 %v13438_v54, %v10718_v57  ;;  %v11393_v17 = vor.u32 %v13606_v2, %v11390_v5  ;;  %v13809_v54 = vld [vmem:[#allocation6 + $0x1b94] sm:$0xf] }
 0x103   :  { %7245 = vmatpush.bf16.msrb.mxu1 %v11029_v14  ;;  %v11782_v14 = vld [vmem:[#allocation6 + $0x1864] sm:$0xf0]  ;;  %v13753_v57 = vld [vmem:[#allocation6 + $0x19d4] sm:$0xf] }
 0x104   :  { %7271 = vmatpush.bf16.msrb.mxu3 %v11477_v27  ;;  %v12230_v27 = vld [vmem:[#allocation6 + $0x1be4] sm:$0xf0]  ;;  %v11785_v39 = vor.u32 %v13704_v12, %v11782_v14  ;;  %v11981_v2 = vor.u32 %v13753_v57, %v11978_v58  ;;  %v12398_v12 = vld [vmem:[#allocation6 + $0x1d34] sm:$0xf0]  ;;  %v13683_v14 = vld [vmem:[#allocation6 + $0x17a4] sm:$0xf] }
 0x105   :  { %7233 = vmatpush.bf16.msrb.mxu0 %v10777_v24  ;;  %v10914_v24 = vld [vmem:[#allocation6 + $0x119c] sm:$0xf0]  ;;  %v12233_v38 = vor.u32 %v13816_v15, %v12230_v27  ;;  %v11953_v27 = vor.u32 %v13746_v6, %v11950_v7  ;;  %v12342_v57 = vld [vmem:[#allocation6 + $0x1cc4] sm:$0xf0]  ;;  %v13837_v6 = vld [vmem:[#allocation6 + $0x1c74] sm:$0xf] }
 0x106   :  { %7259 = vmatpush.bf16.msrb.mxu2 %v11225_v25  ;;  %v7006_v25 = vpop.f32.mrf.mxu2  ;;  %v10917_v46 = vor.u32 %v13487_v20, %v10914_v24  ;;  %v11698_v15 = vld [vmem:[#allocation6 + $0x17bc] sm:$0xf0]  ;;  %v12401_v24 = vor.u32 %v13858_v11, %v12398_v12  ;;  %v12314_v7 = vld [vmem:[#allocation6 + $0x1c8c] sm:$0xf0] }
 0x107   :  { %7246 = vmatpush.bf16.msrb.mxu1 %v11001_v41  ;;  %v13760_v41 = vld [vmem:[#allocation6 + $0x1a0c] sm:$0xf]  ;;  %v12146_v20 = vld [vmem:[#allocation6 + $0x1b3c] sm:$0xf0]  ;;  %v13739_v25 = vld [vmem:[#allocation6 + $0x1964] sm:$0xf] }
 0x108   :  { %7272 = vmatpush.bf16.msrb.mxu3 %v11449_v45  ;;  %v7019_v45 = vpop.f32.mrf.mxu3  ;;  %v12009_v53 = vor.u32 %v13760_v41, %v12006_v43  ;;  %v13676_v43 = vld [vmem:[#allocation6 + $0x176c] sm:$0xf] }
 0x109   :  { %7234 = vmatpush.bf16.msrb.mxu0 %v10749_v50  ;;  %v11365_v50 = vor.u32 %v13599_v34, %v11362_v35  ;;  %v11701_v34 = vor.u32 %v13683_v14, %v11698_v15  ;;  %v13851_v35 = vld [vmem:[#allocation6 + $0x1ce4] sm:$0xf]  ;;  %v11670_v45 = vld [vmem:[#allocation6 + $0x1784] sm:$0xf0]  ;;  %v11614_v14 = vld [vmem:[#allocation6 + $0x1714] sm:$0xf0] }
 0x10a   :  { %7260 = vmatpush.bf16.msrb.mxu2 %v11197_v51  ;;  %v13697_v51 = vld [vmem:[#allocation6 + $0x1814] sm:$0xf] }
 0x10b   :  { %7247 = vmatpush.bf16.msrb.mxu1 %v10973_v61  ;;  %v11757_v59 = vor.u32 %v13697_v51, %v11754_v52  ;;  %v13865_v61 = vld [vmem:[#allocation6 + $0x1d54] sm:$0xf] }
 0x10c   :  { %7273 = vmatpush.bf16.msrb.mxu3 %v11421_v63  ;;  %v12205_v63 = vor.u32 %v13809_v54, %v12202_v55  ;;  %v12429_v5 = vor.u32 %v13865_v61, %v12426_v62  ;;  %v11894_v54 = vld [vmem:[#allocation6 + $0x1944] sm:$0xf0]  ;;  %v11673_v55 = vor.u32 %v13676_v43, %v11670_v45  ;;  %v13781_v62 = vld [vmem:[#allocation6 + $0x1ab4] sm:$0xf]  ;;  %v11586_v43 = vld [vmem:[#allocation6 + $0x16dc] sm:$0xf0] }
 0x10d   :  { %7235 = vmatpush.bf16.msrb.mxu0 %v10721_v3  ;;  %v13802_v3 = vld [vmem:[#allocation6 + $0x1b5c] sm:$0xf]  ;;  %v13767_v45 = vld [vmem:[#allocation6 + $0x1a44] sm:$0xf] }
 0x10e   :  { %7261 = vmatpush.bf16.msrb.mxu2 %v11169_v4  ;;  %v12174_v4 = vld [vmem:[#allocation6 + $0x1b74] sm:$0xf0] }
 0x10f   :  { %7248 = vmatpush.bf16.msrb.mxu1 %v10945_v13  ;;  %v12177_v13 = vor.u32 %v13802_v3, %v12174_v4  ;;  %v11866_v3 = vld [vmem:[#allocation6 + $0x190c] sm:$0xf0] }
 0x110   :  { %7274 = vmatpush.bf16.msrb.mxu3 %v11393_v17  ;;  %v13795_v17 = vld [vmem:[#allocation6 + $0x1b24] sm:$0xf] }
 0x111   :  { %7236 = vmatpush.bf16.msrb.mxu0 %v10693_v26  ;;  %v11922_v26 = vld [vmem:[#allocation6 + $0x197c] sm:$0xf0]  ;;  %v12149_v41 = vor.u32 %v13795_v17, %v12146_v20  ;;  %v13774_v17 = vld [vmem:[#allocation6 + $0x1a7c] sm:$0xf]  ;;  %v12062_v20 = vld [vmem:[#allocation6 + $0x1a94] sm:$0xf0] }
 0x112   :  { %7262 = vmatpush.bf16.msrb.mxu2 %v11141_v32  ;;  %v7030_v32 = vpop.f32.mrf.mxu0  ;;  %v11925_v47 = vor.u32 %v13739_v25, %v11922_v26  ;;  %v12317_v25 = vor.u32 %v13837_v6, %v12314_v7  ;;  %v13718_v26 = vld [vmem:[#allocation6 + $0x18bc] sm:$0xf]  ;;  %v13921_v6 = vld [vmem:[#allocation6 + $0x1f14] sm:$0xf]  ;;  %v12650_v7 = vld [vmem:[#allocation6 + $0x1f2c] sm:$0xf0] }
 0x113   :  { %7249 = vmatpush.bf16.msrb.mxu1 %v10917_v46  ;;  %v7043_v46 = vpop.f32.mrf.mxu1 }
 0x114   :  { %7275 = vmatpush.bf16.msrb.mxu3 %v11365_v50  ;;  %7237 = vmatmul.bf16.vlgmr.msrb.gmra.mxu0 %v14191_v28  ;;  %v12118_v50 = vld [vmem:[#allocation6 + $0x1b04] sm:$0xf0] }
 0x115   :  { %7281 = vmatpush.bf16.msra.mxu0 %v11785_v39  ;;  %7263 = vmatmul.bf16.vlgmr.msrb.gmra.mxu2 %v14193_v31  ;;  %v12370_v39 = vld [vmem:[#allocation6 + $0x1cfc] sm:$0xf0]  ;;  %v12121_v58 = vor.u32 %v13788_v49, %v12118_v50  ;;  %v13928_v49 = vld [vmem:[#allocation6 + $0x1f4c] sm:$0xf]  ;;  %v12678_v50 = vld [vmem:[#allocation6 + $0x1f64] sm:$0xf0] }
 0x116   :  { %7307 = vmatpush.bf16.msra.mxu2 %v12233_v38  ;;  %7250 = vmatmul.bf16.vlgmr.msrb.gmra.mxu1 %v14189_v23  ;;  %v7031_v38 = vadd.f32 %v7030_v32, %v14235_v60  ;;  %v12373_v52 = vor.u32 %v13851_v35, %v12370_v39  ;;  %v13669_v60 = vld [vmem:[#allocation6 + $0x1734] sm:$0xf]  ;;  %v11838_v32 = vld [vmem:[#allocation6 + $0x18d4] sm:$0xf0]  ;;  %v13830_v35 = vld [vmem:[#allocation6 + $0x1c3c] sm:$0xf] }
 0x117   :  { %7294 = vmatpush.bf16.msra.mxu1 %v12009_v53  ;;  %7276 = vmatmul.bf16.vlgmr.msrb.gmra.mxu3 %v14199_v16  ;;  %v13732_v53 = vld [vmem:[#allocation6 + $0x192c] sm:$0xf]  ;;  %v12286_v39 = vld [vmem:[#allocation6 + $0x1c54] sm:$0xf0] }
 0x118   :  { %7320 = vmatpush.bf16.msra.mxu3 %v12457_v56  ;;  %v7044_v51 = vadd.f32 %v7043_v46, %v7031_v38  ;;  %v13844_v56 = vld [vmem:[#allocation6 + $0x1cac] sm:$0xf]  ;;  %v11897_v61 = vor.u32 %v13732_v53, %v11894_v54  ;;  %v7056_v0 = vpop.f32.mrf.mxu2  ;;  %v13655_v38 = vld [vmem:[#allocation6 + $0x16c4] sm:$0xf]  ;;  %v12034_v46 = vld [vmem:[#allocation6 + $0x1a5c] sm:$0xf0] }
 0x119   :  { %7282 = vmatpush.bf16.msra.mxu0 %v11757_v59  ;;  %v11642_v59 = vld [vmem:[#allocation6 + $0x174c] sm:$0xf0]  ;;  %v12345_v1 = vor.u32 %v13844_v56, %v12342_v57  ;;  %v12980_v53 = vld [vmem:[#allocation6 + $0x1a8] sm:$0xf0]  ;;  %v13711_v54 = vld [vmem:[#allocation6 + $0x1884] sm:$0xf]  ;;  %v11589_v57 = vor.u32 %v13655_v38, %v11586_v43 }
 0x11a   :  { %7308 = vmatpush.bf16.msra.mxu2 %v12205_v63  ;;  %v12090_v63 = vld [vmem:[#allocation6 + $0x1acc] sm:$0xf0]  ;;  %v7057_v4 = vadd.f32 %v7056_v0, %v7044_v51  ;;  %v7069_v11 = vpop.f32.mrf.mxu3  ;;  %v12846_v43 = vld [vmem:[#allocation6 + $0x20b4] sm:$0xf0] }
 0x11b   :  { %7295 = vmatpush.bf16.msra.mxu1 %v11981_v2  ;;  %v13725_v2 = vld [vmem:[#allocation6 + $0x18f4] sm:$0xf]  ;;  %v12093_v12 = vor.u32 %v13781_v62, %v12090_v63  ;;  %v8876_v51 = vld [vmem:[#allocation6 + $0x190] sm:$0xf]  ;;  %v13984_v62 = vld [vmem:[#allocation6 + $0x210c] sm:$0xf] }
 0x11c   :  { %7321 = vmatpush.bf16.msra.mxu3 %v12429_v5  ;;  %v11645_v5 = vor.u32 %v13669_v60, %v11642_v59  ;;  %v14242_v15 = vadd.f32 %v7069_v11, %v7057_v4  ;;  %v12258_v60 = vld [vmem:[#allocation6 + $0x1c1c] sm:$0xf0]  ;;  %v12037_v59 = vor.u32 %v13767_v45, %v12034_v46  ;;  %v12902_v63 = vld [vmem:[#allocation6 + $0x2124] sm:$0xf0]  ;;  %v13036_v4 = vld [vmem:[#allocation6 + $0x368] sm:$0xf0] }
 0x11d   :  { %7283 = vmatpush.bf16.msra.mxu0 %v11729_v9  ;;  %v7032_v9 = vpop.f32.mrf.mxu0  ;;  %v8848_v11 = vld [vmem:[#allocation6 + $0x158] sm:$0xf]  ;;  %v9044_v46 = vld [vmem:[#allocation6 + $0x2e0] sm:$0xf] }
 0x11e   :  { %7309 = vmatpush.bf16.msra.mxu2 %v12177_v13  ;;  %v13662_v13 = vld [vmem:[#allocation6 + $0x16fc] sm:$0xf]  ;;  %v12905_v9 = vor.u32 %v13984_v62, %v12902_v63 }
 0x11f   :  { %7296 = vmatpush.bf16.msra.mxu1 %v11953_v27  ;;  %v11869_v27 = vor.u32 %v13725_v2, %v11866_v3  ;;  %v9100_v3 = vld [vmem:[#allocation6 + $0x350] sm:$0xf] }
 0x120   :  { %7322 = vmatpush.bf16.msra.mxu3 %v12401_v24  ;;  %v7045_v24 = vpop.f32.mrf.mxu1  ;;  %v7058_v56 = vpop.f32.mrf.mxu2 }
 0x121   :  { %7284 = vmatpush.bf16.msra.mxu0 %v11701_v34  ;;  %v11617_v34 = vor.u32 %v13662_v13, %v11614_v14  ;;  %v9101_v13 = vor.u32 %v13036_v4, %v9100_v3  ;;  %v13977_v14 = vld [vmem:[#allocation6 + $0x20d4] sm:$0xf]  ;;  %v13963_v56 = vld [vmem:[#allocation6 + $0x2064] sm:$0xf]  ;;  %v8764_v4 = vld [vmem:[#allocation6 + $0xb0] sm:$0xf] }
 0x122   :  { %7310 = vmatpush.bf16.msra.mxu2 %v12149_v41  ;;  %v12065_v41 = vor.u32 %v13774_v17, %v12062_v20  ;;  %v7071_v0 = vpop.f32.mrf.mxu3  ;;  %v12653_v17 = vor.u32 %v13921_v6, %v12650_v7  ;;  %v9072_v20 = vld [vmem:[#allocation6 + $0x318] sm:$0xf]  ;;  %v13029_v24 = vld [vmem:[#allocation6 + $0x330] sm:$0xf0] }
 0x123   :  { %7297 = vmatpush.bf16.msra.mxu1 %v11925_v47  ;;  %v11841_v47 = vor.u32 %v13718_v26, %v11838_v32  ;;  %v13914_v26 = vld [vmem:[#allocation6 + $0x1edc] sm:$0xf]  ;;  %v12622_v32 = vld [vmem:[#allocation6 + $0x1ef4] sm:$0xf0]  ;;  %v9073_v38 = vor.u32 %v13029_v24, %v9072_v20  ;;  %v13900_v0 = vld [vmem:[#allocation6 + $0x1e6c] sm:$0xf] }
 0x124   :  { %7323 = vmatpush.bf16.msra.mxu3 %v12373_v52  ;;  %v12289_v52 = vor.u32 %v13830_v35, %v12286_v39  ;;  %v8820_v35 = vld [vmem:[#allocation6 + $0x120] sm:$0xf]  ;;  %v12966_v39 = vld [vmem:[#allocation6 + $0x138] sm:$0xf0]  ;;  %v12625_v45 = vor.u32 %v13914_v26, %v12622_v32  ;;  %v8736_v24 = vld [vmem:[#allocation6 + $0x78] sm:$0xf] }
 0x125   :  { %7285 = vmatpush.bf16.msra.mxu0 %v11673_v55  ;;  %v11810_v55 = vld [vmem:[#allocation6 + $0x189c] sm:$0xf0] }
 0x126   :  { %7311 = vmatpush.bf16.msra.mxu2 %v12121_v58  ;;  %v13823_v58 = vld [vmem:[#allocation6 + $0x1c04] sm:$0xf]  ;;  %v11813_v2 = vor.u32 %v13711_v54, %v11810_v55 }
 0x127   :  { %7298 = vmatpush.bf16.msra.mxu1 %v11897_v61  ;;  %v12681_v61 = vor.u32 %v13928_v49, %v12678_v50  ;;  %v8821_v49 = vor.u32 %v12966_v39, %v8820_v35  ;;  %v13907_v50 = vld [vmem:[#allocation6 + $0x1ea4] sm:$0xf]  ;;  %v12762_v35 = vld [vmem:[#allocation6 + $0x200c] sm:$0xf0] }
 0x128   :  { %7324 = vmatpush.bf16.msra.mxu3 %v12345_v1  ;;  %v8877_v1 = vor.u32 %v12980_v53, %v8876_v51  ;;  %v12594_v51 = vld [vmem:[#allocation6 + $0x1ebc] sm:$0xf0]  ;;  %v8792_v53 = vld [vmem:[#allocation6 + $0xe8] sm:$0xf]  ;;  %v12959_v54 = vld [vmem:[#allocation6 + $0x100] sm:$0xf0] }
 0x129   :  { %7286 = vmatpush.bf16.msra.mxu0 %v11645_v5  ;;  %v12261_v5 = vor.u32 %v13823_v58, %v12258_v60  ;;  %v12597_v60 = vor.u32 %v13907_v50, %v12594_v51  ;;  %v8793_v63 = vor.u32 %v12959_v54, %v8792_v53  ;;  %v8708_v51 = vld [vmem:[#allocation6 + $0x40] sm:$0xf] }
 0x12a   :  { %7312 = vmatpush.bf16.msra.mxu2 %v12093_v12  ;;  %v12973_v12 = vld [vmem:[#allocation6 + $0x170] sm:$0xf0] }
 0x12b   :  { %7299 = vmatpush.bf16.msra.mxu1 %v11869_v27  ;;  %v12874_v27 = vld [vmem:[#allocation6 + $0x20ec] sm:$0xf0] }
 0x12c   :  { %7325 = vmatpush.bf16.msra.mxu3 %v12317_v25  ;;  %v8849_v25 = vor.u32 %v12973_v12, %v8848_v11  ;;  %v12790_v11 = vld [vmem:[#allocation6 + $0x2044] sm:$0xf0] }
 0x12d   :  { %7287 = vmatpush.bf16.msra.mxu0 %v11617_v34  ;;  %v12877_v34 = vor.u32 %v13977_v14, %v12874_v27  ;;  %v13008_v14 = vld [vmem:[#allocation6 + $0x288] sm:$0xf0] }
 0x12e   :  { %7313 = vmatpush.bf16.msra.mxu2 %v12065_v41  ;;  %v13970_v41 = vld [vmem:[#allocation6 + $0x209c] sm:$0xf] }
 0x12f   :  { %7300 = vmatpush.bf16.msra.mxu1 %v11841_v47  ;;  %v13022_v47 = vld [vmem:[#allocation6 + $0x2f8] sm:$0xf0] }
 0x130   :  { %7326 = vmatpush.bf16.msra.mxu3 %v12289_v52  ;;  %v12849_v52 = vor.u32 %v13970_v41, %v12846_v43  ;;  %v9045_v55 = vor.u32 %v13022_v47, %v9044_v46  ;;  %v8960_v41 = vld [vmem:[#allocation6 + $0x238] sm:$0xf]  ;;  %v13001_v43 = vld [vmem:[#allocation6 + $0x250] sm:$0xf0]  ;;  %v13886_v47 = vld [vmem:[#allocation6 + $0x1dfc] sm:$0xf] }
 0x131   :  { %7288 = vmatpush.bf16.msra.mxu0 %v11589_v57  ;;  %v12818_v57 = vld [vmem:[#allocation6 + $0x207c] sm:$0xf0]  ;;  %v7082_v58 = vpop.f32.mrf.mxu0 }
 0x132   :  { %7314 = vmatpush.bf16.msra.mxu2 %v12037_v59  ;;  %v9016_v59 = vld [vmem:[#allocation6 + $0x2a8] sm:$0xf]  ;;  %v7083_v62 = vadd.f32 %v7082_v58, %v14242_v15  ;;  %v12821_v3 = vor.u32 %v13963_v56, %v12818_v57  ;;  %v13893_v15 = vld [vmem:[#allocation6 + $0x1e34] sm:$0xf]  ;;  %v13942_v56 = vld [vmem:[#allocation6 + $0x1fbc] sm:$0xf] }
 0x133   :  { %7301 = vmatpush.bf16.msra.mxu1 %v11813_v2  ;;  %v7095_v2 = vpop.f32.mrf.mxu1  ;;  %v12734_v57 = vld [vmem:[#allocation6 + $0x1fd4] sm:$0xf0] }
 0x134   :  { %7327 = vmatpush.bf16.msra.mxu3 %v12261_v5  ;;  %7289 = vmatmul.bf16.vlgmr.msra.gmra.mxu0 %v14203_v29  ;;  %v12952_v5 = vld [vmem:[#allocation6 + $0xc8] sm:$0xf0]  ;;  %v7096_v6 = vadd.f32 %v7095_v2, %v7083_v62  ;;  %v12737_v2 = vor.u32 %v13942_v56, %v12734_v57  ;;  %v9268_v57 = vld [vmem:[#allocation6 + $0x4a0] sm:$0xf] }
 0x135   :  { %7333 = vmatpush.bf16.msrb.mxu0 %v12681_v61  ;;  %7315 = vmatmul.bf16.vlgmr.msra.gmra.mxu2 %v14205_v33  ;;  %v13015_v61 = vld [vmem:[#allocation6 + $0x2c0] sm:$0xf0]  ;;  %v8765_v27 = vor.u32 %v12952_v5, %v8764_v4  ;;  %v13092_v4 = vld [vmem:[#allocation6 + $0x528] sm:$0xf0]  ;;  %v9772_v5 = vld [vmem:[#allocation6 + $0x890] sm:$0xf] }
 0x136   :  { %7359 = vmatpush.bf16.msrb.mxu2 %v8877_v1  ;;  %7302 = vmatmul.bf16.vlgmr.msra.gmra.mxu1 %v14201_v21  ;;  %v12566_v1 = vld [vmem:[#allocation6 + $0x1e84] sm:$0xf0]  ;;  %v9017_v7 = vor.u32 %v13015_v61, %v9016_v59  ;;  %v12994_v59 = vld [vmem:[#allocation6 + $0x218] sm:$0xf0]  ;;  %v13879_v61 = vld [vmem:[#allocation6 + $0x1dc4] sm:$0xf] }
 0x137   :  { %7346 = vmatpush.bf16.msrb.mxu1 %v12905_v9  ;;  %7328 = vmatmul.bf16.vlgmr.msra.gmra.mxu3 %v14211_v30  ;;  %v13956_v9 = vld [vmem:[#allocation6 + $0x202c] sm:$0xf]  ;;  %v12569_v12 = vor.u32 %v13900_v0, %v12566_v1  ;;  %v8680_v0 = vld [vmem:[#allocation6 + $0x8] sm:$0xf]  ;;  %v12931_v1 = vld [vmem:[#allocation6 + $0x20] sm:$0xf0] }
 0x138   :  { %7372 = vmatpush.bf16.msrb.mxu3 %v9101_v13  ;;  %v8988_v13 = vld [vmem:[#allocation6 + $0x270] sm:$0xf]  ;;  %v12793_v20 = vor.u32 %v13956_v9, %v12790_v11  ;;  %v7108_v26 = vpop.f32.mrf.mxu2  ;;  %v13935_v9 = vld [vmem:[#allocation6 + $0x1f84] sm:$0xf]  ;;  %v12706_v11 = vld [vmem:[#allocation6 + $0x1f9c] sm:$0xf0] }
 0x139   :  { %7334 = vmatpush.bf16.msrb.mxu0 %v12653_v17  ;;  %v12538_v17 = vld [vmem:[#allocation6 + $0x1e4c] sm:$0xf0]  ;;  %v8989_v32 = vor.u32 %v13008_v14, %v8988_v13  ;;  %v14249_v39 = vadd.f32 %v7108_v26, %v7096_v6  ;;  %v8904_v14 = vld [vmem:[#allocation6 + $0x1c8] sm:$0xf]  ;;  %v13260_v26 = vld [vmem:[#allocation6 + $0xa68] sm:$0xf0] }
 0x13a   :  { %7360 = vmatpush.bf16.msrb.mxu2 %v8849_v25  ;;  %v12945_v25 = vld [vmem:[#allocation6 + $0x90] sm:$0xf0]  ;;  %v14251_v53 = vpop.f32.mrf.mxu3 }
 0x13b   :  { %7347 = vmatpush.bf16.msrb.mxu1 %v12877_v34  ;;  %v13949_v34 = vld [vmem:[#allocation6 + $0x1ff4] sm:$0xf]  ;;  %v8737_v46 = vor.u32 %v12945_v25, %v8736_v24  ;;  %v7097_v54 = vpop.f32.mrf.mxu1  ;;  %v13148_v24 = vld [vmem:[#allocation6 + $0x6e8] sm:$0xf0]  ;;  %v9996_v25 = vld [vmem:[#allocation6 + $0xa50] sm:$0xf] }
 0x13c   :  { %7373 = vmatpush.bf16.msrb.mxu3 %v9073_v38  ;;  %v12541_v38 = vor.u32 %v13893_v15, %v12538_v17  ;;  %v12765_v50 = vor.u32 %v13949_v34, %v12762_v35  ;;  %v9548_v15 = vld [vmem:[#allocation6 + $0x6d0] sm:$0xf]  ;;  %v8681_v17 = vor.u32 %v12931_v1, %v8680_v0  ;;  %v12709_v34 = vor.u32 %v13935_v9, %v12706_v11  ;;  %v9296_v35 = vld [vmem:[#allocation6 + $0x4d8] sm:$0xf]  ;;  %v13134_v1 = vld [vmem:[#allocation6 + $0x678] sm:$0xf0] }
 0x13d   :  { %7335 = vmatpush.bf16.msrb.mxu0 %v12625_v45  ;;  %v7084_v45 = vpop.f32.mrf.mxu0  ;;  %v9968_v54 = vld [vmem:[#allocation6 + $0xa18] sm:$0xf]  ;;  %v9688_v11 = vld [vmem:[#allocation6 + $0x7e8] sm:$0xf] }
 0x13e   :  { %7361 = vmatpush.bf16.msrb.mxu2 %v8821_v49  ;;  %v12510_v49 = vld [vmem:[#allocation6 + $0x1e14] sm:$0xf0] }
 0x13f   :  { %7348 = vmatpush.bf16.msrb.mxu1 %v12849_v52  ;;  %v12938_v52 = vld [vmem:[#allocation6 + $0x58] sm:$0xf0]  ;;  %v12513_v58 = vor.u32 %v13886_v47, %v12510_v49  ;;  %v9744_v45 = vld [vmem:[#allocation6 + $0x858] sm:$0xf]  ;;  %v9549_v47 = vor.u32 %v13148_v24, %v9548_v15  ;;  %v9997_v49 = vor.u32 %v13260_v26, %v9996_v25  ;;  %v13239_v24 = vld [vmem:[#allocation6 + $0x9c0] sm:$0xf0] }
 0x140   :  { %7374 = vmatpush.bf16.msrb.mxu3 %v9045_v55  ;;  %v8961_v55 = vor.u32 %v13001_v43, %v8960_v41  ;;  %v8709_v62 = vor.u32 %v12938_v52, %v8708_v51  ;;  %v13141_v52 = vld [vmem:[#allocation6 + $0x6b0] sm:$0xf0]  ;;  %v9212_v26 = vld [vmem:[#allocation6 + $0x430] sm:$0xf] }
 0x141   :  { %7336 = vmatpush.bf16.msrb.mxu0 %v12597_v60  ;;  %v8932_v60 = vld [vmem:[#allocation6 + $0x200] sm:$0xf] }
 0x142   :  { %7362 = vmatpush.bf16.msrb.mxu2 %v8793_v63  ;;  %v12482_v63 = vld [vmem:[#allocation6 + $0x1ddc] sm:$0xf0]  ;;  %v8933_v6 = vor.u32 %v12994_v59, %v8932_v60  ;;  %v7123_v41 = vpop.f32.mrf.mxu3  ;;  %v13190_v59 = vld [vmem:[#allocation6 + $0x838] sm:$0xf0] }
 0x143   :  { %7349 = vmatpush.bf16.msrb.mxu1 %v12821_v3  ;;  %v9324_v3 = vld [vmem:[#allocation6 + $0x510] sm:$0xf]  ;;  %v12485_v13 = vor.u32 %v13879_v61, %v12482_v63  ;;  %v9716_v60 = vld [vmem:[#allocation6 + $0x820] sm:$0xf] }
 0x144   :  { %7375 = vmatpush.bf16.msrb.mxu3 %v9017_v7  ;;  %v13204_v7 = vld [vmem:[#allocation6 + $0x8a8] sm:$0xf0]  ;;  %v9492_v63 = vld [vmem:[#allocation6 + $0x660] sm:$0xf] }
 0x145   :  { %7337 = vmatpush.bf16.msrb.mxu0 %v12569_v12  ;;  %v7110_v12 = vpop.f32.mrf.mxu2 }
 0x146   :  { %7363 = vmatpush.bf16.msrb.mxu2 %v8765_v27  ;;  %v12987_v27 = vld [vmem:[#allocation6 + $0x1e0] sm:$0xf0] }
 0x147   :  { %7350 = vmatpush.bf16.msrb.mxu1 %v12793_v20  ;;  %v9325_v20 = vor.u32 %v13092_v4, %v9324_v3  ;;  %v8905_v43 = vor.u32 %v12987_v27, %v8904_v14  ;;  %v13246_v3 = vld [vmem:[#allocation6 + $0x9f8] sm:$0xf0]  ;;  %v9717_v4 = vor.u32 %v13190_v59, %v9716_v60  ;;  %v13183_v12 = vld [vmem:[#allocation6 + $0x800] sm:$0xf0]  ;;  %v9464_v27 = vld [vmem:[#allocation6 + $0x628] sm:$0xf] }
 0x148   :  { %7376 = vmatpush.bf16.msrb.mxu3 %v8989_v32  ;;  %v9773_v32 = vor.u32 %v13204_v7, %v9772_v5  ;;  %v9240_v5 = vld [vmem:[#allocation6 + $0x468] sm:$0xf]  ;;  %v14002_v7 = vld [vmem:[#allocation8] sm:$0xff]  ;;  %v9689_v25 = vor.u32 %v13183_v12, %v9688_v11  ;;  %v13162_v11 = vld [vmem:[#allocation6 + $0x758] sm:$0xf0] }
 0x149   :  { %7338 = vmatpush.bf16.msrb.mxu0 %v12541_v38  ;;  %v13085_v38 = vld [vmem:[#allocation6 + $0x4f0] sm:$0xf0]  ;;  %v1313_v9 = vperm.slane %v14002_v7, 1 }
 0x14a   :  { %7364 = vmatpush.bf16.msrb.mxu2 %v8737_v46  ;;  %v13197_v46 = vld [vmem:[#allocation6 + $0x870] sm:$0xf0]  ;;  %v9297_v51 = vor.u32 %v13085_v38, %v9296_v35  ;;  %v9660_v35 = vld [vmem:[#allocation6 + $0x7b0] sm:$0xf]  ;;  %v13176_v38 = vld [vmem:[#allocation6 + $0x7c8] sm:$0xf0] }
 0x14b   :  { %7351 = vmatpush.bf16.msrb.mxu1 %v12765_v50  ;;  %v9520_v50 = vld [vmem:[#allocation6 + $0x698] sm:$0xf]  ;;  %v9745_v56 = vor.u32 %v13197_v46, %v9744_v45  ;;  %v9436_v45 = vld [vmem:[#allocation6 + $0x5f0] sm:$0xf] }
 0x14c   :  { %7377 = vmatpush.bf16.msrb.mxu3 %v8961_v55  ;;  %v13253_v55 = vld [vmem:[#allocation6 + $0xa30] sm:$0xf0]  ;;  %v9521_v61 = vor.u32 %v13141_v52, %v9520_v50  ;;  %v13232_v50 = vld [vmem:[#allocation6 + $0x988] sm:$0xf0]  ;;  %v9661_v52 = vor.u32 %v13176_v38, %v9660_v35  ;;  %v13043_v35 = vld [vmem:[#allocation6 + $0x3a0] sm:$0xf0] }
 0x14d   :  { %7339 = vmatpush.bf16.msrb.mxu0 %v12513_v58  ;;  %v13078_v58 = vld [vmem:[#allocation6 + $0x4b8] sm:$0xf0]  ;;  %v9576_v38 = vld [vmem:[#allocation6 + $0x708] sm:$0xf] }
 0x14e   :  { %7365 = vmatpush.bf16.msrb.mxu2 %v8709_v62  ;;  %v9969_v62 = vor.u32 %v13253_v55, %v9968_v54  ;;  %v9269_v0 = vor.u32 %v13078_v58, %v9268_v57  ;;  %v9184_v54 = vld [vmem:[#allocation6 + $0x3f8] sm:$0xf]  ;;  %v13057_v55 = vld [vmem:[#allocation6 + $0x410] sm:$0xf0] }
 0x14f   :  { %7352 = vmatpush.bf16.msrb.mxu1 %v12737_v2  ;;  %v9940_v2 = vld [vmem:[#allocation6 + $0x9e0] sm:$0xf]  ;;  %v9632_v57 = vld [vmem:[#allocation6 + $0x778] sm:$0xf] }
 0x150   :  { %7378 = vmatpush.bf16.msrb.mxu3 %v8933_v6  ;;  %v13071_v6 = vld [vmem:[#allocation6 + $0x480] sm:$0xf0]  ;;  %v9941_v14 = vor.u32 %v13246_v3, %v9940_v2  ;;  %v13225_v2 = vld [vmem:[#allocation6 + $0x950] sm:$0xf0] }
 0x151   :  { %7340 = vmatpush.bf16.msrb.mxu0 %v12485_v13  ;;  %v9493_v13 = vor.u32 %v13134_v1, %v9492_v63  ;;  %v9241_v15 = vor.u32 %v13071_v6, %v9240_v5  ;;  %v9185_v63 = vor.u32 %v13057_v55, %v9184_v54  ;;  %v9856_v1 = vld [vmem:[#allocation6 + $0x938] sm:$0xf]  ;;  %v9156_v5 = vld [vmem:[#allocation6 + $0x3c0] sm:$0xf]  ;;  %v13050_v6 = vld [vmem:[#allocation6 + $0x3d8] sm:$0xf0] }
 0x152   :  { %7366 = vmatpush.bf16.msrb.mxu2 %v8681_v17  ;;  %v13127_v17 = vld [vmem:[#allocation6 + $0x640] sm:$0xf0] }
 0x153   :  { %7353 = vmatpush.bf16.msrb.mxu1 %v12709_v34  ;;  %v7122_v34 = vadd.f32 %v14251_v53, %v1313_v9  ;;  %v9465_v41 = vor.u32 %v13127_v17, %v9464_v27  ;;  %v13169_v53 = vld [vmem:[#allocation6 + $0x790] sm:$0xf0]  ;;  %v7147_v58 = vpop.f32.mrf.mxu1  ;;  %v9604_v9 = vld [vmem:[#allocation6 + $0x740] sm:$0xf]  ;;  %v13099_v54 = vld [vmem:[#allocation6 + $0x560] sm:$0xf0] }
 0x154   :  { %7379 = vmatpush.bf16.msrb.mxu3 %v8905_v43  ;;  %7341 = vmatmul.bf16.vlgmr.msrb.gmra.mxu0 %v14215_v40  ;;  %v9380_v27 = vld [vmem:[#allocation6 + $0x580] sm:$0xf] }
 0x155   :  { %7385 = vmatpush.bf16.msra.mxu0 %v9325_v20  ;;  %7367 = vmatmul.bf16.vlgmr.msrb.gmra.mxu2 %v14168_v18  ;;  %v9912_v20 = vld [vmem:[#allocation6 + $0x9a8] sm:$0xf] }
 0x156   :  { %7411 = vmatpush.bf16.msra.mxu2 %v9773_v32  ;;  %7354 = vmatmul.bf16.vlgmr.msrb.gmra.mxu1 %v14213_v37  ;;  %v13064_v32 = vld [vmem:[#allocation6 + $0x448] sm:$0xf0]  ;;  %v9913_v43 = vor.u32 %v13239_v24, %v9912_v20  ;;  %v9157_v20 = vor.u32 %v13050_v6, %v9156_v5  ;;  %v9828_v24 = vld [vmem:[#allocation6 + $0x900] sm:$0xf]  ;;  %v10640_v6 = vld [vmem:[#allocation6 + $0xf58] sm:$0xf] }
 0x157   :  { %7398 = vmatpush.bf16.msra.mxu1 %v9549_v47  ;;  %7380 = vmatmul.bf16.vlgmr.msrb.gmra.mxu3 %v14171_v22  ;;  %v9213_v46 = vor.u32 %v13064_v32, %v9212_v26  ;;  %v13120_v47 = vld [vmem:[#allocation6 + $0x608] sm:$0xf0]  ;;  %v9128_v26 = vld [vmem:[#allocation6 + $0x388] sm:$0xf] }
 0x158   :  { %7424 = vmatpush.bf16.msra.mxu3 %v9997_v49  ;;  %v9884_v49 = vld [vmem:[#allocation6 + $0x970] sm:$0xf]  ;;  %v9437_v60 = vor.u32 %v13120_v47, %v9436_v45  ;;  %v7160_v3 = vpop.f32.mrf.mxu2  ;;  %v13316_v45 = vld [vmem:[#allocation6 + $0xc28] sm:$0xf0]  ;;  %v9129_v55 = vor.u32 %v13043_v35, %v9128_v26  ;;  %v10612_v26 = vld [vmem:[#allocation6 + $0xf20] sm:$0xf] }
 0x159   :  { %7386 = vmatpush.bf16.msra.mxu0 %v9297_v51  ;;  %v7134_v51 = vpop.f32.mrf.mxu0  ;;  %v9885_v59 = vor.u32 %v13232_v50, %v9884_v49 }
 0x15a   :  { %7412 = vmatpush.bf16.msra.mxu2 %v9745_v56  ;;  %v7135_v56 = vadd.f32 %v7134_v51, %v7122_v34  ;;  %v7173_v12 = vpop.f32.mrf.mxu3  ;;  %v9605_v34 = vor.u32 %v13162_v11, %v9604_v9  ;;  %v13428_v51 = vld [vmem:[#allocation6 + $0xfa8] sm:$0xf0] }
 0x15b   :  { %7399 = vmatpush.bf16.msra.mxu1 %v9521_v61  ;;  %v9408_v61 = vld [vmem:[#allocation6 + $0x5b8] sm:$0xf]  ;;  %v7149_v47 = vpop.f32.mrf.mxu1 }
 0x15c   :  { %7425 = vmatpush.bf16.msra.mxu3 %v9969_v62  ;;  %v7148_v62 = vadd.f32 %v7147_v58, %v7135_v56  ;;  %v9800_v56 = vld [vmem:[#allocation6 + $0x8c8] sm:$0xf] }
 0x15d   :  { %7387 = vmatpush.bf16.msra.mxu0 %v9269_v0  ;;  %v13113_v0 = vld [vmem:[#allocation6 + $0x5d0] sm:$0xf0] }
 0x15e   :  { %7413 = vmatpush.bf16.msra.mxu2 %v9717_v4  ;;  %v9633_v4 = vor.u32 %v13169_v53, %v9632_v57  ;;  %v7161_v7 = vadd.f32 %v7160_v3, %v7148_v62  ;;  %v13211_v57 = vld [vmem:[#allocation6 + $0x8e0] sm:$0xf0]  ;;  %v10444_v53 = vld [vmem:[#allocation6 + $0xdd0] sm:$0xf] }
 0x15f   :  { %7400 = vmatpush.bf16.msra.mxu1 %v9493_v13  ;;  %v9409_v13 = vor.u32 %v13113_v0, %v9408_v61  ;;  %v13372_v61 = vld [vmem:[#allocation6 + $0xde8] sm:$0xf0]  ;;  %v10892_v62 = vld [vmem:[#allocation6 + $0x1150] sm:$0xf]  ;;  %v9801_v5 = vor.u32 %v13211_v57, %v9800_v56  ;;  %v10360_v56 = vld [vmem:[#allocation6 + $0xd28] sm:$0xf] }
 0x160   :  { %7426 = vmatpush.bf16.msra.mxu3 %v9941_v14  ;;  %v9857_v14 = vor.u32 %v13225_v2, %v9856_v1  ;;  %v14258_v17 = vadd.f32 %v7173_v12, %v7161_v7  ;;  %v7162_v58 = vpop.f32.mrf.mxu2  ;;  %v10192_v1 = vld [vmem:[#allocation6 + $0xbd8] sm:$0xf]  ;;  %v13309_v2 = vld [vmem:[#allocation6 + $0xbf0] sm:$0xf0]  ;;  %v10445_v9 = vor.u32 %v13372_v61, %v10444_v53  ;;  %v13351_v53 = vld [vmem:[#allocation6 + $0xd40] sm:$0xf0] }
 0x161   :  { %7388 = vmatpush.bf16.msra.mxu0 %v9241_v15  ;;  %v13106_v15 = vld [vmem:[#allocation6 + $0x598] sm:$0xf0]  ;;  %v7136_v32 = vpop.f32.mrf.mxu0  ;;  %v13421_v7 = vld [vmem:[#allocation6 + $0xf70] sm:$0xf0]  ;;  %v10416_v12 = vld [vmem:[#allocation6 + $0xd98] sm:$0xf] }
 0x162   :  { %7414 = vmatpush.bf16.msra.mxu2 %v9689_v25  ;;  %v13218_v25 = vld [vmem:[#allocation6 + $0x918] sm:$0xf0]  ;;  %v9381_v49 = vor.u32 %v13106_v15, %v9380_v27  ;;  %v7175_v3 = vpop.f32.mrf.mxu3  ;;  %v10864_v27 = vld [vmem:[#allocation6 + $0x1118] sm:$0xf]  ;;  %v13477_v15 = vld [vmem:[#allocation6 + $0x1130] sm:$0xf0] }
 0x163   :  { %7401 = vmatpush.bf16.msra.mxu1 %v9465_v41  ;;  %v13155_v41 = vld [vmem:[#allocation6 + $0x720] sm:$0xf0]  ;;  %v9829_v50 = vor.u32 %v13218_v25, %v9828_v24  ;;  %v10164_v24 = vld [vmem:[#allocation6 + $0xba0] sm:$0xf]  ;;  %v13302_v25 = vld [vmem:[#allocation6 + $0xbb8] sm:$0xf0]  ;;  %v10865_v35 = vor.u32 %v13477_v15, %v10864_v27 }
 0x164   :  { %7427 = vmatpush.bf16.msra.mxu3 %v9913_v43  ;;  %v10220_v43 = vld [vmem:[#allocation6 + $0xc10] sm:$0xf]  ;;  %v13414_v32 = vld [vmem:[#allocation6 + $0xf38] sm:$0xf0]  ;;  %v10808_v58 = vld [vmem:[#allocation6 + $0x10a8] sm:$0xf] }
 0x165   :  { %7389 = vmatpush.bf16.msra.mxu0 %v9213_v46  ;;  %v10668_v46 = vld [vmem:[#allocation6 + $0xf90] sm:$0xf]  ;;  %v10613_v47 = vor.u32 %v13414_v32, %v10612_v26  ;;  %v10528_v15 = vld [vmem:[#allocation6 + $0xe78] sm:$0xf] }
 0x166   :  { %7415 = vmatpush.bf16.msra.mxu2 %v9661_v52  ;;  %v9352_v52 = vld [vmem:[#allocation6 + $0x548] sm:$0xf]  ;;  %v10669_v0 = vor.u32 %v13428_v51, %v10668_v46  ;;  %v13470_v46 = vld [vmem:[#allocation6 + $0x10f8] sm:$0xf0]  ;;  %v10108_v61 = vld [vmem:[#allocation6 + $0xb30] sm:$0xf] }
 0x167   :  { %7402 = vmatpush.bf16.msra.mxu1 %v9437_v60  ;;  %v9577_v60 = vor.u32 %v13155_v41, %v9576_v38  ;;  %v10388_v38 = vld [vmem:[#allocation6 + $0xd60] sm:$0xf]  ;;  %v10165_v41 = vor.u32 %v13302_v25, %v10164_v24  ;;  %v10584_v51 = vld [vmem:[#allocation6 + $0xee8] sm:$0xf]  ;;  %v10332_v3 = vld [vmem:[#allocation6 + $0xcf0] sm:$0xf] }
 0x168   :  { %7428 = vmatpush.bf16.msra.mxu3 %v9885_v59  ;;  %v10221_v59 = vor.u32 %v13316_v45, %v10220_v43  ;;  %v13358_v43 = vld [vmem:[#allocation6 + $0xd78] sm:$0xf0]  ;;  %v10836_v45 = vld [vmem:[#allocation6 + $0x10e0] sm:$0xf]  ;;  %v10304_v32 = vld [vmem:[#allocation6 + $0xcb8] sm:$0xf] }
 0x169   :  { %7390 = vmatpush.bf16.msra.mxu0 %v9185_v63  ;;  %v13484_v63 = vld [vmem:[#allocation6 + $0x1168] sm:$0xf0] }
 0x16a   :  { %7416 = vmatpush.bf16.msra.mxu2 %v9633_v4  ;;  %v9353_v4 = vor.u32 %v13099_v54, %v9352_v52  ;;  %v10893_v11 = vor.u32 %v13484_v63, %v10892_v62  ;;  %v13407_v52 = vld [vmem:[#allocation6 + $0xf00] sm:$0xf0]  ;;  %v10389_v54 = vor.u32 %v13358_v43, %v10388_v38  ;;  %v13288_v62 = vld [vmem:[#allocation6 + $0xb48] sm:$0xf0]  ;;  %v10556_v63 = vld [vmem:[#allocation6 + $0xeb0] sm:$0xf] }
 0x16b   :  { %7403 = vmatpush.bf16.msra.mxu1 %v9409_v13  ;;  %v10193_v13 = vor.u32 %v13309_v2, %v10192_v1  ;;  %v10361_v1 = vor.u32 %v13351_v53, %v10360_v56  ;;  %v13337_v38 = vld [vmem:[#allocation6 + $0xcd0] sm:$0xf0]  ;;  %v10276_v56 = vld [vmem:[#allocation6 + $0xc80] sm:$0xf] }
 0x16c   :  { %7429 = vmatpush.bf16.msra.mxu3 %v9857_v14  ;;  %v13365_v14 = vld [vmem:[#allocation6 + $0xdb0] sm:$0xf0] }
 0x16d   :  { %7391 = vmatpush.bf16.msra.mxu0 %v9157_v20  ;;  %v10641_v20 = vor.u32 %v13421_v7, %v10640_v6  ;;  %v13344_v6 = vld [vmem:[#allocation6 + $0xd08] sm:$0xf0]  ;;  %v10780_v7 = vld [vmem:[#allocation6 + $0x1070] sm:$0xf]  ;;  %v13449_v43 = vld [vmem:[#allocation6 + $0x1050] sm:$0xf0] }
 0x16e   :  { %7417 = vmatpush.bf16.msra.mxu2 %v9605_v34  ;;  %v10417_v34 = vor.u32 %v13365_v14, %v10416_v12  ;;  %v13281_v14 = vld [vmem:[#allocation6 + $0xb10] sm:$0xf0]  ;;  %v10333_v24 = vor.u32 %v13344_v6, %v10332_v3  ;;  %v13540_v3 = vld [vmem:[#allocation6 + $0x1328] sm:$0xf0] }
 0x16f   :  { %7404 = vmatpush.bf16.msra.mxu1 %v9381_v49  ;;  %v10136_v49 = vld [vmem:[#allocation6 + $0xb68] sm:$0xf] }
 0x170   :  { %7430 = vmatpush.bf16.msra.mxu3 %v9829_v50  ;;  %v13295_v50 = vld [vmem:[#allocation6 + $0xb80] sm:$0xf0] }
 0x171   :  { %7392 = vmatpush.bf16.msra.mxu0 %v9129_v55  ;;  %v10837_v55 = vor.u32 %v13470_v46, %v10836_v45  ;;  %v10137_v57 = vor.u32 %v13295_v50, %v10136_v49  ;;  %v10052_v46 = vld [vmem:[#allocation6 + $0xac0] sm:$0xf] }
 0x172   :  { %7418 = vmatpush.bf16.msra.mxu2 %v9577_v60  ;;  %v13463_v60 = vld [vmem:[#allocation6 + $0x10c0] sm:$0xf0]  ;;  %v10500_v50 = vld [vmem:[#allocation6 + $0xe40] sm:$0xf] }
 0x173   :  { %7405 = vmatpush.bf16.msra.mxu1 %v9353_v4  ;;  %v10809_v2 = vor.u32 %v13463_v60, %v10808_v58  ;;  %v10109_v4 = vor.u32 %v13288_v62, %v10108_v61  ;;  %v7199_v27 = vpop.f32.mrf.mxu1  ;;  %v10724_v58 = vld [vmem:[#allocation6 + $0x1000] sm:$0xf]  ;;  %v13442_v60 = vld [vmem:[#allocation6 + $0x1018] sm:$0xf0] }
 0x174   :  { %7431 = vmatpush.bf16.msra.mxu3 %v9801_v5  ;;  %7393 = vmatmul.bf16.vlgmr.msra.gmra.mxu0 %v14163_v8  ;;  %v7186_v5 = vpop.f32.mrf.mxu0 }
 0x175   :  { %7437 = vmatpush.bf16.msrb.mxu0 %v10221_v59  ;;  %7419 = vmatmul.bf16.vlgmr.msra.gmra.mxu2 %v14179_v44  ;;  %v10585_v59 = vor.u32 %v13407_v52, %v10584_v51  ;;  %v7187_v12 = vadd.f32 %v7186_v5, %v14258_v17  ;;  %v13386_v51 = vld [vmem:[#allocation6 + $0xe58] sm:$0xf0]  ;;  %v10305_v52 = vor.u32 %v13337_v38, %v10304_v32  ;;  %v11788_v32 = vld [vmem:[#allocation6 + $0x1850] sm:$0xf]  ;;  %v11088_v38 = vld [vmem:[#allocation6 + $0x12d8] sm:$0xf] }
 0x176   :  { %7463 = vmatpush.bf16.msrb.mxu2 %v10669_v0  ;;  %7406 = vmatmul.bf16.vlgmr.msra.gmra.mxu1 %v14165_v10  ;;  %v13400_v0 = vld [vmem:[#allocation6 + $0xec8] sm:$0xf0]  ;;  %v10501_v62 = vor.u32 %v13386_v51, %v10500_v50  ;;  %v11312_v51 = vld [vmem:[#allocation6 + $0x1498] sm:$0xf] }
 0x177   :  { %7450 = vmatpush.bf16.msrb.mxu1 %v10445_v9  ;;  %7432 = vmatmul.bf16.vlgmr.msra.gmra.mxu3 %v14177_v42  ;;  %v13456_v9 = vld [vmem:[#allocation6 + $0x1088] sm:$0xf0]  ;;  %v7200_v26 = vadd.f32 %v7199_v27, %v7187_v12  ;;  %v13323_v12 = vld [vmem:[#allocation6 + $0xc60] sm:$0xf0] }
 0x178   :  { %7476 = vmatpush.bf16.msrb.mxu3 %v10893_v11  ;;  %v10557_v11 = vor.u32 %v13400_v0, %v10556_v63  ;;  %v10781_v25 = vor.u32 %v13456_v9, %v10780_v7  ;;  %v13267_v63 = vld [vmem:[#allocation6 + $0xaa0] sm:$0xf0]  ;;  %v10472_v0 = vld [vmem:[#allocation6 + $0xe08] sm:$0xf]  ;;  %v10725_v7 = vor.u32 %v13442_v60, %v10724_v58  ;;  %v13652_v9 = vld [vmem:[#allocation6 + $0x16a8] sm:$0xf0] }
 0x179   :  { %7438 = vmatpush.bf16.msrb.mxu0 %v10193_v13  ;;  %v10080_v13 = vld [vmem:[#allocation6 + $0xaf8] sm:$0xf]  ;;  %v13435_v27 = vld [vmem:[#allocation6 + $0xfe0] sm:$0xf0]  ;;  %v11060_v58 = vld [vmem:[#allocation6 + $0x12a0] sm:$0xf] }
 0x17a   :  { %7464 = vmatpush.bf16.msrb.mxu2 %v10641_v20  ;;  %v13393_v20 = vld [vmem:[#allocation6 + $0xe90] sm:$0xf0]  ;;  %v7225_v49 = vpop.f32.mrf.mxu3  ;;  %v13526_v60 = vld [vmem:[#allocation6 + $0x12b8] sm:$0xf0] }
 0x17b   :  { %7451 = vmatpush.bf16.msrb.mxu1 %v10417_v34  ;;  %v10081_v34 = vor.u32 %v13281_v14, %v10080_v13  ;;  %v10529_v45 = vor.u32 %v13393_v20, %v10528_v15  ;;  %v7201_v5 = vpop.f32.mrf.mxu1  ;;  %v10696_v14 = vld [vmem:[#allocation6 + $0xfc8] sm:$0xf]  ;;  %v11340_v15 = vld [vmem:[#allocation6 + $0x14d0] sm:$0xf] }
 0x17c   :  { %7477 = vmatpush.bf16.msrb.mxu3 %v10865_v35  ;;  %v7212_v35 = vpop.f32.mrf.mxu2  ;;  %v7188_v61 = vpop.f32.mrf.mxu0 }
 0x17d   :  { %7439 = vmatpush.bf16.msrb.mxu0 %v10165_v41  ;;  %v10752_v41 = vld [vmem:[#allocation6 + $0x1038] sm:$0xf]  ;;  %v7213_v17 = vadd.f32 %v7212_v35, %v7200_v26  ;;  %v13596_v26 = vld [vmem:[#allocation6 + $0x14e8] sm:$0xf0]  ;;  %v13638_v61 = vld [vmem:[#allocation6 + $0x1638] sm:$0xf0] }
 0x17e   :  { %7465 = vmatpush.bf16.msrb.mxu2 %v10613_v47  ;;  %v13274_v47 = vld [vmem:[#allocation6 + $0xad8] sm:$0xf0] }
 0x17f   :  { %7452 = vmatpush.bf16.msrb.mxu1 %v10389_v54  ;;  %v10753_v54 = vor.u32 %v13449_v43, %v10752_v41  ;;  %v10053_v53 = vor.u32 %v13274_v47, %v10052_v46  ;;  %v13533_v41 = vld [vmem:[#allocation6 + $0x12f0] sm:$0xf0]  ;;  %v11536_v46 = vld [vmem:[#allocation6 + $0x1658] sm:$0xf] }
 0x180   :  { %7478 = vmatpush.bf16.msrb.mxu3 %v10837_v55  ;;  %v14265_v55 = vadd.f32 %v7225_v49, %v7213_v17  ;;  %v10697_v17 = vor.u32 %v13435_v27, %v10696_v14  ;;  %v13645_v47 = vld [vmem:[#allocation6 + $0x1670] sm:$0xf0]  ;;  %v11341_v49 = vor.u32 %v13596_v26, %v11340_v15  ;;  %v11256_v14 = vld [vmem:[#allocation6 + $0x1428] sm:$0xf]  ;;  %v13575_v15 = vld [vmem:[#allocation6 + $0x1440] sm:$0xf0] }
 0x181   :  { %7440 = vmatpush.bf16.msrb.mxu0 %v10137_v57  ;;  %v13330_v57 = vld [vmem:[#allocation6 + $0xc98] sm:$0xf0] }
 0x182   :  { %7466 = vmatpush.bf16.msrb.mxu2 %v10585_v59  ;;  %v10024_v59 = vld [vmem:[#allocation6 + $0xa88] sm:$0xf]  ;;  %v10277_v6 = vor.u32 %v13330_v57, %v10276_v56  ;;  %v7227_v43 = vpop.f32.mrf.mxu3  ;;  %v11760_v56 = vld [vmem:[#allocation6 + $0x1818] sm:$0xf]  ;;  %v13701_v57 = vld [vmem:[#allocation6 + $0x1830] sm:$0xf0] }
 0x183   :  { %7453 = vmatpush.bf16.msrb.mxu1 %v10361_v1  ;;  %v13379_v1 = vld [vmem:[#allocation6 + $0xe20] sm:$0xf0]  ;;  %v10025_v13 = vor.u32 %v13267_v63, %v10024_v59  ;;  %v11508_v59 = vld [vmem:[#allocation6 + $0x1620] sm:$0xf]  ;;  %v11761_v63 = vor.u32 %v13701_v57, %v11760_v56  ;;  %v10976_v56 = vld [vmem:[#allocation6 + $0x11f8] sm:$0xf] }
 0x184   :  { %7479 = vmatpush.bf16.msrb.mxu3 %v10809_v2  ;;  %v11116_v2 = vld [vmem:[#allocation6 + $0x1310] sm:$0xf]  ;;  %v7214_v20 = vpop.f32.mrf.mxu2  ;;  %v11509_v5 = vor.u32 %v13638_v61, %v11508_v59  ;;  %v13505_v57 = vld [vmem:[#allocation6 + $0x1210] sm:$0xf0]  ;;  %v11200_v59 = vld [vmem:[#allocation6 + $0x13b8] sm:$0xf] }
 0x185   :  { %7441 = vmatpush.bf16.msrb.mxu0 %v10109_v4  ;;  %v11564_v4 = vld [vmem:[#allocation6 + $0x1690] sm:$0xf]  ;;  %v11704_v20 = vld [vmem:[#allocation6 + $0x17a8] sm:$0xf] }
 0x186   :  { %7467 = vmatpush.bf16.msrb.mxu2 %v10557_v11  ;;  %v10248_v11 = vld [vmem:[#allocation6 + $0xc48] sm:$0xf]  ;;  %v11565_v35 = vor.u32 %v13652_v9, %v11564_v4  ;;  %v13694_v4 = vld [vmem:[#allocation6 + $0x17f8] sm:$0xf0] }
 0x187   :  { %7454 = vmatpush.bf16.msrb.mxu1 %v10333_v24  ;;  %v10473_v24 = vor.u32 %v13379_v1, %v10472_v0  ;;  %v11284_v0 = vld [vmem:[#allocation6 + $0x1460] sm:$0xf]  ;;  %v11061_v1 = vor.u32 %v13526_v60, %v11060_v58  ;;  %v11480_v9 = vld [vmem:[#allocation6 + $0x15e8] sm:$0xf] }
 0x188   :  { %7480 = vmatpush.bf16.msrb.mxu3 %v10781_v25  ;;  %v11117_v25 = vor.u32 %v13540_v3, %v11116_v2  ;;  %v13582_v2 = vld [vmem:[#allocation6 + $0x1478] sm:$0xf0]  ;;  %v11732_v3 = vld [vmem:[#allocation6 + $0x17e0] sm:$0xf] }
 0x189   :  { %7442 = vmatpush.bf16.msrb.mxu0 %v10081_v34  ;;  %v13708_v34 = vld [vmem:[#allocation6 + $0x1868] sm:$0xf0] }
 0x18a   :  { %7468 = vmatpush.bf16.msrb.mxu2 %v10529_v45  ;;  %v10249_v45 = vor.u32 %v13323_v12, %v10248_v11  ;;  %v11789_v50 = vor.u32 %v13708_v34, %v11788_v32  ;;  %v13631_v11 = vld [vmem:[#allocation6 + $0x1600] sm:$0xf0]  ;;  %v11285_v12 = vor.u32 %v13582_v2, %v11284_v0  ;;  %v11004_v32 = vld [vmem:[#allocation6 + $0x1230] sm:$0xf]  ;;  %v13512_v34 = vld [vmem:[#allocation6 + $0x1248] sm:$0xf0] }
 0x18b   :  { %7455 = vmatpush.bf16.msrb.mxu1 %v10305_v52  ;;  %v11089_v52 = vor.u32 %v13533_v41, %v11088_v38  ;;  %v11481_v26 = vor.u32 %v13631_v11, %v11480_v9  ;;  %v11452_v38 = vld [vmem:[#allocation6 + $0x15b0] sm:$0xf]  ;;  %v13624_v41 = vld [vmem:[#allocation6 + $0x15c8] sm:$0xf0]  ;;  %v11648_v0 = vld [vmem:[#allocation6 + $0x1738] sm:$0xf] }
 0x18c   :  { %7481 = vmatpush.bf16.msrb.mxu3 %v10753_v54  ;;  %v13589_v54 = vld [vmem:[#allocation6 + $0x14b0] sm:$0xf0]  ;;  %v11396_v9 = vld [vmem:[#allocation6 + $0x1540] sm:$0xf]  ;;  %v13610_v11 = vld [vmem:[#allocation6 + $0x1558] sm:$0xf0] }
 0x18d   :  { %7443 = vmatpush.bf16.msrb.mxu0 %v10053_v53  ;;  %v11537_v53 = vor.u32 %v13645_v47, %v11536_v46  ;;  %v11228_v46 = vld [vmem:[#allocation6 + $0x13f0] sm:$0xf] }
 0x18e   :  { %7469 = vmatpush.bf16.msrb.mxu2 %v10501_v62  ;;  %v11313_v62 = vor.u32 %v13589_v54, %v11312_v51  ;;  %v11676_v51 = vld [vmem:[#allocation6 + $0x1770] sm:$0xf]  ;;  %v11453_v54 = vor.u32 %v13624_v41, %v11452_v38  ;;  %v11368_v38 = vld [vmem:[#allocation6 + $0x1508] sm:$0xf]  ;;  %v13603_v41 = vld [vmem:[#allocation6 + $0x1520] sm:$0xf0] }
 0x18f   :  { %7456 = vmatpush.bf16.msrb.mxu1 %v10277_v6  ;;  %v11032_v6 = vld [vmem:[#allocation6 + $0x1268] sm:$0xf] }
 0x190   :  { %7482 = vmatpush.bf16.msrb.mxu3 %v10725_v7  ;;  %v13519_v7 = vld [vmem:[#allocation6 + $0x1280] sm:$0xf0] }
 0x191   :  { %7444 = vmatpush.bf16.msrb.mxu0 %v10025_v13  ;;  %v11733_v13 = vor.u32 %v13694_v4, %v11732_v3  ;;  %v11033_v27 = vor.u32 %v13519_v7, %v11032_v6  ;;  %v10948_v4 = vld [vmem:[#allocation6 + $0x11c0] sm:$0xf] }
 0x192   :  { %7470 = vmatpush.bf16.msrb.mxu2 %v10473_v24  ;;  %v13687_v24 = vld [vmem:[#allocation6 + $0x17c0] sm:$0xf0] }
 0x193   :  { %7457 = vmatpush.bf16.msrb.mxu1 %v10249_v45  ;;  %v7251_v43 = vpop.f32.mrf.mxu1  ;;  %v11257_v45 = vor.u32 %v13575_v15, %v11256_v14 }
 0x194   :  { %7483 = vmatpush.bf16.msrb.mxu3 %v10697_v17  ;;  %7445 = vmatmul.bf16.vlgmr.msrb.gmra.mxu0 %v14175_v36  ;;  %v11705_v17 = vor.u32 %v13687_v24, %v11704_v20  ;;  %v13554_v24 = vld [vmem:[#allocation6 + $0x1398] sm:$0xf0] }
 0x195   :  { %7489 = vmatpush.bf16.msra.mxu0 %v11117_v25  ;;  %7471 = vmatmul.bf16.vlgmr.msrb.gmra.mxu2 %v14187_v19  ;;  %v7238_v25 = vpop.f32.mrf.mxu0 }
 0x196   :  { %7515 = vmatpush.bf16.msra.mxu2 %v11565_v35  ;;  %7458 = vmatmul.bf16.vlgmr.msrb.gmra.mxu1 %v14181_v48  ;;  %v7239_v35 = vadd.f32 %v7238_v25, %v14265_v55  ;;  %v13617_v55 = vld [vmem:[#allocation6 + $0x1590] sm:$0xf0]  ;;  %v11620_v25 = vld [vmem:[#allocation6 + $0x1700] sm:$0xf] }
 0x197   :  { %7502 = vmatpush.bf16.msra.mxu1 %v11341_v49  ;;  %7484 = vmatmul.bf16.vlgmr.msrb.gmra.mxu3 %v14191_v28  ;;  %v11005_v49 = vor.u32 %v13512_v34, %v11004_v32  ;;  %v11397_v32 = vor.u32 %v13610_v11, %v11396_v9  ;;  %v10920_v34 = vld [vmem:[#allocation6 + $0x1188] sm:$0xf]  ;;  %v12208_v9 = vld [vmem:[#allocation6 + $0x1b98] sm:$0xf]  ;;  %v13813_v11 = vld [vmem:[#allocation6 + $0x1bb0] sm:$0xf0] }
 0x198   :  { %7528 = vmatpush.bf16.msra.mxu3 %v11789_v50  ;;  %v7252_v47 = vadd.f32 %v7251_v43, %v7239_v35  ;;  %v13568_v50 = vld [vmem:[#allocation6 + $0x1408] sm:$0xf0]  ;;  %v7264_v61 = vpop.f32.mrf.mxu2  ;;  %v13491_v35 = vld [vmem:[#allocation6 + $0x11a0] sm:$0xf0]  ;;  %v12012_v43 = vld [vmem:[#allocation6 + $0x1a10] sm:$0xf] }
 0x199   :  { %7490 = vmatpush.bf16.msra.mxu0 %v11089_v52  ;;  %v13680_v52 = vld [vmem:[#allocation6 + $0x1788] sm:$0xf0]  ;;  %v11229_v58 = vor.u32 %v13568_v50, %v11228_v46  ;;  %v11144_v50 = vld [vmem:[#allocation6 + $0x1348] sm:$0xf] }
 0x19a   :  { %7516 = vmatpush.bf16.msra.mxu2 %v11537_v53  ;;  %v11424_v53 = vld [vmem:[#allocation6 + $0x1578] sm:$0xf]  ;;  %v11677_v60 = vor.u32 %v13680_v52, %v11676_v51  ;;  %v7265_v2 = vadd.f32 %v7264_v61, %v7252_v47  ;;  %v7277_v7 = vpop.f32.mrf.mxu3  ;;  %v12460_v47 = vld [vmem:[#allocation6 + $0x1d90] sm:$0xf]  ;;  %v10921_v51 = vor.u32 %v13491_v35, %v10920_v34  ;;  %v13547_v52 = vld [vmem:[#allocation6 + $0x1360] sm:$0xf0] }
 0x19b   :  { %7503 = vmatpush.bf16.msra.mxu1 %v11313_v62  ;;  %v10977_v62 = vor.u32 %v13505_v57, %v10976_v56  ;;  %v11425_v3 = vor.u32 %v13617_v55, %v11424_v53  ;;  %v7253_v15 = vpop.f32.mrf.mxu1  ;;  %v13659_v56 = vld [vmem:[#allocation6 + $0x16e0] sm:$0xf0]  ;;  %v11369_v53 = vor.u32 %v13603_v41, %v11368_v38  ;;  %v12684_v61 = vld [vmem:[#allocation6 + $0x1f50] sm:$0xf]  ;;  %v12180_v35 = vld [vmem:[#allocation6 + $0x1b60] sm:$0xf] }
 0x19c   :  { %7529 = vmatpush.bf16.msra.mxu3 %v11761_v63  ;;  %v13561_v63 = vld [vmem:[#allocation6 + $0x13d0] sm:$0xf0]  ;;  %v13806_v38 = vld [vmem:[#allocation6 + $0x1b78] sm:$0xf0]  ;;  %v12628_v41 = vld [vmem:[#allocation6 + $0x1ee0] sm:$0xf] }
 0x19d   :  { %7491 = vmatpush.bf16.msra.mxu0 %v11061_v1  ;;  %v13673_v1 = vld [vmem:[#allocation6 + $0x1750] sm:$0xf0]  ;;  %v7240_v6 = vpop.f32.mrf.mxu0 }
 0x19e   :  { %7517 = vmatpush.bf16.msra.mxu2 %v11509_v5  ;;  %v13498_v5 = vld [vmem:[#allocation6 + $0x11d8] sm:$0xf0]  ;;  %v11649_v14 = vor.u32 %v13673_v1, %v11648_v0  ;;  %v11145_v0 = vor.u32 %v13547_v52, %v11144_v50  ;;  %v13855_v50 = vld [vmem:[#allocation6 + $0x1d00] sm:$0xf0] }
 0x19f   :  { %7504 = vmatpush.bf16.msra.mxu1 %v11285_v12  ;;  %v14272_v12 = vadd.f32 %v7277_v7, %v7265_v2  ;;  %v10949_v20 = vor.u32 %v13498_v5, %v10948_v4  ;;  %v11984_v2 = vld [vmem:[#allocation6 + $0x19d8] sm:$0xf]  ;;  %v13869_v5 = vld [vmem:[#allocation6 + $0x1d70] sm:$0xf0] }
 0x1a0   :  { %7530 = vmatpush.bf16.msra.mxu3 %v11733_v13  ;;  %v11201_v13 = vor.u32 %v13561_v63, %v11200_v59  ;;  %v7266_v57 = vpop.f32.mrf.mxu2  ;;  %v13820_v59 = vld [vmem:[#allocation6 + $0x1be8] sm:$0xf0]  ;;  %v12432_v4 = vld [vmem:[#allocation6 + $0x1d58] sm:$0xf] }
 0x1a1   :  { %7492 = vmatpush.bf16.msra.mxu0 %v11033_v27  ;;  %v11172_v27 = vld [vmem:[#allocation6 + $0x1380] sm:$0xf]  ;;  %v12433_v15 = vor.u32 %v13869_v5, %v12432_v4  ;;  %v12600_v57 = vld [vmem:[#allocation6 + $0x1ea8] sm:$0xf]  ;;  %v12124_v4 = vld [vmem:[#allocation6 + $0x1af0] sm:$0xf] }
 0x1a2   :  { %7518 = vmatpush.bf16.msra.mxu2 %v11481_v26  ;;  %v13666_v26 = vld [vmem:[#allocation6 + $0x1718] sm:$0xf0]  ;;  %v7279_v63 = vpop.f32.mrf.mxu3 }
 0x1a3   :  { %7505 = vmatpush.bf16.msra.mxu1 %v11257_v45  ;;  %v13764_v45 = vld [vmem:[#allocation6 + $0x1a28] sm:$0xf0]  ;;  %v11621_v46 = vor.u32 %v13666_v26, %v11620_v25  ;;  %v12404_v25 = vld [vmem:[#allocation6 + $0x1d20] sm:$0xf]  ;;  %v13862_v26 = vld [vmem:[#allocation6 + $0x1d38] sm:$0xf0] }
 0x1a4   :  { %7531 = vmatpush.bf16.msra.mxu3 %v11705_v17  ;;  %v11173_v17 = vor.u32 %v13554_v24, %v11172_v27  ;;  %v12013_v55 = vor.u32 %v13764_v45, %v12012_v43  ;;  %v13750_v24 = vld [vmem:[#allocation6 + $0x19b8] sm:$0xf0]  ;;  %v12348_v63 = vld [vmem:[#allocation6 + $0x1cb0] sm:$0xf] }
 0x1a5   :  { %7493 = vmatpush.bf16.msra.mxu0 %v11005_v49  ;;  %v13876_v49 = vld [vmem:[#allocation6 + $0x1da8] sm:$0xf0]  ;;  %v13918_v43 = vld [vmem:[#allocation6 + $0x1ef8] sm:$0xf0] }
 0x1a6   :  { %7519 = vmatpush.bf16.msra.mxu2 %v11453_v54  ;;  %v11592_v54 = vld [vmem:[#allocation6 + $0x16c8] sm:$0xf]  ;;  %v12629_v52 = vor.u32 %v13918_v43, %v12628_v41 }
 0x1a7   :  { %7506 = vmatpush.bf16.msra.mxu1 %v11229_v58  ;;  %v12236_v58 = vld [vmem:[#allocation6 + $0x1bd0] sm:$0xf]  ;;  %v11593_v1 = vor.u32 %v13659_v56, %v11592_v54  ;;  %v12152_v54 = vld [vmem:[#allocation6 + $0x1b28] sm:$0xf]  ;;  %v13799_v56 = vld [vmem:[#allocation6 + $0x1b40] sm:$0xf0] }
 0x1a8   :  { %7532 = vmatpush.bf16.msra.mxu3 %v11677_v60  ;;  %v12461_v60 = vor.u32 %v13876_v49, %v12460_v47  ;;  %v12237_v6 = vor.u32 %v13820_v59, %v12236_v58  ;;  %v13743_v47 = vld [vmem:[#allocation6 + $0x1980] sm:$0xf0]  ;;  %v12376_v49 = vld [vmem:[#allocation6 + $0x1ce8] sm:$0xf]  ;;  %v11900_v59 = vld [vmem:[#allocation6 + $0x1930] sm:$0xf] }
 0x1a9   :  { %7494 = vmatpush.bf16.msra.mxu0 %v10977_v62  ;;  %v13932_v62 = vld [vmem:[#allocation6 + $0x1f68] sm:$0xf0] }
 0x1aa   :  { %7520 = vmatpush.bf16.msra.mxu2 %v11425_v3  ;;  %v13757_v3 = vld [vmem:[#allocation6 + $0x19f0] sm:$0xf0]  ;;  %v12685_v7 = vor.u32 %v13932_v62, %v12684_v61  ;;  %v13736_v62 = vld [vmem:[#allocation6 + $0x1948] sm:$0xf0] }
 0x1ab   :  { %7507 = vmatpush.bf16.msra.mxu1 %v11201_v13  ;;  %v12656_v13 = vld [vmem:[#allocation6 + $0x1f18] sm:$0xf]  ;;  %v11985_v27 = vor.u32 %v13757_v3, %v11984_v2  ;;  %v12153_v2 = vor.u32 %v13799_v56, %v12152_v54  ;;  %v12068_v56 = vld [vmem:[#allocation6 + $0x1a80] sm:$0xf] }
 0x1ac   :  { %7533 = vmatpush.bf16.msra.mxu3 %v11649_v14  ;;  %v13925_v14 = vld [vmem:[#allocation6 + $0x1f30] sm:$0xf0] }
 0x1ad   :  { %7495 = vmatpush.bf16.msra.mxu0 %v10949_v20  ;;  %v11956_v20 = vld [vmem:[#allocation6 + $0x19a0] sm:$0xf]  ;;  %v12657_v34 = vor.u32 %v13925_v14, %v12656_v13  ;;  %v11872_v14 = vld [vmem:[#allocation6 + $0x18f8] sm:$0xf] }
 0x1ae   :  { %7521 = vmatpush.bf16.msra.mxu2 %v11397_v32  ;;  %v12209_v32 = vor.u32 %v13813_v11, %v12208_v9  ;;  %v11957_v45 = vor.u32 %v13750_v24, %v11956_v20  ;;  %v13904_v9 = vld [vmem:[#allocation6 + $0x1e88] sm:$0xf0]  ;;  %v11901_v11 = vor.u32 %v13736_v62, %v11900_v59  ;;  %v13715_v62 = vld [vmem:[#allocation6 + $0x18a0] sm:$0xf0] }
 0x1af   :  { %7508 = vmatpush.bf16.msra.mxu1 %v11173_v17  ;;  %v12405_v17 = vor.u32 %v13862_v26, %v12404_v25  ;;  %v12096_v25 = vld [vmem:[#allocation6 + $0x1ab8] sm:$0xf] }
 0x1b0   :  { %7534 = vmatpush.bf16.msra.mxu3 %v11621_v46  ;;  %v11928_v46 = vld [vmem:[#allocation6 + $0x1968] sm:$0xf] }
 0x1b1   :  { %7496 = vmatpush.bf16.msra.mxu0 %v10921_v51  ;;  %v12181_v51 = vor.u32 %v13806_v38, %v12180_v35  ;;  %v11929_v58 = vor.u32 %v13743_v47, %v11928_v46  ;;  %v13897_v35 = vld [vmem:[#allocation6 + $0x1e50] sm:$0xf0]  ;;  %v13722_v47 = vld [vmem:[#allocation6 + $0x18d8] sm:$0xf0] }
 0x1b2   :  { %7522 = vmatpush.bf16.msra.mxu2 %v11369_v53  ;;  %v13911_v53 = vld [vmem:[#allocation6 + $0x1ec0] sm:$0xf0] }
 0x1b3   :  { %7509 = vmatpush.bf16.msra.mxu1 %v11145_v0  ;;  %v13848_v0 = vld [vmem:[#allocation6 + $0x1cc8] sm:$0xf0]  ;;  %v12601_v3 = vor.u32 %v13911_v53, %v12600_v57  ;;  %v13778_v53 = vld [vmem:[#allocation6 + $0x1a98] sm:$0xf0] }
 0x1b4   :  { %7535 = vmatpush.bf16.msra.mxu3 %v11593_v1  ;;  %7497 = vmatmul.bf16.vlgmr.msra.gmra.mxu0 %v14189_v23  ;;  %v7303_v1 = vpop.f32.mrf.mxu1  ;;  %v12349_v13 = vor.u32 %v13848_v0, %v12348_v63  ;;  %v12264_v63 = vld [vmem:[#allocation6 + $0x1c08] sm:$0xf]  ;;  %v13827_v0 = vld [vmem:[#allocation6 + $0x1c20] sm:$0xf0] }
 0x1b5   :  { %7541 = vmatpush.bf16.msrb.mxu0 %v12013_v55  ;;  %7523 = vmatmul.bf16.vlgmr.msra.gmra.mxu2 %v14199_v16  ;;  %v7290_v55 = vpop.f32.mrf.mxu0 }
 0x1b6   :  { %7567 = vmatpush.bf16.msrb.mxu2 %v12461_v60  ;;  %7510 = vmatmul.bf16.vlgmr.msra.gmra.mxu1 %v14193_v31  ;;  %v12377_v60 = vor.u32 %v13855_v50, %v12376_v49  ;;  %v7291_v61 = vadd.f32 %v7290_v55, %v14272_v12  ;;  %v12320_v12 = vld [vmem:[#allocation6 + $0x1c78] sm:$0xf]  ;;  %v12292_v49 = vld [vmem:[#allocation6 + $0x1c40] sm:$0xf]  ;;  %v13834_v50 = vld [vmem:[#allocation6 + $0x1c58] sm:$0xf0] }
 0x1b7   :  { %7554 = vmatpush.bf16.msrb.mxu1 %v12237_v6  ;;  %7536 = vmatmul.bf16.vlgmr.msra.gmra.mxu3 %v14203_v29  ;;  %v13792_v6 = vld [vmem:[#allocation6 + $0x1b08] sm:$0xf0]  ;;  %v12516_v55 = vld [vmem:[#allocation6 + $0x1e00] sm:$0xf]  ;;  %v12293_v59 = vor.u32 %v13834_v50, %v12292_v49  ;;  %v12970_v49 = vld [vmem:[#allocation6 + $0x15c] sm:$0xf] }
 0x1b8   :  { %7580 = vmatpush.bf16.msrb.mxu3 %v12685_v7  ;;  %v7304_v5 = vadd.f32 %v7303_v1, %v7291_v61  ;;  %v12572_v7 = vld [vmem:[#allocation6 + $0x1e70] sm:$0xf]  ;;  %v12125_v20 = vor.u32 %v13792_v6, %v12124_v4  ;;  %v7316_v26 = vpop.f32.mrf.mxu2  ;;  %v11816_v61 = vld [vmem:[#allocation6 + $0x1888] sm:$0xf]  ;;  %v8850_v50 = vld [vmem:[#allocation6 + $0x174] sm:$0xf0] }
 0x1b9   :  { %7542 = vmatpush.bf16.msrb.mxu0 %v11985_v27  ;;  %v13729_v27 = vld [vmem:[#allocation6 + $0x1910] sm:$0xf0]  ;;  %v12573_v24 = vor.u32 %v13904_v9, %v12572_v7  ;;  %v12908_v1 = vld [vmem:[#allocation6 + $0x2110] sm:$0xf]  ;;  %v12040_v7 = vld [vmem:[#allocation6 + $0x1a48] sm:$0xf] }
 0x1ba   :  { %7568 = vmatpush.bf16.msrb.mxu2 %v12433_v15  ;;  %v13841_v15 = vld [vmem:[#allocation6 + $0x1c90] sm:$0xf0]  ;;  %v7317_v38 = vadd.f32 %v7316_v26, %v7304_v5  ;;  %v11873_v41 = vor.u32 %v13729_v27, %v11872_v14  ;;  %v7329_v46 = vpop.f32.mrf.mxu3  ;;  %v9102_v6 = vld [vmem:[#allocation6 + $0x36c] sm:$0xf0]  ;;  %v13771_v9 = vld [vmem:[#allocation6 + $0x1a60] sm:$0xf0]  ;;  %v11817_v27 = vor.u32 %v13715_v62, %v11816_v61 }
 0x1bb   :  { %7555 = vmatpush.bf16.msrb.mxu1 %v12209_v32  ;;  %v13785_v32 = vld [vmem:[#allocation6 + $0x1ad0] sm:$0xf0]  ;;  %v12321_v43 = vor.u32 %v13841_v15, %v12320_v12  ;;  %v12265_v12 = vor.u32 %v13827_v0, %v12264_v63  ;;  %v12963_v62 = vld [vmem:[#allocation6 + $0x124] sm:$0xf]  ;;  %v8822_v63 = vld [vmem:[#allocation6 + $0x13c] sm:$0xf0] }
 0x1bc   :  { %7581 = vmatpush.bf16.msrb.mxu3 %v12657_v34  ;;  %v12544_v34 = vld [vmem:[#allocation6 + $0x1e38] sm:$0xf]  ;;  %v7305_v57 = vpop.f32.mrf.mxu1  ;;  %v13033_v5 = vld [vmem:[#allocation6 + $0x354] sm:$0xf]  ;;  %v13075_v0 = vld [vmem:[#allocation6 + $0x4a4] sm:$0xf] }
 0x1bd   :  { %7543 = vmatpush.bf16.msrb.mxu0 %v11957_v45  ;;  %v11844_v45 = vld [vmem:[#allocation6 + $0x18c0] sm:$0xf]  ;;  %v12545_v54 = vor.u32 %v13897_v35, %v12544_v34  ;;  %v12977_v15 = vld [vmem:[#allocation6 + $0x194] sm:$0xf]  ;;  %v12041_v35 = vor.u32 %v13771_v9, %v12040_v7  ;;  %v13012_v7 = vld [vmem:[#allocation6 + $0x2ac] sm:$0xf] }
 0x1be   :  { %7569 = vmatpush.bf16.msrb.mxu2 %v12405_v17  ;;  %v7292_v17 = vpop.f32.mrf.mxu0  ;;  %v13089_v26 = vld [vmem:[#allocation6 + $0x514] sm:$0xf]  ;;  %v9018_v9 = vld [vmem:[#allocation6 + $0x2c4] sm:$0xf0] }
 0x1bf   :  { %7556 = vmatpush.bf16.msrb.mxu1 %v12181_v51  ;;  %v14279_v51 = vadd.f32 %v7329_v46, %v7317_v38  ;;  %v9074_v17 = vld [vmem:[#allocation6 + $0x334] sm:$0xf0] }
 0x1c0   :  { %7582 = vmatpush.bf16.msrb.mxu3 %v12629_v52  ;;  %v12097_v52 = vor.u32 %v13785_v32, %v12096_v25  ;;  %v7318_v14 = vpop.f32.mrf.mxu2  ;;  %v8878_v25 = vld [vmem:[#allocation6 + $0x1ac] sm:$0xf0] }
 0x1c1   :  { %7544 = vmatpush.bf16.msrb.mxu0 %v11929_v58  ;;  %v13890_v58 = vld [vmem:[#allocation6 + $0x1e18] sm:$0xf0]  ;;  %v9326_v32 = vld [vmem:[#allocation6 + $0x52c] sm:$0xf0]  ;;  %v8881_v46 = vor.u32 %v12977_v15, %v8878_v25  ;;  %v12956_v14 = vld [vmem:[#allocation6 + $0xec] sm:$0xf] }
 0x1c2   :  { %7570 = vmatpush.bf16.msrb.mxu2 %v12377_v60  ;;  %v11845_v60 = vor.u32 %v13722_v47, %v11844_v45  ;;  %v12517_v4 = vor.u32 %v13890_v58, %v12516_v55  ;;  %v7331_v34 = vpop.f32.mrf.mxu3  ;;  %v13026_v45 = vld [vmem:[#allocation6 + $0x31c] sm:$0xf]  ;;  %v9329_v47 = vor.u32 %v13089_v26, %v9326_v32  ;;  %v13019_v58 = vld [vmem:[#allocation6 + $0x2e4] sm:$0xf]  ;;  %v9242_v15 = vld [vmem:[#allocation6 + $0x484] sm:$0xf0]  ;;  %v9021_v26 = vor.u32 %v13012_v7, %v9018_v9 }
 0x1c3   :  { %7557 = vmatpush.bf16.msrb.mxu1 %v12153_v2  ;;  %v13988_v2 = vld [vmem:[#allocation6 + $0x2128] sm:$0xf0]  ;;  %v9077_v57 = vor.u32 %v13026_v45, %v9074_v17  ;;  %v13974_v55 = vld [vmem:[#allocation6 + $0x20b8] sm:$0xf0]  ;;  %v12796_v32 = vld [vmem:[#allocation6 + $0x2030] sm:$0xf] }
 0x1c4   :  { %7583 = vmatpush.bf16.msrb.mxu3 %v12601_v3  ;;  %v12069_v3 = vor.u32 %v13778_v53, %v12068_v56  ;;  %v12852_v53 = vld [vmem:[#allocation6 + $0x20a0] sm:$0xf] }
 0x1c5   :  { %7545 = vmatpush.bf16.msrb.mxu0 %v11901_v11  ;;  %v12488_v11 = vld [vmem:[#allocation6 + $0x1dc8] sm:$0xf]  ;;  %v12740_v9 = vld [vmem:[#allocation6 + $0x1fc0] sm:$0xf] }
 0x1c6   :  { %7571 = vmatpush.bf16.msrb.mxu2 %v12349_v13  ;;  %v13883_v13 = vld [vmem:[#allocation6 + $0x1de0] sm:$0xf0] }
 0x1c7   :  { %7558 = vmatpush.bf16.msrb.mxu1 %v12125_v20  ;;  %v12909_v20 = vor.u32 %v13988_v2, %v12908_v1  ;;  %v12489_v38 = vor.u32 %v13883_v13, %v12488_v11  ;;  %v9270_v1 = vld [vmem:[#allocation6 + $0x4bc] sm:$0xf0]  ;;  %v8602_v2 = vld [vmem:[#allocation9] sm:$0xff]  ;;  %v8825_v11 = vor.u32 %v12963_v62, %v8822_v63  ;;  %v12942_v62 = vld [vmem:[#allocation6 + $0x7c] sm:$0xf] }
 0x1c8   :  { %7584 = vmatpush.bf16.msrb.mxu3 %v12573_v24  ;;  %v9105_v24 = vor.u32 %v13033_v5, %v9102_v6  ;;  %v12824_v5 = vld [vmem:[#allocation6 + $0x2068] sm:$0xf]  ;;  %v13967_v6 = vld [vmem:[#allocation6 + $0x2080] sm:$0xf0]  ;;  %v9273_v13 = vor.u32 %v13075_v0, %v9270_v1  ;;  %v8605_v17 = vperm.slane %v8602_v2, 1 }
 0x1c9   :  { %7546 = vmatpush.bf16.msrb.mxu0 %v11873_v41  ;;  %v12880_v41 = vld [vmem:[#allocation6 + $0x20d8] sm:$0xf]  ;;  %v12825_v25 = vor.u32 %v13967_v6, %v12824_v5 }
 0x1ca   :  { %7572 = vmatpush.bf16.msrb.mxu2 %v12321_v43  ;;  %v13981_v43 = vld [vmem:[#allocation6 + $0x20f0] sm:$0xf0]  ;;  %v8738_v63 = vld [vmem:[#allocation6 + $0x94] sm:$0xf0] }
 0x1cb   :  { %7559 = vmatpush.bf16.msrb.mxu1 %v12097_v52  ;;  %v13082_v52 = vld [vmem:[#allocation6 + $0x4dc] sm:$0xf]  ;;  %v12881_v56 = vor.u32 %v13981_v43, %v12880_v41  ;;  %v8990_v41 = vld [vmem:[#allocation6 + $0x28c] sm:$0xf0]  ;;  %v8594_v43 = vmax.f32 %v14249_v39, 0.0 }
 0x1cc   :  { %7585 = vmatpush.bf16.msrb.mxu3 %v12545_v54  ;;  %v9298_v54 = vld [vmem:[#allocation6 + $0x4f4] sm:$0xf0] }
 0x1cd   :  { %7547 = vmatpush.bf16.msrb.mxu0 %v11845_v60  ;;  %v9046_v60 = vld [vmem:[#allocation6 + $0x2fc] sm:$0xf0]  ;;  %v9301_v61 = vor.u32 %v13082_v52, %v9298_v54  ;;  %v8766_v52 = vld [vmem:[#allocation6 + $0xcc] sm:$0xf0]  ;;  %v13061_v54 = vld [vmem:[#allocation6 + $0x434] sm:$0xf] }
 0x1ce   :  { %7573 = vmatpush.bf16.msrb.mxu2 %v12293_v59  ;;  %v8853_v59 = vor.u32 %v12970_v49, %v8850_v50  ;;  %v12949_v49 = vld [vmem:[#allocation6 + $0xb4] sm:$0xf]  ;;  %v8962_v39 = vld [vmem:[#allocation6 + $0x254] sm:$0xf0] }
 0x1cf   :  { %7560 = vmatpush.bf16.msrb.mxu1 %v12069_v3  ;;  %v12853_v3 = vor.u32 %v13974_v55, %v12852_v53  ;;  %v12768_v53 = vld [vmem:[#allocation6 + $0x1ff8] sm:$0xf]  ;;  %v13953_v55 = vld [vmem:[#allocation6 + $0x2010] sm:$0xf0] }
 0x1d0   :  { %7586 = vmatpush.bf16.msrb.mxu3 %v12517_v4  ;;  %v9049_v4 = vor.u32 %v13019_v58, %v9046_v60  ;;  %v12998_v60 = vld [vmem:[#allocation6 + $0x23c] sm:$0xf]  ;;  %v12769_v6 = vor.u32 %v13953_v55, %v12768_v53  ;;  %v9998_v53 = vld [vmem:[#allocation6 + $0xa6c] sm:$0xf0]  ;;  %v12928_v55 = vld [vmem:[#allocation6 + $0xc] sm:$0xf] }
 0x1d1   :  { %7548 = vmatpush.bf16.msrb.mxu0 %v11817_v27  ;;  %v8794_v27 = vld [vmem:[#allocation6 + $0x104] sm:$0xf0]  ;;  %v8965_v7 = vor.u32 %v12998_v60, %v8962_v39  ;;  %v13040_v60 = vld [vmem:[#allocation6 + $0x38c] sm:$0xf] }
 0x1d2   :  { %7574 = vmatpush.bf16.msrb.mxu2 %v12265_v12  ;;  %v13068_v12 = vld [vmem:[#allocation6 + $0x46c] sm:$0xf]  ;;  %v9130_v39 = vld [vmem:[#allocation6 + $0x3a4] sm:$0xf0] }
 0x1d3   :  { %7561 = vmatpush.bf16.msrb.mxu1 %v12041_v35  ;;  %v13960_v35 = vld [vmem:[#allocation6 + $0x2048] sm:$0xf0]  ;;  %v7355_v45 = vpop.f32.mrf.mxu1 }
 0x1d4   :  { %7587 = vmatpush.bf16.msrb.mxu3 %v12489_v38  ;;  %7549 = vmatmul.bf16.vlgmr.msrb.gmra.mxu0 %v14201_v21  ;;  %v13005_v38 = vld [vmem:[#allocation6 + $0x274] sm:$0xf] }
 0x1d5   :  { %7593 = vmatpush.bf16.msra.mxu0 %v12909_v20  ;;  %7575 = vmatmul.bf16.vlgmr.msrb.gmra.mxu2 %v14211_v30  ;;  %v8604_v20 = vperm.slane %v8602_v2, 0  ;;  %v13054_v2 = vld [vmem:[#allocation6 + $0x3fc] sm:$0xf] }
 0x1d6   :  { %7619 = vmatpush.bf16.msra.mxu2 %v9105_v24  ;;  %7562 = vmatmul.bf16.vlgmr.msrb.gmra.mxu1 %v14205_v33  ;;  %v7342_v24 = vpop.f32.mrf.mxu0 }
 0x1d7   :  { %7606 = vmatpush.bf16.msra.mxu1 %v8881_v46  ;;  %7588 = vmatmul.bf16.vlgmr.msrb.gmra.mxu3 %v14215_v40  ;;  %v7343_v34 = vadd.f32 %v7342_v24, %v14279_v51  ;;  %v8797_v46 = vor.u32 %v12956_v14, %v8794_v27  ;;  %v8993_v51 = vor.u32 %v13005_v38, %v8990_v41  ;;  %v13946_v14 = vld [vmem:[#allocation6 + $0x1fd8] sm:$0xf0]  ;;  %v12991_v27 = vld [vmem:[#allocation6 + $0x204] sm:$0xf]  ;;  %v9158_v38 = vld [vmem:[#allocation6 + $0x3dc] sm:$0xf0] }
 0x1d8   :  { %7632 = vmatpush.bf16.msra.mxu3 %v9329_v47  ;;  %v9245_v47 = vor.u32 %v13068_v12, %v9242_v15  ;;  %v8618_v0 = vmul.f32 %v8604_v20, %v8594_v43  ;;  %v8934_v12 = vld [vmem:[#allocation6 + $0x21c] sm:$0xf0]  ;;  %v8741_v20 = vor.u32 %v12942_v62, %v8738_v63  ;;  %v12741_v43 = vor.u32 %v13946_v14, %v12740_v9  ;;  %v13201_v62 = vld [vmem:[#allocation6 + $0x894] sm:$0xf]  ;;  %v9774_v63 = vld [vmem:[#allocation6 + $0x8ac] sm:$0xf0] }
 0x1d9   :  { %7594 = vmatpush.bf16.msra.mxu0 %v12881_v56  ;;  %v7356_v50 = vadd.f32 %v7355_v45, %v7343_v34  ;;  %v9214_v56 = vld [vmem:[#allocation6 + $0x44c] sm:$0xf0]  ;;  %v8710_v34 = vld [vmem:[#allocation6 + $0x5c] sm:$0xf0]  ;;  %v8937_v45 = vor.u32 %v12991_v27, %v8934_v12  ;;  %v9522_v9 = vld [vmem:[#allocation6 + $0x6b4] sm:$0xf0]  ;;  %v9777_v12 = vor.u32 %v13201_v62, %v9774_v63 }
 0x1da   :  { %7620 = vmatpush.bf16.msra.mxu2 %v9077_v57  ;;  %v12797_v57 = vor.u32 %v13960_v35, %v12796_v32  ;;  %v7381_v15 = vpop.f32.mrf.mxu3  ;;  %v13047_v35 = vld [vmem:[#allocation6 + $0x3c4] sm:$0xf]  ;;  %v9970_v14 = vld [vmem:[#allocation6 + $0xa34] sm:$0xf0]  ;;  %v13292_v63 = vld [vmem:[#allocation6 + $0xb6c] sm:$0xf] }
 0x1db   :  { %7607 = vmatpush.bf16.msra.mxu1 %v8853_v59  ;;  %v8595_v58 = vmax.f32 %v7356_v50, 0.0  ;;  %v8769_v59 = vor.u32 %v12949_v49, %v8766_v52  ;;  %v7357_v32 = vpop.f32.mrf.mxu1  ;;  %v8906_v49 = vld [vmem:[#allocation6 + $0x1e4] sm:$0xf0]  ;;  %v13145_v50 = vld [vmem:[#allocation6 + $0x6d4] sm:$0xf] }
 0x1dc   :  { %7633 = vmatpush.bf16.msra.mxu3 %v9301_v61  ;;  %v9217_v61 = vor.u32 %v13061_v54, %v9214_v56  ;;  %v9550_v52 = vld [vmem:[#allocation6 + $0x6ec] sm:$0xf0]  ;;  %v13306_v32 = vld [vmem:[#allocation6 + $0xbdc] sm:$0xf] }
 0x1dd   :  { %7595 = vmatpush.bf16.msra.mxu0 %v12853_v3  ;;  %v8619_v1 = vmul.f32 %v8605_v17, %v8595_v58  ;;  %v9186_v3 = vld [vmem:[#allocation6 + $0x414] sm:$0xf0]  ;;  %v12712_v17 = vld [vmem:[#allocation6 + $0x1f88] sm:$0xf] }
 0x1de   :  { %7621 = vmatpush.bf16.msra.mxu2 %v9049_v4  ;;  %v14003_v4 = vld [vmem:[#allocation8] sm:$0xff]  ;;  %v9189_v24 = vor.u32 %v13054_v2, %v9186_v3  ;;  %v8682_v58 = vld [vmem:[#allocation6 + $0x24] sm:$0xf0]  ;;  %v13313_v2 = vld [vmem:[#allocation6 + $0xc14] sm:$0xf] }
 0x1df   :  { %7608 = vmatpush.bf16.msra.mxu1 %v8825_v11  ;;  %v1314_v5 = vperm.slane %v14003_v4, 2  ;;  %v7344_v11 = vpop.f32.mrf.mxu0  ;;  %v10222_v3 = vld [vmem:[#allocation6 + $0xc2c] sm:$0xf0]  ;;  %v13138_v4 = vld [vmem:[#allocation6 + $0x69c] sm:$0xf] }
 0x1e0   :  { %7634 = vmatpush.bf16.msra.mxu3 %v9273_v13  ;;  %v14287_v13 = vadd.f32 %v8619_v1, %v8618_v0  ;;  %v9553_v0 = vor.u32 %v13145_v50, %v9550_v52  ;;  %v13250_v11 = vld [vmem:[#allocation6 + $0xa1c] sm:$0xf]  ;;  %v13299_v52 = vld [vmem:[#allocation6 + $0xba4] sm:$0xf] }
 0x1e1   :  { %7596 = vmatpush.bf16.msra.mxu0 %v12825_v25  ;;  %v12935_v25 = vld [vmem:[#allocation6 + $0x44] sm:$0xf] }
 0x1e2   :  { %7622 = vmatpush.bf16.msra.mxu2 %v9021_v26  ;;  %v7368_v26 = vpop.f32.mrf.mxu2  ;;  %v8713_v56 = vor.u32 %v12935_v25, %v8710_v34  ;;  %v9525_v25 = vor.u32 %v13138_v4, %v9522_v9  ;;  %v10194_v34 = vld [vmem:[#allocation6 + $0xbf4] sm:$0xf0]  ;;  %v9886_v4 = vld [vmem:[#allocation6 + $0x98c] sm:$0xf0] }
 0x1e3   :  { %7609 = vmatpush.bf16.msra.mxu1 %v8797_v46  ;;  %v7369_v41 = vadd.f32 %v7368_v26, %v1314_v5  ;;  %v13939_v46 = vld [vmem:[#allocation6 + $0x1fa0] sm:$0xf0]  ;;  %v7383_v5 = vpop.f32.mrf.mxu3  ;;  %v9973_v26 = vor.u32 %v13250_v11, %v9970_v14  ;;  %v9662_v9 = vld [vmem:[#allocation6 + $0x7cc] sm:$0xf0] }
 0x1e4   :  { %7635 = vmatpush.bf16.msra.mxu3 %v9245_v47  ;;  %v12984_v47 = vld [vmem:[#allocation6 + $0x1cc] sm:$0xf] }
 0x1e5   :  { %7597 = vmatpush.bf16.msra.mxu0 %v12797_v57  ;;  %v14289_v54 = vadd.f32 %v7381_v15, %v7369_v41  ;;  %v9161_v57 = vor.u32 %v13047_v35, %v9158_v38  ;;  %v10225_v15 = vor.u32 %v13313_v2, %v10222_v3  ;;  %v13131_v35 = vld [vmem:[#allocation6 + $0x664] sm:$0xf]  ;;  %v9494_v38 = vld [vmem:[#allocation6 + $0x67c] sm:$0xf0]  ;;  %v9438_v2 = vld [vmem:[#allocation6 + $0x60c] sm:$0xf0] }
 0x1e6   :  { %7623 = vmatpush.bf16.msra.mxu2 %v8993_v51  ;;  %v13257_v51 = vld [vmem:[#allocation6 + $0xa54] sm:$0xf]  ;;  %v13243_v41 = vld [vmem:[#allocation6 + $0x9e4] sm:$0xf] }
 0x1e7   :  { %7610 = vmatpush.bf16.msra.mxu1 %v8769_v59  ;;  %v12713_v59 = vor.u32 %v13939_v46, %v12712_v17  ;;  %v10001_v1 = vor.u32 %v13257_v51, %v9998_v53  ;;  %v10197_v17 = vor.u32 %v13306_v32, %v10194_v34  ;;  %v13187_v46 = vld [vmem:[#allocation6 + $0x824] sm:$0xf]  ;;  %v9466_v51 = vld [vmem:[#allocation6 + $0x644] sm:$0xf0]  ;;  %v13236_v53 = vld [vmem:[#allocation6 + $0x9ac] sm:$0xf] }
 0x1e8   :  { %7636 = vmatpush.bf16.msra.mxu3 %v9217_v61  ;;  %v8909_v61 = vor.u32 %v12984_v47, %v8906_v49  ;;  %v9718_v47 = vld [vmem:[#allocation6 + $0x83c] sm:$0xf0]  ;;  %v9497_v49 = vor.u32 %v13131_v35, %v9494_v38  ;;  %v13229_v3 = vld [vmem:[#allocation6 + $0x974] sm:$0xf]  ;;  %v13222_v32 = vld [vmem:[#allocation6 + $0x93c] sm:$0xf] }
 0x1e9   :  { %7598 = vmatpush.bf16.msra.mxu0 %v12769_v6  ;;  %v8685_v6 = vor.u32 %v12928_v55, %v8682_v58  ;;  %v9914_v55 = vld [vmem:[#allocation6 + $0x9c4] sm:$0xf0]  ;;  %v9721_v58 = vor.u32 %v13187_v46, %v9718_v47  ;;  %v9858_v34 = vld [vmem:[#allocation6 + $0x954] sm:$0xf0]  ;;  %v13278_v47 = vld [vmem:[#allocation6 + $0xafc] sm:$0xf] }
 0x1ea   :  { %7624 = vmatpush.bf16.msra.mxu2 %v8965_v7  ;;  %v9133_v7 = vor.u32 %v13040_v60, %v9130_v39  ;;  %v7370_v27 = vpop.f32.mrf.mxu2  ;;  %v13180_v39 = vld [vmem:[#allocation6 + $0x7ec] sm:$0xf]  ;;  %v9917_v62 = vor.u32 %v13236_v53, %v9914_v55  ;;  %v9861_v46 = vor.u32 %v13222_v32, %v9858_v34  ;;  %v10026_v32 = vld [vmem:[#allocation6 + $0xaa4] sm:$0xf0]  ;;  %v13425_v34 = vld [vmem:[#allocation6 + $0xf94] sm:$0xf] }
 0x1eb   :  { %7611 = vmatpush.bf16.msra.mxu1 %v8741_v20  ;;  %v13194_v20 = vld [vmem:[#allocation6 + $0x85c] sm:$0xf]  ;;  %v9889_v27 = vor.u32 %v13229_v3, %v9886_v4  ;;  %v9354_v3 = vld [vmem:[#allocation6 + $0x564] sm:$0xf0] }
 0x1ec   :  { %7637 = vmatpush.bf16.msra.mxu3 %v9189_v24  ;;  %v9746_v24 = vld [vmem:[#allocation6 + $0x874] sm:$0xf0] }
 0x1ed   :  { %7599 = vmatpush.bf16.msra.mxu0 %v12741_v43  ;;  %v9942_v43 = vld [vmem:[#allocation6 + $0x9fc] sm:$0xf0] }
 0x1ee   :  { %7625 = vmatpush.bf16.msra.mxu2 %v8937_v45  ;;  %v9749_v45 = vor.u32 %v13194_v20, %v9746_v24  ;;  %v9945_v50 = vor.u32 %v13243_v41, %v9942_v43  ;;  %v13110_v20 = vld [vmem:[#allocation6 + $0x5bc] sm:$0xf] }
 0x1ef   :  { %7612 = vmatpush.bf16.msra.mxu1 %v8713_v56  ;;  %v10166_v56 = vld [vmem:[#allocation6 + $0xbbc] sm:$0xf0]  ;;  %v13166_v43 = vld [vmem:[#allocation6 + $0x77c] sm:$0xf] }
 0x1f0   :  { %7638 = vmatpush.bf16.msra.mxu3 %v9161_v57  ;;  %v13124_v57 = vld [vmem:[#allocation6 + $0x62c] sm:$0xf]  ;;  %v10169_v60 = vor.u32 %v13299_v52, %v10166_v56  ;;  %v13215_v56 = vld [vmem:[#allocation6 + $0x904] sm:$0xf] }
 0x1f1   :  { %7600 = vmatpush.bf16.msra.mxu0 %v12713_v59  ;;  %v9690_v59 = vld [vmem:[#allocation6 + $0x804] sm:$0xf0]  ;;  %v7394_v11 = vpop.f32.mrf.mxu0 }
 0x1f2   :  { %7626 = vmatpush.bf16.msra.mxu2 %v8909_v61  ;;  %v9469_v61 = vor.u32 %v13124_v57, %v9466_v51  ;;  %v9693_v5 = vor.u32 %v13180_v39, %v9690_v59  ;;  %v7395_v24 = vadd.f32 %v7394_v11, %v14289_v54  ;;  %v9382_v54 = vld [vmem:[#allocation6 + $0x59c] sm:$0xf0]  ;;  %v13271_v59 = vld [vmem:[#allocation6 + $0xac4] sm:$0xf]  ;;  %v10446_v11 = vld [vmem:[#allocation6 + $0xdec] sm:$0xf0] }
 0x1f3   :  { %7613 = vmatpush.bf16.msra.mxu1 %v8685_v6  ;;  %v9830_v57 = vld [vmem:[#allocation6 + $0x91c] sm:$0xf0] }
 0x1f4   :  { %7639 = vmatpush.bf16.msra.mxu3 %v9133_v7  ;;  %7601 = vmatmul.bf16.vlgmr.msra.gmra.mxu0 %v14213_v37  ;;  %v13173_v7 = vld [vmem:[#allocation6 + $0x7b4] sm:$0xf]  ;;  %v9606_v39 = vld [vmem:[#allocation6 + $0x75c] sm:$0xf0] }
 0x1f5   :  { %7645 = vmatpush.bf16.msrb.mxu0 %v9553_v0  ;;  %7627 = vmatmul.bf16.vlgmr.msra.gmra.mxu2 %v14171_v22  ;;  %v10138_v0 = vld [vmem:[#allocation6 + $0xb84] sm:$0xf0]  ;;  %v9665_v35 = vor.u32 %v13173_v7, %v9662_v9  ;;  %v13369_v7 = vld [vmem:[#allocation6 + $0xdd4] sm:$0xf] }
 0x1f6   :  { %7671 = vmatpush.bf16.msrb.mxu2 %v10001_v1  ;;  %7614 = vmatmul.bf16.vlgmr.msra.gmra.mxu1 %v14168_v18  ;;  %v13117_v1 = vld [vmem:[#allocation6 + $0x5f4] sm:$0xf]  ;;  %v10141_v6 = vor.u32 %v13292_v63, %v10138_v0  ;;  %v9833_v0 = vor.u32 %v13215_v56, %v9830_v57 }
 0x1f7   :  { %7658 = vmatpush.bf16.msrb.mxu1 %v9777_v12  ;;  %7640 = vmatmul.bf16.vlgmr.msra.gmra.mxu3 %v14163_v8  ;;  %v9441_v14 = vor.u32 %v13117_v1, %v9438_v2  ;;  %v13285_v12 = vld [vmem:[#allocation6 + $0xb34] sm:$0xf]  ;;  %v10054_v1 = vld [vmem:[#allocation6 + $0xadc] sm:$0xf0]  ;;  %v13096_v2 = vld [vmem:[#allocation6 + $0x54c] sm:$0xf] }
 0x1f8   :  { %7684 = vmatpush.bf16.msrb.mxu3 %v10225_v15  ;;  %v10110_v15 = vld [vmem:[#allocation6 + $0xb4c] sm:$0xf0]  ;;  %v7420_v52 = vpop.f32.mrf.mxu2 }
 0x1f9   :  { %7646 = vmatpush.bf16.msrb.mxu0 %v9525_v25  ;;  %v7407_v25 = vpop.f32.mrf.mxu1  ;;  %v10113_v41 = vor.u32 %v13285_v12, %v10110_v15  ;;  %v10057_v12 = vor.u32 %v13271_v59, %v10054_v1  ;;  %v13152_v15 = vld [vmem:[#allocation6 + $0x70c] sm:$0xf]  ;;  %v11090_v59 = vld [vmem:[#allocation6 + $0x12f4] sm:$0xf0]  ;;  %v10838_v1 = vld [vmem:[#allocation6 + $0x10fc] sm:$0xf0] }
 0x1fa   :  { %7672 = vmatpush.bf16.msrb.mxu2 %v9973_v26  ;;  %v9410_v26 = vld [vmem:[#allocation6 + $0x5d4] sm:$0xf0]  ;;  %v7408_v38 = vadd.f32 %v7407_v25, %v7395_v24  ;;  %v7433_v55 = vpop.f32.mrf.mxu3  ;;  %v13264_v24 = vld [vmem:[#allocation6 + $0xa8c] sm:$0xf]  ;;  %v9357_v25 = vor.u32 %v13096_v2, %v9354_v3 }
 0x1fb   :  { %7659 = vmatpush.bf16.msrb.mxu1 %v9749_v45  ;;  %v9634_v45 = vld [vmem:[#allocation6 + $0x794] sm:$0xf0]  ;;  %v10029_v56 = vor.u32 %v13264_v24, %v10026_v32 }
 0x1fc   :  { %7685 = vmatpush.bf16.msrb.mxu3 %v10197_v17  ;;  %v9413_v17 = vor.u32 %v13110_v20, %v9410_v26  ;;  %v7421_v51 = vadd.f32 %v7420_v52, %v7408_v38  ;;  %v9637_v53 = vor.u32 %v13166_v43, %v9634_v45  ;;  %v9578_v20 = vld [vmem:[#allocation6 + $0x724] sm:$0xf0]  ;;  %v13537_v45 = vld [vmem:[#allocation6 + $0x1314] sm:$0xf]  ;;  %v10866_v52 = vld [vmem:[#allocation6 + $0x1134] sm:$0xf0] }
 0x1fd   :  { %7647 = vmatpush.bf16.msrb.mxu0 %v9497_v49  ;;  %v10082_v49 = vld [vmem:[#allocation6 + $0xb14] sm:$0xf0] }
 0x1fe   :  { %7673 = vmatpush.bf16.msrb.mxu2 %v9945_v50  ;;  %v13103_v50 = vld [vmem:[#allocation6 + $0x584] sm:$0xf] }
 0x1ff   :  { %7660 = vmatpush.bf16.msrb.mxu1 %v9721_v58  ;;  %v10085_v58 = vor.u32 %v13278_v47, %v10082_v49  ;;  %v9385_v63 = vor.u32 %v13103_v50, %v9382_v54  ;;  %v9581_v47 = vor.u32 %v13152_v15, %v9578_v20  ;;  %v10418_v49 = vld [vmem:[#allocation6 + $0xdb4] sm:$0xf0]  ;;  %v13474_v50 = vld [vmem:[#allocation6 + $0x111c] sm:$0xf]  ;;  %v10810_v15 = vld [vmem:[#allocation6 + $0x10c4] sm:$0xf0] }
 0x200   :  { %7686 = vmatpush.bf16.msrb.mxu3 %v10169_v60  ;;  %v13159_v60 = vld [vmem:[#allocation6 + $0x744] sm:$0xf]  ;;  %v7422_v38 = vpop.f32.mrf.mxu2 }
 0x201   :  { %7648 = vmatpush.bf16.msrb.mxu0 %v9469_v61  ;;  %v14296_v61 = vadd.f32 %v7433_v55, %v7421_v51  ;;  %v7409_v4 = vpop.f32.mrf.mxu1  ;;  %v9609_v9 = vor.u32 %v13159_v60, %v9606_v39  ;;  %v10642_v55 = vld [vmem:[#allocation6 + $0xf74] sm:$0xf0]  ;;  %v10869_v60 = vor.u32 %v13474_v50, %v10866_v52  ;;  %v13530_v39 = vld [vmem:[#allocation6 + $0x12dc] sm:$0xf]  ;;  %v11034_v38 = vld [vmem:[#allocation6 + $0x1284] sm:$0xf0] }
 0x202   :  { %7674 = vmatpush.bf16.msrb.mxu2 %v9917_v62  ;;  %v7396_v62 = vpop.f32.mrf.mxu0  ;;  %v7435_v54 = vpop.f32.mrf.mxu3  ;;  %v11093_v3 = vor.u32 %v13530_v39, %v11090_v59  ;;  %v13411_v4 = vld [vmem:[#allocation6 + $0xf24] sm:$0xf]  ;;  %v13397_v50 = vld [vmem:[#allocation6 + $0xeb4] sm:$0xf]  ;;  %v10558_v52 = vld [vmem:[#allocation6 + $0xecc] sm:$0xf0] }
 0x203   :  { %7661 = vmatpush.bf16.msrb.mxu1 %v9693_v5  ;;  %v13208_v5 = vld [vmem:[#allocation6 + $0x8cc] sm:$0xf]  ;;  %v13355_v62 = vld [vmem:[#allocation6 + $0xd64] sm:$0xf]  ;;  %v13446_v39 = vld [vmem:[#allocation6 + $0x103c] sm:$0xf] }
 0x204   :  { %7687 = vmatpush.bf16.msrb.mxu3 %v10141_v6  ;;  %v9802_v6 = vld [vmem:[#allocation6 + $0x8e4] sm:$0xf0]  ;;  %v10754_v59 = vld [vmem:[#allocation6 + $0x1054] sm:$0xf0] }
 0x205   :  { %7649 = vmatpush.bf16.msrb.mxu0 %v9441_v14  ;;  %v13481_v14 = vld [vmem:[#allocation6 + $0x1154] sm:$0xf]  ;;  %v9805_v26 = vor.u32 %v13208_v5, %v9802_v6  ;;  %v10614_v5 = vld [vmem:[#allocation6 + $0xf3c] sm:$0xf0] }
 0x206   :  { %7675 = vmatpush.bf16.msrb.mxu2 %v9889_v27  ;;  %v10894_v27 = vld [vmem:[#allocation6 + $0x116c] sm:$0xf0]  ;;  %v10617_v20 = vor.u32 %v13411_v4, %v10614_v5  ;;  %v10757_v4 = vor.u32 %v13446_v39, %v10754_v59  ;;  %v10922_v39 = vld [vmem:[#allocation6 + $0x11a4] sm:$0xf0]  ;;  %v13649_v59 = vld [vmem:[#allocation6 + $0x1694] sm:$0xf] }
 0x207   :  { %7662 = vmatpush.bf16.msrb.mxu1 %v9665_v35  ;;  %v10670_v35 = vld [vmem:[#allocation6 + $0xfac] sm:$0xf0]  ;;  %v10897_v43 = vor.u32 %v13481_v14, %v10894_v27  ;;  %v13348_v14 = vld [vmem:[#allocation6 + $0xd2c] sm:$0xf]  ;;  %v10362_v27 = vld [vmem:[#allocation6 + $0xd44] sm:$0xf0] }
 0x208   :  { %7688 = vmatpush.bf16.msrb.mxu3 %v10113_v41  ;;  %v10449_v41 = vor.u32 %v13369_v7, %v10446_v11  ;;  %v10673_v57 = vor.u32 %v13425_v34, %v10670_v35  ;;  %v11062_v11 = vld [vmem:[#allocation6 + $0x12bc] sm:$0xf0]  ;;  %v10365_v32 = vor.u32 %v13348_v14, %v10362_v27  ;;  %v13516_v35 = vld [vmem:[#allocation6 + $0x126c] sm:$0xf]  ;;  %v13439_v14 = vld [vmem:[#allocation6 + $0x1004] sm:$0xf] }
 0x209   :  { %7650 = vmatpush.bf16.msrb.mxu0 %v9413_v17  ;;  %v11118_v17 = vld [vmem:[#allocation6 + $0x132c] sm:$0xf0]  ;;  %v10726_v27 = vld [vmem:[#allocation6 + $0x101c] sm:$0xf0] }
 0x20a   :  { %7676 = vmatpush.bf16.msrb.mxu2 %v9861_v46  ;;  %v13362_v46 = vld [vmem:[#allocation6 + $0xd9c] sm:$0xf]  ;;  %v11121_v51 = vor.u32 %v13537_v45, %v11118_v17  ;;  %v13453_v45 = vld [vmem:[#allocation6 + $0x1074] sm:$0xf]  ;;  %v10782_v17 = vld [vmem:[#allocation6 + $0x108c] sm:$0xf0] }
 0x20b   :  { %7663 = vmatpush.bf16.msrb.mxu1 %v9637_v53  ;;  %v13418_v53 = vld [vmem:[#allocation6 + $0xf5c] sm:$0xf] }
 0x20c   :  { %7689 = vmatpush.bf16.msrb.mxu3 %v10085_v58  ;;  %v10421_v58 = vor.u32 %v13362_v46, %v10418_v49  ;;  %v10645_v2 = vor.u32 %v13418_v53, %v10642_v55  ;;  %v11006_v53 = vld [vmem:[#allocation6 + $0x124c] sm:$0xf0] }
 0x20d   :  { %7651 = vmatpush.bf16.msrb.mxu0 %v9385_v63  ;;  %v10390_v63 = vld [vmem:[#allocation6 + $0xd7c] sm:$0xf0] }
 0x20e   :  { %7677 = vmatpush.bf16.msrb.mxu2 %v9833_v0  ;;  %v13467_v0 = vld [vmem:[#allocation6 + $0x10e4] sm:$0xf]  ;;  %v10393_v6 = vor.u32 %v13355_v62, %v10390_v63  ;;  %v10561_v62 = vor.u32 %v13397_v50, %v10558_v52  ;;  %v11342_v52 = vld [vmem:[#allocation6 + $0x14ec] sm:$0xf0] }
 0x20f   :  { %7664 = vmatpush.bf16.msrb.mxu1 %v9609_v9  ;;  %v10841_v7 = vor.u32 %v13467_v0, %v10838_v1  ;;  %v13523_v9 = vld [vmem:[#allocation6 + $0x12a4] sm:$0xf]  ;;  %v13390_v1 = vld [vmem:[#allocation6 + $0xe7c] sm:$0xf] }
 0x210   :  { %7690 = vmatpush.bf16.msrb.mxu3 %v10057_v12  ;;  %v13460_v12 = vld [vmem:[#allocation6 + $0x10ac] sm:$0xf]  ;;  %v11065_v24 = vor.u32 %v13523_v9, %v11062_v11  ;;  %v10278_v11 = vld [vmem:[#allocation6 + $0xc9c] sm:$0xf0] }
 0x211   :  { %7652 = vmatpush.bf16.msrb.mxu0 %v9357_v25  ;;  %v13404_v25 = vld [vmem:[#allocation6 + $0xeec] sm:$0xf]  ;;  %v10813_v34 = vor.u32 %v13460_v12, %v10810_v15  ;;  %v7446_v49 = vpop.f32.mrf.mxu0 }
 0x212   :  { %7678 = vmatpush.bf16.msrb.mxu2 %v9805_v26  ;;  %v10586_v26 = vld [vmem:[#allocation6 + $0xf04] sm:$0xf0] }
 0x213   :  { %7665 = vmatpush.bf16.msrb.mxu1 %v9581_v47  ;;  %v10589_v46 = vor.u32 %v13404_v25, %v10586_v26  ;;  %v11037_v47 = vor.u32 %v13516_v35, %v11034_v38  ;;  %v7459_v55 = vpop.f32.mrf.mxu1  ;;  %v13383_v25 = vld [vmem:[#allocation6 + $0xe44] sm:$0xf]  ;;  %v10502_v26 = vld [vmem:[#allocation6 + $0xe5c] sm:$0xf0]  ;;  %v10729_v38 = vor.u32 %v13439_v14, %v10726_v27 }
 0x214   :  { %7691 = vmatpush.bf16.msrb.mxu3 %v10029_v56  ;;  %7653 = vmatmul.bf16.vlgmr.msrb.gmra.mxu0 %v14165_v10  ;;  %v10785_v56 = vor.u32 %v13453_v45, %v10782_v17  ;;  %v10250_v45 = vld [vmem:[#allocation6 + $0xc64] sm:$0xf0]  ;;  %v10505_v50 = vor.u32 %v13383_v25, %v10502_v26  ;;  %v13754_v26 = vld [vmem:[#allocation6 + $0x19dc] sm:$0xf] }
 0x215   :  { %7697 = vmatpush.bf16.msra.mxu0 %v10449_v41  ;;  %7679 = vmatmul.bf16.vlgmr.msrb.gmra.mxu2 %v14177_v42  ;;  %v13341_v41 = vld [vmem:[#allocation6 + $0xcf4] sm:$0xf] }
 0x216   :  { %7723 = vmatpush.bf16.msra.mxu2 %v10897_v43  ;;  %7666 = vmatmul.bf16.vlgmr.msrb.gmra.mxu1 %v14179_v44  ;;  %v10334_v43 = vld [vmem:[#allocation6 + $0xd0c] sm:$0xf0] }
 0x217   :  { %7710 = vmatpush.bf16.msra.mxu1 %v10673_v57  ;;  %7692 = vmatmul.bf16.vlgmr.msrb.gmra.mxu3 %v14175_v36  ;;  %v10337_v54 = vor.u32 %v13341_v41, %v10334_v43  ;;  %v7447_v57 = vadd.f32 %v7446_v49, %v14296_v61  ;;  %v13502_v61 = vld [vmem:[#allocation6 + $0x11fc] sm:$0xf]  ;;  %v10950_v41 = vld [vmem:[#allocation6 + $0x11dc] sm:$0xf0]  ;;  %v13320_v43 = vld [vmem:[#allocation6 + $0xc4c] sm:$0xf] }
 0x218   :  { %7736 = vmatpush.bf16.msra.mxu3 %v11121_v51  ;;  %v13509_v51 = vld [vmem:[#allocation6 + $0x1234] sm:$0xf]  ;;  %v7472_v5 = vpop.f32.mrf.mxu2 }
 0x219   :  { %7698 = vmatpush.bf16.msra.mxu0 %v10421_v58  ;;  %v13334_v58 = vld [vmem:[#allocation6 + $0xcbc] sm:$0xf]  ;;  %v7460_v63 = vadd.f32 %v7459_v55, %v7447_v57  ;;  %v11009_v0 = vor.u32 %v13509_v51, %v11006_v53  ;;  %v13593_v49 = vld [vmem:[#allocation6 + $0x14d4] sm:$0xf]  ;;  %v13376_v51 = vld [vmem:[#allocation6 + $0xe0c] sm:$0xf] }
 0x21a   :  { %7724 = vmatpush.bf16.msra.mxu2 %v10869_v60  ;;  %v10306_v60 = vld [vmem:[#allocation6 + $0xcd4] sm:$0xf0]  ;;  %v7485_v15 = vpop.f32.mrf.mxu3  ;;  %v10474_v53 = vld [vmem:[#allocation6 + $0xe24] sm:$0xf0]  ;;  %v13488_v55 = vld [vmem:[#allocation6 + $0x118c] sm:$0xf] }
 0x21b   :  { %7711 = vmatpush.bf16.msra.mxu1 %v10645_v2  ;;  %v10530_v2 = vld [vmem:[#allocation6 + $0xe94] sm:$0xf0]  ;;  %v7473_v9 = vadd.f32 %v7472_v5, %v7460_v63  ;;  %v7461_v17 = vpop.f32.mrf.mxu1  ;;  %v10477_v5 = vor.u32 %v13376_v51, %v10474_v53  ;;  %v11706_v51 = vld [vmem:[#allocation6 + $0x17c4] sm:$0xf0] }
 0x21c   :  { %7737 = vmatpush.bf16.msra.mxu3 %v11093_v3  ;;  %v10309_v3 = vor.u32 %v13334_v58, %v10306_v60  ;;  %v10533_v12 = vor.u32 %v13390_v1, %v10530_v2  ;;  %v10253_v58 = vor.u32 %v13320_v43, %v10250_v45  ;;  %v13761_v2 = vld [vmem:[#allocation6 + $0x1a14] sm:$0xf]  ;;  %v13635_v17 = vld [vmem:[#allocation6 + $0x1624] sm:$0xf] }
 0x21d   :  { %7699 = vmatpush.bf16.msra.mxu0 %v10393_v6  ;;  %v10978_v6 = vld [vmem:[#allocation6 + $0x1214] sm:$0xf0] }
 0x21e   :  { %7725 = vmatpush.bf16.msra.mxu2 %v10841_v7  ;;  %v13327_v7 = vld [vmem:[#allocation6 + $0xc84] sm:$0xf] }
 0x21f   :  { %7712 = vmatpush.bf16.msra.mxu1 %v10617_v20  ;;  %v10981_v20 = vor.u32 %v13502_v61, %v10978_v6  ;;  %v10281_v35 = vor.u32 %v13327_v7, %v10278_v11  ;;  %v11314_v61 = vld [vmem:[#allocation6 + $0x14b4] sm:$0xf0]  ;;  %v13698_v6 = vld [vmem:[#allocation6 + $0x181c] sm:$0xf]  ;;  %v10925_v11 = vor.u32 %v13488_v55, %v10922_v39 }
 0x220   :  { %7738 = vmatpush.bf16.msra.mxu3 %v11065_v24  ;;  %v14303_v24 = vadd.f32 %v7485_v15, %v7473_v9  ;;  %v7474_v63 = vpop.f32.mrf.mxu2  ;;  %v11762_v7 = vld [vmem:[#allocation6 + $0x1834] sm:$0xf0] }
 0x221   :  { %7700 = vmatpush.bf16.msra.mxu0 %v10365_v32  ;;  %v13495_v32 = vld [vmem:[#allocation6 + $0x11c4] sm:$0xf]  ;;  %v11538_v15 = vld [vmem:[#allocation6 + $0x1674] sm:$0xf0]  ;;  %v11765_v25 = vor.u32 %v13698_v6, %v11762_v7  ;;  %v11930_v63 = vld [vmem:[#allocation6 + $0x1984] sm:$0xf0] }
 0x222   :  { %7726 = vmatpush.bf16.msra.mxu2 %v10813_v34  ;;  %v7448_v34 = vpop.f32.mrf.mxu0  ;;  %v10953_v57 = vor.u32 %v13495_v32, %v10950_v41  ;;  %v7487_v9 = vpop.f32.mrf.mxu3  ;;  %v11986_v32 = vld [vmem:[#allocation6 + $0x19f4] sm:$0xf0]  ;;  %v11734_v41 = vld [vmem:[#allocation6 + $0x17fc] sm:$0xf0] }
 0x223   :  { %7713 = vmatpush.bf16.msra.mxu1 %v10589_v46  ;;  %v13432_v46 = vld [vmem:[#allocation6 + $0xfcc] sm:$0xf]  ;;  %v13579_v34 = vld [vmem:[#allocation6 + $0x1464] sm:$0xf]  ;;  %v11989_v45 = vor.u32 %v13754_v26, %v11986_v32  ;;  %v13621_v9 = vld [vmem:[#allocation6 + $0x15b4] sm:$0xf] }
 0x224   :  { %7739 = vmatpush.bf16.msra.mxu3 %v11037_v47  ;;  %v10698_v47 = vld [vmem:[#allocation6 + $0xfe4] sm:$0xf0]  ;;  %v11202_v26 = vld [vmem:[#allocation6 + $0x13d4] sm:$0xf0]  ;;  %v13670_v32 = vld [vmem:[#allocation6 + $0x173c] sm:$0xf] }
 0x225   :  { %7701 = vmatpush.bf16.msra.mxu0 %v10337_v54  ;;  %v13705_v54 = vld [vmem:[#allocation6 + $0x1854] sm:$0xf]  ;;  %v10701_v60 = vor.u32 %v13432_v46, %v10698_v47  ;;  %v11510_v46 = vld [vmem:[#allocation6 + $0x163c] sm:$0xf0] }
 0x226   :  { %7727 = vmatpush.bf16.msra.mxu2 %v10785_v56  ;;  %v11790_v56 = vld [vmem:[#allocation6 + $0x186c] sm:$0xf0]  ;;  %v11513_v53 = vor.u32 %v13635_v17, %v11510_v46 }
 0x227   :  { %7714 = vmatpush.bf16.msra.mxu1 %v10561_v62  ;;  %v11566_v62 = vld [vmem:[#allocation6 + $0x16ac] sm:$0xf0]  ;;  %v11793_v1 = vor.u32 %v13705_v54, %v11790_v56  ;;  %v13572_v54 = vld [vmem:[#allocation6 + $0x142c] sm:$0xf]  ;;  %v11258_v56 = vld [vmem:[#allocation6 + $0x1444] sm:$0xf0] }
 0x228   :  { %7740 = vmatpush.bf16.msra.mxu3 %v11009_v0  ;;  %v11345_v0 = vor.u32 %v13593_v49, %v11342_v52  ;;  %v11569_v14 = vor.u32 %v13649_v59, %v11566_v62  ;;  %v11958_v52 = vld [vmem:[#allocation6 + $0x19bc] sm:$0xf0]  ;;  %v11261_v39 = vor.u32 %v13572_v54, %v11258_v56  ;;  %v13740_v62 = vld [vmem:[#allocation6 + $0x196c] sm:$0xf]  ;;  %v13663_v56 = vld [vmem:[#allocation6 + $0x1704] sm:$0xf] }
 0x229   :  { %7702 = vmatpush.bf16.msra.mxu0 %v10309_v3  ;;  %v12014_v3 = vld [vmem:[#allocation6 + $0x1a2c] sm:$0xf0]  ;;  %v11933_v7 = vor.u32 %v13740_v62, %v11930_v63  ;;  %v11174_v54 = vld [vmem:[#allocation6 + $0x139c] sm:$0xf0] }
 0x22a   :  { %7728 = vmatpush.bf16.msra.mxu2 %v10757_v4  ;;  %v13586_v4 = vld [vmem:[#allocation6 + $0x149c] sm:$0xf]  ;;  %v12017_v27 = vor.u32 %v13761_v2, %v12014_v3  ;;  %v11230_v2 = vld [vmem:[#allocation6 + $0x140c] sm:$0xf0]  ;;  %v13677_v3 = vld [vmem:[#allocation6 + $0x1774] sm:$0xf] }
 0x22b   :  { %7715 = vmatpush.bf16.msra.mxu1 %v10533_v12  ;;  %v13642_v12 = vld [vmem:[#allocation6 + $0x165c] sm:$0xf] }
 0x22c   :  { %7741 = vmatpush.bf16.msra.mxu3 %v10981_v20  ;;  %v11317_v20 = vor.u32 %v13586_v4, %v11314_v61  ;;  %v11541_v43 = vor.u32 %v13642_v12, %v11538_v15  ;;  %v11678_v4 = vld [vmem:[#allocation6 + $0x178c] sm:$0xf0]  ;;  %v13733_v15 = vld [vmem:[#allocation6 + $0x1934] sm:$0xf] }
 0x22d   :  { %7703 = vmatpush.bf16.msra.mxu0 %v10281_v35  ;;  %v11286_v35 = vld [vmem:[#allocation6 + $0x147c] sm:$0xf0]  ;;  %v11681_v12 = vor.u32 %v13677_v3, %v11678_v4  ;;  %v11146_v3 = vld [vmem:[#allocation6 + $0x1364] sm:$0xf0]  ;;  %v13656_v4 = vld [vmem:[#allocation6 + $0x16cc] sm:$0xf] }
 0x22e   :  { %7729 = vmatpush.bf16.msra.mxu2 %v10729_v38  ;;  %v13691_v38 = vld [vmem:[#allocation6 + $0x17e4] sm:$0xf]  ;;  %v11289_v47 = vor.u32 %v13579_v34, %v11286_v35  ;;  %v11650_v34 = vld [vmem:[#allocation6 + $0x1754] sm:$0xf0] }
 0x22f   :  { %7716 = vmatpush.bf16.msra.mxu1 %v10505_v50  ;;  %v11737_v49 = vor.u32 %v13691_v38, %v11734_v41  ;;  %v13747_v50 = vld [vmem:[#allocation6 + $0x19a4] sm:$0xf]  ;;  %v13614_v41 = vld [vmem:[#allocation6 + $0x157c] sm:$0xf]  ;;  %v11653_v46 = vor.u32 %v13670_v32, %v11650_v34  ;;  %v11818_v32 = vld [vmem:[#allocation6 + $0x18a4] sm:$0xf0] }
 0x230   :  { %7742 = vmatpush.bf16.msra.mxu3 %v10953_v57  ;;  %v13684_v57 = vld [vmem:[#allocation6 + $0x17ac] sm:$0xf]  ;;  %v11961_v55 = vor.u32 %v13747_v50, %v11958_v52  ;;  %v13551_v50 = vld [vmem:[#allocation6 + $0x1384] sm:$0xf] }
 0x231   :  { %7704 = vmatpush.bf16.msra.mxu0 %v10253_v58  ;;  %v13628_v58 = vld [vmem:[#allocation6 + $0x15ec] sm:$0xf]  ;;  %v11709_v59 = vor.u32 %v13684_v57, %v11706_v51  ;;  %v11622_v57 = vld [vmem:[#allocation6 + $0x171c] sm:$0xf0]  ;;  %v11177_v63 = vor.u32 %v13551_v50, %v11174_v54  ;;  %v12658_v54 = vld [vmem:[#allocation6 + $0x1f34] sm:$0xf0] }
 0x232   :  { %7730 = vmatpush.bf16.msra.mxu2 %v10701_v60  ;;  %v11482_v60 = vld [vmem:[#allocation6 + $0x1604] sm:$0xf0] }
 0x233   :  { %7717 = vmatpush.bf16.msra.mxu1 %v10477_v5  ;;  %v11485_v61 = vor.u32 %v13628_v58, %v11482_v60  ;;  %v7511_v6 = vpop.f32.mrf.mxu1  ;;  %v13607_v60 = vld [vmem:[#allocation6 + $0x1544] sm:$0xf] }
 0x234   :  { %7743 = vmatpush.bf16.msra.mxu3 %v10925_v11  ;;  %7705 = vmatmul.bf16.vlgmr.msra.gmra.mxu0 %v14181_v48  ;;  %v11454_v11 = vld [vmem:[#allocation6 + $0x15cc] sm:$0xf0] }
 0x235   :  { %7749 = vmatpush.bf16.msrb.mxu0 %v11345_v0  ;;  %7731 = vmatmul.bf16.vlgmr.msra.gmra.mxu2 %v14191_v28  ;;  %v13565_v0 = vld [vmem:[#allocation6 + $0x13f4] sm:$0xf]  ;;  %v11457_v35 = vor.u32 %v13621_v9, %v11454_v11  ;;  %v12686_v11 = vld [vmem:[#allocation6 + $0x1f6c] sm:$0xf0] }
 0x236   :  { %7775 = vmatpush.bf16.msrb.mxu2 %v11793_v1  ;;  %7718 = vmatmul.bf16.vlgmr.msra.gmra.mxu1 %v14187_v19  ;;  %v7498_v1 = vpop.f32.mrf.mxu0  ;;  %v13929_v9 = vld [vmem:[#allocation6 + $0x1f54] sm:$0xf] }
 0x237   :  { %7762 = vmatpush.bf16.msrb.mxu1 %v11569_v14  ;;  %7744 = vmatmul.bf16.vlgmr.msra.gmra.mxu3 %v14189_v23  ;;  %v7499_v5 = vadd.f32 %v7498_v1, %v14303_v24  ;;  %v11846_v1 = vld [vmem:[#allocation6 + $0x18dc] sm:$0xf0] }
 0x238   :  { %7788 = vmatpush.bf16.msrb.mxu3 %v12017_v27  ;;  %v11233_v27 = vor.u32 %v13565_v0, %v11230_v2  ;;  %v7524_v24 = vpop.f32.mrf.mxu2  ;;  %v11625_v0 = vor.u32 %v13663_v56, %v11622_v57  ;;  %v13544_v2 = vld [vmem:[#allocation6 + $0x134c] sm:$0xf]  ;;  %v13866_v57 = vld [vmem:[#allocation6 + $0x1d5c] sm:$0xf] }
 0x239   :  { %7750 = vmatpush.bf16.msrb.mxu0 %v11317_v20  ;;  %v7512_v14 = vadd.f32 %v7511_v6, %v7499_v5  ;;  %v11902_v20 = vld [vmem:[#allocation6 + $0x194c] sm:$0xf0]  ;;  %v11594_v5 = vld [vmem:[#allocation6 + $0x16e4] sm:$0xf0] }
 0x23a   :  { %7776 = vmatpush.bf16.msrb.mxu2 %v11765_v25  ;;  %v13558_v25 = vld [vmem:[#allocation6 + $0x13bc] sm:$0xf]  ;;  %v11905_v38 = vor.u32 %v13733_v15, %v11902_v20  ;;  %v7537_v52 = vpop.f32.mrf.mxu3  ;;  %v11149_v20 = vor.u32 %v13544_v2, %v11146_v3  ;;  %v13859_v3 = vld [vmem:[#allocation6 + $0x1d24] sm:$0xf] }
 0x23b   :  { %7763 = vmatpush.bf16.msrb.mxu1 %v11541_v43  ;;  %v11426_v43 = vld [vmem:[#allocation6 + $0x1594] sm:$0xf0]  ;;  %v11205_v17 = vor.u32 %v13558_v25, %v11202_v26  ;;  %v7513_v62 = vpop.f32.mrf.mxu1  ;;  %v11597_v25 = vor.u32 %v13656_v4, %v11594_v5  ;;  %v13712_v26 = vld [vmem:[#allocation6 + $0x188c] sm:$0xf]  ;;  %v12406_v4 = vld [vmem:[#allocation6 + $0x1d3c] sm:$0xf0] }
 0x23c   :  { %7789 = vmatpush.bf16.msrb.mxu3 %v11989_v45  ;;  %v7525_v45 = vadd.f32 %v7524_v24, %v7512_v14  ;;  %v13873_v24 = vld [vmem:[#allocation6 + $0x1d94] sm:$0xf]  ;;  %v12182_v62 = vld [vmem:[#allocation6 + $0x1b7c] sm:$0xf0] }
 0x23d   :  { %7751 = vmatpush.bf16.msrb.mxu0 %v11289_v47  ;;  %v13726_v47 = vld [vmem:[#allocation6 + $0x18fc] sm:$0xf] }
 0x23e   :  { %7777 = vmatpush.bf16.msrb.mxu2 %v11737_v49  ;;  %v11874_v49 = vld [vmem:[#allocation6 + $0x1914] sm:$0xf0]  ;;  %v7500_v51 = vpop.f32.mrf.mxu0 }
 0x23f   :  { %7764 = vmatpush.bf16.msrb.mxu1 %v11513_v53  ;;  %v14310_v53 = vadd.f32 %v7537_v52, %v7525_v45  ;;  %v11877_v58 = vor.u32 %v13726_v47, %v11874_v49  ;;  %v13985_v45 = vld [vmem:[#allocation6 + $0x2114] sm:$0xf]  ;;  %v13810_v47 = vld [vmem:[#allocation6 + $0x1b9c] sm:$0xf]  ;;  %v12210_v49 = vld [vmem:[#allocation6 + $0x1bb4] sm:$0xf0] }
 0x240   :  { %7790 = vmatpush.bf16.msrb.mxu3 %v11961_v55  ;;  %v11429_v55 = vor.u32 %v13614_v41, %v11426_v43  ;;  %v7526_v15 = vpop.f32.mrf.mxu2  ;;  %v13922_v52 = vld [vmem:[#allocation6 + $0x1f1c] sm:$0xf]  ;;  %v12434_v51 = vld [vmem:[#allocation6 + $0x1d74] sm:$0xf0] }
 0x241   :  { %7752 = vmatpush.bf16.msrb.mxu0 %v11261_v39  ;;  %v11398_v39 = vld [vmem:[#allocation6 + $0x155c] sm:$0xf0] }
 0x242   :  { %7778 = vmatpush.bf16.msrb.mxu2 %v11709_v59  ;;  %v13719_v59 = vld [vmem:[#allocation6 + $0x18c4] sm:$0xf]  ;;  %v11401_v6 = vor.u32 %v13607_v60, %v11398_v39  ;;  %v7539_v41 = vpop.f32.mrf.mxu3  ;;  %v12882_v60 = vld [vmem:[#allocation6 + $0x20f4] sm:$0xf0]  ;;  %v12661_v39 = vor.u32 %v13922_v52, %v12658_v54  ;;  %v12350_v52 = vld [vmem:[#allocation6 + $0x1ccc] sm:$0xf0] }
 0x243   :  { %7765 = vmatpush.bf16.msrb.mxu1 %v11485_v61  ;;  %v13817_v61 = vld [vmem:[#allocation6 + $0x1bd4] sm:$0xf]  ;;  %v11849_v14 = vor.u32 %v13719_v59, %v11846_v1  ;;  %v13803_v59 = vld [vmem:[#allocation6 + $0x1b64] sm:$0xf]  ;;  %v12630_v1 = vld [vmem:[#allocation6 + $0x1efc] sm:$0xf0] }
 0x244   :  { %7791 = vmatpush.bf16.msrb.mxu3 %v11933_v7  ;;  %v12238_v7 = vld [vmem:[#allocation6 + $0x1bec] sm:$0xf0]  ;;  %v12185_v5 = vor.u32 %v13803_v59, %v12182_v62  ;;  %v12546_v59 = vld [vmem:[#allocation6 + $0x1e54] sm:$0xf0] }
 0x245   :  { %7753 = vmatpush.bf16.msrb.mxu0 %v11233_v27  ;;  %v13600_v27 = vld [vmem:[#allocation6 + $0x150c] sm:$0xf]  ;;  %v12241_v34 = vor.u32 %v13817_v61, %v12238_v7  ;;  %v13971_v61 = vld [vmem:[#allocation6 + $0x20a4] sm:$0xf]  ;;  %v12126_v41 = vld [vmem:[#allocation6 + $0x1b0c] sm:$0xf0] }
 0x246   :  { %7779 = vmatpush.bf16.msrb.mxu2 %v11681_v12  ;;  %v11370_v12 = vld [vmem:[#allocation6 + $0x1524] sm:$0xf0] }
 0x247   :  { %7766 = vmatpush.bf16.msrb.mxu1 %v11457_v35  ;;  %v12689_v35 = vor.u32 %v13929_v9, %v12686_v11  ;;  %v11373_v43 = vor.u32 %v13600_v27, %v11370_v12  ;;  %v13796_v9 = vld [vmem:[#allocation6 + $0x1b2c] sm:$0xf]  ;;  %v12154_v11 = vld [vmem:[#allocation6 + $0x1b44] sm:$0xf0] }
 0x248   :  { %7792 = vmatpush.bf16.msrb.mxu3 %v11905_v38  ;;  %v12462_v38 = vld [vmem:[#allocation6 + $0x1dac] sm:$0xf0]  ;;  %v13908_v27 = vld [vmem:[#allocation6 + $0x1eac] sm:$0xf]  ;;  %v12602_v12 = vld [vmem:[#allocation6 + $0x1ec4] sm:$0xf0] }
 0x249   :  { %7754 = vmatpush.bf16.msrb.mxu0 %v11205_v17  ;;  %v12910_v17 = vld [vmem:[#allocation6 + $0x212c] sm:$0xf0]  ;;  %v12465_v50 = vor.u32 %v13873_v24, %v12462_v38  ;;  %v12605_v24 = vor.u32 %v13908_v27, %v12602_v12  ;;  %v13789_v38 = vld [vmem:[#allocation6 + $0x1af4] sm:$0xf]  ;;  %v13887_v12 = vld [vmem:[#allocation6 + $0x1e04] sm:$0xf] }
 0x24a   :  { %7780 = vmatpush.bf16.msrb.mxu2 %v11653_v46  ;;  %v11821_v46 = vor.u32 %v13712_v26, %v11818_v32  ;;  %v12913_v56 = vor.u32 %v13985_v45, %v12910_v17  ;;  %v12157_v26 = vor.u32 %v13796_v9, %v12154_v11  ;;  %v13964_v32 = vld [vmem:[#allocation6 + $0x206c] sm:$0xf]  ;;  %v13901_v17 = vld [vmem:[#allocation6 + $0x1e74] sm:$0xf]  ;;  %v12070_v9 = vld [vmem:[#allocation6 + $0x1a9c] sm:$0xf0] }
 0x24b   :  { %7767 = vmatpush.bf16.msrb.mxu1 %v11429_v55  ;;  %v12213_v55 = vor.u32 %v13810_v47, %v12210_v49 }
 0x24c   :  { %7793 = vmatpush.bf16.msrb.mxu3 %v11877_v58  ;;  %v13978_v58 = vld [vmem:[#allocation6 + $0x20dc] sm:$0xf] }
 0x24d   :  { %7755 = vmatpush.bf16.msrb.mxu0 %v11177_v63  ;;  %v12437_v63 = vor.u32 %v13866_v57, %v12434_v51  ;;  %v12885_v2 = vor.u32 %v13978_v58, %v12882_v60  ;;  %v13957_v57 = vld [vmem:[#allocation6 + $0x2034] sm:$0xf]  ;;  %v12798_v51 = vld [vmem:[#allocation6 + $0x204c] sm:$0xf0]  ;;  %v13782_v58 = vld [vmem:[#allocation6 + $0x1abc] sm:$0xf] }
 0x24e   :  { %7781 = vmatpush.bf16.msrb.mxu2 %v11625_v0  ;;  %v13915_v0 = vld [vmem:[#allocation6 + $0x1ee4] sm:$0xf]  ;;  %v12098_v60 = vld [vmem:[#allocation6 + $0x1ad4] sm:$0xf0] }
 0x24f   :  { %7768 = vmatpush.bf16.msrb.mxu1 %v11401_v6  ;;  %v12854_v6 = vld [vmem:[#allocation6 + $0x20bc] sm:$0xf0]  ;;  %v12633_v7 = vor.u32 %v13915_v0, %v12630_v1  ;;  %v13838_v0 = vld [vmem:[#allocation6 + $0x1c7c] sm:$0xf]  ;;  %v12322_v1 = vld [vmem:[#allocation6 + $0x1c94] sm:$0xf0] }
 0x250   :  { %7794 = vmatpush.bf16.msrb.mxu3 %v11849_v14  ;;  %v12409_v14 = vor.u32 %v13859_v3, %v12406_v4  ;;  %v12857_v15 = vor.u32 %v13971_v61, %v12854_v6  ;;  %v12101_v3 = vor.u32 %v13782_v58, %v12098_v60  ;;  %v13950_v4 = vld [vmem:[#allocation6 + $0x1ffc] sm:$0xf]  ;;  %v12325_v27 = vor.u32 %v13838_v0, %v12322_v1  ;;  %v13936_v58 = vld [vmem:[#allocation6 + $0x1f8c] sm:$0xf]  ;;  %v12714_v60 = vld [vmem:[#allocation6 + $0x1fa4] sm:$0xf0] }
 0x251   :  { %7756 = vmatpush.bf16.msrb.mxu0 %v11149_v20  ;;  %v13852_v20 = vld [vmem:[#allocation6 + $0x1cec] sm:$0xf] }
 0x252   :  { %7782 = vmatpush.bf16.msrb.mxu2 %v11597_v25  ;;  %v12378_v25 = vld [vmem:[#allocation6 + $0x1d04] sm:$0xf0] }
 0x253   :  { %7769 = vmatpush.bf16.msrb.mxu1 %v11373_v43  ;;  %v12381_v45 = vor.u32 %v13852_v20, %v12378_v25  ;;  %v7563_v47 = vpop.f32.mrf.mxu1  ;;  %v13831_v25 = vld [vmem:[#allocation6 + $0x1c44] sm:$0xf] }
 0x254   :  { %7795 = vmatpush.bf16.msrb.mxu3 %v11821_v46  ;;  %7757 = vmatmul.bf16.vlgmr.msrb.gmra.mxu0 %v14193_v31  ;;  %v12574_v46 = vld [vmem:[#allocation6 + $0x1e8c] sm:$0xf0] }
 0x255   :  { %7801 = vmatpush.bf16.msra.mxu0 %v12241_v34  ;;  %7783 = vmatmul.bf16.vlgmr.msrb.gmra.mxu2 %v14203_v29  ;;  %v12826_v34 = vld [vmem:[#allocation6 + $0x2084] sm:$0xf0] }
 0x256   :  { %7827 = vmatpush.bf16.msra.mxu2 %v12689_v35  ;;  %7770 = vmatmul.bf16.vlgmr.msrb.gmra.mxu1 %v14199_v16  ;;  %v7550_v35 = vpop.f32.mrf.mxu0  ;;  %v12829_v49 = vor.u32 %v13964_v32, %v12826_v34 }
 0x257   :  { %7814 = vmatpush.bf16.msra.mxu1 %v12465_v50  ;;  %7796 = vmatmul.bf16.vlgmr.msrb.gmra.mxu3 %v14201_v21  ;;  %v7551_v43 = vadd.f32 %v7550_v35, %v14310_v53  ;;  %v13845_v50 = vld [vmem:[#allocation6 + $0x1cb4] sm:$0xf]  ;;  %v13894_v53 = vld [vmem:[#allocation6 + $0x1e3c] sm:$0xf]  ;;  %v13943_v35 = vld [vmem:[#allocation6 + $0x1fc4] sm:$0xf] }
 0x258   :  { %7840 = vmatpush.bf16.msra.mxu3 %v12913_v56  ;;  %v12129_v56 = vor.u32 %v13789_v38, %v12126_v41  ;;  %v7576_v62 = vpop.f32.mrf.mxu2  ;;  %v12549_v6 = vor.u32 %v13894_v53, %v12546_v59  ;;  %v13768_v38 = vld [vmem:[#allocation6 + $0x1a4c] sm:$0xf]  ;;  %v9108_v59 = vld [vmem:[#allocation6 + $0x358] sm:$0xf] }
 0x259   :  { %7802 = vmatpush.bf16.msra.mxu0 %v12213_v55  ;;  %v7564_v54 = vadd.f32 %v7563_v47, %v7551_v43  ;;  %v12577_v55 = vor.u32 %v13901_v17, %v12574_v46  ;;  %v12042_v43 = vld [vmem:[#allocation6 + $0x1a64] sm:$0xf0]  ;;  %v8884_v47 = vld [vmem:[#allocation6 + $0x198] sm:$0xf] }
 0x25a   :  { %7828 = vmatpush.bf16.msra.mxu2 %v12661_v39  ;;  %v12353_v39 = vor.u32 %v13845_v50, %v12350_v52  ;;  %v7589_v61 = vpop.f32.mrf.mxu3  ;;  %v12490_v17 = vld [vmem:[#allocation6 + $0x1de4] sm:$0xf0]  ;;  %v9332_v50 = vld [vmem:[#allocation6 + $0x518] sm:$0xf] }
 0x25b   :  { %7815 = vmatpush.bf16.msra.mxu1 %v12437_v63  ;;  %v12801_v63 = vor.u32 %v13957_v57, %v12798_v51  ;;  %v7565_v32 = vpop.f32.mrf.mxu1  ;;  %v12266_v57 = vld [vmem:[#allocation6 + $0x1c24] sm:$0xf0] }
 0x25c   :  { %7841 = vmatpush.bf16.msra.mxu3 %v12885_v2  ;;  %v7577_v2 = vadd.f32 %v7576_v62, %v7564_v54  ;;  %v13093_v54 = vld [vmem:[#allocation6 + $0x530] sm:$0xf0]  ;;  %v8828_v32 = vld [vmem:[#allocation6 + $0x128] sm:$0xf] }
 0x25d   :  { %7803 = vmatpush.bf16.msra.mxu0 %v12185_v5  ;;  %v12770_v5 = vld [vmem:[#allocation6 + $0x2014] sm:$0xf0]  ;;  %v13037_v62 = vld [vmem:[#allocation6 + $0x370] sm:$0xf0]  ;;  %v9333_v0 = vor.u32 %v13093_v54, %v9332_v50  ;;  %v8800_v50 = vld [vmem:[#allocation6 + $0xf0] sm:$0xf] }
 0x25e   :  { %7829 = vmatpush.bf16.msra.mxu2 %v12633_v7  ;;  %v13775_v7 = vld [vmem:[#allocation6 + $0x1a84] sm:$0xf]  ;;  %v7552_v11 = vpop.f32.mrf.mxu0  ;;  %v12773_v20 = vor.u32 %v13950_v4, %v12770_v5  ;;  %v12717_v4 = vor.u32 %v13936_v58, %v12714_v60  ;;  %v8856_v5 = vld [vmem:[#allocation6 + $0x160] sm:$0xf]  ;;  %v13016_v58 = vld [vmem:[#allocation6 + $0x2c8] sm:$0xf0] }
 0x25f   :  { %7816 = vmatpush.bf16.msra.mxu1 %v12409_v14  ;;  %v14317_v14 = vadd.f32 %v7589_v61, %v7577_v2  ;;  %v12073_v34 = vor.u32 %v13775_v7, %v12070_v9  ;;  %v9556_v2 = vld [vmem:[#allocation6 + $0x6d8] sm:$0xf]  ;;  %v12974_v61 = vld [vmem:[#allocation6 + $0x178] sm:$0xf0]  ;;  %v9304_v7 = vld [vmem:[#allocation6 + $0x4e0] sm:$0xf] }
 0x260   :  { %7842 = vmatpush.bf16.msra.mxu3 %v12857_v15  ;;  %v12518_v15 = vld [vmem:[#allocation6 + $0x1e1c] sm:$0xf0]  ;;  %v7578_v51 = vpop.f32.mrf.mxu2  ;;  %v13086_v9 = vld [vmem:[#allocation6 + $0x4f8] sm:$0xf0] }
 0x261   :  { %7804 = vmatpush.bf16.msra.mxu0 %v12157_v26  ;;  %v12294_v26 = vld [vmem:[#allocation6 + $0x1c5c] sm:$0xf0]  ;;  %v12521_v41 = vor.u32 %v13887_v12, %v12518_v15  ;;  %v13030_v12 = vld [vmem:[#allocation6 + $0x338] sm:$0xf0]  ;;  %v8857_v15 = vor.u32 %v12974_v61, %v8856_v5  ;;  %v9220_v5 = vld [vmem:[#allocation6 + $0x438] sm:$0xf] }
 0x262   :  { %7830 = vmatpush.bf16.msra.mxu2 %v12605_v24  ;;  %v12742_v24 = vld [vmem:[#allocation6 + $0x1fdc] sm:$0xf0]  ;;  %v12297_v46 = vor.u32 %v13831_v25, %v12294_v26  ;;  %v13142_v25 = vld [vmem:[#allocation6 + $0x6b8] sm:$0xf0]  ;;  %v9305_v26 = vor.u32 %v13086_v9, %v9304_v7  ;;  %v13065_v61 = vld [vmem:[#allocation6 + $0x450] sm:$0xf0] }
 0x263   :  { %7817 = vmatpush.bf16.msra.mxu1 %v12381_v45  ;;  %v13880_v45 = vld [vmem:[#allocation6 + $0x1dcc] sm:$0xf]  ;;  %v12745_v52 = vor.u32 %v13943_v35, %v12742_v24  ;;  %v9276_v24 = vld [vmem:[#allocation6 + $0x4a8] sm:$0xf]  ;;  %v8996_v7 = vld [vmem:[#allocation6 + $0x278] sm:$0xf] }
 0x264   :  { %7843 = vmatpush.bf16.msra.mxu3 %v12829_v49  ;;  %v12981_v49 = vld [vmem:[#allocation6 + $0x1b0] sm:$0xf0] }
 0x265   :  { %7805 = vmatpush.bf16.msra.mxu0 %v12129_v56  ;;  %v13824_v56 = vld [vmem:[#allocation6 + $0x1c0c] sm:$0xf]  ;;  %v8885_v53 = vor.u32 %v12981_v49, %v8884_v47  ;;  %v13135_v47 = vld [vmem:[#allocation6 + $0x680] sm:$0xf0]  ;;  %v13009_v9 = vld [vmem:[#allocation6 + $0x290] sm:$0xf0] }
 0x266   :  { %7831 = vmatpush.bf16.msra.mxu2 %v12577_v55  ;;  %v12045_v55 = vor.u32 %v13768_v38, %v12042_v43  ;;  %v12269_v1 = vor.u32 %v13824_v56, %v12266_v57  ;;  %v13079_v38 = vld [vmem:[#allocation6 + $0x4c0] sm:$0xf0]  ;;  %v9052_v43 = vld [vmem:[#allocation6 + $0x2e8] sm:$0xf]  ;;  %v9248_v56 = vld [vmem:[#allocation6 + $0x470] sm:$0xf] }
 0x267   :  { %7818 = vmatpush.bf16.msra.mxu1 %v12353_v39  ;;  %v12493_v39 = vor.u32 %v13880_v45, %v12490_v17  ;;  %v13023_v45 = vld [vmem:[#allocation6 + $0x300] sm:$0xf0]  ;;  %v9277_v49 = vor.u32 %v13079_v38, %v9276_v24  ;;  %v13072_v57 = vld [vmem:[#allocation6 + $0x488] sm:$0xf0]  ;;  %v8997_v24 = vor.u32 %v13009_v9, %v8996_v7  ;;  %v9192_v38 = vld [vmem:[#allocation6 + $0x400] sm:$0xf] }
 0x268   :  { %7844 = vmatpush.bf16.msra.mxu3 %v12801_v63  ;;  %v7591_v63 = vpop.f32.mrf.mxu3  ;;  %v9053_v54 = vor.u32 %v13023_v45, %v9052_v43  ;;  %v9136_v7 = vld [vmem:[#allocation6 + $0x390] sm:$0xf]  ;;  %v13044_v9 = vld [vmem:[#allocation6 + $0x3a8] sm:$0xf0] }
 0x269   :  { %7806 = vmatpush.bf16.msra.mxu0 %v12101_v3  ;;  %v13149_v3 = vld [vmem:[#allocation6 + $0x6f0] sm:$0xf0]  ;;  %v8772_v63 = vld [vmem:[#allocation6 + $0xb8] sm:$0xf] }
 0x26a   :  { %7832 = vmatpush.bf16.msra.mxu2 %v12549_v6  ;;  %v9109_v6 = vor.u32 %v13037_v62, %v9108_v59  ;;  %v9557_v11 = vor.u32 %v13149_v3, %v9556_v2  ;;  %v9249_v62 = vor.u32 %v13072_v57, %v9248_v56  ;;  %v14004_v2 = vld [vmem:[#allocation9] sm:$0xff] }
 0x26b   :  { %7819 = vmatpush.bf16.msra.mxu1 %v12325_v27  ;;  %v9080_v27 = vld [vmem:[#allocation6 + $0x320] sm:$0xf]  ;;  %v8606_v3 = vperm.slane %v14004_v2, 2  ;;  %v8716_v57 = vld [vmem:[#allocation6 + $0x48] sm:$0xf] }
 0x26c   :  { %7845 = vmatpush.bf16.msra.mxu3 %v12773_v20  ;;  %v9528_v20 = vld [vmem:[#allocation6 + $0x6a0] sm:$0xf]  ;;  %v9081_v35 = vor.u32 %v13030_v12, %v9080_v27  ;;  %v9444_v12 = vld [vmem:[#allocation6 + $0x5f8] sm:$0xf] }
 0x26d   :  { %7807 = vmatpush.bf16.msra.mxu0 %v12073_v34  ;;  %v12967_v34 = vld [vmem:[#allocation6 + $0x140] sm:$0xf0] }
 0x26e   :  { %7833 = vmatpush.bf16.msra.mxu2 %v12521_v41  ;;  %v9529_v41 = vor.u32 %v13142_v25, %v9528_v20  ;;  %v8829_v17 = vor.u32 %v12967_v34, %v8828_v32  ;;  %v14005_v20 = vld [vmem:[#allocation8] sm:$0xff]  ;;  %v9221_v32 = vor.u32 %v13065_v61, %v9220_v5  ;;  %v12946_v34 = vld [vmem:[#allocation6 + $0x98] sm:$0xf0]  ;;  %v12932_v5 = vld [vmem:[#allocation6 + $0x28] sm:$0xf0] }
 0x26f   :  { %7820 = vmatpush.bf16.msra.mxu1 %v12297_v46  ;;  %v9500_v46 = vld [vmem:[#allocation6 + $0x668] sm:$0xf]  ;;  %v1315_v25 = vperm.slane %v14005_v20, 3  ;;  %v13317_v20 = vld [vmem:[#allocation6 + $0xc30] sm:$0xf0] }
 0x270   :  { %7846 = vmatpush.bf16.msra.mxu3 %v12745_v52  ;;  %v12960_v52 = vld [vmem:[#allocation6 + $0x108] sm:$0xf0]  ;;  %v9501_v51 = vor.u32 %v13135_v47, %v9500_v46  ;;  %v13002_v46 = vld [vmem:[#allocation6 + $0x258] sm:$0xf0] }
 0x271   :  { %7808 = vmatpush.bf16.msra.mxu0 %v12045_v55  ;;  %v9024_v55 = vld [vmem:[#allocation6 + $0x2b0] sm:$0xf]  ;;  %v8801_v60 = vor.u32 %v12960_v52, %v8800_v50  ;;  %v7602_v59 = vpop.f32.mrf.mxu0  ;;  %v9416_v50 = vld [vmem:[#allocation6 + $0x5c0] sm:$0xf]  ;;  %v13114_v52 = vld [vmem:[#allocation6 + $0x5d8] sm:$0xf0] }
 0x272   :  { %7834 = vmatpush.bf16.msra.mxu2 %v12493_v39  ;;  %v9472_v39 = vld [vmem:[#allocation6 + $0x630] sm:$0xf] }
 0x273   :  { %7821 = vmatpush.bf16.msra.mxu1 %v12269_v1  ;;  %v7603_v1 = vadd.f32 %v7602_v59, %v14317_v14  ;;  %v8744_v14 = vld [vmem:[#allocation6 + $0x80] sm:$0xf] }
 0x274   :  { %7847 = vmatpush.bf16.msra.mxu3 %v12717_v4  ;;  %7809 = vmatmul.bf16.vlgmr.msra.gmra.mxu0 %v14205_v33  ;;  %v9025_v4 = vor.u32 %v13016_v58, %v9024_v55 }
 0x275   :  { %7853 = vmatpush.bf16.msrb.mxu0 %v8885_v53  ;;  %7835 = vmatmul.bf16.vlgmr.msra.gmra.mxu2 %v14215_v40  ;;  %v13128_v53 = vld [vmem:[#allocation6 + $0x648] sm:$0xf0] }
 0x276   :  { %7879 = vmatpush.bf16.msrb.mxu2 %v9333_v0  ;;  %7822 = vmatmul.bf16.vlgmr.msra.gmra.mxu1 %v14211_v30  ;;  %v12953_v0 = vld [vmem:[#allocation6 + $0xd0] sm:$0xf0] }
 0x277   :  { %7866 = vmatpush.bf16.msrb.mxu1 %v9109_v6  ;;  %7848 = vmatmul.bf16.vlgmr.msra.gmra.mxu3 %v14213_v37  ;;  %v9473_v6 = vor.u32 %v13128_v53, %v9472_v39  ;;  %v8773_v27 = vor.u32 %v12953_v0, %v8772_v63  ;;  %v9164_v39 = vld [vmem:[#allocation6 + $0x3c8] sm:$0xf]  ;;  %v13051_v53 = vld [vmem:[#allocation6 + $0x3e0] sm:$0xf0] }
 0x278   :  { %7892 = vmatpush.bf16.msrb.mxu3 %v9557_v11  ;;  %v8596_v11 = vmax.f32 %v7603_v1, 0.0  ;;  %v12995_v63 = vld [vmem:[#allocation6 + $0x220] sm:$0xf0]  ;;  %v9388_v0 = vld [vmem:[#allocation6 + $0x588] sm:$0xf] }
 0x279   :  { %7854 = vmatpush.bf16.msrb.mxu0 %v8857_v15  ;;  %v13121_v15 = vld [vmem:[#allocation6 + $0x610] sm:$0xf0]  ;;  %v7604_v55 = vpop.f32.mrf.mxu0 }
 0x27a   :  { %7880 = vmatpush.bf16.msrb.mxu2 %v9305_v26  ;;  %v7615_v26 = vpop.f32.mrf.mxu1  ;;  %v9445_v45 = vor.u32 %v13121_v15, %v9444_v12  ;;  %v7641_v59 = vpop.f32.mrf.mxu3  ;;  %v13205_v12 = vld [vmem:[#allocation6 + $0x8b0] sm:$0xf0]  ;;  %v10228_v15 = vld [vmem:[#allocation6 + $0xc18] sm:$0xf]  ;;  %v10200_v55 = vld [vmem:[#allocation6 + $0xbe0] sm:$0xf] }
 0x27b   :  { %7867 = vmatpush.bf16.msrb.mxu1 %v9081_v35  ;;  %v8620_v35 = vmul.f32 %v8606_v3, %v8596_v11  ;;  %v7616_v43 = vadd.f32 %v7615_v26, %v1315_v25  ;;  %v13107_v3 = vld [vmem:[#allocation6 + $0x5a0] sm:$0xf0]  ;;  %v9780_v11 = vld [vmem:[#allocation6 + $0x898] sm:$0xf]  ;;  %v8912_v26 = vld [vmem:[#allocation6 + $0x1d0] sm:$0xf] }
 0x27c   :  { %7893 = vmatpush.bf16.msrb.mxu3 %v9529_v41  ;;  %v13058_v41 = vld [vmem:[#allocation6 + $0x418] sm:$0xf0]  ;;  %v9389_v25 = vor.u32 %v13107_v3, %v9388_v0  ;;  %v9724_v0 = vld [vmem:[#allocation6 + $0x828] sm:$0xf] }
 0x27d   :  { %7855 = vmatpush.bf16.msrb.mxu0 %v8829_v17  ;;  %v8968_v17 = vld [vmem:[#allocation6 + $0x240] sm:$0xf]  ;;  %v14325_v47 = vadd.f32 %v14287_v13, %v8620_v35  ;;  %v9193_v56 = vor.u32 %v13058_v41, %v9192_v38  ;;  %v8940_v13 = vld [vmem:[#allocation6 + $0x208] sm:$0xf]  ;;  %v13100_v35 = vld [vmem:[#allocation6 + $0x568] sm:$0xf0] }
 0x27e   :  { %7881 = vmatpush.bf16.msrb.mxu2 %v9277_v49  ;;  %v8745_v49 = vor.u32 %v12946_v34, %v8744_v14  ;;  %v9360_v14 = vld [vmem:[#allocation6 + $0x550] sm:$0xf]  ;;  %v13261_v38 = vld [vmem:[#allocation6 + $0xa70] sm:$0xf0] }
 0x27f   :  { %7868 = vmatpush.bf16.msrb.mxu1 %v9053_v54  ;;  %v7628_v54 = vpop.f32.mrf.mxu2 }
 0x280   :  { %7894 = vmatpush.bf16.msrb.mxu3 %v9501_v51  ;;  %v12939_v51 = vld [vmem:[#allocation6 + $0x60] sm:$0xf0]  ;;  %v7629_v58 = vadd.f32 %v7628_v54, %v7616_v43  ;;  %v9137_v43 = vor.u32 %v13044_v9, %v9136_v7  ;;  %v13198_v54 = vld [vmem:[#allocation6 + $0x878] sm:$0xf0] }
 0x281   :  { %7856 = vmatpush.bf16.msrb.mxu0 %v8801_v60  ;;  %v8969_v60 = vor.u32 %v13002_v46, %v8968_v17  ;;  %v8717_v2 = vor.u32 %v12939_v51, %v8716_v57  ;;  %v10452_v17 = vld [vmem:[#allocation6 + $0xdd8] sm:$0xf]  ;;  %v13373_v46 = vld [vmem:[#allocation6 + $0xdf0] sm:$0xf0]  ;;  %v9361_v57 = vor.u32 %v13100_v35, %v9360_v14  ;;  %v13247_v7 = vld [vmem:[#allocation6 + $0xa00] sm:$0xf0] }
 0x282   :  { %7882 = vmatpush.bf16.msrb.mxu2 %v9249_v62  ;;  %v9417_v62 = vor.u32 %v13114_v52, %v9416_v50  ;;  %v14327_v1 = vadd.f32 %v7641_v59, %v7629_v58  ;;  %v7617_v61 = vpop.f32.mrf.mxu1  ;;  %v9752_v52 = vld [vmem:[#allocation6 + $0x860] sm:$0xf]  ;;  %v13310_v58 = vld [vmem:[#allocation6 + $0xbf8] sm:$0xf0]  ;;  %v13240_v35 = vld [vmem:[#allocation6 + $0x9c8] sm:$0xf0] }
 0x283   :  { %7869 = vmatpush.bf16.msrb.mxu1 %v9025_v4  ;;  %v8688_v4 = vld [vmem:[#allocation6 + $0x10] sm:$0xf]  ;;  %v9753_v59 = vor.u32 %v13198_v54, %v9752_v52  ;;  %v9892_v54 = vld [vmem:[#allocation6 + $0x978] sm:$0xf] }
 0x284   :  { %7895 = vmatpush.bf16.msrb.mxu3 %v9473_v6  ;;  %v9165_v6 = vor.u32 %v13051_v53, %v9164_v39  ;;  %v8689_v34 = vor.u32 %v12932_v5, %v8688_v4  ;;  %v9976_v39 = vld [vmem:[#allocation6 + $0xa20] sm:$0xf]  ;;  %v13254_v53 = vld [vmem:[#allocation6 + $0xa38] sm:$0xf0]  ;;  %v10172_v4 = vld [vmem:[#allocation6 + $0xba8] sm:$0xf] }
 0x285   :  { %7857 = vmatpush.bf16.msrb.mxu0 %v8773_v27  ;;  %v8941_v27 = vor.u32 %v12995_v63, %v8940_v13  ;;  %v13366_v13 = vld [vmem:[#allocation6 + $0xdb8] sm:$0xf0]  ;;  %v10201_v63 = vor.u32 %v13310_v58, %v10200_v55  ;;  %v9977_v3 = vor.u32 %v13254_v53, %v9976_v39  ;;  %v13303_v5 = vld [vmem:[#allocation6 + $0xbc0] sm:$0xf0]  ;;  %v13345_v55 = vld [vmem:[#allocation6 + $0xd10] sm:$0xf0] }
 0x286   :  { %7883 = vmatpush.bf16.msrb.mxu2 %v9221_v32  ;;  %v12988_v32 = vld [vmem:[#allocation6 + $0x1e8] sm:$0xf0]  ;;  %v9640_v39 = vld [vmem:[#allocation6 + $0x780] sm:$0xf]  ;;  %v13170_v53 = vld [vmem:[#allocation6 + $0x798] sm:$0xf0] }
 0x287   :  { %7870 = vmatpush.bf16.msrb.mxu1 %v8997_v24  ;;  %v10004_v24 = vld [vmem:[#allocation6 + $0xa58] sm:$0xf]  ;;  %v7630_v41 = vpop.f32.mrf.mxu2  ;;  %v8913_v50 = vor.u32 %v12988_v32, %v8912_v26  ;;  %v10144_v26 = vld [vmem:[#allocation6 + $0xb70] sm:$0xf]  ;;  %v13296_v32 = vld [vmem:[#allocation6 + $0xb88] sm:$0xf0] }
 0x288   :  { %7896 = vmatpush.bf16.msrb.mxu3 %v9445_v45  ;;  %v9781_v45 = vor.u32 %v13205_v12, %v9780_v11  ;;  %v10005_v51 = vor.u32 %v13261_v38, %v10004_v24  ;;  %v10396_v11 = vld [vmem:[#allocation6 + $0xd68] sm:$0xf]  ;;  %v10173_v12 = vor.u32 %v13303_v5, %v10172_v4  ;;  %v10368_v38 = vld [vmem:[#allocation6 + $0xd30] sm:$0xf]  ;;  %v13352_v41 = vld [vmem:[#allocation6 + $0xd48] sm:$0xf0] }
 0x289   :  { %7858 = vmatpush.bf16.msrb.mxu0 %v8745_v49  ;;  %v10229_v49 = vor.u32 %v13317_v20, %v10228_v15  ;;  %v9696_v15 = vld [vmem:[#allocation6 + $0x7f0] sm:$0xf]  ;;  %v13184_v20 = vld [vmem:[#allocation6 + $0x808] sm:$0xf0]  ;;  %v10369_v52 = vor.u32 %v13352_v41, %v10368_v38  ;;  %v13226_v4 = vld [vmem:[#allocation6 + $0x958] sm:$0xf0] }
 0x28a   :  { %7884 = vmatpush.bf16.msrb.mxu2 %v9193_v56  ;;  %v7643_v56 = vpop.f32.mrf.mxu3  ;;  %v9697_v24 = vor.u32 %v13184_v20, %v9696_v15  ;;  %v10060_v20 = vld [vmem:[#allocation6 + $0xac8] sm:$0xf]  ;;  %v13331_v41 = vld [vmem:[#allocation6 + $0xca0] sm:$0xf0] }
 0x28b   :  { %7871 = vmatpush.bf16.msrb.mxu1 %v8969_v60  ;;  %v10453_v60 = vor.u32 %v13373_v46, %v10452_v17  ;;  %v13177_v17 = vld [vmem:[#allocation6 + $0x7d0] sm:$0xf0] }
 0x28c   :  { %7897 = vmatpush.bf16.msrb.mxu3 %v9417_v62  ;;  %v10424_v62 = vld [vmem:[#allocation6 + $0xda0] sm:$0xf]  ;;  %v13233_v56 = vld [vmem:[#allocation6 + $0x990] sm:$0xf0] }
 0x28d   :  { %7859 = vmatpush.bf16.msrb.mxu0 %v8717_v2  ;;  %v13191_v2 = vld [vmem:[#allocation6 + $0x840] sm:$0xf0]  ;;  %v10425_v61 = vor.u32 %v13366_v13, %v10424_v62  ;;  %v9893_v62 = vor.u32 %v13233_v56, %v9892_v54  ;;  %v10088_v13 = vld [vmem:[#allocation6 + $0xb00] sm:$0xf]  ;;  %v13429_v56 = vld [vmem:[#allocation6 + $0xfb0] sm:$0xf0] }
 0x28e   :  { %7885 = vmatpush.bf16.msrb.mxu2 %v9165_v6  ;;  %v9948_v6 = vld [vmem:[#allocation6 + $0x9e8] sm:$0xf]  ;;  %v9725_v9 = vor.u32 %v13191_v2, %v9724_v0 }
 0x28f   :  { %7872 = vmatpush.bf16.msrb.mxu1 %v8941_v27  ;;  %v13359_v27 = vld [vmem:[#allocation6 + $0xd80] sm:$0xf0] }
 0x290   :  { %7898 = vmatpush.bf16.msrb.mxu3 %v9389_v25  ;;  %v9949_v25 = vor.u32 %v13247_v7, %v9948_v6  ;;  %v10397_v14 = vor.u32 %v13359_v27, %v10396_v11  ;;  %v10312_v6 = vld [vmem:[#allocation6 + $0xcc0] sm:$0xf]  ;;  %v13338_v7 = vld [vmem:[#allocation6 + $0xcd8] sm:$0xf0]  ;;  %v9612_v27 = vld [vmem:[#allocation6 + $0x748] sm:$0xf] }
 0x291   :  { %7860 = vmatpush.bf16.msrb.mxu0 %v8689_v34  ;;  %v9920_v34 = vld [vmem:[#allocation6 + $0x9b0] sm:$0xf]  ;;  %v7654_v58 = vpop.f32.mrf.mxu0 }
 0x292   :  { %7886 = vmatpush.bf16.msrb.mxu2 %v9137_v43  ;;  %v10145_v43 = vor.u32 %v13296_v32, %v10144_v26  ;;  %v9921_v46 = vor.u32 %v13240_v35, %v9920_v34  ;;  %v10313_v32 = vor.u32 %v13338_v7, %v10312_v6  ;;  %v13219_v34 = vld [vmem:[#allocation6 + $0x920] sm:$0xf0]  ;;  %v10284_v35 = vld [vmem:[#allocation6 + $0xc88] sm:$0xf]  ;;  %v10648_v7 = vld [vmem:[#allocation6 + $0xf60] sm:$0xf] }
 0x293   :  { %7873 = vmatpush.bf16.msrb.mxu1 %v8913_v50  ;;  %v13289_v50 = vld [vmem:[#allocation6 + $0xb50] sm:$0xf0]  ;;  %v7667_v0 = vpop.f32.mrf.mxu1 }
 0x294   :  { %7899 = vmatpush.bf16.msrb.mxu3 %v9361_v57  ;;  %7861 = vmatmul.bf16.vlgmr.msrb.gmra.mxu0 %v14168_v18 }
 0x295   :  { %7905 = vmatpush.bf16.msra.mxu0 %v9781_v45  ;;  %7887 = vmatmul.bf16.vlgmr.msrb.gmra.mxu2 %v14163_v8  ;;  %v9668_v45 = vld [vmem:[#allocation6 + $0x7b8] sm:$0xf] }
 0x296   :  { %7931 = vmatpush.bf16.msra.mxu2 %v10229_v49  ;;  %7874 = vmatmul.bf16.vlgmr.msrb.gmra.mxu1 %v14171_v22  ;;  %v10116_v49 = vld [vmem:[#allocation6 + $0xb38] sm:$0xf]  ;;  %v9669_v57 = vor.u32 %v13177_v17, %v9668_v45  ;;  %v13156_v45 = vld [vmem:[#allocation6 + $0x728] sm:$0xf0] }
 0x297   :  { %7918 = vmatpush.bf16.msra.mxu1 %v10005_v51  ;;  %7900 = vmatmul.bf16.vlgmr.msrb.gmra.mxu3 %v14165_v10  ;;  %v10340_v51 = vld [vmem:[#allocation6 + $0xcf8] sm:$0xf] }
 0x298   :  { %7944 = vmatpush.bf16.msra.mxu3 %v10453_v60  ;;  %v10117_v60 = vor.u32 %v13289_v50, %v10116_v49  ;;  %v10341_v2 = vor.u32 %v13345_v55, %v10340_v51  ;;  %v10032_v49 = vld [vmem:[#allocation6 + $0xa90] sm:$0xf]  ;;  %v13268_v50 = vld [vmem:[#allocation6 + $0xaa8] sm:$0xf0]  ;;  %v13541_v51 = vld [vmem:[#allocation6 + $0x1330] sm:$0xf0] }
 0x299   :  { %7906 = vmatpush.bf16.msra.mxu0 %v9753_v59  ;;  %v7655_v59 = vadd.f32 %v7654_v58, %v14327_v1  ;;  %v7656_v17 = vpop.f32.mrf.mxu0  ;;  %v10285_v58 = vor.u32 %v13331_v41, %v10284_v35  ;;  %v13415_v41 = vld [vmem:[#allocation6 + $0xf40] sm:$0xf0] }
 0x29a   :  { %7932 = vmatpush.bf16.msra.mxu2 %v10201_v63  ;;  %v13282_v63 = vld [vmem:[#allocation6 + $0xb18] sm:$0xf0]  ;;  %v7693_v26 = vpop.f32.mrf.mxu3  ;;  %v13527_v17 = vld [vmem:[#allocation6 + $0x12c0] sm:$0xf0] }
 0x29b   :  { %7919 = vmatpush.bf16.msra.mxu1 %v9977_v3  ;;  %v9864_v3 = vld [vmem:[#allocation6 + $0x940] sm:$0xf]  ;;  %v7668_v5 = vadd.f32 %v7667_v0, %v7655_v59  ;;  %v10089_v11 = vor.u32 %v13282_v63, %v10088_v13  ;;  %v7669_v55 = vpop.f32.mrf.mxu1  ;;  %v10900_v13 = vld [vmem:[#allocation6 + $0x1158] sm:$0xf]  ;;  %v13485_v63 = vld [vmem:[#allocation6 + $0x1170] sm:$0xf0] }
 0x29c   :  { %7945 = vmatpush.bf16.msra.mxu3 %v10425_v61  ;;  %v9641_v61 = vor.u32 %v13170_v53, %v9640_v39  ;;  %v9865_v15 = vor.u32 %v13226_v4, %v9864_v3  ;;  %v13212_v39 = vld [vmem:[#allocation6 + $0x8e8] sm:$0xf0]  ;;  %v10256_v53 = vld [vmem:[#allocation6 + $0xc50] sm:$0xf]  ;;  %v11348_v4 = vld [vmem:[#allocation6 + $0x14d8] sm:$0xf] }
 0x29d   :  { %7907 = vmatpush.bf16.msra.mxu0 %v9725_v9  ;;  %v7680_v9 = vpop.f32.mrf.mxu2  ;;  %v13408_v55 = vld [vmem:[#allocation6 + $0xf08] sm:$0xf0] }
 0x29e   :  { %7933 = vmatpush.bf16.msra.mxu2 %v10173_v12  ;;  %v13163_v12 = vld [vmem:[#allocation6 + $0x760] sm:$0xf0]  ;;  %v7681_v1 = vadd.f32 %v7680_v9, %v7668_v5  ;;  %v13597_v5 = vld [vmem:[#allocation6 + $0x14f0] sm:$0xf0]  ;;  %v13422_v9 = vld [vmem:[#allocation6 + $0xf78] sm:$0xf0] }
 0x29f   :  { %7920 = vmatpush.bf16.msra.mxu1 %v9949_v25  ;;  %v13275_v25 = vld [vmem:[#allocation6 + $0xae0] sm:$0xf0]  ;;  %v9613_v38 = vor.u32 %v13163_v12, %v9612_v27  ;;  %v10901_v12 = vor.u32 %v13485_v63, %v10900_v13  ;;  %v11264_v63 = vld [vmem:[#allocation6 + $0x1430] sm:$0xf] }
 0x2a0   :  { %7946 = vmatpush.bf16.msra.mxu3 %v10397_v14  ;;  %v9836_v14 = vld [vmem:[#allocation6 + $0x908] sm:$0xf] }
 0x2a1   :  { %7908 = vmatpush.bf16.msra.mxu0 %v9697_v24  ;;  %v14334_v24 = vadd.f32 %v7693_v26, %v7681_v1  ;;  %v9837_v54 = vor.u32 %v13219_v34, %v9836_v14  ;;  %v11096_v1 = vld [vmem:[#allocation6 + $0x12e0] sm:$0xf]  ;;  %v13478_v26 = vld [vmem:[#allocation6 + $0x1138] sm:$0xf0] }
 0x2a2   :  { %7934 = vmatpush.bf16.msra.mxu2 %v10145_v43  ;;  %v9584_v43 = vld [vmem:[#allocation6 + $0x710] sm:$0xf]  ;;  %v11320_v14 = vld [vmem:[#allocation6 + $0x14a0] sm:$0xf]  ;;  %v13590_v34 = vld [vmem:[#allocation6 + $0x14b8] sm:$0xf0] }
 0x2a3   :  { %7921 = vmatpush.bf16.msra.mxu1 %v9921_v46  ;;  %v10061_v46 = vor.u32 %v13275_v25, %v10060_v20  ;;  %v9585_v59 = vor.u32 %v13156_v45, %v9584_v43  ;;  %v11349_v20 = vor.u32 %v13597_v5, %v11348_v4  ;;  %v10872_v25 = vld [vmem:[#allocation6 + $0x1120] sm:$0xf]  ;;  %v11068_v45 = vld [vmem:[#allocation6 + $0x12a8] sm:$0xf]  ;;  %v13401_v4 = vld [vmem:[#allocation6 + $0xed0] sm:$0xf0] }
 0x2a4   :  { %7947 = vmatpush.bf16.msra.mxu3 %v10369_v52  ;;  %v10676_v52 = vld [vmem:[#allocation6 + $0xf98] sm:$0xf]  ;;  %v10873_v43 = vor.u32 %v13478_v26, %v10872_v25  ;;  %v10536_v26 = vld [vmem:[#allocation6 + $0xe80] sm:$0xf] }
 0x2a5   :  { %7909 = vmatpush.bf16.msra.mxu0 %v9669_v57  ;;  %v11124_v57 = vld [vmem:[#allocation6 + $0x1318] sm:$0xf]  ;;  %v7682_v0 = vpop.f32.mrf.mxu2  ;;  %v10677_v3 = vor.u32 %v13429_v56, %v10676_v52  ;;  %v13583_v56 = vld [vmem:[#allocation6 + $0x1480] sm:$0xf0] }
 0x2a6   :  { %7935 = vmatpush.bf16.msra.mxu2 %v10117_v60  ;;  %v9808_v60 = vld [vmem:[#allocation6 + $0x8d0] sm:$0xf]  ;;  %v13576_v0 = vld [vmem:[#allocation6 + $0x1448] sm:$0xf0] }
 0x2a7   :  { %7922 = vmatpush.bf16.msra.mxu1 %v9893_v62  ;;  %v13324_v62 = vld [vmem:[#allocation6 + $0xc68] sm:$0xf0]  ;;  %v9809_v6 = vor.u32 %v13212_v39, %v9808_v60  ;;  %v11040_v60 = vld [vmem:[#allocation6 + $0x1270] sm:$0xf] }
 0x2a8   :  { %7948 = vmatpush.bf16.msra.mxu3 %v10341_v2  ;;  %v10033_v2 = vor.u32 %v13268_v50, %v10032_v49  ;;  %v10257_v27 = vor.u32 %v13324_v62, %v10256_v53  ;;  %v10844_v49 = vld [vmem:[#allocation6 + $0x10e8] sm:$0xf]  ;;  %v13471_v50 = vld [vmem:[#allocation6 + $0x1100] sm:$0xf0]  ;;  %v13520_v39 = vld [vmem:[#allocation6 + $0x1288] sm:$0xf0] }
 0x2a9   :  { %7910 = vmatpush.bf16.msra.mxu0 %v9641_v61  ;;  %v11125_v61 = vor.u32 %v13541_v51, %v11124_v57  ;;  %v11069_v57 = vor.u32 %v13527_v17, %v11068_v45  ;;  %v10592_v51 = vld [vmem:[#allocation6 + $0xef0] sm:$0xf]  ;;  %v13464_v62 = vld [vmem:[#allocation6 + $0x10c8] sm:$0xf0]  ;;  %v10760_v45 = vld [vmem:[#allocation6 + $0x1040] sm:$0xf] }
 0x2aa   :  { %7936 = vmatpush.bf16.msra.mxu2 %v10089_v11  ;;  %v7695_v11 = vpop.f32.mrf.mxu3  ;;  %v10593_v13 = vor.u32 %v13408_v55, %v10592_v51  ;;  %v13450_v17 = vld [vmem:[#allocation6 + $0x1058] sm:$0xf0] }
 0x2ab   :  { %7923 = vmatpush.bf16.msra.mxu1 %v9865_v15  ;;  %v13534_v15 = vld [vmem:[#allocation6 + $0x12f8] sm:$0xf0]  ;;  %v13457_v11 = vld [vmem:[#allocation6 + $0x1090] sm:$0xf0]  ;;  %v10761_v51 = vor.u32 %v13450_v17, %v10760_v45 }
 0x2ac   :  { %7949 = vmatpush.bf16.msra.mxu3 %v10313_v32  ;;  %v10649_v32 = vor.u32 %v13422_v9, %v10648_v7  ;;  %v11097_v35 = vor.u32 %v13534_v15, %v11096_v1  ;;  %v11265_v7 = vor.u32 %v13576_v0, %v11264_v63  ;;  %v10788_v9 = vld [vmem:[#allocation6 + $0x1078] sm:$0xf]  ;;  %v13569_v15 = vld [vmem:[#allocation6 + $0x1410] sm:$0xf0]  ;;  %v11180_v63 = vld [vmem:[#allocation6 + $0x1388] sm:$0xf] }
 0x2ad   :  { %7911 = vmatpush.bf16.msra.mxu0 %v9613_v38  ;;  %v10620_v38 = vld [vmem:[#allocation6 + $0xf28] sm:$0xf]  ;;  %v11236_v1 = vld [vmem:[#allocation6 + $0x13f8] sm:$0xf]  ;;  %v13555_v0 = vld [vmem:[#allocation6 + $0x13a0] sm:$0xf0] }
 0x2ae   :  { %7937 = vmatpush.bf16.msra.mxu2 %v10061_v46  ;;  %v11321_v46 = vor.u32 %v13590_v34, %v11320_v14  ;;  %v10621_v52 = vor.u32 %v13415_v41, %v10620_v38  ;;  %v10789_v14 = vor.u32 %v13457_v11, %v10788_v9  ;;  %v13506_v38 = vld [vmem:[#allocation6 + $0x1218] sm:$0xf0]  ;;  %v11237_v41 = vor.u32 %v13569_v15, %v11236_v1  ;;  %v11572_v9 = vld [vmem:[#allocation6 + $0x1698] sm:$0xf]  ;;  %v13653_v11 = vld [vmem:[#allocation6 + $0x16b0] sm:$0xf0] }
 0x2af   :  { %7924 = vmatpush.bf16.msra.mxu1 %v9837_v54  ;;  %v11292_v54 = vld [vmem:[#allocation6 + $0x1468] sm:$0xf]  ;;  %v11181_v1 = vor.u32 %v13555_v0, %v11180_v63  ;;  %v13765_v15 = vld [vmem:[#allocation6 + $0x1a30] sm:$0xf0]  ;;  %v13639_v0 = vld [vmem:[#allocation6 + $0x1640] sm:$0xf0] }
 0x2b0   :  { %7950 = vmatpush.bf16.msra.mxu3 %v10285_v58  ;;  %v10845_v58 = vor.u32 %v13471_v50, %v10844_v49  ;;  %v11293_v53 = vor.u32 %v13583_v56, %v11292_v54  ;;  %v11208_v50 = vld [vmem:[#allocation6 + $0x13c0] sm:$0xf]  ;;  %v10508_v56 = vld [vmem:[#allocation6 + $0xe48] sm:$0xf] }
 0x2b1   :  { %7912 = vmatpush.bf16.msra.mxu0 %v9585_v59  ;;  %v10816_v59 = vld [vmem:[#allocation6 + $0x10b0] sm:$0xf]  ;;  %v11516_v63 = vld [vmem:[#allocation6 + $0x1628] sm:$0xf] }
 0x2b2   :  { %7938 = vmatpush.bf16.msra.mxu2 %v10033_v2  ;;  %v11041_v2 = vor.u32 %v13520_v39, %v11040_v60  ;;  %v10817_v5 = vor.u32 %v13464_v62, %v10816_v59  ;;  %v13499_v60 = vld [vmem:[#allocation6 + $0x11e0] sm:$0xf0]  ;;  %v10732_v59 = vld [vmem:[#allocation6 + $0x1008] sm:$0xf] }
 0x2b3   :  { %7925 = vmatpush.bf16.msra.mxu1 %v9809_v6  ;;  %v13513_v6 = vld [vmem:[#allocation6 + $0x1250] sm:$0xf0]  ;;  %v7719_v34 = vpop.f32.mrf.mxu1  ;;  %v13443_v62 = vld [vmem:[#allocation6 + $0x1020] sm:$0xf0] }
 0x2b4   :  { %7951 = vmatpush.bf16.msra.mxu3 %v10257_v27  ;;  %7913 = vmatmul.bf16.vlgmr.msra.gmra.mxu0 %v14179_v44 }
 0x2b5   :  { %7957 = vmatpush.bf16.msrb.mxu0 %v10677_v3  ;;  %7939 = vmatmul.bf16.vlgmr.msra.gmra.mxu2 %v14175_v36  ;;  %v10564_v3 = vld [vmem:[#allocation6 + $0xeb8] sm:$0xf] }
 0x2b6   :  { %7983 = vmatpush.bf16.msrb.mxu2 %v11125_v61  ;;  %7926 = vmatmul.bf16.vlgmr.msra.gmra.mxu1 %v14177_v42  ;;  %v11012_v61 = vld [vmem:[#allocation6 + $0x1238] sm:$0xf]  ;;  %v10565_v27 = vor.u32 %v13401_v4, %v10564_v3 }
 0x2b7   :  { %7970 = vmatpush.bf16.msrb.mxu1 %v10901_v12  ;;  %7952 = vmatmul.bf16.vlgmr.msra.gmra.mxu3 %v14181_v48  ;;  %v7706_v12 = vpop.f32.mrf.mxu0 }
 0x2b8   :  { %7996 = vmatpush.bf16.msrb.mxu3 %v11349_v20  ;;  %v11013_v20 = vor.u32 %v13513_v6, %v11012_v61  ;;  %v7707_v25 = vadd.f32 %v7706_v12, %v14334_v24  ;;  %v7732_v49 = vpop.f32.mrf.mxu2  ;;  %v10928_v61 = vld [vmem:[#allocation6 + $0x1190] sm:$0xf]  ;;  %v13492_v6 = vld [vmem:[#allocation6 + $0x11a8] sm:$0xf0] }
 0x2b9   :  { %7958 = vmatpush.bf16.msrb.mxu0 %v10649_v32  ;;  %v13394_v32 = vld [vmem:[#allocation6 + $0xe98] sm:$0xf0] }
 0x2ba   :  { %7984 = vmatpush.bf16.msrb.mxu2 %v11097_v35  ;;  %v10984_v35 = vld [vmem:[#allocation6 + $0x1200] sm:$0xf]  ;;  %v7745_v55 = vpop.f32.mrf.mxu3 }
 0x2bb   :  { %7971 = vmatpush.bf16.msrb.mxu1 %v10873_v43  ;;  %v7720_v43 = vadd.f32 %v7719_v34, %v7707_v25  ;;  %v10985_v54 = vor.u32 %v13506_v38, %v10984_v35  ;;  %v7721_v12 = vpop.f32.mrf.mxu1  ;;  %v13436_v25 = vld [vmem:[#allocation6 + $0xfe8] sm:$0xf0]  ;;  %v10929_v35 = vor.u32 %v13492_v6, %v10928_v61  ;;  %v11573_v38 = vor.u32 %v13653_v11, %v11572_v9  ;;  %v11740_v61 = vld [vmem:[#allocation6 + $0x17e8] sm:$0xf]  ;;  %v13695_v6 = vld [vmem:[#allocation6 + $0x1800] sm:$0xf0] }
 0x2bc   :  { %7997 = vmatpush.bf16.msrb.mxu3 %v11321_v46  ;;  %v10537_v46 = vor.u32 %v13394_v32, %v10536_v26  ;;  %v11152_v32 = vld [vmem:[#allocation6 + $0x1350] sm:$0xf]  ;;  %v12188_v9 = vld [vmem:[#allocation6 + $0x1b68] sm:$0xf]  ;;  %v13807_v11 = vld [vmem:[#allocation6 + $0x1b80] sm:$0xf0] }
 0x2bd   :  { %7959 = vmatpush.bf16.msrb.mxu0 %v10621_v52  ;;  %v13562_v52 = vld [vmem:[#allocation6 + $0x13d8] sm:$0xf0]  ;;  %v7733_v24 = vadd.f32 %v7732_v49, %v7720_v43  ;;  %v13709_v43 = vld [vmem:[#allocation6 + $0x1870] sm:$0xf0]  ;;  %v11488_v12 = vld [vmem:[#allocation6 + $0x15f0] sm:$0xf] }
 0x2be   :  { %7985 = vmatpush.bf16.msrb.mxu2 %v11069_v57  ;;  %v13387_v57 = vld [vmem:[#allocation6 + $0xe60] sm:$0xf0]  ;;  %v11209_v39 = vor.u32 %v13562_v52, %v11208_v50  ;;  %v13821_v49 = vld [vmem:[#allocation6 + $0x1bf0] sm:$0xf0] }
 0x2bf   :  { %7972 = vmatpush.bf16.msrb.mxu1 %v10845_v58  ;;  %v10956_v58 = vld [vmem:[#allocation6 + $0x11c8] sm:$0xf]  ;;  %v7708_v3 = vpop.f32.mrf.mxu0 }
 0x2c0   :  { %7998 = vmatpush.bf16.msrb.mxu3 %v11293_v53  ;;  %v14341_v53 = vadd.f32 %v7745_v55, %v7733_v24  ;;  %v10957_v4 = vor.u32 %v13499_v60, %v10956_v58  ;;  %v7734_v34 = vpop.f32.mrf.mxu2  ;;  %v13646_v24 = vld [vmem:[#allocation6 + $0x1678] sm:$0xf0]  ;;  %v11768_v58 = vld [vmem:[#allocation6 + $0x1820] sm:$0xf]  ;;  %v11964_v3 = vld [vmem:[#allocation6 + $0x19a8] sm:$0xf] }
 0x2c1   :  { %7960 = vmatpush.bf16.msrb.mxu0 %v10593_v13  ;;  %v10509_v13 = vor.u32 %v13387_v57, %v10508_v56  ;;  %v11992_v57 = vld [vmem:[#allocation6 + $0x19e0] sm:$0xf]  ;;  %v13702_v60 = vld [vmem:[#allocation6 + $0x1838] sm:$0xf0] }
 0x2c2   :  { %7986 = vmatpush.bf16.msrb.mxu2 %v11041_v2  ;;  %v10480_v2 = vld [vmem:[#allocation6 + $0xe10] sm:$0xf]  ;;  %v7747_v50 = vpop.f32.mrf.mxu3 }
 0x2c3   :  { %7973 = vmatpush.bf16.msrb.mxu1 %v10817_v5  ;;  %v13380_v5 = vld [vmem:[#allocation6 + $0xe28] sm:$0xf0] }
 0x2c4   :  { %7999 = vmatpush.bf16.msrb.mxu3 %v11265_v7  ;;  %v10733_v7 = vor.u32 %v13443_v62, %v10732_v59  ;;  %v10481_v26 = vor.u32 %v13380_v5, %v10480_v2  ;;  %v12216_v59 = vld [vmem:[#allocation6 + $0x1ba0] sm:$0xf]  ;;  %v13814_v62 = vld [vmem:[#allocation6 + $0x1bb8] sm:$0xf0]  ;;  %v11769_v2 = vor.u32 %v13702_v60, %v11768_v58  ;;  %v12132_v58 = vld [vmem:[#allocation6 + $0x1af8] sm:$0xf] }
 0x2c5   :  { %7961 = vmatpush.bf16.msrb.mxu0 %v10565_v27  ;;  %v12020_v27 = vld [vmem:[#allocation6 + $0x1a18] sm:$0xf]  ;;  %v12217_v5 = vor.u32 %v13814_v62, %v12216_v59  ;;  %v13793_v60 = vld [vmem:[#allocation6 + $0x1b10] sm:$0xf0]  ;;  %v13618_v59 = vld [vmem:[#allocation6 + $0x1598] sm:$0xf0] }
 0x2c6   :  { %7987 = vmatpush.bf16.msrb.mxu2 %v11013_v20  ;;  %v10704_v20 = vld [vmem:[#allocation6 + $0xfd0] sm:$0xf]  ;;  %v12021_v45 = vor.u32 %v13765_v15, %v12020_v27  ;;  %v11741_v15 = vor.u32 %v13695_v6, %v11740_v61  ;;  %v12104_v6 = vld [vmem:[#allocation6 + $0x1ac0] sm:$0xf] }
 0x2c7   :  { %7974 = vmatpush.bf16.msrb.mxu1 %v10789_v14  ;;  %v13548_v14 = vld [vmem:[#allocation6 + $0x1368] sm:$0xf0]  ;;  %v10705_v17 = vor.u32 %v13436_v25, %v10704_v20  ;;  %v11936_v20 = vld [vmem:[#allocation6 + $0x1970] sm:$0xf] }
 0x2c8   :  { %8000 = vmatpush.bf16.msrb.mxu3 %v11237_v41  ;;  %v11796_v41 = vld [vmem:[#allocation6 + $0x1858] sm:$0xf]  ;;  %v11153_v52 = vor.u32 %v13548_v14, %v11152_v32  ;;  %v13744_v25 = vld [vmem:[#allocation6 + $0x1988] sm:$0xf0]  ;;  %v11712_v32 = vld [vmem:[#allocation6 + $0x17b0] sm:$0xf] }
 0x2c9   :  { %7962 = vmatpush.bf16.msrb.mxu0 %v10537_v46  ;;  %v12244_v46 = vld [vmem:[#allocation6 + $0x1bd8] sm:$0xf]  ;;  %v11797_v56 = vor.u32 %v13709_v43, %v11796_v41  ;;  %v13688_v14 = vld [vmem:[#allocation6 + $0x17c8] sm:$0xf0] }
 0x2ca   :  { %7988 = vmatpush.bf16.msrb.mxu2 %v10985_v54  ;;  %v11544_v54 = vld [vmem:[#allocation6 + $0x1660] sm:$0xf]  ;;  %v12245_v55 = vor.u32 %v13821_v49, %v12244_v46  ;;  %v13800_v41 = vld [vmem:[#allocation6 + $0x1b48] sm:$0xf0]  ;;  %v13625_v46 = vld [vmem:[#allocation6 + $0x15d0] sm:$0xf0]  ;;  %v11713_v50 = vor.u32 %v13688_v14, %v11712_v32 }
 0x2cb   :  { %7975 = vmatpush.bf16.msrb.mxu1 %v10761_v51  ;;  %v13758_v51 = vld [vmem:[#allocation6 + $0x19f8] sm:$0xf0] }
 0x2cc   :  { %8001 = vmatpush.bf16.msrb.mxu3 %v11209_v39  ;;  %v11545_v39 = vor.u32 %v13646_v24, %v11544_v54  ;;  %v13737_v54 = vld [vmem:[#allocation6 + $0x1950] sm:$0xf0] }
 0x2cd   :  { %7963 = vmatpush.bf16.msrb.mxu0 %v10509_v13  ;;  %v11993_v13 = vor.u32 %v13758_v51, %v11992_v57  ;;  %v11684_v57 = vld [vmem:[#allocation6 + $0x1778] sm:$0xf]  ;;  %v13681_v51 = vld [vmem:[#allocation6 + $0x1790] sm:$0xf0] }
 0x2ce   :  { %7989 = vmatpush.bf16.msrb.mxu2 %v10957_v4  ;;  %v13751_v4 = vld [vmem:[#allocation6 + $0x19c0] sm:$0xf0]  ;;  %v11685_v62 = vor.u32 %v13681_v51, %v11684_v57  ;;  %v13989_v51 = vld [vmem:[#allocation6 + $0x2130] sm:$0xf0] }
 0x2cf   :  { %7976 = vmatpush.bf16.msrb.mxu1 %v10733_v7  ;;  %v11517_v7 = vor.u32 %v13639_v0, %v11516_v63  ;;  %v11965_v27 = vor.u32 %v13751_v4, %v11964_v3  ;;  %v13730_v63 = vld [vmem:[#allocation6 + $0x1918] sm:$0xf0]  ;;  %v11656_v3 = vld [vmem:[#allocation6 + $0x1740] sm:$0xf] }
 0x2d0   :  { %8002 = vmatpush.bf16.msrb.mxu3 %v11181_v1  ;;  %v13632_v1 = vld [vmem:[#allocation6 + $0x1608] sm:$0xf0]  ;;  %v13674_v4 = vld [vmem:[#allocation6 + $0x1758] sm:$0xf0] }
 0x2d1   :  { %7964 = vmatpush.bf16.msrb.mxu0 %v10481_v26  ;;  %v12189_v26 = vor.u32 %v13807_v11, %v12188_v9  ;;  %v7758_v34 = vpop.f32.mrf.mxu0 }
 0x2d2   :  { %7990 = vmatpush.bf16.msrb.mxu2 %v10929_v35  ;;  %v11489_v35 = vor.u32 %v13632_v1, %v11488_v12  ;;  %v7759_v43 = vadd.f32 %v7758_v34, %v14341_v53  ;;  %v11432_v53 = vld [vmem:[#allocation6 + $0x1580] sm:$0xf]  ;;  %v11404_v12 = vld [vmem:[#allocation6 + $0x1548] sm:$0xf]  ;;  %v13611_v1 = vld [vmem:[#allocation6 + $0x1560] sm:$0xf0] }
 0x2d3   :  { %7977 = vmatpush.bf16.msrb.mxu1 %v10705_v17  ;;  %v11460_v17 = vld [vmem:[#allocation6 + $0x15b8] sm:$0xf]  ;;  %v7771_v49 = vpop.f32.mrf.mxu1  ;;  %v11433_v61 = vor.u32 %v13618_v59, %v11432_v53  ;;  %v11628_v34 = vld [vmem:[#allocation6 + $0x1708] sm:$0xf]  ;;  %v12048_v53 = vld [vmem:[#allocation6 + $0x1a50] sm:$0xf] }
 0x2d4   :  { %8003 = vmatpush.bf16.msrb.mxu3 %v11153_v52  ;;  %7965 = vmatmul.bf16.vlgmr.msrb.gmra.mxu0 %v14187_v19  ;;  %v11908_v52 = vld [vmem:[#allocation6 + $0x1938] sm:$0xf]  ;;  %v7772_v24 = vadd.f32 %v7771_v49, %v7759_v43  ;;  %v13779_v43 = vld [vmem:[#allocation6 + $0x1aa0] sm:$0xf0]  ;;  %v11824_v49 = vld [vmem:[#allocation6 + $0x1890] sm:$0xf] }
 0x2d5   :  { %8009 = vmatpush.bf16.msra.mxu0 %v11573_v38  ;;  %7991 = vmatmul.bf16.vlgmr.msrb.gmra.mxu2 %v14189_v23  ;;  %v12160_v38 = vld [vmem:[#allocation6 + $0x1b30] sm:$0xf]  ;;  %v13772_v59 = vld [vmem:[#allocation6 + $0x1a68] sm:$0xf0] }
 0x2d6   :  { %8035 = vmatpush.bf16.msra.mxu2 %v12021_v45  ;;  %7978 = vmatmul.bf16.vlgmr.msrb.gmra.mxu1 %v14191_v28  ;;  %v11937_v45 = vor.u32 %v13744_v25, %v11936_v20  ;;  %v11657_v20 = vor.u32 %v13674_v4, %v11656_v3  ;;  %v11852_v25 = vld [vmem:[#allocation6 + $0x18c8] sm:$0xf] }
 0x2d7   :  { %8022 = vmatpush.bf16.msra.mxu1 %v11797_v56  ;;  %8004 = vmatmul.bf16.vlgmr.msrb.gmra.mxu3 %v14193_v31  ;;  %v12161_v56 = vor.u32 %v13800_v41, %v12160_v38  ;;  %v11405_v38 = vor.u32 %v13611_v1, %v11404_v12  ;;  %v12076_v41 = vld [vmem:[#allocation6 + $0x1a88] sm:$0xf]  ;;  %v13982_v12 = vld [vmem:[#allocation6 + $0x20f8] sm:$0xf0] }
 0x2d8   :  { %8048 = vmatpush.bf16.msra.mxu3 %v12245_v55  ;;  %v11461_v55 = vor.u32 %v13625_v46, %v11460_v17  ;;  %v7784_v0 = vpop.f32.mrf.mxu2  ;;  %v13604_v46 = vld [vmem:[#allocation6 + $0x1528] sm:$0xf0]  ;;  %v12077_v57 = vor.u32 %v13779_v43, %v12076_v41  ;;  %v12860_v43 = vld [vmem:[#allocation6 + $0x20a8] sm:$0xf] }
 0x2d9   :  { %8010 = vmatpush.bf16.msra.mxu0 %v11545_v39  ;;  %v11909_v39 = vor.u32 %v13737_v54, %v11908_v52  ;;  %v7760_v9 = vpop.f32.mrf.mxu0  ;;  %v12468_v54 = vld [vmem:[#allocation6 + $0x1d98] sm:$0xf] }
 0x2da   :  { %8036 = vmatpush.bf16.msra.mxu2 %v11993_v13  ;;  %v11880_v13 = vld [vmem:[#allocation6 + $0x1900] sm:$0xf]  ;;  %v7797_v11 = vpop.f32.mrf.mxu3  ;;  %v13870_v9 = vld [vmem:[#allocation6 + $0x1d78] sm:$0xf0] }
 0x2db   :  { %8023 = vmatpush.bf16.msra.mxu1 %v11769_v2  ;;  %v12133_v2 = vor.u32 %v13793_v60, %v12132_v58  ;;  %v7773_v32 = vpop.f32.mrf.mxu1  ;;  %v13660_v58 = vld [vmem:[#allocation6 + $0x16e8] sm:$0xf0] }
 0x2dc   :  { %8049 = vmatpush.bf16.msra.mxu3 %v12217_v5  ;;  %v7785_v5 = vadd.f32 %v7784_v0, %v7772_v24  ;;  %v13877_v24 = vld [vmem:[#allocation6 + $0x1db0] sm:$0xf0]  ;;  %v12971_v32 = vld [vmem:[#allocation6 + $0x164] sm:$0xf] }
 0x2dd   :  { %8011 = vmatpush.bf16.msra.mxu0 %v11517_v7  ;;  %v13786_v7 = vld [vmem:[#allocation6 + $0x1ad8] sm:$0xf0]  ;;  %v13933_v0 = vld [vmem:[#allocation6 + $0x1f70] sm:$0xf0] }
 0x2de   :  { %8037 = vmatpush.bf16.msra.mxu2 %v11965_v27  ;;  %v11881_v27 = vor.u32 %v13730_v63, %v11880_v13  ;;  %v12105_v14 = vor.u32 %v13786_v7, %v12104_v6  ;;  %v12469_v13 = vor.u32 %v13877_v24, %v12468_v54  ;;  %v12692_v63 = vld [vmem:[#allocation6 + $0x1f58] sm:$0xf]  ;;  %v12049_v6 = vor.u32 %v13772_v59, %v12048_v53  ;;  %v12440_v7 = vld [vmem:[#allocation6 + $0x1d60] sm:$0xf]  ;;  %v8830_v54 = vld [vmem:[#allocation6 + $0x144] sm:$0xf0] }
 0x2df   :  { %8024 = vmatpush.bf16.msra.mxu1 %v11741_v15  ;;  %v14348_v15 = vadd.f32 %v7797_v11, %v7785_v5  ;;  %v12978_v5 = vld [vmem:[#allocation6 + $0x19c] sm:$0xf]  ;;  %v12693_v11 = vor.u32 %v13933_v0, %v12692_v63  ;;  %v13912_v53 = vld [vmem:[#allocation6 + $0x1ec8] sm:$0xf0]  ;;  %v8802_v63 = vld [vmem:[#allocation6 + $0x10c] sm:$0xf0] }
 0x2e0   :  { %8050 = vmatpush.bf16.msra.mxu3 %v12189_v26  ;;  %v13723_v26 = vld [vmem:[#allocation6 + $0x18e0] sm:$0xf0]  ;;  %v7786_v60 = vpop.f32.mrf.mxu2 }
 0x2e1   :  { %8012 = vmatpush.bf16.msra.mxu0 %v11489_v35  ;;  %v13667_v35 = vld [vmem:[#allocation6 + $0x1720] sm:$0xf0]  ;;  %v11853_v17 = vor.u32 %v13723_v26, %v11852_v25  ;;  %v13926_v25 = vld [vmem:[#allocation6 + $0x1f38] sm:$0xf0]  ;;  %v12441_v26 = vor.u32 %v13870_v9, %v12440_v7  ;;  %v13961_v7 = vld [vmem:[#allocation6 + $0x2050] sm:$0xf0] }
 0x2e2   :  { %8038 = vmatpush.bf16.msra.mxu2 %v11937_v45  ;;  %v11376_v45 = vld [vmem:[#allocation6 + $0x1510] sm:$0xf]  ;;  %v11629_v52 = vor.u32 %v13667_v35, %v11628_v34  ;;  %v12412_v35 = vld [vmem:[#allocation6 + $0x1d28] sm:$0xf] }
 0x2e3   :  { %8025 = vmatpush.bf16.msra.mxu1 %v11713_v50  ;;  %v13716_v50 = vld [vmem:[#allocation6 + $0x18a8] sm:$0xf0] }
 0x2e4   :  { %8051 = vmatpush.bf16.msra.mxu3 %v12161_v56  ;;  %v12916_v56 = vld [vmem:[#allocation6 + $0x2118] sm:$0xf] }
 0x2e5   :  { %8013 = vmatpush.bf16.msra.mxu0 %v11461_v55  ;;  %v11600_v55 = vld [vmem:[#allocation6 + $0x16d0] sm:$0xf]  ;;  %v12917_v3 = vor.u32 %v13989_v51, %v12916_v56 }
 0x2e6   :  { %8039 = vmatpush.bf16.msra.mxu2 %v11909_v39  ;;  %v11377_v39 = vor.u32 %v13604_v46, %v11376_v45  ;;  %v11601_v4 = vor.u32 %v13660_v58, %v11600_v55  ;;  %v13975_v45 = vld [vmem:[#allocation6 + $0x20c0] sm:$0xf0]  ;;  %v12636_v46 = vld [vmem:[#allocation6 + $0x1ee8] sm:$0xf]  ;;  %v12384_v56 = vld [vmem:[#allocation6 + $0x1cf0] sm:$0xf] }
 0x2e7   :  { %8026 = vmatpush.bf16.msra.mxu1 %v11685_v62  ;;  %v11825_v62 = vor.u32 %v13716_v50, %v11824_v49  ;;  %v13919_v49 = vld [vmem:[#allocation6 + $0x1f00] sm:$0xf0]  ;;  %v12861_v24 = vor.u32 %v13975_v45, %v12860_v43  ;;  %v12832_v55 = vld [vmem:[#allocation6 + $0x2070] sm:$0xf]  ;;  %v13968_v58 = vld [vmem:[#allocation6 + $0x2088] sm:$0xf0] }
 0x2e8   :  { %8052 = vmatpush.bf16.msra.mxu3 %v12133_v2  ;;  %v7799_v2 = vpop.f32.mrf.mxu3  ;;  %v12637_v51 = vor.u32 %v13919_v49, %v12636_v46  ;;  %v12552_v43 = vld [vmem:[#allocation6 + $0x1e40] sm:$0xf]  ;;  %v13898_v45 = vld [vmem:[#allocation6 + $0x1e58] sm:$0xf0]  ;;  %v12943_v49 = vld [vmem:[#allocation6 + $0x84] sm:$0xf] }
 0x2e9   :  { %8014 = vmatpush.bf16.msra.mxu0 %v11433_v61  ;;  %v8886_v61 = vld [vmem:[#allocation6 + $0x1b4] sm:$0xf0]  ;;  %v12833_v2 = vor.u32 %v13968_v58, %v12832_v55  ;;  %v14006_v55 = vld [vmem:[#allocation9] sm:$0xff] }
 0x2ea   :  { %8040 = vmatpush.bf16.msra.mxu2 %v11881_v27  ;;  %v12888_v27 = vld [vmem:[#allocation6 + $0x20e0] sm:$0xf]  ;;  %v8889_v1 = vor.u32 %v12978_v5, %v8886_v61  ;;  %v8607_v58 = vperm.slane %v14006_v55, 3 }
 0x2eb   :  { %8027 = vmatpush.bf16.msra.mxu1 %v11657_v20  ;;  %v12664_v20 = vld [vmem:[#allocation6 + $0x1f20] sm:$0xf]  ;;  %v12889_v34 = vor.u32 %v13982_v12, %v12888_v27  ;;  %v12580_v27 = vld [vmem:[#allocation6 + $0x1e78] sm:$0xf]  ;;  %v13905_v12 = vld [vmem:[#allocation6 + $0x1e90] sm:$0xf0] }
 0x2ec   :  { %8053 = vmatpush.bf16.msra.mxu3 %v12105_v14  ;;  %v8858_v14 = vld [vmem:[#allocation6 + $0x17c] sm:$0xf0]  ;;  %v12665_v41 = vor.u32 %v13926_v25, %v12664_v20  ;;  %v12950_v20 = vld [vmem:[#allocation6 + $0xbc] sm:$0xf]  ;;  %v8774_v25 = vld [vmem:[#allocation6 + $0xd4] sm:$0xf0] }
 0x2ed   :  { %8015 = vmatpush.bf16.msra.mxu0 %v11405_v38  ;;  %v13863_v38 = vld [vmem:[#allocation6 + $0x1d40] sm:$0xf0]  ;;  %v9530_v55 = vld [vmem:[#allocation6 + $0x6bc] sm:$0xf0] }
 0x2ee   :  { %8041 = vmatpush.bf16.msra.mxu2 %v11853_v17  ;;  %v8861_v17 = vor.u32 %v12971_v32, %v8858_v14  ;;  %v12413_v50 = vor.u32 %v13863_v38, %v12412_v35  ;;  %v13842_v32 = vld [vmem:[#allocation6 + $0x1c98] sm:$0xf0]  ;;  %v12581_v14 = vor.u32 %v13905_v12, %v12580_v27 }
 0x2ef   :  { %8028 = vmatpush.bf16.msra.mxu1 %v11629_v52  ;;  %v12964_v52 = vld [vmem:[#allocation6 + $0x12c] sm:$0xf]  ;;  %v13954_v35 = vld [vmem:[#allocation6 + $0x2018] sm:$0xf0] }
 0x2f0   :  { %8054 = vmatpush.bf16.msra.mxu3 %v12077_v57  ;;  %v13856_v57 = vld [vmem:[#allocation6 + $0x1d08] sm:$0xf0]  ;;  %v8833_v60 = vor.u32 %v12964_v52, %v8830_v54  ;;  %v13034_v12 = vld [vmem:[#allocation6 + $0x35c] sm:$0xf] }
 0x2f1   :  { %8016 = vmatpush.bf16.msra.mxu0 %v11377_v39  ;;  %v12608_v39 = vld [vmem:[#allocation6 + $0x1eb0] sm:$0xf]  ;;  %v7810_v59 = vpop.f32.mrf.mxu0 }
 0x2f2   :  { %8042 = vmatpush.bf16.msra.mxu2 %v11825_v62  ;;  %v12385_v62 = vor.u32 %v13856_v57, %v12384_v56  ;;  %v7811_v0 = vadd.f32 %v7810_v59, %v14348_v15  ;;  %v12609_v61 = vor.u32 %v13912_v53, %v12608_v39  ;;  %v12328_v15 = vld [vmem:[#allocation6 + $0x1c80] sm:$0xf]  ;;  %v12300_v56 = vld [vmem:[#allocation6 + $0x1c48] sm:$0xf]  ;;  %v13835_v57 = vld [vmem:[#allocation6 + $0x1c60] sm:$0xf0] }
 0x2f3   :  { %8029 = vmatpush.bf16.msra.mxu1 %v11601_v4  ;;  %v13849_v4 = vld [vmem:[#allocation6 + $0x1cd0] sm:$0xf0]  ;;  %v7823_v5 = vpop.f32.mrf.mxu1  ;;  %v12329_v46 = vor.u32 %v13842_v32, %v12328_v15  ;;  %v12748_v39 = vld [vmem:[#allocation6 + $0x1fc8] sm:$0xf]  ;;  %v13947_v53 = vld [vmem:[#allocation6 + $0x1fe0] sm:$0xf0] }
 0x2f4   :  { %8055 = vmatpush.bf16.msra.mxu3 %v12049_v6  ;;  %8017 = vmatmul.bf16.vlgmr.msra.gmra.mxu0 %v14199_v16  ;;  %v12804_v6 = vld [vmem:[#allocation6 + $0x2038] sm:$0xf]  ;;  %v7824_v9 = vadd.f32 %v7823_v5, %v7811_v0  ;;  %v12936_v0 = vld [vmem:[#allocation6 + $0x4c] sm:$0xf]  ;;  %v12272_v5 = vld [vmem:[#allocation6 + $0x1c10] sm:$0xf] }
 0x2f5   :  { %8061 = vmatpush.bf16.msrb.mxu0 %v12469_v13  ;;  %8043 = vmatmul.bf16.vlgmr.msra.gmra.mxu2 %v14201_v21  ;;  %v12957_v13 = vld [vmem:[#allocation6 + $0xf4] sm:$0xf]  ;;  %v12496_v15 = vld [vmem:[#allocation6 + $0x1dd0] sm:$0xf]  ;;  %v13884_v32 = vld [vmem:[#allocation6 + $0x1de8] sm:$0xf0] }
 0x2f6   :  { %8087 = vmatpush.bf16.msrb.mxu2 %v12917_v3  ;;  %8030 = vmatmul.bf16.vlgmr.msra.gmra.mxu1 %v14203_v29  ;;  %v12356_v3 = vld [vmem:[#allocation6 + $0x1cb8] sm:$0xf] }
 0x2f7   :  { %8074 = vmatpush.bf16.msrb.mxu1 %v12693_v11  ;;  %8056 = vmatmul.bf16.vlgmr.msra.gmra.mxu3 %v14205_v33  ;;  %v8805_v11 = vor.u32 %v12957_v13, %v8802_v63  ;;  %v12524_v13 = vld [vmem:[#allocation6 + $0x1e08] sm:$0xf]  ;;  %v13891_v63 = vld [vmem:[#allocation6 + $0x1e20] sm:$0xf0] }
 0x2f8   :  { %8100 = vmatpush.bf16.msrb.mxu3 %v8889_v1  ;;  %v12357_v1 = vor.u32 %v13849_v4, %v12356_v3  ;;  %v7836_v38 = vpop.f32.mrf.mxu2  ;;  %v12301_v3 = vor.u32 %v13835_v57, %v12300_v56  ;;  %v8718_v4 = vld [vmem:[#allocation6 + $0x64] sm:$0xf0]  ;;  %v12525_v27 = vor.u32 %v13891_v63, %v12524_v13  ;;  %v13027_v56 = vld [vmem:[#allocation6 + $0x324] sm:$0xf]  ;;  %v9754_v63 = vld [vmem:[#allocation6 + $0x87c] sm:$0xf0] }
 0x2f9   :  { %8062 = vmatpush.bf16.msrb.mxu0 %v12441_v26  ;;  %v12805_v26 = vor.u32 %v13961_v7, %v12804_v6  ;;  %v7812_v52 = vpop.f32.mrf.mxu0  ;;  %v13828_v6 = vld [vmem:[#allocation6 + $0x1c28] sm:$0xf0]  ;;  %v12720_v7 = vld [vmem:[#allocation6 + $0x1f90] sm:$0xf]  ;;  %v13195_v13 = vld [vmem:[#allocation6 + $0x864] sm:$0xf] }
 0x2fa   :  { %8088 = vmatpush.bf16.msrb.mxu2 %v12889_v34  ;;  %v12776_v34 = vld [vmem:[#allocation6 + $0x2000] sm:$0xf]  ;;  %v7849_v54 = vpop.f32.mrf.mxu3  ;;  %v12497_v52 = vor.u32 %v13884_v32, %v12496_v15 }
 0x2fb   :  { %8075 = vmatpush.bf16.msrb.mxu1 %v12665_v41  ;;  %v8777_v41 = vor.u32 %v12950_v20, %v8774_v25  ;;  %v7825_v59 = vpop.f32.mrf.mxu1  ;;  %v13146_v20 = vld [vmem:[#allocation6 + $0x6dc] sm:$0xf]  ;;  %v8721_v25 = vor.u32 %v12936_v0, %v8718_v4  ;;  %v13020_v0 = vld [vmem:[#allocation6 + $0x2ec] sm:$0xf]  ;;  %v9502_v4 = vld [vmem:[#allocation6 + $0x684] sm:$0xf0] }
 0x2fc   :  { %8101 = vmatpush.bf16.msrb.mxu3 %v8861_v17  ;;  %v7837_v17 = vadd.f32 %v7836_v38, %v7824_v9  ;;  %v13940_v9 = vld [vmem:[#allocation6 + $0x1fa8] sm:$0xf0]  ;;  %v12929_v38 = vld [vmem:[#allocation6 + $0x14] sm:$0xf] }
 0x2fd   :  { %8063 = vmatpush.bf16.msrb.mxu0 %v12413_v50  ;;  %v8746_v50 = vld [vmem:[#allocation6 + $0x9c] sm:$0xf0] }
 0x2fe   :  { %8089 = vmatpush.bf16.msrb.mxu2 %v12861_v24  ;;  %v12777_v24 = vor.u32 %v13954_v35, %v12776_v34  ;;  %v12273_v35 = vor.u32 %v13828_v6, %v12272_v5  ;;  %v13076_v6 = vld [vmem:[#allocation6 + $0x4ac] sm:$0xf] }
 0x2ff   :  { %8076 = vmatpush.bf16.msrb.mxu1 %v12637_v51  ;;  %v7850_v51 = vadd.f32 %v7849_v54, %v7837_v17  ;;  %v13090_v17 = vld [vmem:[#allocation6 + $0x51c] sm:$0xf] }
 0x300   :  { %8102 = vmatpush.bf16.msrb.mxu3 %v8833_v60  ;;  %v12553_v60 = vor.u32 %v13898_v45, %v12552_v43  ;;  %v12721_v43 = vor.u32 %v13940_v9, %v12720_v7  ;;  %v13202_v54 = vld [vmem:[#allocation6 + $0x89c] sm:$0xf]  ;;  %v9278_v7 = vld [vmem:[#allocation6 + $0x4c4] sm:$0xf0] }
 0x301   :  { %8064 = vmatpush.bf16.msrb.mxu0 %v12385_v62  ;;  %v8749_v62 = vor.u32 %v12943_v49, %v8746_v50  ;;  %v9281_v15 = vor.u32 %v13076_v6, %v9278_v7 }
 0x302   :  { %8090 = vmatpush.bf16.msrb.mxu2 %v12833_v2  ;;  %v8597_v2 = vmax.f32 %v7850_v51, 0.0  ;;  %v7851_v49 = vpop.f32.mrf.mxu3  ;;  %v13139_v51 = vld [vmem:[#allocation6 + $0x6a4] sm:$0xf] }
 0x303   :  { %8077 = vmatpush.bf16.msrb.mxu1 %v12609_v61  ;;  %v12749_v61 = vor.u32 %v13947_v53, %v12748_v39  ;;  %v13083_v39 = vld [vmem:[#allocation6 + $0x4e4] sm:$0xf]  ;;  %v9306_v53 = vld [vmem:[#allocation6 + $0x4fc] sm:$0xf0] }
 0x304   :  { %8103 = vmatpush.bf16.msrb.mxu3 %v8805_v11  ;;  %v8621_v11 = vmul.f32 %v8607_v58, %v8597_v2  ;;  %v9054_v2 = vld [vmem:[#allocation6 + $0x304] sm:$0xf0]  ;;  %v9309_v5 = vor.u32 %v13083_v39, %v9306_v53  ;;  %v13174_v39 = vld [vmem:[#allocation6 + $0x7bc] sm:$0xf]  ;;  %v9670_v53 = vld [vmem:[#allocation6 + $0x7d4] sm:$0xf0] }
 0x305   :  { %8065 = vmatpush.bf16.msrb.mxu0 %v12357_v1  ;;  %v9110_v1 = vld [vmem:[#allocation6 + $0x374] sm:$0xf0]  ;;  %v9057_v9 = vor.u32 %v13020_v0, %v9054_v2  ;;  %v9418_v0 = vld [vmem:[#allocation6 + $0x5dc] sm:$0xf0] }
 0x306   :  { %8091 = vmatpush.bf16.msrb.mxu2 %v12805_v26  ;;  %v9558_v26 = vld [vmem:[#allocation6 + $0x6f4] sm:$0xf0]  ;;  %v14356_v34 = vadd.f32 %v14325_v47, %v8621_v11  ;;  %v9113_v45 = vor.u32 %v13034_v12, %v9110_v1  ;;  %v9082_v47 = vld [vmem:[#allocation6 + $0x33c] sm:$0xf0]  ;;  %v9726_v12 = vld [vmem:[#allocation6 + $0x844] sm:$0xf0] }
 0x307   :  { %8078 = vmatpush.bf16.msrb.mxu1 %v12581_v14  ;;  %v7838_v14 = vpop.f32.mrf.mxu2  ;;  %v9561_v50 = vor.u32 %v13146_v20, %v9558_v26  ;;  %v9085_v59 = vor.u32 %v13027_v56, %v9082_v47  ;;  %v13013_v1 = vld [vmem:[#allocation6 + $0x2b4] sm:$0xf]  ;;  %v9026_v20 = vld [vmem:[#allocation6 + $0x2cc] sm:$0xf0]  ;;  %v13062_v47 = vld [vmem:[#allocation6 + $0x43c] sm:$0xf] }
 0x308   :  { %8104 = vmatpush.bf16.msrb.mxu3 %v8777_v41  ;;  %v8690_v41 = vld [vmem:[#allocation6 + $0x2c] sm:$0xf0]  ;;  %v13069_v14 = vld [vmem:[#allocation6 + $0x474] sm:$0xf] }
 0x309   :  { %8066 = vmatpush.bf16.msrb.mxu0 %v12329_v46  ;;  %v9334_v46 = vld [vmem:[#allocation6 + $0x534] sm:$0xf0]  ;;  %v8693_v57 = vor.u32 %v12929_v38, %v8690_v41  ;;  %v9474_v26 = vld [vmem:[#allocation6 + $0x64c] sm:$0xf0]  ;;  %v13181_v38 = vld [vmem:[#allocation6 + $0x7f4] sm:$0xf]  ;;  %v9029_v41 = vor.u32 %v13013_v1, %v9026_v20 }
 0x30a   :  { %8092 = vmatpush.bf16.msrb.mxu2 %v12777_v24  ;;  %v9782_v24 = vld [vmem:[#allocation6 + $0x8b4] sm:$0xf0]  ;;  %v9337_v58 = vor.u32 %v13090_v17, %v9334_v46  ;;  %v13006_v17 = vld [vmem:[#allocation6 + $0x27c] sm:$0xf]  ;;  %v14007_v46 = vld [vmem:[#allocation8] sm:$0xff] }
 0x30b   :  { %8079 = vmatpush.bf16.msrb.mxu1 %v12553_v60  ;;  %v9785_v60 = vor.u32 %v13202_v54, %v9782_v24  ;;  %v1316_v49 = vperm.slane %v14007_v46, 4  ;;  %v9446_v54 = vld [vmem:[#allocation6 + $0x614] sm:$0xf0]  ;;  %v8942_v20 = vld [vmem:[#allocation6 + $0x224] sm:$0xf0] }
 0x30c   :  { %8105 = vmatpush.bf16.msrb.mxu3 %v8749_v62  ;;  %v9533_v62 = vor.u32 %v13139_v51, %v9530_v55  ;;  %v9222_v51 = vld [vmem:[#allocation6 + $0x454] sm:$0xf0] }
 0x30d   :  { %8067 = vmatpush.bf16.msrb.mxu0 %v12301_v3  ;;  %v13132_v3 = vld [vmem:[#allocation6 + $0x66c] sm:$0xf]  ;;  %v9225_v2 = vor.u32 %v13062_v47, %v9222_v51  ;;  %v10006_v51 = vld [vmem:[#allocation6 + $0xa74] sm:$0xf0] }
 0x30e   :  { %8093 = vmatpush.bf16.msrb.mxu2 %v12749_v61  ;;  %v9757_v61 = vor.u32 %v13195_v13, %v9754_v63  ;;  %v9505_v11 = vor.u32 %v13132_v3, %v9502_v4  ;;  %v8970_v13 = vld [vmem:[#allocation6 + $0x25c] sm:$0xf0]  ;;  %v13111_v63 = vld [vmem:[#allocation6 + $0x5c4] sm:$0xf]  ;;  %v9673_v4 = vor.u32 %v13174_v39, %v9670_v53  ;;  %v13041_v39 = vld [vmem:[#allocation6 + $0x394] sm:$0xf] }
 0x30f   :  { %8080 = vmatpush.bf16.msrb.mxu1 %v12525_v27  ;;  %v13188_v27 = vld [vmem:[#allocation6 + $0x82c] sm:$0xf]  ;;  %v9138_v53 = vld [vmem:[#allocation6 + $0x3ac] sm:$0xf0] }
 0x310   :  { %8106 = vmatpush.bf16.msrb.mxu3 %v8721_v25  ;;  %v13125_v25 = vld [vmem:[#allocation6 + $0x634] sm:$0xf]  ;;  %v9729_v32 = vor.u32 %v13188_v27, %v9726_v12  ;;  %v9642_v27 = vld [vmem:[#allocation6 + $0x79c] sm:$0xf0]  ;;  %v12992_v12 = vld [vmem:[#allocation6 + $0x20c] sm:$0xf] }
 0x311   :  { %8068 = vmatpush.bf16.msrb.mxu0 %v12273_v35  ;;  %v9250_v35 = vld [vmem:[#allocation6 + $0x48c] sm:$0xf0]  ;;  %v7862_v55 = vpop.f32.mrf.mxu0  ;;  %v8945_v46 = vor.u32 %v12992_v12, %v8942_v20  ;;  %v10426_v12 = vld [vmem:[#allocation6 + $0xdbc] sm:$0xf0] }
 0x312   :  { %8094 = vmatpush.bf16.msrb.mxu2 %v12721_v43  ;;  %v9477_v43 = vor.u32 %v13125_v25, %v9474_v26  ;;  %v9253_v24 = vor.u32 %v13069_v14, %v9250_v35  ;;  %v13104_v25 = vld [vmem:[#allocation6 + $0x58c] sm:$0xf]  ;;  %v9390_v26 = vld [vmem:[#allocation6 + $0x5a4] sm:$0xf0] }
 0x313   :  { %8081 = vmatpush.bf16.msrb.mxu1 %v12497_v52  ;;  %v13118_v52 = vld [vmem:[#allocation6 + $0x5fc] sm:$0xf]  ;;  %v7875_v56 = vpop.f32.mrf.mxu1 }
 0x314   :  { %8107 = vmatpush.bf16.msrb.mxu3 %v8693_v57  ;;  %8069 = vmatmul.bf16.vlgmr.msrb.gmra.mxu0 %v14211_v30 }
 0x315   :  { %8113 = vmatpush.bf16.msra.mxu0 %v9113_v45  ;;  %8095 = vmatmul.bf16.vlgmr.msrb.gmra.mxu2 %v14213_v37  ;;  %v9698_v45 = vld [vmem:[#allocation6 + $0x80c] sm:$0xf0] }
 0x316   :  { %8139 = vmatpush.bf16.msra.mxu2 %v9561_v50  ;;  %8082 = vmatmul.bf16.vlgmr.msrb.gmra.mxu1 %v14215_v40  ;;  %v8998_v50 = vld [vmem:[#allocation6 + $0x294] sm:$0xf0]  ;;  %v9701_v57 = vor.u32 %v13181_v38, %v9698_v45  ;;  %v13048_v38 = vld [vmem:[#allocation6 + $0x3cc] sm:$0xf] }
 0x317   :  { %8126 = vmatpush.bf16.msra.mxu1 %v9337_v58  ;;  %8108 = vmatmul.bf16.vlgmr.msrb.gmra.mxu3 %v14168_v18  ;;  %v9001_v58 = vor.u32 %v13006_v17, %v8998_v50  ;;  %v9614_v50 = vld [vmem:[#allocation6 + $0x764] sm:$0xf0] }
 0x318   :  { %8152 = vmatpush.bf16.msra.mxu3 %v9785_v60  ;;  %v9449_v60 = vor.u32 %v13118_v52, %v9446_v54  ;;  %v7888_v6 = vpop.f32.mrf.mxu2  ;;  %v12985_v52 = vld [vmem:[#allocation6 + $0x1d4] sm:$0xf]  ;;  %v8914_v54 = vld [vmem:[#allocation6 + $0x1ec] sm:$0xf0] }
 0x319   :  { %8114 = vmatpush.bf16.msra.mxu0 %v9085_v59  ;;  %v12999_v59 = vld [vmem:[#allocation6 + $0x244] sm:$0xf]  ;;  %v7864_v17 = vpop.f32.mrf.mxu0 }
 0x31a   :  { %8140 = vmatpush.bf16.msra.mxu2 %v9533_v62  ;;  %v7863_v62 = vadd.f32 %v7862_v55, %v1316_v49  ;;  %v8973_v7 = vor.u32 %v12999_v59, %v8970_v13  ;;  %v9393_v49 = vor.u32 %v13104_v25, %v9390_v26  ;;  %v13370_v55 = vld [vmem:[#allocation6 + $0xddc] sm:$0xf]  ;;  %v13153_v59 = vld [vmem:[#allocation6 + $0x714] sm:$0xf]  ;;  %v8917_v13 = vor.u32 %v12985_v52, %v8914_v54  ;;  %v9950_v17 = vld [vmem:[#allocation6 + $0xa04] sm:$0xf0] }
 0x31b   :  { %8127 = vmatpush.bf16.msra.mxu1 %v9309_v5  ;;  %v13055_v5 = vld [vmem:[#allocation6 + $0x404] sm:$0xf]  ;;  %v7877_v14 = vpop.f32.mrf.mxu1  ;;  %v13300_v54 = vld [vmem:[#allocation6 + $0xbac] sm:$0xf] }
 0x31c   :  { %8153 = vmatpush.bf16.msra.mxu3 %v9757_v61  ;;  %v7876_v3 = vadd.f32 %v7875_v56, %v7863_v62  ;;  %v9194_v61 = vld [vmem:[#allocation6 + $0x41c] sm:$0xf0]  ;;  %v9362_v56 = vld [vmem:[#allocation6 + $0x56c] sm:$0xf0] }
 0x31d   :  { %8115 = vmatpush.bf16.msra.mxu0 %v9057_v9  ;;  %v9421_v9 = vor.u32 %v13111_v63, %v9418_v0  ;;  %v9586_v0 = vld [vmem:[#allocation6 + $0x72c] sm:$0xf0] }
 0x31e   :  { %8141 = vmatpush.bf16.msra.mxu2 %v9505_v11  ;;  %v13167_v11 = vld [vmem:[#allocation6 + $0x784] sm:$0xf]  ;;  %v7889_v1 = vadd.f32 %v7888_v6, %v7876_v3  ;;  %v10230_v3 = vld [vmem:[#allocation6 + $0xc34] sm:$0xf0]  ;;  %v9589_v20 = vor.u32 %v13153_v59, %v9586_v0 }
 0x31f   :  { %8128 = vmatpush.bf16.msra.mxu1 %v9281_v15  ;;  %v9197_v15 = vor.u32 %v13055_v5, %v9194_v61  ;;  %v9645_v35 = vor.u32 %v13167_v11, %v9642_v27  ;;  %v13426_v61 = vld [vmem:[#allocation6 + $0xf9c] sm:$0xf]  ;;  %v10678_v6 = vld [vmem:[#allocation6 + $0xfb4] sm:$0xf0]  ;;  %v9978_v11 = vld [vmem:[#allocation6 + $0xa3c] sm:$0xf0] }
 0x320   :  { %8154 = vmatpush.bf16.msra.mxu3 %v9729_v32  ;;  %v7901_v32 = vpop.f32.mrf.mxu3  ;;  %v7890_v62 = vpop.f32.mrf.mxu2  ;;  %v13363_v27 = vld [vmem:[#allocation6 + $0xda4] sm:$0xf]  ;;  %v10681_v26 = vor.u32 %v13426_v61, %v10678_v6  ;;  %v13342_v61 = vld [vmem:[#allocation6 + $0xcfc] sm:$0xf]  ;;  %v10342_v6 = vld [vmem:[#allocation6 + $0xd14] sm:$0xf0] }
 0x321   :  { %8116 = vmatpush.bf16.msra.mxu0 %v9029_v41  ;;  %v9166_v41 = vld [vmem:[#allocation6 + $0x3e4] sm:$0xf0]  ;;  %v14362_v45 = vadd.f32 %v7901_v32, %v7889_v1  ;;  %v10202_v32 = vld [vmem:[#allocation6 + $0xbfc] sm:$0xf0]  ;;  %v13293_v62 = vld [vmem:[#allocation6 + $0xb74] sm:$0xf] }
 0x322   :  { %8142 = vmatpush.bf16.msra.mxu2 %v9477_v43  ;;  %v13160_v43 = vld [vmem:[#allocation6 + $0x74c] sm:$0xf]  ;;  %v9169_v47 = vor.u32 %v13048_v38, %v9166_v41  ;;  %v13419_v38 = vld [vmem:[#allocation6 + $0xf64] sm:$0xf]  ;;  %v10650_v41 = vld [vmem:[#allocation6 + $0xf7c] sm:$0xf0] }
 0x323   :  { %8129 = vmatpush.bf16.msra.mxu1 %v9253_v24  ;;  %v13097_v24 = vld [vmem:[#allocation6 + $0x554] sm:$0xf]  ;;  %v10653_v52 = vor.u32 %v13419_v38, %v10650_v41  ;;  %v13335_v38 = vld [vmem:[#allocation6 + $0xcc4] sm:$0xf]  ;;  %v10314_v41 = vld [vmem:[#allocation6 + $0xcdc] sm:$0xf0] }
 0x324   :  { %8155 = vmatpush.bf16.msra.mxu3 %v9701_v57  ;;  %v13258_v57 = vld [vmem:[#allocation6 + $0xa5c] sm:$0xf]  ;;  %v9365_v63 = vor.u32 %v13097_v24, %v9362_v56  ;;  %v10174_v24 = vld [vmem:[#allocation6 + $0xbc4] sm:$0xf0] }
 0x325   :  { %8117 = vmatpush.bf16.msra.mxu0 %v9001_v58  ;;  %v10454_v58 = vld [vmem:[#allocation6 + $0xdf4] sm:$0xf0] }
 0x326   :  { %8143 = vmatpush.bf16.msra.mxu2 %v9449_v60  ;;  %v9617_v60 = vor.u32 %v13160_v43, %v9614_v50  ;;  %v10457_v5 = vor.u32 %v13370_v55, %v10454_v58  ;;  %v13244_v43 = vld [vmem:[#allocation6 + $0x9ec] sm:$0xf]  ;;  %v13237_v55 = vld [vmem:[#allocation6 + $0x9b4] sm:$0xf]  ;;  %v9922_v58 = vld [vmem:[#allocation6 + $0x9cc] sm:$0xf0] }
 0x327   :  { %8130 = vmatpush.bf16.msra.mxu1 %v9225_v2  ;;  %v13314_v2 = vld [vmem:[#allocation6 + $0xc1c] sm:$0xf]  ;;  %v9953_v56 = vor.u32 %v13244_v43, %v9950_v17 }
 0x328   :  { %8156 = vmatpush.bf16.msra.mxu3 %v9673_v4  ;;  %v10009_v4 = vor.u32 %v13258_v57, %v10006_v51  ;;  %v7903_v1 = vpop.f32.mrf.mxu3  ;;  %v10233_v25 = vor.u32 %v13314_v2, %v10230_v3  ;;  %v10622_v51 = vld [vmem:[#allocation6 + $0xf44] sm:$0xf0]  ;;  %v13405_v2 = vld [vmem:[#allocation6 + $0xef4] sm:$0xf]  ;;  %v10594_v3 = vld [vmem:[#allocation6 + $0xf0c] sm:$0xf0] }
 0x329   :  { %8118 = vmatpush.bf16.msra.mxu0 %v8973_v7  ;;  %v13251_v7 = vld [vmem:[#allocation6 + $0xa24] sm:$0xf]  ;;  %v10118_v1 = vld [vmem:[#allocation6 + $0xb54] sm:$0xf0] }
 0x32a   :  { %8144 = vmatpush.bf16.msra.mxu2 %v9421_v9  ;;  %v9141_v9 = vor.u32 %v13041_v39, %v9138_v53  ;;  %v9981_v14 = vor.u32 %v13251_v7, %v9978_v11  ;;  %v10370_v39 = vld [vmem:[#allocation6 + $0xd4c] sm:$0xf0]  ;;  %v10177_v53 = vor.u32 %v13300_v54, %v10174_v24  ;;  %v10597_v11 = vor.u32 %v13405_v2, %v10594_v3 }
 0x32b   :  { %8131 = vmatpush.bf16.msra.mxu1 %v9197_v15  ;;  %v13307_v15 = vld [vmem:[#allocation6 + $0xbe4] sm:$0xf]  ;;  %v10317_v24 = vor.u32 %v13335_v38, %v10314_v41  ;;  %v10482_v41 = vld [vmem:[#allocation6 + $0xe2c] sm:$0xf0] }
 0x32c   :  { %8157 = vmatpush.bf16.msra.mxu3 %v9645_v35  ;;  %v10429_v35 = vor.u32 %v13363_v27, %v10426_v12  ;;  %v10205_v50 = vor.u32 %v13307_v15, %v10202_v32  ;;  %v13286_v12 = vld [vmem:[#allocation6 + $0xb3c] sm:$0xf]  ;;  %v10566_v32 = vld [vmem:[#allocation6 + $0xed4] sm:$0xf0] }
 0x32d   :  { %8119 = vmatpush.bf16.msra.mxu0 %v8945_v46  ;;  %v13356_v46 = vld [vmem:[#allocation6 + $0xd6c] sm:$0xf]  ;;  %v13398_v15 = vld [vmem:[#allocation6 + $0xebc] sm:$0xf]  ;;  %v10121_v43 = vor.u32 %v13286_v12, %v10118_v1  ;;  %v10902_v12 = vld [vmem:[#allocation6 + $0x1174] sm:$0xf0] }
 0x32e   :  { %8145 = vmatpush.bf16.msra.mxu2 %v9393_v49  ;;  %v10398_v49 = vld [vmem:[#allocation6 + $0xd84] sm:$0xf0]  ;;  %v13594_v1 = vld [vmem:[#allocation6 + $0x14dc] sm:$0xf] }
 0x32f   :  { %8132 = vmatpush.bf16.msra.mxu1 %v9169_v47  ;;  %v10401_v57 = vor.u32 %v13356_v46, %v10398_v49  ;;  %v13412_v47 = vld [vmem:[#allocation6 + $0xf2c] sm:$0xf]  ;;  %v10569_v46 = vor.u32 %v13398_v15, %v10566_v32  ;;  %v10034_v15 = vld [vmem:[#allocation6 + $0xaac] sm:$0xf0]  ;;  %v13377_v32 = vld [vmem:[#allocation6 + $0xe14] sm:$0xf] }
 0x330   :  { %8158 = vmatpush.bf16.msra.mxu3 %v9617_v60  ;;  %v13349_v60 = vld [vmem:[#allocation6 + $0xd34] sm:$0xf]  ;;  %v10625_v59 = vor.u32 %v13412_v47, %v10622_v51  ;;  %v13216_v47 = vld [vmem:[#allocation6 + $0x90c] sm:$0xf]  ;;  %v9838_v51 = vld [vmem:[#allocation6 + $0x924] sm:$0xf0] }
 0x331   :  { %8120 = vmatpush.bf16.msra.mxu0 %v8917_v13  ;;  %v10146_v13 = vld [vmem:[#allocation6 + $0xb8c] sm:$0xf0]  ;;  %v10373_v0 = vor.u32 %v13349_v60, %v10370_v39  ;;  %v7914_v27 = vpop.f32.mrf.mxu0  ;;  %v9841_v3 = vor.u32 %v13216_v47, %v9838_v51  ;;  %v10485_v51 = vor.u32 %v13377_v32, %v10482_v41 }
 0x332   :  { %8146 = vmatpush.bf16.msra.mxu2 %v9365_v63  ;;  %v9925_v63 = vor.u32 %v13237_v55, %v9922_v58  ;;  %v10149_v7 = vor.u32 %v13293_v62, %v10146_v13  ;;  %v13328_v55 = vld [vmem:[#allocation6 + $0xc8c] sm:$0xf]  ;;  %v10286_v58 = vld [vmem:[#allocation6 + $0xca4] sm:$0xf0] }
 0x333   :  { %8133 = vmatpush.bf16.msra.mxu1 %v9141_v9  ;;  %v7927_v9 = vpop.f32.mrf.mxu1  ;;  %v13272_v13 = vld [vmem:[#allocation6 + $0xacc] sm:$0xf] }
 0x334   :  { %8159 = vmatpush.bf16.msra.mxu3 %v9589_v20  ;;  %8121 = vmatmul.bf16.vlgmr.msra.gmra.mxu0 %v14171_v22 }
 0x335   :  { %8165 = vmatpush.bf16.msrb.mxu0 %v10009_v4  ;;  %8147 = vmatmul.bf16.vlgmr.msra.gmra.mxu2 %v14165_v10  ;;  %v13230_v4 = vld [vmem:[#allocation6 + $0x97c] sm:$0xf] }
 0x336   :  { %8191 = vmatpush.bf16.msrb.mxu2 %v10457_v5  ;;  %8134 = vmatmul.bf16.vlgmr.msra.gmra.mxu1 %v14163_v8  ;;  %v9894_v5 = vld [vmem:[#allocation6 + $0x994] sm:$0xf0] }
 0x337   :  { %8178 = vmatpush.bf16.msrb.mxu1 %v10233_v25  ;;  %8160 = vmatmul.bf16.vlgmr.msra.gmra.mxu3 %v14179_v44  ;;  %v9897_v20 = vor.u32 %v13230_v4, %v9894_v5  ;;  %v10345_v25 = vor.u32 %v13342_v61, %v10342_v6  ;;  %v10289_v4 = vor.u32 %v13328_v55, %v10286_v58  ;;  %v10510_v5 = vld [vmem:[#allocation6 + $0xe64] sm:$0xf0]  ;;  %v13209_v61 = vld [vmem:[#allocation6 + $0x8d4] sm:$0xf]  ;;  %v9810_v6 = vld [vmem:[#allocation6 + $0x8ec] sm:$0xf0] }
 0x338   :  { %8204 = vmatpush.bf16.msrb.mxu3 %v10681_v26  ;;  %v7915_v26 = vadd.f32 %v7914_v27, %v14362_v45  ;;  %v7940_v49 = vpop.f32.mrf.mxu2  ;;  %v13391_v45 = vld [vmem:[#allocation6 + $0xe84] sm:$0xf] }
 0x339   :  { %8166 = vmatpush.bf16.msrb.mxu0 %v9981_v14  ;;  %v13223_v14 = vld [vmem:[#allocation6 + $0x944] sm:$0xf]  ;;  %v7916_v2 = vpop.f32.mrf.mxu0 }
 0x33a   :  { %8192 = vmatpush.bf16.msrb.mxu2 %v10429_v35  ;;  %v9866_v35 = vld [vmem:[#allocation6 + $0x95c] sm:$0xf0]  ;;  %v7928_v17 = vadd.f32 %v7927_v9, %v7915_v26  ;;  %v7953_v39 = vpop.f32.mrf.mxu3  ;;  %v10258_v9 = vld [vmem:[#allocation6 + $0xc6c] sm:$0xf0]  ;;  %v13265_v26 = vld [vmem:[#allocation6 + $0xa94] sm:$0xf] }
 0x33b   :  { %8179 = vmatpush.bf16.msrb.mxu1 %v10205_v50  ;;  %v13279_v50 = vld [vmem:[#allocation6 + $0xb04] sm:$0xf]  ;;  %v9869_v54 = vor.u32 %v13223_v14, %v9866_v35  ;;  %v9813_v35 = vor.u32 %v13209_v61, %v9810_v6  ;;  %v10846_v2 = vld [vmem:[#allocation6 + $0x1104] sm:$0xf0]  ;;  %v13524_v6 = vld [vmem:[#allocation6 + $0x12ac] sm:$0xf] }
 0x33c   :  { %8205 = vmatpush.bf16.msrb.mxu3 %v10653_v52  ;;  %v10090_v52 = vld [vmem:[#allocation6 + $0xb1c] sm:$0xf0] }
 0x33d   :  { %8167 = vmatpush.bf16.msrb.mxu0 %v9953_v56  ;;  %v7941_v56 = vadd.f32 %v7940_v49, %v7928_v17  ;;  %v10093_v60 = vor.u32 %v13279_v50, %v10090_v52  ;;  %v11126_v17 = vld [vmem:[#allocation6 + $0x1334] sm:$0xf0]  ;;  %v13650_v50 = vld [vmem:[#allocation6 + $0x169c] sm:$0xf] }
 0x33e   :  { %8193 = vmatpush.bf16.msrb.mxu2 %v10401_v57  ;;  %v10538_v57 = vld [vmem:[#allocation6 + $0xe9c] sm:$0xf0]  ;;  %v11574_v52 = vld [vmem:[#allocation6 + $0x16b4] sm:$0xf0] }
 0x33f   :  { %8180 = vmatpush.bf16.msrb.mxu1 %v10177_v53  ;;  %v7929_v53 = vpop.f32.mrf.mxu1  ;;  %v14369_v62 = vadd.f32 %v7953_v39, %v7941_v56  ;;  %v10874_v56 = vld [vmem:[#allocation6 + $0x113c] sm:$0xf0]  ;;  %v11577_v58 = vor.u32 %v13650_v50, %v11574_v52  ;;  %v10790_v52 = vld [vmem:[#allocation6 + $0x1094] sm:$0xf0] }
 0x340   :  { %8206 = vmatpush.bf16.msrb.mxu3 %v10625_v59  ;;  %v10541_v59 = vor.u32 %v13391_v45, %v10538_v57  ;;  %v7942_v14 = vpop.f32.mrf.mxu2  ;;  %v13587_v45 = vld [vmem:[#allocation6 + $0x14a4] sm:$0xf]  ;;  %v11322_v57 = vld [vmem:[#allocation6 + $0x14bc] sm:$0xf0] }
 0x341   :  { %8168 = vmatpush.bf16.msrb.mxu0 %v9925_v63  ;;  %v10062_v63 = vld [vmem:[#allocation6 + $0xae4] sm:$0xf0]  ;;  %v11098_v39 = vld [vmem:[#allocation6 + $0x12fc] sm:$0xf0]  ;;  %v13517_v14 = vld [vmem:[#allocation6 + $0x1274] sm:$0xf] }
 0x342   :  { %8194 = vmatpush.bf16.msrb.mxu2 %v10373_v0  ;;  %v13384_v0 = vld [vmem:[#allocation6 + $0xe4c] sm:$0xf]  ;;  %v10065_v27 = vor.u32 %v13272_v13, %v10062_v63  ;;  %v7955_v47 = vpop.f32.mrf.mxu3  ;;  %v13643_v13 = vld [vmem:[#allocation6 + $0x1664] sm:$0xf]  ;;  %v11546_v63 = vld [vmem:[#allocation6 + $0x167c] sm:$0xf0] }
 0x343   :  { %8181 = vmatpush.bf16.msrb.mxu1 %v10149_v7  ;;  %v13321_v7 = vld [vmem:[#allocation6 + $0xc54] sm:$0xf]  ;;  %v11549_v61 = vor.u32 %v13643_v13, %v11546_v63  ;;  %v10762_v13 = vld [vmem:[#allocation6 + $0x105c] sm:$0xf0] }
 0x344   :  { %8207 = vmatpush.bf16.msrb.mxu3 %v10597_v11  ;;  %v13482_v11 = vld [vmem:[#allocation6 + $0x115c] sm:$0xf]  ;;  %v10261_v38 = vor.u32 %v13321_v7, %v10258_v9  ;;  %v11070_v7 = vld [vmem:[#allocation6 + $0x12c4] sm:$0xf0]  ;;  %v11210_v63 = vld [vmem:[#allocation6 + $0x13dc] sm:$0xf0] }
 0x345   :  { %8169 = vmatpush.bf16.msrb.mxu0 %v9897_v20  ;;  %v11350_v20 = vld [vmem:[#allocation6 + $0x14f4] sm:$0xf0] }
 0x346   :  { %8195 = vmatpush.bf16.msrb.mxu2 %v10345_v25  ;;  %v10513_v25 = vor.u32 %v13384_v0, %v10510_v5  ;;  %v11353_v49 = vor.u32 %v13594_v1, %v11350_v20  ;;  %v13468_v0 = vld [vmem:[#allocation6 + $0x10ec] sm:$0xf]  ;;  %v13461_v1 = vld [vmem:[#allocation6 + $0x10b4] sm:$0xf]  ;;  %v10818_v20 = vld [vmem:[#allocation6 + $0x10cc] sm:$0xf0] }
 0x347   :  { %8182 = vmatpush.bf16.msrb.mxu1 %v10121_v43  ;;  %v13538_v43 = vld [vmem:[#allocation6 + $0x131c] sm:$0xf]  ;;  %v10849_v9 = vor.u32 %v13468_v0, %v10846_v2  ;;  %v10821_v41 = vor.u32 %v13461_v1, %v10818_v20  ;;  %v10734_v20 = vld [vmem:[#allocation6 + $0x1024] sm:$0xf0] }
 0x348   :  { %8208 = vmatpush.bf16.msrb.mxu3 %v10569_v46  ;;  %v10905_v46 = vor.u32 %v13482_v11, %v10902_v12  ;;  %v11129_v55 = vor.u32 %v13538_v43, %v11126_v17  ;;  %v11518_v12 = vld [vmem:[#allocation6 + $0x1644] sm:$0xf0]  ;;  %v13629_v17 = vld [vmem:[#allocation6 + $0x15f4] sm:$0xf] }
 0x349   :  { %8170 = vmatpush.bf16.msrb.mxu0 %v9869_v54  ;;  %v13475_v54 = vld [vmem:[#allocation6 + $0x1124] sm:$0xf] }
 0x34a   :  { %8196 = vmatpush.bf16.msrb.mxu2 %v10317_v24  ;;  %v10037_v24 = vor.u32 %v13265_v26, %v10034_v15  ;;  %v10877_v53 = vor.u32 %v13475_v54, %v10874_v56  ;;  %v11266_v26 = vld [vmem:[#allocation6 + $0x144c] sm:$0xf0]  ;;  %v11073_v15 = vor.u32 %v13524_v6, %v11070_v7  ;;  %v13566_v54 = vld [vmem:[#allocation6 + $0x13fc] sm:$0xf] }
 0x34b   :  { %8183 = vmatpush.bf16.msrb.mxu1 %v10093_v60  ;;  %v13531_v60 = vld [vmem:[#allocation6 + $0x12e4] sm:$0xf] }
 0x34c   :  { %8209 = vmatpush.bf16.msrb.mxu3 %v10541_v59  ;;  %v11325_v59 = vor.u32 %v13587_v45, %v11322_v57  ;;  %v11101_v5 = vor.u32 %v13531_v60, %v11098_v39  ;;  %v13622_v39 = vld [vmem:[#allocation6 + $0x15bc] sm:$0xf] }
 0x34d   :  { %8171 = vmatpush.bf16.msrb.mxu0 %v9841_v3  ;;  %v13580_v3 = vld [vmem:[#allocation6 + $0x146c] sm:$0xf] }
 0x34e   :  { %8197 = vmatpush.bf16.msrb.mxu2 %v10289_v4  ;;  %v11294_v4 = vld [vmem:[#allocation6 + $0x1484] sm:$0xf0] }
 0x34f   :  { %8184 = vmatpush.bf16.msrb.mxu1 %v10065_v27  ;;  %v11297_v11 = vor.u32 %v13580_v3, %v11294_v4  ;;  %v13636_v27 = vld [vmem:[#allocation6 + $0x162c] sm:$0xf]  ;;  %v13503_v4 = vld [vmem:[#allocation6 + $0x1204] sm:$0xf] }
 0x350   :  { %8210 = vmatpush.bf16.msrb.mxu3 %v10513_v25  ;;  %v13573_v25 = vld [vmem:[#allocation6 + $0x1434] sm:$0xf]  ;;  %v11521_v32 = vor.u32 %v13636_v27, %v11518_v12  ;;  %v13440_v27 = vld [vmem:[#allocation6 + $0x100c] sm:$0xf] }
 0x351   :  { %8172 = vmatpush.bf16.msrb.mxu0 %v9813_v35  ;;  %v11042_v35 = vld [vmem:[#allocation6 + $0x128c] sm:$0xf0]  ;;  %v11269_v43 = vor.u32 %v13573_v25, %v11266_v26  ;;  %v13552_v25 = vld [vmem:[#allocation6 + $0x138c] sm:$0xf]  ;;  %v11182_v26 = vld [vmem:[#allocation6 + $0x13a4] sm:$0xf0] }
 0x352   :  { %8198 = vmatpush.bf16.msrb.mxu2 %v10261_v38  ;;  %v7966_v38 = vpop.f32.mrf.mxu0  ;;  %v11045_v45 = vor.u32 %v13517_v14, %v11042_v35 }
 0x353   :  { %8185 = vmatpush.bf16.msrb.mxu1 %v10037_v24  ;;  %v7967_v50 = vadd.f32 %v7966_v38, %v14369_v62  ;;  %v11238_v24 = vld [vmem:[#allocation6 + $0x1414] sm:$0xf0]  ;;  %v7979_v56 = vpop.f32.mrf.mxu1  ;;  %v13559_v62 = vld [vmem:[#allocation6 + $0x13c4] sm:$0xf]  ;;  %v13496_v38 = vld [vmem:[#allocation6 + $0x11cc] sm:$0xf] }
 0x354   :  { %8211 = vmatpush.bf16.msrb.mxu3 %v10485_v51  ;;  %8173 = vmatmul.bf16.vlgmr.msrb.gmra.mxu0 %v14177_v42  ;;  %v13510_v51 = vld [vmem:[#allocation6 + $0x123c] sm:$0xf]  ;;  %v11241_v60 = vor.u32 %v13566_v54, %v11238_v24  ;;  %v11213_v7 = vor.u32 %v13559_v62, %v11210_v63  ;;  %v13545_v54 = vld [vmem:[#allocation6 + $0x1354] sm:$0xf]  ;;  %v11154_v24 = vld [vmem:[#allocation6 + $0x136c] sm:$0xf0] }
 0x355   :  { %8217 = vmatpush.bf16.msra.mxu0 %v10905_v46  ;;  %8199 = vmatmul.bf16.vlgmr.msrb.gmra.mxu2 %v14181_v48  ;;  %v11490_v46 = vld [vmem:[#allocation6 + $0x160c] sm:$0xf0]  ;;  %v7980_v57 = vadd.f32 %v7979_v56, %v7967_v50  ;;  %v13433_v50 = vld [vmem:[#allocation6 + $0xfd4] sm:$0xf]  ;;  %v13706_v56 = vld [vmem:[#allocation6 + $0x185c] sm:$0xf] }
 0x356   :  { %8243 = vmatpush.bf16.msra.mxu2 %v11353_v49  ;;  %8186 = vmatmul.bf16.vlgmr.msrb.gmra.mxu1 %v14175_v36  ;;  %v13454_v49 = vld [vmem:[#allocation6 + $0x107c] sm:$0xf]  ;;  %v11493_v47 = vor.u32 %v13629_v17, %v11490_v46  ;;  %v10737_v17 = vor.u32 %v13440_v27, %v10734_v20  ;;  %v11185_v46 = vor.u32 %v13552_v25, %v11182_v26  ;;  %v11378_v62 = vld [vmem:[#allocation6 + $0x152c] sm:$0xf0]  ;;  %v13755_v25 = vld [vmem:[#allocation6 + $0x19e4] sm:$0xf] }
 0x357   :  { %8230 = vmatpush.bf16.msra.mxu1 %v11129_v55  ;;  %8212 = vmatmul.bf16.vlgmr.msrb.gmra.mxu3 %v14187_v19  ;;  %v11014_v55 = vld [vmem:[#allocation6 + $0x1254] sm:$0xf0]  ;;  %v11994_v26 = vld [vmem:[#allocation6 + $0x19fc] sm:$0xf0] }
 0x358   :  { %8256 = vmatpush.bf16.msra.mxu3 %v11577_v58  ;;  %v10793_v58 = vor.u32 %v13454_v49, %v10790_v52  ;;  %v11017_v0 = vor.u32 %v13510_v51, %v11014_v55  ;;  %v7992_v2 = vpop.f32.mrf.mxu2  ;;  %v11406_v49 = vld [vmem:[#allocation6 + $0x1564] sm:$0xf0]  ;;  %v10706_v52 = vld [vmem:[#allocation6 + $0xfec] sm:$0xf0]  ;;  %v12246_v51 = vld [vmem:[#allocation6 + $0x1bf4] sm:$0xf0] }
 0x359   :  { %8218 = vmatpush.bf16.msra.mxu0 %v10877_v53  ;;  %v11462_v53 = vld [vmem:[#allocation6 + $0x15d4] sm:$0xf0] }
 0x35a   :  { %8244 = vmatpush.bf16.msra.mxu2 %v11325_v59  ;;  %v13447_v59 = vld [vmem:[#allocation6 + $0x1044] sm:$0xf]  ;;  %v11465_v3 = vor.u32 %v13622_v39, %v11462_v53  ;;  %v7968_v12 = vpop.f32.mrf.mxu0  ;;  %v8005_v1 = vpop.f32.mrf.mxu3  ;;  %v10709_v53 = vor.u32 %v13433_v50, %v10706_v52  ;;  %v13748_v52 = vld [vmem:[#allocation6 + $0x19ac] sm:$0xf] }
 0x35b   :  { %8231 = vmatpush.bf16.msra.mxu1 %v11101_v5  ;;  %v10986_v5 = vld [vmem:[#allocation6 + $0x121c] sm:$0xf0]  ;;  %v10765_v6 = vor.u32 %v13447_v59, %v10762_v13  ;;  %v7981_v14 = vpop.f32.mrf.mxu1  ;;  %v11157_v59 = vor.u32 %v13545_v54, %v11154_v24  ;;  %v13601_v13 = vld [vmem:[#allocation6 + $0x1514] sm:$0xf]  ;;  %v13811_v12 = vld [vmem:[#allocation6 + $0x1ba4] sm:$0xf] }
 0x35c   :  { %8257 = vmatpush.bf16.msra.mxu3 %v11549_v61  ;;  %v7993_v61 = vadd.f32 %v7992_v2, %v7980_v57  ;;  %v11798_v57 = vld [vmem:[#allocation6 + $0x1874] sm:$0xf0]  ;;  %v13762_v2 = vld [vmem:[#allocation6 + $0x1a1c] sm:$0xf]  ;;  %v13867_v14 = vld [vmem:[#allocation6 + $0x1d64] sm:$0xf] }
 0x35d   :  { %8219 = vmatpush.bf16.msra.mxu0 %v10849_v9  ;;  %v13615_v9 = vld [vmem:[#allocation6 + $0x1584] sm:$0xf]  ;;  %v11801_v63 = vor.u32 %v13706_v56, %v11798_v57  ;;  %v11966_v54 = vld [vmem:[#allocation6 + $0x19c4] sm:$0xf0]  ;;  %v13860_v56 = vld [vmem:[#allocation6 + $0x1d2c] sm:$0xf] }
 0x35e   :  { %8245 = vmatpush.bf16.msra.mxu2 %v11297_v11  ;;  %v11434_v11 = vld [vmem:[#allocation6 + $0x159c] sm:$0xf0] }
 0x35f   :  { %8232 = vmatpush.bf16.msra.mxu1 %v11073_v15  ;;  %v14376_v15 = vadd.f32 %v8005_v1, %v7993_v61  ;;  %v11437_v35 = vor.u32 %v13615_v9, %v11434_v11  ;;  %v13874_v61 = vld [vmem:[#allocation6 + $0x1d9c] sm:$0xf]  ;;  %v13699_v9 = vld [vmem:[#allocation6 + $0x1824] sm:$0xf]  ;;  %v11770_v11 = vld [vmem:[#allocation6 + $0x183c] sm:$0xf0] }
 0x360   :  { %8258 = vmatpush.bf16.msra.mxu3 %v11521_v32  ;;  %v10989_v32 = vor.u32 %v13503_v4, %v10986_v5  ;;  %v7994_v39 = vpop.f32.mrf.mxu2  ;;  %v12218_v1 = vld [vmem:[#allocation6 + $0x1bbc] sm:$0xf0] }
 0x361   :  { %8220 = vmatpush.bf16.msra.mxu0 %v10821_v41  ;;  %v10958_v41 = vld [vmem:[#allocation6 + $0x11e4] sm:$0xf0] }
 0x362   :  { %8246 = vmatpush.bf16.msra.mxu2 %v11269_v43  ;;  %v13608_v43 = vld [vmem:[#allocation6 + $0x154c] sm:$0xf]  ;;  %v8007_v4 = vpop.f32.mrf.mxu3 }
 0x363   :  { %8233 = vmatpush.bf16.msra.mxu1 %v11045_v45  ;;  %v10961_v45 = vor.u32 %v13496_v38, %v10958_v41  ;;  %v11409_v55 = vor.u32 %v13608_v43, %v11406_v49  ;;  %v12221_v38 = vor.u32 %v13811_v12, %v12218_v1  ;;  %v13692_v41 = vld [vmem:[#allocation6 + $0x17ec] sm:$0xf]  ;;  %v11742_v43 = vld [vmem:[#allocation6 + $0x1804] sm:$0xf0]  ;;  %v13678_v4 = vld [vmem:[#allocation6 + $0x177c] sm:$0xf] }
 0x364   :  { %8259 = vmatpush.bf16.msra.mxu3 %v11493_v47  ;;  %v13818_v47 = vld [vmem:[#allocation6 + $0x1bdc] sm:$0xf]  ;;  %v12190_v49 = vld [vmem:[#allocation6 + $0x1b84] sm:$0xf0]  ;;  %v11745_v24 = vor.u32 %v13692_v41, %v11742_v43  ;;  %v11910_v1 = vld [vmem:[#allocation6 + $0x1954] sm:$0xf0] }
 0x365   :  { %8221 = vmatpush.bf16.msra.mxu0 %v10793_v58  ;;  %v13489_v58 = vld [vmem:[#allocation6 + $0x1194] sm:$0xf]  ;;  %v13734_v12 = vld [vmem:[#allocation6 + $0x193c] sm:$0xf]  ;;  %v12106_v41 = vld [vmem:[#allocation6 + $0x1adc] sm:$0xf0] }
 0x366   :  { %8247 = vmatpush.bf16.msra.mxu2 %v11241_v60  ;;  %v10930_v60 = vld [vmem:[#allocation6 + $0x11ac] sm:$0xf0] }
 0x367   :  { %8234 = vmatpush.bf16.msra.mxu1 %v11017_v0  ;;  %v12249_v0 = vor.u32 %v13818_v47, %v12246_v51  ;;  %v10933_v5 = vor.u32 %v13489_v58, %v10930_v60  ;;  %v13685_v47 = vld [vmem:[#allocation6 + $0x17b4] sm:$0xf]  ;;  %v11714_v51 = vld [vmem:[#allocation6 + $0x17cc] sm:$0xf0] }
 0x368   :  { %8260 = vmatpush.bf16.msra.mxu3 %v11465_v3  ;;  %v12022_v3 = vld [vmem:[#allocation6 + $0x1a34] sm:$0xf0]  ;;  %v13797_v58 = vld [vmem:[#allocation6 + $0x1b34] sm:$0xf]  ;;  %v12162_v60 = vld [vmem:[#allocation6 + $0x1b4c] sm:$0xf0] }
 0x369   :  { %8222 = vmatpush.bf16.msra.mxu0 %v10765_v6  ;;  %v12470_v6 = vld [vmem:[#allocation6 + $0x1db4] sm:$0xf0]  ;;  %v12025_v27 = vor.u32 %v13762_v2, %v12022_v3  ;;  %v12165_v3 = vor.u32 %v13797_v58, %v12162_v60  ;;  %v13776_v60 = vld [vmem:[#allocation6 + $0x1a8c] sm:$0xf] }
 0x36a   :  { %8248 = vmatpush.bf16.msra.mxu2 %v11213_v7  ;;  %v11381_v7 = vor.u32 %v13601_v13, %v11378_v62  ;;  %v12473_v20 = vor.u32 %v13874_v61, %v12470_v6  ;;  %v11717_v62 = vor.u32 %v13685_v47, %v11714_v51  ;;  %v13664_v47 = vld [vmem:[#allocation6 + $0x170c] sm:$0xf]  ;;  %v11630_v51 = vld [vmem:[#allocation6 + $0x1724] sm:$0xf0] }
 0x36b   :  { %8235 = vmatpush.bf16.msra.mxu1 %v10989_v32  ;;  %v11773_v32 = vor.u32 %v13699_v9, %v11770_v11  ;;  %v12134_v9 = vld [vmem:[#allocation6 + $0x1b14] sm:$0xf0] }
 0x36c   :  { %8261 = vmatpush.bf16.msra.mxu3 %v11437_v35  ;;  %v12442_v35 = vld [vmem:[#allocation6 + $0x1d7c] sm:$0xf0] }
 0x36d   :  { %8223 = vmatpush.bf16.msra.mxu0 %v10737_v17  ;;  %v11997_v17 = vor.u32 %v13755_v25, %v11994_v26  ;;  %v12445_v50 = vor.u32 %v13867_v14, %v12442_v35  ;;  %v13846_v25 = vld [vmem:[#allocation6 + $0x1cbc] sm:$0xf]  ;;  %v12358_v26 = vld [vmem:[#allocation6 + $0x1cd4] sm:$0xf0]  ;;  %v11658_v14 = vld [vmem:[#allocation6 + $0x175c] sm:$0xf0]  ;;  %v11913_v35 = vor.u32 %v13734_v12, %v11910_v1 }
 0x36e   :  { %8249 = vmatpush.bf16.msra.mxu2 %v11185_v46  ;;  %v13804_v46 = vld [vmem:[#allocation6 + $0x1b6c] sm:$0xf]  ;;  %v12982_v1 = vld [vmem:[#allocation6 + $0x1b8] sm:$0xf0] }
 0x36f   :  { %8236 = vmatpush.bf16.msra.mxu1 %v10961_v45  ;;  %v12414_v45 = vld [vmem:[#allocation6 + $0x1d44] sm:$0xf0]  ;;  %v12193_v57 = vor.u32 %v13804_v46, %v12190_v49  ;;  %v13727_v46 = vld [vmem:[#allocation6 + $0x1904] sm:$0xf]  ;;  %v11882_v49 = vld [vmem:[#allocation6 + $0x191c] sm:$0xf0] }
 0x370   :  { %8262 = vmatpush.bf16.msra.mxu3 %v11409_v55  ;;  %v11969_v55 = vor.u32 %v13748_v52, %v11966_v54  ;;  %v12417_v39 = vor.u32 %v13860_v56, %v12414_v45  ;;  %v13839_v54 = vld [vmem:[#allocation6 + $0x1c84] sm:$0xf]  ;;  %v11885_v58 = vor.u32 %v13727_v46, %v11882_v49 }
 0x371   :  { %8224 = vmatpush.bf16.msra.mxu0 %v10709_v53  ;;  %v13741_v53 = vld [vmem:[#allocation6 + $0x1974] sm:$0xf]  ;;  %v8018_v13 = vpop.f32.mrf.mxu0 }
 0x372   :  { %8250 = vmatpush.bf16.msra.mxu2 %v11157_v59  ;;  %v11938_v59 = vld [vmem:[#allocation6 + $0x198c] sm:$0xf0]  ;;  %v8019_v2 = vadd.f32 %v8018_v13, %v14376_v15  ;;  %v13671_v15 = vld [vmem:[#allocation6 + $0x1744] sm:$0xf]  ;;  %v13720_v13 = vld [vmem:[#allocation6 + $0x18cc] sm:$0xf] }
 0x373   :  { %8237 = vmatpush.bf16.msra.mxu1 %v10933_v5  ;;  %v11686_v5 = vld [vmem:[#allocation6 + $0x1794] sm:$0xf0]  ;;  %v8031_v61 = vpop.f32.mrf.mxu1  ;;  %v11941_v6 = vor.u32 %v13741_v53, %v11938_v59  ;;  %v11661_v52 = vor.u32 %v13671_v15, %v11658_v14  ;;  %v13825_v15 = vld [vmem:[#allocation6 + $0x1c14] sm:$0xf]  ;;  %v12274_v14 = vld [vmem:[#allocation6 + $0x1c2c] sm:$0xf0] }
 0x374   :  { %8263 = vmatpush.bf16.msra.mxu3 %v11381_v7  ;;  %8225 = vmatmul.bf16.vlgmr.msra.gmra.mxu0 %v14191_v28  ;;  %v13790_v7 = vld [vmem:[#allocation6 + $0x1afc] sm:$0xf]  ;;  %v8032_v11 = vadd.f32 %v8031_v61, %v8019_v2  ;;  %v12302_v2 = vld [vmem:[#allocation6 + $0x1c64] sm:$0xf0]  ;;  %v13769_v61 = vld [vmem:[#allocation6 + $0x1a54] sm:$0xf] }
 0x375   :  { %8269 = vmatpush.bf16.msrb.mxu0 %v11801_v63  ;;  %8251 = vmatmul.bf16.vlgmr.msra.gmra.mxu2 %v14193_v31  ;;  %v13853_v63 = vld [vmem:[#allocation6 + $0x1cf4] sm:$0xf] }
 0x376   :  { %8295 = vmatpush.bf16.msrb.mxu2 %v12249_v0  ;;  %8238 = vmatmul.bf16.vlgmr.msra.gmra.mxu1 %v14189_v23  ;;  %v12386_v0 = vld [vmem:[#allocation6 + $0x1d0c] sm:$0xf0] }
 0x377   :  { %8282 = vmatpush.bf16.msrb.mxu1 %v12025_v27  ;;  %8264 = vmatmul.bf16.vlgmr.msra.gmra.mxu3 %v14199_v16  ;;  %v12389_v27 = vor.u32 %v13853_v63, %v12386_v0  ;;  %v11633_v63 = vor.u32 %v13664_v47, %v11630_v51  ;;  %v13832_v0 = vld [vmem:[#allocation6 + $0x1c4c] sm:$0xf]  ;;  %v12975_v47 = vld [vmem:[#allocation6 + $0x180] sm:$0xf0] }
 0x378   :  { %8308 = vmatpush.bf16.msrb.mxu3 %v12473_v20  ;;  %v11689_v20 = vor.u32 %v13678_v4, %v11686_v5  ;;  %v8044_v43 = vpop.f32.mrf.mxu2  ;;  %v11602_v5 = vld [vmem:[#allocation6 + $0x16ec] sm:$0xf0]  ;;  %v12305_v12 = vor.u32 %v13832_v0, %v12302_v2 }
 0x379   :  { %8270 = vmatpush.bf16.msrb.mxu0 %v11773_v32  ;;  %v12137_v32 = vor.u32 %v13790_v7, %v12134_v9  ;;  %v8020_v56 = vpop.f32.mrf.mxu0  ;;  %v13930_v9 = vld [vmem:[#allocation6 + $0x1f5c] sm:$0xf]  ;;  %v8836_v2 = vld [vmem:[#allocation6 + $0x130] sm:$0xf] }
 0x37a   :  { %8296 = vmatpush.bf16.msrb.mxu2 %v12221_v38  ;;  %v13783_v38 = vld [vmem:[#allocation6 + $0x1ac4] sm:$0xf]  ;;  %v8057_v45 = vpop.f32.mrf.mxu3  ;;  %v12666_v56 = vld [vmem:[#allocation6 + $0x1f3c] sm:$0xf0] }
 0x37b   :  { %8283 = vmatpush.bf16.msrb.mxu1 %v11997_v17  ;;  %v12361_v17 = vor.u32 %v13846_v25, %v12358_v26  ;;  %v8033_v53 = vpop.f32.mrf.mxu1  ;;  %v11826_v25 = vld [vmem:[#allocation6 + $0x18ac] sm:$0xf0] }
 0x37c   :  { %8309 = vmatpush.bf16.msrb.mxu3 %v12445_v50  ;;  %v8045_v50 = vadd.f32 %v8044_v43, %v8032_v11  ;;  %v12694_v11 = vld [vmem:[#allocation6 + $0x1f74] sm:$0xf0]  ;;  %v9088_v53 = vld [vmem:[#allocation6 + $0x328] sm:$0xf] }
 0x37d   :  { %8271 = vmatpush.bf16.msrb.mxu0 %v11745_v24  ;;  %v12330_v24 = vld [vmem:[#allocation6 + $0x1c9c] sm:$0xf0]  ;;  %v12918_v43 = vld [vmem:[#allocation6 + $0x2134] sm:$0xf0] }
 0x37e   :  { %8297 = vmatpush.bf16.msrb.mxu2 %v12193_v57  ;;  %v12109_v57 = vor.u32 %v13783_v38, %v12106_v41  ;;  %v12333_v59 = vor.u32 %v13839_v54, %v12330_v24  ;;  %v12697_v38 = vor.u32 %v13930_v9, %v12694_v11  ;;  %v13986_v41 = vld [vmem:[#allocation6 + $0x211c] sm:$0xf]  ;;  %v12277_v54 = vor.u32 %v13825_v15, %v12274_v14  ;;  %v13923_v24 = vld [vmem:[#allocation6 + $0x1f24] sm:$0xf]  ;;  %v13024_v9 = vld [vmem:[#allocation6 + $0x308] sm:$0xf0] }
 0x37f   :  { %8284 = vmatpush.bf16.msrb.mxu1 %v11969_v55  ;;  %v14383_v55 = vadd.f32 %v8057_v45, %v8045_v50  ;;  %v9116_v50 = vld [vmem:[#allocation6 + $0x360] sm:$0xf]  ;;  %v12921_v45 = vor.u32 %v13986_v41, %v12918_v43  ;;  %v12834_v15 = vld [vmem:[#allocation6 + $0x208c] sm:$0xf0]  ;;  %v13017_v41 = vld [vmem:[#allocation6 + $0x2d0] sm:$0xf0] }
 0x380   :  { %8310 = vmatpush.bf16.msrb.mxu3 %v12417_v39  ;;  %v12078_v39 = vld [vmem:[#allocation6 + $0x1aa4] sm:$0xf0]  ;;  %v8046_v26 = vpop.f32.mrf.mxu2 }
 0x381   :  { %8272 = vmatpush.bf16.msrb.mxu0 %v11717_v62  ;;  %v11854_v62 = vld [vmem:[#allocation6 + $0x18e4] sm:$0xf0]  ;;  %v12081_v4 = vor.u32 %v13776_v60, %v12078_v39  ;;  %v12890_v60 = vld [vmem:[#allocation6 + $0x20fc] sm:$0xf0]  ;;  %v12669_v39 = vor.u32 %v13923_v24, %v12666_v56  ;;  %v12954_v24 = vld [vmem:[#allocation6 + $0xd8] sm:$0xf0] }
 0x382   :  { %8298 = vmatpush.bf16.msrb.mxu2 %v12165_v3  ;;  %v13657_v3 = vld [vmem:[#allocation6 + $0x16d4] sm:$0xf]  ;;  %v11857_v7 = vor.u32 %v13720_v13, %v11854_v62  ;;  %v13916_v62 = vld [vmem:[#allocation6 + $0x1eec] sm:$0xf] }
 0x383   :  { %8285 = vmatpush.bf16.msrb.mxu1 %v11941_v6  ;;  %v12050_v6 = vld [vmem:[#allocation6 + $0x1a6c] sm:$0xf0] }
 0x384   :  { %8311 = vmatpush.bf16.msrb.mxu3 %v12389_v27  ;;  %v8892_v27 = vld [vmem:[#allocation6 + $0x1a0] sm:$0xf] }
 0x385   :  { %8273 = vmatpush.bf16.msrb.mxu0 %v11689_v20  ;;  %v13713_v20 = vld [vmem:[#allocation6 + $0x1894] sm:$0xf]  ;;  %v8893_v46 = vor.u32 %v12982_v1, %v8892_v27 }
 0x386   :  { %8299 = vmatpush.bf16.msrb.mxu2 %v12137_v32  ;;  %v11605_v32 = vor.u32 %v13657_v3, %v11602_v5  ;;  %v11829_v49 = vor.u32 %v13713_v20, %v11826_v25  ;;  %v12968_v3 = vld [vmem:[#allocation6 + $0x148] sm:$0xf0]  ;;  %v13909_v27 = vld [vmem:[#allocation6 + $0x1eb4] sm:$0xf]  ;;  %v8808_v20 = vld [vmem:[#allocation6 + $0xf8] sm:$0xf] }
 0x387   :  { %8286 = vmatpush.bf16.msrb.mxu1 %v11913_v35  ;;  %v12053_v35 = vor.u32 %v13769_v61, %v12050_v6  ;;  %v13972_v5 = vld [vmem:[#allocation6 + $0x20ac] sm:$0xf]  ;;  %v12862_v61 = vld [vmem:[#allocation6 + $0x20c4] sm:$0xf0]  ;;  %v8837_v11 = vor.u32 %v12968_v3, %v8836_v2  ;;  %v12961_v25 = vld [vmem:[#allocation6 + $0x110] sm:$0xf0] }
 0x388   :  { %8312 = vmatpush.bf16.msrb.mxu3 %v12361_v17  ;;  %v8059_v17 = vpop.f32.mrf.mxu3  ;;  %v12865_v1 = vor.u32 %v13972_v5, %v12862_v61  ;;  %v13951_v2 = vld [vmem:[#allocation6 + $0x2004] sm:$0xf]  ;;  %v12778_v3 = vld [vmem:[#allocation6 + $0x201c] sm:$0xf0]  ;;  %v14008_v5 = vld [vmem:[#allocation9] sm:$0xff] }
 0x389   :  { %8274 = vmatpush.bf16.msrb.mxu0 %v11661_v52  ;;  %v13038_v52 = vld [vmem:[#allocation6 + $0x378] sm:$0xf0]  ;;  %v8809_v17 = vor.u32 %v12961_v25, %v8808_v20  ;;  %v8608_v61 = vperm.slane %v14008_v5, 4  ;;  %v12781_v25 = vor.u32 %v13951_v2, %v12778_v3  ;;  %v10012_v5 = vld [vmem:[#allocation6 + $0xa60] sm:$0xf] }
 0x38a   :  { %8300 = vmatpush.bf16.msrb.mxu2 %v12109_v57  ;;  %v8864_v57 = vld [vmem:[#allocation6 + $0x168] sm:$0xf]  ;;  %v9117_v51 = vor.u32 %v13038_v52, %v9116_v50 }
 0x38b   :  { %8287 = vmatpush.bf16.msrb.mxu1 %v11885_v58  ;;  %v13979_v58 = vld [vmem:[#allocation6 + $0x20e4] sm:$0xf]  ;;  %v8865_v13 = vor.u32 %v12975_v47, %v8864_v57  ;;  %v13958_v57 = vld [vmem:[#allocation6 + $0x203c] sm:$0xf]  ;;  %v12806_v47 = vld [vmem:[#allocation6 + $0x2054] sm:$0xf0] }
 0x38c   :  { %8313 = vmatpush.bf16.msrb.mxu3 %v12333_v59  ;;  %v13031_v59 = vld [vmem:[#allocation6 + $0x340] sm:$0xf0]  ;;  %v12893_v0 = vor.u32 %v13979_v58, %v12890_v60  ;;  %v9004_v58 = vld [vmem:[#allocation6 + $0x280] sm:$0xf]  ;;  %v13010_v60 = vld [vmem:[#allocation6 + $0x298] sm:$0xf0] }
 0x38d   :  { %8275 = vmatpush.bf16.msrb.mxu0 %v11633_v63  ;;  %v12638_v63 = vld [vmem:[#allocation6 + $0x1f04] sm:$0xf0] }
 0x38e   :  { %8301 = vmatpush.bf16.msrb.mxu2 %v12081_v4  ;;  %v9089_v4 = vor.u32 %v13031_v59, %v9088_v53  ;;  %v12641_v6 = vor.u32 %v13916_v62, %v12638_v63  ;;  %v12554_v53 = vld [vmem:[#allocation6 + $0x1e5c] sm:$0xf0]  ;;  %v12809_v59 = vor.u32 %v13958_v57, %v12806_v47  ;;  %v12947_v62 = vld [vmem:[#allocation6 + $0xa0] sm:$0xf0]  ;;  %v13094_v47 = vld [vmem:[#allocation6 + $0x538] sm:$0xf0] }
 0x38f   :  { %8288 = vmatpush.bf16.msrb.mxu1 %v11857_v7  ;;  %v9060_v7 = vld [vmem:[#allocation6 + $0x2f0] sm:$0xf]  ;;  %v9340_v57 = vld [vmem:[#allocation6 + $0x520] sm:$0xf] }
 0x390   :  { %8314 = vmatpush.bf16.msrb.mxu3 %v12305_v12  ;;  %v12610_v12 = vld [vmem:[#allocation6 + $0x1ecc] sm:$0xf0]  ;;  %v9061_v26 = vor.u32 %v13024_v9, %v9060_v7  ;;  %v8976_v7 = vld [vmem:[#allocation6 + $0x248] sm:$0xf]  ;;  %v13003_v9 = vld [vmem:[#allocation6 + $0x260] sm:$0xf0]  ;;  %v9341_v3 = vor.u32 %v13094_v47, %v9340_v57 }
 0x391   :  { %8276 = vmatpush.bf16.msrb.mxu0 %v11605_v32  ;;  %v13965_v32 = vld [vmem:[#allocation6 + $0x2074] sm:$0xf]  ;;  %v8070_v14 = vpop.f32.mrf.mxu0  ;;  %v13248_v57 = vld [vmem:[#allocation6 + $0xa08] sm:$0xf0] }
 0x392   :  { %8302 = vmatpush.bf16.msrb.mxu2 %v12053_v35  ;;  %v12613_v35 = vor.u32 %v13909_v27, %v12610_v12  ;;  %v8071_v43 = vadd.f32 %v8070_v14, %v14383_v55  ;;  %v12837_v52 = vor.u32 %v13965_v32, %v12834_v15  ;;  %v13895_v55 = vld [vmem:[#allocation6 + $0x1e44] sm:$0xf]  ;;  %v13888_v12 = vld [vmem:[#allocation6 + $0x1e0c] sm:$0xf] }
 0x393   :  { %8289 = vmatpush.bf16.msrb.mxu1 %v11829_v49  ;;  %v12582_v49 = vld [vmem:[#allocation6 + $0x1e94] sm:$0xf0]  ;;  %v8083_v50 = vpop.f32.mrf.mxu1  ;;  %v12940_v32 = vld [vmem:[#allocation6 + $0x68] sm:$0xf0] }
 0x394   :  { %8315 = vmatpush.bf16.msrb.mxu3 %v12277_v54  ;;  %8277 = vmatmul.bf16.vlgmr.msrb.gmra.mxu0 %v14203_v29  ;;  %v8780_v54 = vld [vmem:[#allocation6 + $0xc0] sm:$0xf]  ;;  %v8084_v56 = vadd.f32 %v8083_v50, %v8071_v43  ;;  %v13881_v50 = vld [vmem:[#allocation6 + $0x1dd4] sm:$0xf] }
 0x395   :  { %8321 = vmatpush.bf16.msra.mxu0 %v12697_v38  ;;  %8303 = vmatmul.bf16.vlgmr.msrb.gmra.mxu2 %v14205_v33  ;;  %v9032_v38 = vld [vmem:[#allocation6 + $0x2b8] sm:$0xf] }
 0x396   :  { %8347 = vmatpush.bf16.msra.mxu2 %v8893_v46  ;;  %8290 = vmatmul.bf16.vlgmr.msrb.gmra.mxu1 %v14201_v21  ;;  %v13902_v46 = vld [vmem:[#allocation6 + $0x1e7c] sm:$0xf] }
 0x397   :  { %8334 = vmatpush.bf16.msra.mxu1 %v12921_v45  ;;  %8316 = vmatmul.bf16.vlgmr.msrb.gmra.mxu3 %v14211_v30  ;;  %v9033_v45 = vor.u32 %v13017_v41, %v9032_v38  ;;  %v13944_v38 = vld [vmem:[#allocation6 + $0x1fcc] sm:$0xf]  ;;  %v12750_v41 = vld [vmem:[#allocation6 + $0x1fe4] sm:$0xf0] }
 0x398   :  { %8360 = vmatpush.bf16.msra.mxu3 %v9117_v51  ;;  %v12585_v51 = vor.u32 %v13902_v46, %v12582_v49  ;;  %v8096_v63 = vpop.f32.mrf.mxu2  ;;  %v8948_v46 = vld [vmem:[#allocation6 + $0x210] sm:$0xf]  ;;  %v12996_v49 = vld [vmem:[#allocation6 + $0x228] sm:$0xf0] }
 0x399   :  { %8322 = vmatpush.bf16.msra.mxu0 %v12669_v39  ;;  %v8781_v39 = vor.u32 %v12954_v24, %v8780_v54  ;;  %v12498_v54 = vld [vmem:[#allocation6 + $0x1dec] sm:$0xf0]  ;;  %v8696_v24 = vld [vmem:[#allocation6 + $0x18] sm:$0xf] }
 0x39a   :  { %8348 = vmatpush.bf16.msra.mxu2 %v8865_v13  ;;  %v8752_v13 = vld [vmem:[#allocation6 + $0x88] sm:$0xf]  ;;  %v14390_v15 = vpop.f32.mrf.mxu3 }
 0x39b   :  { %8335 = vmatpush.bf16.msra.mxu1 %v12893_v0  ;;  %v9005_v0 = vor.u32 %v13010_v60, %v9004_v58  ;;  %v8753_v27 = vor.u32 %v12947_v62, %v8752_v13  ;;  %v8085_v14 = vpop.f32.mrf.mxu1  ;;  %v8949_v60 = vor.u32 %v12996_v49, %v8948_v46  ;;  %v12501_v13 = vor.u32 %v13881_v50, %v12498_v54  ;;  %v8920_v62 = vld [vmem:[#allocation6 + $0x1d8] sm:$0xf]  ;;  %v9732_v46 = vld [vmem:[#allocation6 + $0x830] sm:$0xf]  ;;  %v13192_v49 = vld [vmem:[#allocation6 + $0x848] sm:$0xf0] }
 0x39c   :  { %8361 = vmatpush.bf16.msra.mxu3 %v9089_v4  ;;  %v8097_v4 = vadd.f32 %v8096_v63, %v8084_v56  ;;  %v12933_v56 = vld [vmem:[#allocation6 + $0x30] sm:$0xf0]  ;;  %v13143_v14 = vld [vmem:[#allocation6 + $0x6c0] sm:$0xf0]  ;;  %v9508_v54 = vld [vmem:[#allocation6 + $0x670] sm:$0xf]  ;;  %v9733_v47 = vor.u32 %v13192_v49, %v9732_v46 }
 0x39d   :  { %8323 = vmatpush.bf16.msra.mxu0 %v12641_v6  ;;  %v12557_v6 = vor.u32 %v13895_v55, %v12554_v53  ;;  %v13937_v55 = vld [vmem:[#allocation6 + $0x1f94] sm:$0xf]  ;;  %v12722_v53 = vld [vmem:[#allocation6 + $0x1fac] sm:$0xf0]  ;;  %v8697_v2 = vor.u32 %v12933_v56, %v8696_v24  ;;  %v13136_v56 = vld [vmem:[#allocation6 + $0x688] sm:$0xf0] }
 0x39e   :  { %8349 = vmatpush.bf16.msra.mxu2 %v8837_v11  ;;  %v8072_v11 = vpop.f32.mrf.mxu0  ;;  %v8598_v20 = vmax.f32 %v8097_v4, 0.0  ;;  %v12989_v63 = vld [vmem:[#allocation6 + $0x1f0] sm:$0xf0]  ;;  %v13150_v4 = vld [vmem:[#allocation6 + $0x6f8] sm:$0xf0] }
 0x39f   :  { %8336 = vmatpush.bf16.msra.mxu1 %v12865_v1  ;;  %v12526_v1 = vld [vmem:[#allocation6 + $0x1e24] sm:$0xf0] }
 0x3a0   :  { %8362 = vmatpush.bf16.msra.mxu3 %v9061_v26  ;;  %v8724_v26 = vld [vmem:[#allocation6 + $0x50] sm:$0xf]  ;;  %v8622_v43 = vmul.f32 %v8608_v61, %v8598_v20  ;;  %v13262_v61 = vld [vmem:[#allocation6 + $0xa78] sm:$0xf0]  ;;  %v9424_v46 = vld [vmem:[#allocation6 + $0x5c8] sm:$0xf] }
 0x3a1   :  { %8324 = vmatpush.bf16.msra.mxu0 %v12613_v35  ;;  %v8977_v35 = vor.u32 %v13003_v9, %v8976_v7  ;;  %v9312_v7 = vld [vmem:[#allocation6 + $0x4e8] sm:$0xf]  ;;  %v13087_v9 = vld [vmem:[#allocation6 + $0x500] sm:$0xf0] }
 0x3a2   :  { %8350 = vmatpush.bf16.msra.mxu2 %v8809_v17  ;;  %v12529_v17 = vor.u32 %v13888_v12, %v12526_v1  ;;  %v14393_v58 = vadd.f32 %v14356_v34, %v8622_v43  ;;  %v8111_v11 = vpop.f32.mrf.mxu3  ;;  %v9760_v12 = vld [vmem:[#allocation6 + $0x868] sm:$0xf]  ;;  %v13199_v1 = vld [vmem:[#allocation6 + $0x880] sm:$0xf0]  ;;  %v9284_v43 = vld [vmem:[#allocation6 + $0x4b0] sm:$0xf] }
 0x3a3   :  { %8337 = vmatpush.bf16.msra.mxu1 %v12837_v52  ;;  %v8725_v52 = vor.u32 %v12940_v32, %v8724_v26  ;;  %v9536_v26 = vld [vmem:[#allocation6 + $0x6a8] sm:$0xf]  ;;  %v9313_v32 = vor.u32 %v13087_v9, %v9312_v7  ;;  %v13178_v7 = vld [vmem:[#allocation6 + $0x7d8] sm:$0xf0]  ;;  %v9452_v11 = vld [vmem:[#allocation6 + $0x600] sm:$0xf] }
 0x3a4   :  { %8363 = vmatpush.bf16.msra.mxu3 %v9033_v45  ;;  %v12753_v45 = vor.u32 %v13944_v38, %v12750_v41  ;;  %v13255_v38 = vld [vmem:[#allocation6 + $0xa40] sm:$0xf0]  ;;  %v9761_v41 = vor.u32 %v13199_v1, %v9760_v12  ;;  %v9537_v50 = vor.u32 %v13143_v14, %v9536_v26  ;;  %v13122_v12 = vld [vmem:[#allocation6 + $0x618] sm:$0xf0]  ;;  %v9900_v1 = vld [vmem:[#allocation6 + $0x980] sm:$0xf] }
 0x3a5   :  { %8325 = vmatpush.bf16.msra.mxu0 %v12585_v51  ;;  %v9788_v51 = vld [vmem:[#allocation6 + $0x8a0] sm:$0xf]  ;;  %v13059_v14 = vld [vmem:[#allocation6 + $0x420] sm:$0xf0] }
 0x3a6   :  { %8351 = vmatpush.bf16.msra.mxu2 %v8781_v39  ;;  %v13206_v39 = vld [vmem:[#allocation6 + $0x8b8] sm:$0xf0] }
 0x3a7   :  { %8338 = vmatpush.bf16.msra.mxu1 %v12809_v59  ;;  %v8098_v59 = vpop.f32.mrf.mxu2  ;;  %v9789_v34 = vor.u32 %v13206_v39, %v9788_v51  ;;  %v9256_v51 = vld [vmem:[#allocation6 + $0x478] sm:$0xf]  ;;  %v14009_v39 = vld [vmem:[#allocation8] sm:$0xff] }
 0x3a8   :  { %8364 = vmatpush.bf16.msra.mxu3 %v9005_v0  ;;  %v9564_v0 = vld [vmem:[#allocation6 + $0x6e0] sm:$0xf]  ;;  %v13185_v59 = vld [vmem:[#allocation6 + $0x810] sm:$0xf0] }
 0x3a9   :  { %8326 = vmatpush.bf16.msra.mxu0 %v12557_v6  ;;  %v12725_v6 = vor.u32 %v13937_v55, %v12722_v53  ;;  %v9565_v20 = vor.u32 %v13150_v4, %v9564_v0  ;;  %v1317_v55 = vperm.slane %v14009_v39, 5  ;;  %v9704_v53 = vld [vmem:[#allocation6 + $0x7f8] sm:$0xf]  ;;  %v13241_v4 = vld [vmem:[#allocation6 + $0x9d0] sm:$0xf0] }
 0x3aa   :  { %8352 = vmatpush.bf16.msra.mxu2 %v8753_v27  ;;  %v8921_v27 = vor.u32 %v12989_v63, %v8920_v62  ;;  %v9480_v63 = vld [vmem:[#allocation6 + $0x638] sm:$0xf]  ;;  %v13164_v39 = vld [vmem:[#allocation6 + $0x768] sm:$0xf0] }
 0x3ab   :  { %8339 = vmatpush.bf16.msra.mxu1 %v12781_v25  ;;  %v10013_v25 = vor.u32 %v13262_v61, %v10012_v5  ;;  %v9705_v5 = vor.u32 %v13185_v59, %v9704_v53  ;;  %v9228_v61 = vld [vmem:[#allocation6 + $0x440] sm:$0xf] }
 0x3ac   :  { %8365 = vmatpush.bf16.msra.mxu3 %v8977_v35  ;;  %v9984_v35 = vld [vmem:[#allocation6 + $0xa28] sm:$0xf] }
 0x3ad   :  { %8327 = vmatpush.bf16.msra.mxu0 %v12529_v17  ;;  %v13080_v17 = vld [vmem:[#allocation6 + $0x4c8] sm:$0xf0] }
 0x3ae   :  { %8353 = vmatpush.bf16.msra.mxu2 %v8725_v52  ;;  %v9985_v52 = vor.u32 %v13255_v38, %v9984_v35  ;;  %v9285_v24 = vor.u32 %v13080_v17, %v9284_v43  ;;  %v9648_v38 = vld [vmem:[#allocation6 + $0x788] sm:$0xf]  ;;  %v9453_v43 = vor.u32 %v13122_v12, %v9452_v11 }
 0x3af   :  { %8340 = vmatpush.bf16.msra.mxu1 %v12753_v45  ;;  %v9956_v45 = vld [vmem:[#allocation6 + $0x9f0] sm:$0xf] }
 0x3b0   :  { %8366 = vmatpush.bf16.msra.mxu3 %v8949_v60  ;;  %v13073_v60 = vld [vmem:[#allocation6 + $0x490] sm:$0xf0]  ;;  %v9957_v62 = vor.u32 %v13248_v57, %v9956_v45  ;;  %v9172_v57 = vld [vmem:[#allocation6 + $0x3d0] sm:$0xf] }
 0x3b1   :  { %8328 = vmatpush.bf16.msra.mxu0 %v12501_v13  ;;  %v9509_v13 = vor.u32 %v13136_v56, %v9508_v54  ;;  %v9257_v0 = vor.u32 %v13073_v60, %v9256_v51  ;;  %v9872_v54 = vld [vmem:[#allocation6 + $0x948] sm:$0xf]  ;;  %v9620_v60 = vld [vmem:[#allocation6 + $0x750] sm:$0xf] }
 0x3b2   :  { %8354 = vmatpush.bf16.msra.mxu2 %v8697_v2  ;;  %v13129_v2 = vld [vmem:[#allocation6 + $0x650] sm:$0xf0] }
 0x3b3   :  { %8341 = vmatpush.bf16.msra.mxu1 %v12725_v6  ;;  %v9676_v6 = vld [vmem:[#allocation6 + $0x7c0] sm:$0xf] }
 0x3b4   :  { %8367 = vmatpush.bf16.msra.mxu3 %v8921_v27  ;;  %8329 = vmatmul.bf16.vlgmr.msra.gmra.mxu0 %v14215_v40  ;;  %v9677_v26 = vor.u32 %v13178_v7, %v9676_v6  ;;  %v13157_v6 = vld [vmem:[#allocation6 + $0x730] sm:$0xf0]  ;;  %v10236_v7 = vld [vmem:[#allocation6 + $0xc20] sm:$0xf] }
 0x3b5   :  { %8373 = vmatpush.bf16.msrb.mxu0 %v9341_v3  ;;  %8355 = vmatmul.bf16.vlgmr.msra.gmra.mxu2 %v14168_v18  ;;  %v9928_v3 = vld [vmem:[#allocation6 + $0x9b8] sm:$0xf]  ;;  %v9481_v18 = vor.u32 %v13129_v2, %v9480_v63  ;;  %v9844_v2 = vld [vmem:[#allocation6 + $0x910] sm:$0xf] }
 0x3b6   :  { %8399 = vmatpush.bf16.msrb.mxu2 %v9789_v34  ;;  %8342 = vmatmul.bf16.vlgmr.msra.gmra.mxu1 %v14213_v37  ;;  %v13066_v34 = vld [vmem:[#allocation6 + $0x458] sm:$0xf0]  ;;  %v9929_v9 = vor.u32 %v13241_v4, %v9928_v3  ;;  %v13220_v3 = vld [vmem:[#allocation6 + $0x928] sm:$0xf0]  ;;  %v9144_v4 = vld [vmem:[#allocation6 + $0x398] sm:$0xf] }
 0x3b7   :  { %8386 = vmatpush.bf16.msrb.mxu1 %v9565_v20  ;;  %8368 = vmatmul.bf16.vlgmr.msra.gmra.mxu3 %v14171_v22  ;;  %v8110_v22 = vadd.f32 %v14390_v15, %v1317_v55  ;;  %v9229_v27 = vor.u32 %v13066_v34, %v9228_v61  ;;  %v13234_v20 = vld [vmem:[#allocation6 + $0x998] sm:$0xf0]  ;;  %v13171_v15 = vld [vmem:[#allocation6 + $0x7a0] sm:$0xf0]  ;;  %v9621_v61 = vor.u32 %v13164_v39, %v9620_v60  ;;  %v13045_v34 = vld [vmem:[#allocation6 + $0x3b0] sm:$0xf0] }
 0x3b8   :  { %8412 = vmatpush.bf16.msrb.mxu3 %v10013_v25  ;;  %v8122_v25 = vpop.f32.mrf.mxu0  ;;  %v9901_v17 = vor.u32 %v13234_v20, %v9900_v1  ;;  %v8148_v56 = vpop.f32.mrf.mxu2  ;;  %v9649_v45 = vor.u32 %v13171_v15, %v9648_v38  ;;  %v9845_v12 = vor.u32 %v13220_v3, %v9844_v2  ;;  %v13430_v1 = vld [vmem:[#allocation6 + $0xfb8] sm:$0xf0]  ;;  %v9368_v20 = vld [vmem:[#allocation6 + $0x558] sm:$0xf]  ;;  %v10432_v60 = vld [vmem:[#allocation6 + $0xda8] sm:$0xf] }
 0x3b9   :  { %8374 = vmatpush.bf16.msrb.mxu0 %v9313_v32  ;;  %v9200_v32 = vld [vmem:[#allocation6 + $0x408] sm:$0xf]  ;;  %v8123_v35 = vadd.f32 %v8122_v25, %v8110_v22  ;;  %v9592_v22 = vld [vmem:[#allocation6 + $0x718] sm:$0xf]  ;;  %v13101_v25 = vld [vmem:[#allocation6 + $0x570] sm:$0xf0] }
 0x3ba   :  { %8400 = vmatpush.bf16.msrb.mxu2 %v9761_v41  ;;  %v8135_v41 = vpop.f32.mrf.mxu1  ;;  %v8161_v55 = vpop.f32.mrf.mxu3  ;;  %v9593_v15 = vor.u32 %v13157_v6, %v9592_v22  ;;  %v10628_v2 = vld [vmem:[#allocation6 + $0xf30] sm:$0xf]  ;;  %v13416_v3 = vld [vmem:[#allocation6 + $0xf48] sm:$0xf0] }
 0x3bb   :  { %8387 = vmatpush.bf16.msrb.mxu1 %v9537_v50  ;;  %v8136_v49 = vadd.f32 %v8135_v41, %v8123_v35  ;;  %v9201_v50 = vor.u32 %v13059_v14, %v9200_v32  ;;  %v9816_v32 = vld [vmem:[#allocation6 + $0x8d8] sm:$0xf]  ;;  %v13213_v14 = vld [vmem:[#allocation6 + $0x8f0] sm:$0xf0]  ;;  %v10460_v35 = vld [vmem:[#allocation6 + $0xde0] sm:$0xf] }
 0x3bc   :  { %8413 = vmatpush.bf16.msrb.mxu3 %v9985_v52  ;;  %v13115_v52 = vld [vmem:[#allocation6 + $0x5e0] sm:$0xf0]  ;;  %v13360_v22 = vld [vmem:[#allocation6 + $0xd88] sm:$0xf0]  ;;  %v10852_v6 = vld [vmem:[#allocation6 + $0x10f0] sm:$0xf] }
 0x3bd   :  { %8375 = vmatpush.bf16.msrb.mxu0 %v9285_v24  ;;  %v13227_v24 = vld [vmem:[#allocation6 + $0x960] sm:$0xf0]  ;;  %v8149_v51 = vadd.f32 %v8148_v56, %v8136_v49  ;;  %v9425_v53 = vor.u32 %v13115_v52, %v9424_v46  ;;  %v13486_v46 = vld [vmem:[#allocation6 + $0x1178] sm:$0xf0]  ;;  %v9817_v56 = vor.u32 %v13213_v14, %v9816_v32  ;;  %v10824_v32 = vld [vmem:[#allocation6 + $0x10b8] sm:$0xf] }
 0x3be   :  { %8401 = vmatpush.bf16.msrb.mxu2 %v9733_v47  ;;  %v13052_v47 = vld [vmem:[#allocation6 + $0x3e8] sm:$0xf0]  ;;  %v9873_v59 = vor.u32 %v13227_v24, %v9872_v54  ;;  %v13311_v52 = vld [vmem:[#allocation6 + $0xc00] sm:$0xf0]  ;;  %v9369_v24 = vor.u32 %v13101_v25, %v9368_v20  ;;  %v10376_v25 = vld [vmem:[#allocation6 + $0xd38] sm:$0xf] }
 0x3bf   :  { %8388 = vmatpush.bf16.msrb.mxu1 %v9509_v13  ;;  %v9396_v13 = vld [vmem:[#allocation6 + $0x590] sm:$0xf]  ;;  %v14400_v63 = vadd.f32 %v8161_v55, %v8149_v51  ;;  %v13367_v55 = vld [vmem:[#allocation6 + $0xdc0] sm:$0xf0]  ;;  %v13465_v14 = vld [vmem:[#allocation6 + $0x10d0] sm:$0xf0] }
 0x3c0   :  { %8414 = vmatpush.bf16.msrb.mxu3 %v9957_v62  ;;  %v13108_v62 = vld [vmem:[#allocation6 + $0x5a8] sm:$0xf0]  ;;  %v8150_v38 = vpop.f32.mrf.mxu2 }
 0x3c1   :  { %8376 = vmatpush.bf16.msrb.mxu0 %v9257_v0  ;;  %v9173_v0 = vor.u32 %v13052_v47, %v9172_v57  ;;  %v13423_v57 = vld [vmem:[#allocation6 + $0xf80] sm:$0xf0]  ;;  %v10124_v38 = vld [vmem:[#allocation6 + $0xb40] sm:$0xf] }
 0x3c2   :  { %8402 = vmatpush.bf16.msrb.mxu2 %v9705_v5  ;;  %v8124_v5 = vpop.f32.mrf.mxu0  ;;  %v8137_v11 = vpop.f32.mrf.mxu1 }
 0x3c3   :  { %8389 = vmatpush.bf16.msrb.mxu1 %v9481_v18  ;;  %v13318_v18 = vld [vmem:[#allocation6 + $0xc38] sm:$0xf0]  ;;  %v8163_v54 = vpop.f32.mrf.mxu3  ;;  %v13297_v11 = vld [vmem:[#allocation6 + $0xb90] sm:$0xf0] }
 0x3c4   :  { %8415 = vmatpush.bf16.msrb.mxu3 %v9929_v9  ;;  %v10684_v9 = vld [vmem:[#allocation6 + $0xfa0] sm:$0xf]  ;;  %v10237_v41 = vor.u32 %v13318_v18, %v10236_v7  ;;  %v13472_v7 = vld [vmem:[#allocation6 + $0x1108] sm:$0xf0]  ;;  %v10629_v18 = vor.u32 %v13416_v3, %v10628_v2  ;;  %v13451_v2 = vld [vmem:[#allocation6 + $0x1060] sm:$0xf0] }
 0x3c5   :  { %8377 = vmatpush.bf16.msrb.mxu0 %v9229_v27  ;;  %v9397_v27 = vor.u32 %v13108_v62, %v9396_v13  ;;  %v10685_v49 = vor.u32 %v13430_v1, %v10684_v9  ;;  %v10180_v62 = vld [vmem:[#allocation6 + $0xbb0] sm:$0xf]  ;;  %v10152_v9 = vld [vmem:[#allocation6 + $0xb78] sm:$0xf]  ;;  %v10853_v20 = vor.u32 %v13472_v7, %v10852_v6 }
 0x3c6   :  { %8403 = vmatpush.bf16.msrb.mxu2 %v9677_v26  ;;  %v9145_v26 = vor.u32 %v13045_v34, %v9144_v4  ;;  %v10433_v4 = vor.u32 %v13367_v55, %v10432_v60 }
 0x3c7   :  { %8390 = vmatpush.bf16.msrb.mxu1 %v9453_v43  ;;  %v13374_v43 = vld [vmem:[#allocation6 + $0xdf8] sm:$0xf0] }
 0x3c8   :  { %8416 = vmatpush.bf16.msrb.mxu3 %v9901_v17  ;;  %v10908_v17 = vld [vmem:[#allocation6 + $0x1160] sm:$0xf]  ;;  %v10461_v47 = vor.u32 %v13374_v43, %v10460_v35 }
 0x3c9   :  { %8378 = vmatpush.bf16.msrb.mxu0 %v9201_v50  ;;  %v10208_v50 = vld [vmem:[#allocation6 + $0xbe8] sm:$0xf]  ;;  %v10909_v51 = vor.u32 %v13486_v46, %v10908_v17  ;;  %v10348_v43 = vld [vmem:[#allocation6 + $0xd00] sm:$0xf] }
 0x3ca   :  { %8404 = vmatpush.bf16.msrb.mxu2 %v9649_v45  ;;  %v10656_v45 = vld [vmem:[#allocation6 + $0xf68] sm:$0xf]  ;;  %v10209_v39 = vor.u32 %v13311_v52, %v10208_v50  ;;  %v10796_v50 = vld [vmem:[#allocation6 + $0x1080] sm:$0xf]  ;;  %v13458_v52 = vld [vmem:[#allocation6 + $0x1098] sm:$0xf0] }
 0x3cb   :  { %8391 = vmatpush.bf16.msrb.mxu1 %v9425_v53  ;;  %v10880_v53 = vld [vmem:[#allocation6 + $0x1128] sm:$0xf]  ;;  %v10657_v13 = vor.u32 %v13423_v57, %v10656_v45  ;;  %v13283_v45 = vld [vmem:[#allocation6 + $0xb20] sm:$0xf0] }
 0x3cc   :  { %8417 = vmatpush.bf16.msrb.mxu3 %v9873_v59  ;;  %v13479_v59 = vld [vmem:[#allocation6 + $0x1140] sm:$0xf0] }
 0x3cd   :  { %8379 = vmatpush.bf16.msrb.mxu0 %v9173_v0  ;;  %v13304_v0 = vld [vmem:[#allocation6 + $0xbc8] sm:$0xf0]  ;;  %v10881_v5 = vor.u32 %v13479_v59, %v10880_v53  ;;  %v10320_v53 = vld [vmem:[#allocation6 + $0xcc8] sm:$0xf] }
 0x3ce   :  { %8405 = vmatpush.bf16.msrb.mxu2 %v9621_v61  ;;  %v10404_v61 = vld [vmem:[#allocation6 + $0xd70] sm:$0xf]  ;;  %v10181_v34 = vor.u32 %v13304_v0, %v10180_v62  ;;  %v13339_v62 = vld [vmem:[#allocation6 + $0xce0] sm:$0xf0]  ;;  %v10768_v0 = vld [vmem:[#allocation6 + $0x1048] sm:$0xf] }
 0x3cf   :  { %8392 = vmatpush.bf16.msrb.mxu1 %v9397_v27  ;;  %v10600_v27 = vld [vmem:[#allocation6 + $0xef8] sm:$0xf]  ;;  %v10405_v1 = vor.u32 %v13360_v22, %v10404_v61  ;;  %v13388_v22 = vld [vmem:[#allocation6 + $0xe68] sm:$0xf0]  ;;  %v10321_v6 = vor.u32 %v13339_v62, %v10320_v53  ;;  %v10769_v7 = vor.u32 %v13451_v2, %v10768_v0  ;;  %v13647_v62 = vld [vmem:[#allocation6 + $0x1680] sm:$0xf0] }
 0x3d0   :  { %8418 = vmatpush.bf16.msrb.mxu3 %v9845_v12  ;;  %v13409_v12 = vld [vmem:[#allocation6 + $0xf10] sm:$0xf0] }
 0x3d1   :  { %8380 = vmatpush.bf16.msrb.mxu0 %v9145_v26  ;;  %v10153_v26 = vor.u32 %v13297_v11, %v10152_v9  ;;  %v10601_v35 = vor.u32 %v13409_v12, %v10600_v27  ;;  %v8174_v46 = vpop.f32.mrf.mxu0  ;;  %v10292_v9 = vld [vmem:[#allocation6 + $0xc90] sm:$0xf]  ;;  %v13332_v11 = vld [vmem:[#allocation6 + $0xca8] sm:$0xf0] }
 0x3d2   :  { %8406 = vmatpush.bf16.msrb.mxu2 %v9593_v15  ;;  %v10572_v15 = vld [vmem:[#allocation6 + $0xec0] sm:$0xf]  ;;  %v10740_v12 = vld [vmem:[#allocation6 + $0x1010] sm:$0xf] }
 0x3d3   :  { %8393 = vmatpush.bf16.msrb.mxu1 %v9369_v24  ;;  %v8175_v24 = vadd.f32 %v8174_v46, %v14400_v63  ;;  %v8187_v57 = vpop.f32.mrf.mxu1 }
 0x3d4   :  { %8419 = vmatpush.bf16.msrb.mxu3 %v9817_v56  ;;  %8381 = vmatmul.bf16.vlgmr.msrb.gmra.mxu0 %v14163_v8  ;;  %v13290_v8 = vld [vmem:[#allocation6 + $0xb58] sm:$0xf0]  ;;  %v10096_v56 = vld [vmem:[#allocation6 + $0xb08] sm:$0xf] }
 0x3d5   :  { %8425 = vmatpush.bf16.msra.mxu0 %v10237_v41  ;;  %8407 = vmatmul.bf16.vlgmr.msrb.gmra.mxu2 %v14179_v44  ;;  %v13353_v44 = vld [vmem:[#allocation6 + $0xd50] sm:$0xf0]  ;;  %v13402_v41 = vld [vmem:[#allocation6 + $0xed8] sm:$0xf0]  ;;  %v10125_v17 = vor.u32 %v13290_v8, %v10124_v38  ;;  %v8188_v55 = vadd.f32 %v8187_v57, %v8175_v24  ;;  %v10097_v59 = vor.u32 %v13283_v45, %v10096_v56  ;;  %v11580_v8 = vld [vmem:[#allocation6 + $0x16a0] sm:$0xf] }
 0x3d6   :  { %8451 = vmatpush.bf16.msra.mxu2 %v10685_v49  ;;  %8394 = vmatmul.bf16.vlgmr.msrb.gmra.mxu1 %v14165_v10  ;;  %v10825_v10 = vor.u32 %v13465_v14, %v10824_v32  ;;  %v13346_v49 = vld [vmem:[#allocation6 + $0xd18] sm:$0xf0]  ;;  %v10573_v54 = vor.u32 %v13402_v41, %v10572_v15  ;;  %v10488_v32 = vld [vmem:[#allocation6 + $0xe18] sm:$0xf]  ;;  %v13381_v14 = vld [vmem:[#allocation6 + $0xe30] sm:$0xf0]  ;;  %v10293_v41 = vor.u32 %v13332_v11, %v10292_v9 }
 0x3d7   :  { %8438 = vmatpush.bf16.msra.mxu1 %v10461_v47  ;;  %8420 = vmatmul.bf16.vlgmr.msrb.gmra.mxu3 %v14177_v42  ;;  %v10377_v42 = vor.u32 %v13353_v44, %v10376_v25  ;;  %v10544_v47 = vld [vmem:[#allocation6 + $0xe88] sm:$0xf]  ;;  %v10349_v60 = vor.u32 %v13346_v49, %v10348_v43  ;;  %v13269_v44 = vld [vmem:[#allocation6 + $0xab0] sm:$0xf0]  ;;  %v13542_v38 = vld [vmem:[#allocation6 + $0x1338] sm:$0xf0]  ;;  %v10489_v24 = vor.u32 %v13381_v14, %v10488_v32 }
 0x3d8   :  { %8464 = vmatpush.bf16.msra.mxu3 %v10909_v51  ;;  %v13395_v51 = vld [vmem:[#allocation6 + $0xea0] sm:$0xf0]  ;;  %v10264_v43 = vld [vmem:[#allocation6 + $0xc58] sm:$0xf]  ;;  %v13598_v45 = vld [vmem:[#allocation6 + $0x14f8] sm:$0xf0] }
 0x3d9   :  { %8426 = vmatpush.bf16.msra.mxu0 %v10209_v39  ;;  %v10797_v39 = vor.u32 %v13458_v52, %v10796_v50  ;;  %v10545_v3 = vor.u32 %v13395_v51, %v10544_v47  ;;  %v8176_v25 = vpop.f32.mrf.mxu0  ;;  %v10712_v49 = vld [vmem:[#allocation6 + $0xfd8] sm:$0xf]  ;;  %v13437_v50 = vld [vmem:[#allocation6 + $0xff0] sm:$0xf0]  ;;  %v11356_v52 = vld [vmem:[#allocation6 + $0x14e0] sm:$0xf] }
 0x3da   :  { %8452 = vmatpush.bf16.msra.mxu2 %v10657_v13  ;;  %v8200_v13 = vpop.f32.mrf.mxu2  ;;  %v8213_v61 = vpop.f32.mrf.mxu3  ;;  %v11804_v57 = vld [vmem:[#allocation6 + $0x1860] sm:$0xf]  ;;  %v13710_v47 = vld [vmem:[#allocation6 + $0x1878] sm:$0xf0]  ;;  %v11357_v0 = vor.u32 %v13598_v45, %v11356_v52  ;;  %v13640_v9 = vld [vmem:[#allocation6 + $0x1648] sm:$0xf0] }
 0x3db   :  { %8439 = vmatpush.bf16.msra.mxu1 %v10433_v4  ;;  %v8201_v63 = vadd.f32 %v8200_v13, %v8188_v55  ;;  %v10068_v4 = vld [vmem:[#allocation6 + $0xad0] sm:$0xf]  ;;  %v8189_v15 = vpop.f32.mrf.mxu1  ;;  %v11552_v13 = vld [vmem:[#allocation6 + $0x1668] sm:$0xf]  ;;  %v11805_v2 = vor.u32 %v13710_v47, %v11804_v57  ;;  %v11048_v32 = vld [vmem:[#allocation6 + $0x1278] sm:$0xf] }
 0x3dc   :  { %8465 = vmatpush.bf16.msra.mxu3 %v10881_v5  ;;  %v13276_v5 = vld [vmem:[#allocation6 + $0xae8] sm:$0xf0]  ;;  %v11748_v25 = vld [vmem:[#allocation6 + $0x17f0] sm:$0xf]  ;;  %v13521_v14 = vld [vmem:[#allocation6 + $0x1290] sm:$0xf0] }
 0x3dd   :  { %8427 = vmatpush.bf16.msra.mxu0 %v10181_v34  ;;  %v10516_v34 = vld [vmem:[#allocation6 + $0xe50] sm:$0xf]  ;;  %v10069_v27 = vor.u32 %v13276_v5, %v10068_v4  ;;  %v13591_v4 = vld [vmem:[#allocation6 + $0x14c0] sm:$0xf0]  ;;  %v11776_v5 = vld [vmem:[#allocation6 + $0x1828] sm:$0xf] }
 0x3de   :  { %8453 = vmatpush.bf16.msra.mxu2 %v10629_v18  ;;  %v14407_v18 = vadd.f32 %v8213_v61, %v8201_v63  ;;  %v13703_v61 = vld [vmem:[#allocation6 + $0x1840] sm:$0xf0]  ;;  %v11272_v15 = vld [vmem:[#allocation6 + $0x1438] sm:$0xf]  ;;  %v13570_v47 = vld [vmem:[#allocation6 + $0x1418] sm:$0xf0] }
 0x3df   :  { %8440 = vmatpush.bf16.msra.mxu1 %v10405_v1  ;;  %v13444_v1 = vld [vmem:[#allocation6 + $0x1028] sm:$0xf0] }
 0x3e0   :  { %8466 = vmatpush.bf16.msra.mxu3 %v10853_v20  ;;  %v10040_v20 = vld [vmem:[#allocation6 + $0xa98] sm:$0xf] }
 0x3e1   :  { %8428 = vmatpush.bf16.msra.mxu0 %v10153_v26  ;;  %v10517_v26 = vor.u32 %v13388_v22, %v10516_v34  ;;  %v10041_v46 = vor.u32 %v13269_v44, %v10040_v20  ;;  %v11553_v34 = vor.u32 %v13647_v62, %v11552_v13  ;;  %v11076_v22 = vld [vmem:[#allocation6 + $0x12b0] sm:$0xf]  ;;  %v13584_v20 = vld [vmem:[#allocation6 + $0x1488] sm:$0xf0] }
 0x3e2   :  { %8454 = vmatpush.bf16.msra.mxu2 %v10601_v35  ;;  %v11132_v35 = vld [vmem:[#allocation6 + $0x1320] sm:$0xf]  ;;  %v8215_v55 = vpop.f32.mrf.mxu3 }
 0x3e3   :  { %8441 = vmatpush.bf16.msra.mxu1 %v10377_v42  ;;  %v10741_v42 = vor.u32 %v13444_v1, %v10740_v12  ;;  %v11133_v56 = vor.u32 %v13542_v38, %v11132_v35  ;;  %v11300_v12 = vld [vmem:[#allocation6 + $0x1470] sm:$0xf]  ;;  %v11496_v35 = vld [vmem:[#allocation6 + $0x15f8] sm:$0xf]  ;;  %v13633_v38 = vld [vmem:[#allocation6 + $0x1610] sm:$0xf0] }
 0x3e4   :  { %8467 = vmatpush.bf16.msra.mxu3 %v10825_v10  ;;  %v13654_v10 = vld [vmem:[#allocation6 + $0x16b8] sm:$0xf0]  ;;  %v10992_v55 = vld [vmem:[#allocation6 + $0x1208] sm:$0xf] }
 0x3e5   :  { %8429 = vmatpush.bf16.msra.mxu0 %v10125_v17  ;;  %v13325_v17 = vld [vmem:[#allocation6 + $0xc70] sm:$0xf0]  ;;  %v11581_v51 = vor.u32 %v13654_v10, %v11580_v8  ;;  %v11301_v8 = vor.u32 %v13584_v20, %v11300_v12  ;;  %v11720_v10 = vld [vmem:[#allocation6 + $0x17b8] sm:$0xf] }
 0x3e6   :  { %8455 = vmatpush.bf16.msra.mxu2 %v10573_v54  ;;  %v8202_v54 = vpop.f32.mrf.mxu2  ;;  %v10265_v53 = vor.u32 %v13325_v17, %v10264_v43  ;;  %v13689_v43 = vld [vmem:[#allocation6 + $0x17d0] sm:$0xf0]  ;;  %v11497_v17 = vor.u32 %v13633_v38, %v11496_v35  ;;  %v13668_v35 = vld [vmem:[#allocation6 + $0x1728] sm:$0xf0] }
 0x3e7   :  { %8442 = vmatpush.bf16.msra.mxu1 %v10349_v60  ;;  %v11104_v60 = vld [vmem:[#allocation6 + $0x12e8] sm:$0xf] }
 0x3e8   :  { %8468 = vmatpush.bf16.msra.mxu3 %v10797_v39  ;;  %v13535_v39 = vld [vmem:[#allocation6 + $0x1300] sm:$0xf0] }
 0x3e9   :  { %8430 = vmatpush.bf16.msra.mxu0 %v10097_v59  ;;  %v10713_v59 = vor.u32 %v13437_v50, %v10712_v49  ;;  %v11105_v63 = vor.u32 %v13535_v39, %v11104_v60  ;;  %v13514_v49 = vld [vmem:[#allocation6 + $0x1258] sm:$0xf0] }
 0x3ea   :  { %8456 = vmatpush.bf16.msra.mxu2 %v10545_v3  ;;  %v11328_v3 = vld [vmem:[#allocation6 + $0x14a8] sm:$0xf]  ;;  %v13626_v50 = vld [vmem:[#allocation6 + $0x15d8] sm:$0xf0] }
 0x3eb   :  { %8443 = vmatpush.bf16.msra.mxu1 %v10321_v6  ;;  %v13528_v6 = vld [vmem:[#allocation6 + $0x12c8] sm:$0xf0]  ;;  %v11329_v11 = vor.u32 %v13591_v4, %v11328_v3  ;;  %v13682_v60 = vld [vmem:[#allocation6 + $0x1798] sm:$0xf0]  ;;  %v11664_v4 = vld [vmem:[#allocation6 + $0x1748] sm:$0xf] }
 0x3ec   :  { %8469 = vmatpush.bf16.msra.mxu3 %v10769_v7  ;;  %v11524_v7 = vld [vmem:[#allocation6 + $0x1630] sm:$0xf]  ;;  %v11077_v1 = vor.u32 %v13528_v6, %v11076_v22  ;;  %v13500_v6 = vld [vmem:[#allocation6 + $0x11e8] sm:$0xf0] }
 0x3ed   :  { %8431 = vmatpush.bf16.msra.mxu0 %v10069_v27  ;;  %v11777_v27 = vor.u32 %v13703_v61, %v11776_v5  ;;  %v11525_v44 = vor.u32 %v13640_v9, %v11524_v7  ;;  %v13675_v5 = vld [vmem:[#allocation6 + $0x1760] sm:$0xf0]  ;;  %v10964_v22 = vld [vmem:[#allocation6 + $0x11d0] sm:$0xf] }
 0x3ee   :  { %8457 = vmatpush.bf16.msra.mxu2 %v10517_v26  ;;  %v13696_v26 = vld [vmem:[#allocation6 + $0x1808] sm:$0xf0]  ;;  %v11665_v20 = vor.u32 %v13675_v5, %v11664_v4  ;;  %v12672_v4 = vld [vmem:[#allocation6 + $0x1f28] sm:$0xf]  ;;  %v13927_v5 = vld [vmem:[#allocation6 + $0x1f40] sm:$0xf0] }
 0x3ef   :  { %8444 = vmatpush.bf16.msra.mxu1 %v10293_v41  ;;  %v11049_v41 = vor.u32 %v13521_v14, %v11048_v32  ;;  %v13556_v32 = vld [vmem:[#allocation6 + $0x13a8] sm:$0xf0]  ;;  %v11636_v14 = vld [vmem:[#allocation6 + $0x1710] sm:$0xf] }
 0x3f0   :  { %8470 = vmatpush.bf16.msra.mxu3 %v10741_v42  ;;  %v13577_v42 = vld [vmem:[#allocation6 + $0x1450] sm:$0xf0] }
 0x3f1   :  { %8432 = vmatpush.bf16.msra.mxu0 %v10041_v46  ;;  %v11020_v46 = vld [vmem:[#allocation6 + $0x1240] sm:$0xf]  ;;  %v11273_v54 = vor.u32 %v13577_v42, %v11272_v15  ;;  %v11384_v15 = vld [vmem:[#allocation6 + $0x1518] sm:$0xf] }
 0x3f2   :  { %8458 = vmatpush.bf16.msra.mxu2 %v10489_v24  ;;  %v11721_v24 = vor.u32 %v13689_v43, %v11720_v10  ;;  %v11021_v57 = vor.u32 %v13514_v49, %v11020_v46  ;;  %v12028_v42 = vld [vmem:[#allocation6 + $0x1a20] sm:$0xf]  ;;  %v13766_v10 = vld [vmem:[#allocation6 + $0x1a38] sm:$0xf0]  ;;  %v11160_v49 = vld [vmem:[#allocation6 + $0x1358] sm:$0xf] }
 0x3f3   :  { %8445 = vmatpush.bf16.msra.mxu1 %v10265_v53  ;;  %v8239_v52 = vpop.f32.mrf.mxu1  ;;  %v13507_v53 = vld [vmem:[#allocation6 + $0x1220] sm:$0xf0]  ;;  %v13878_v46 = vld [vmem:[#allocation6 + $0x1db8] sm:$0xf0] }
 0x3f4   :  { %8471 = vmatpush.bf16.msra.mxu3 %v10713_v59  ;;  %8433 = vmatmul.bf16.vlgmr.msra.gmra.mxu0 %v14175_v36  ;;  %v8226_v36 = vpop.f32.mrf.mxu0  ;;  %v11440_v59 = vld [vmem:[#allocation6 + $0x1588] sm:$0xf]  ;;  %v10993_v3 = vor.u32 %v13507_v53, %v10992_v55 }
 0x3f5   :  { %8477 = vmatpush.bf16.msrb.mxu0 %v11133_v56  ;;  %8459 = vmatmul.bf16.vlgmr.msra.gmra.mxu2 %v14187_v19  ;;  %v11749_v19 = vor.u32 %v13696_v26, %v11748_v25  ;;  %v11244_v56 = vld [vmem:[#allocation6 + $0x1400] sm:$0xf]  ;;  %v11188_v25 = vld [vmem:[#allocation6 + $0x1390] sm:$0xf] }
 0x3f6   :  { %8503 = vmatpush.bf16.msrb.mxu2 %v11581_v51  ;;  %8446 = vmatmul.bf16.vlgmr.msra.gmra.mxu1 %v14181_v48  ;;  %v11468_v48 = vld [vmem:[#allocation6 + $0x15c0] sm:$0xf]  ;;  %v11245_v13 = vor.u32 %v13570_v47, %v11244_v56  ;;  %v11189_v43 = vor.u32 %v13556_v32, %v11188_v25  ;;  %v12029_v56 = vor.u32 %v13766_v10, %v12028_v42  ;;  %v13822_v47 = vld [vmem:[#allocation6 + $0x1bf8] sm:$0xf0]  ;;  %v12644_v25 = vld [vmem:[#allocation6 + $0x1ef0] sm:$0xf] }
 0x3f7   :  { %8490 = vmatpush.bf16.msrb.mxu1 %v11357_v0  ;;  %8472 = vmatmul.bf16.vlgmr.msra.gmra.mxu3 %v14191_v28  ;;  %v8227_v28 = vadd.f32 %v8226_v36, %v14407_v18  ;;  %v11692_v51 = vld [vmem:[#allocation6 + $0x1780] sm:$0xf]  ;;  %v11469_v39 = vor.u32 %v13626_v50, %v11468_v48  ;;  %v13619_v18 = vld [vmem:[#allocation6 + $0x15a0] sm:$0xf0]  ;;  %v11216_v0 = vld [vmem:[#allocation6 + $0x13c8] sm:$0xf]  ;;  %v11637_v36 = vor.u32 %v13668_v35, %v11636_v14 }
 0x3f8   :  { %8516 = vmatpush.bf16.msrb.mxu3 %v11805_v2  ;;  %v11693_v62 = vor.u32 %v13682_v60, %v11692_v51  ;;  %v8252_v2 = vpop.f32.mrf.mxu2  ;;  %v13549_v48 = vld [vmem:[#allocation6 + $0x1370] sm:$0xf0]  ;;  %v11608_v50 = vld [vmem:[#allocation6 + $0x16d8] sm:$0xf]  ;;  %v12700_v51 = vld [vmem:[#allocation6 + $0x1f60] sm:$0xf] }
 0x3f9   :  { %8478 = vmatpush.bf16.msrb.mxu0 %v11105_v63  ;;  %v8240_v45 = vadd.f32 %v8239_v52, %v8227_v28  ;;  %v13563_v63 = vld [vmem:[#allocation6 + $0x13e0] sm:$0xf0]  ;;  %v13661_v52 = vld [vmem:[#allocation6 + $0x16f0] sm:$0xf0]  ;;  %v13934_v60 = vld [vmem:[#allocation6 + $0x1f78] sm:$0xf0]  ;;  %v11161_v55 = vor.u32 %v13549_v48, %v11160_v49 }
 0x3fa   :  { %8504 = vmatpush.bf16.msrb.mxu2 %v11553_v34  ;;  %v11441_v34 = vor.u32 %v13619_v18, %v11440_v59  ;;  %v8265_v9 = vpop.f32.mrf.mxu3  ;;  %v11609_v53 = vor.u32 %v13661_v52, %v11608_v50  ;;  %v12000_v59 = vld [vmem:[#allocation6 + $0x19e8] sm:$0xf]  ;;  %v13759_v18 = vld [vmem:[#allocation6 + $0x1a00] sm:$0xf0]  ;;  %v13745_v32 = vld [vmem:[#allocation6 + $0x1990] sm:$0xf0] }
 0x3fb   :  { %8491 = vmatpush.bf16.msrb.mxu1 %v11329_v11  ;;  %v8253_v61 = vadd.f32 %v8252_v2, %v8240_v45  ;;  %v11412_v11 = vld [vmem:[#allocation6 + $0x1550] sm:$0xf]  ;;  %v8241_v26 = vpop.f32.mrf.mxu1  ;;  %v12252_v45 = vld [vmem:[#allocation6 + $0x1be0] sm:$0xf]  ;;  %v12701_v2 = vor.u32 %v13934_v60, %v12700_v51  ;;  %v12392_v14 = vld [vmem:[#allocation6 + $0x1cf8] sm:$0xf] }
 0x3fc   :  { %8517 = vmatpush.bf16.msrb.mxu3 %v11777_v27  ;;  %v8228_v7 = vpop.f32.mrf.mxu0  ;;  %v13612_v27 = vld [vmem:[#allocation6 + $0x1568] sm:$0xf0]  ;;  %v13857_v35 = vld [vmem:[#allocation6 + $0x1d10] sm:$0xf0]  ;;  %v13850_v49 = vld [vmem:[#allocation6 + $0x1cd8] sm:$0xf0] }
 0x3fd   :  { %8479 = vmatpush.bf16.msrb.mxu0 %v11077_v1  ;;  %v14414_v12 = vadd.f32 %v8265_v9, %v8253_v61  ;;  %v11217_v1 = vor.u32 %v13563_v63, %v11216_v0  ;;  %v11413_v38 = vor.u32 %v13612_v27, %v11412_v11  ;;  %v12253_v0 = vor.u32 %v13822_v47, %v12252_v45  ;;  %v13815_v63 = vld [vmem:[#allocation6 + $0x1bc0] sm:$0xf0]  ;;  %v12420_v7 = vld [vmem:[#allocation6 + $0x1d30] sm:$0xf]  ;;  %v13864_v9 = vld [vmem:[#allocation6 + $0x1d48] sm:$0xf0] }
 0x3fe   :  { %8505 = vmatpush.bf16.msrb.mxu2 %v11525_v44  ;;  %v10965_v44 = vor.u32 %v13500_v6, %v10964_v22  ;;  %v12001_v61 = vor.u32 %v13759_v18, %v12000_v59  ;;  %v11972_v22 = vld [vmem:[#allocation6 + $0x19b0] sm:$0xf]  ;;  %v13752_v6 = vld [vmem:[#allocation6 + $0x19c8] sm:$0xf0]  ;;  %v12673_v27 = vor.u32 %v13927_v5, %v12672_v4  ;;  %v12393_v10 = vor.u32 %v13857_v35, %v12392_v14  ;;  %v12140_v52 = vld [vmem:[#allocation6 + $0x1b00] sm:$0xf] }
 0x3ff   :  { %8492 = vmatpush.bf16.msrb.mxu1 %v11301_v8  ;;  %v10936_v8 = vld [vmem:[#allocation6 + $0x1198] sm:$0xf]  ;;  %v13920_v26 = vld [vmem:[#allocation6 + $0x1f08] sm:$0xf0]  ;;  %v13906_v45 = vld [vmem:[#allocation6 + $0x1e98] sm:$0xf0] }
 0x400   :  { %8518 = vmatpush.bf16.msrb.mxu3 %v11749_v19  ;;  %v13493_v19 = vld [vmem:[#allocation6 + $0x11b0] sm:$0xf0]  ;;  %v11888_v51 = vld [vmem:[#allocation6 + $0x1908] sm:$0xf]  ;;  %v13731_v60 = vld [vmem:[#allocation6 + $0x1920] sm:$0xf0] }
 0x401   :  { %8480 = vmatpush.bf16.msrb.mxu0 %v11049_v41  ;;  %v13605_v41 = vld [vmem:[#allocation6 + $0x1530] sm:$0xf0]  ;;  %v10937_v28 = vor.u32 %v13493_v19, %v10936_v8  ;;  %v12645_v8 = vor.u32 %v13920_v26, %v12644_v25  ;;  %v12168_v19 = vld [vmem:[#allocation6 + $0x1b38] sm:$0xf]  ;;  %v12112_v59 = vld [vmem:[#allocation6 + $0x1ac8] sm:$0xf] }
 0x402   :  { %8506 = vmatpush.bf16.msrb.mxu2 %v11497_v17  ;;  %v12476_v17 = vld [vmem:[#allocation6 + $0x1da0] sm:$0xf]  ;;  %v11860_v4 = vld [vmem:[#allocation6 + $0x18d0] sm:$0xf]  ;;  %v13892_v26 = vld [vmem:[#allocation6 + $0x1e28] sm:$0xf0] }
 0x403   :  { %8493 = vmatpush.bf16.msrb.mxu1 %v11273_v54  ;;  %v8254_v54 = vpop.f32.mrf.mxu2  ;;  %v12532_v25 = vld [vmem:[#allocation6 + $0x1e10] sm:$0xf]  ;;  %v12280_v14 = vld [vmem:[#allocation6 + $0x1c18] sm:$0xf]  ;;  %v13829_v35 = vld [vmem:[#allocation6 + $0x1c30] sm:$0xf0] }
 0x404   :  { %8519 = vmatpush.bf16.msrb.mxu3 %v11721_v24  ;;  %v11385_v24 = vor.u32 %v13605_v41, %v11384_v15  ;;  %v13801_v15 = vld [vmem:[#allocation6 + $0x1b50] sm:$0xf0] }
 0x405   :  { %8481 = vmatpush.bf16.msrb.mxu0 %v11021_v57  ;;  %v12477_v57 = vor.u32 %v13878_v46, %v12476_v17  ;;  %v13913_v41 = vld [vmem:[#allocation6 + $0x1ed0] sm:$0xf0]  ;;  %v13738_v17 = vld [vmem:[#allocation6 + $0x1958] sm:$0xf0]  ;;  %v12364_v46 = vld [vmem:[#allocation6 + $0x1cc0] sm:$0xf]  ;;  %v12169_v48 = vor.u32 %v13801_v15, %v12168_v19 }
 0x406   :  { %8507 = vmatpush.bf16.msrb.mxu2 %v11469_v39  ;;  %v8267_v39 = vpop.f32.mrf.mxu3  ;;  %v12365_v47 = vor.u32 %v13850_v49, %v12364_v46  ;;  %v12924_v19 = vld [vmem:[#allocation6 + $0x2120] sm:$0xf]  ;;  %v13990_v15 = vld [vmem:[#allocation6 + $0x2138] sm:$0xf0] }
 0x407   :  { %8494 = vmatpush.bf16.msrb.mxu1 %v11245_v13  ;;  %v12448_v13 = vld [vmem:[#allocation6 + $0x1d68] sm:$0xf]  ;;  %v13843_v39 = vld [vmem:[#allocation6 + $0x1ca0] sm:$0xf0] }
 0x408   :  { %8520 = vmatpush.bf16.msrb.mxu3 %v11693_v62  ;;  %v13871_v62 = vld [vmem:[#allocation6 + $0x1d80] sm:$0xf0] }
 0x409   :  { %8482 = vmatpush.bf16.msrb.mxu0 %v10993_v3  ;;  %v12224_v3 = vld [vmem:[#allocation6 + $0x1ba8] sm:$0xf] }
 0x40a   :  { %8508 = vmatpush.bf16.msrb.mxu2 %v11441_v34  ;;  %v12449_v34 = vor.u32 %v13871_v62, %v12448_v13  ;;  %v12225_v11 = vor.u32 %v13815_v63, %v12224_v3  ;;  %v13787_v13 = vld [vmem:[#allocation6 + $0x1ae0] sm:$0xf0]  ;;  %v12560_v62 = vld [vmem:[#allocation6 + $0x1e48] sm:$0xf]  ;;  %v11889_v3 = vor.u32 %v13731_v60, %v11888_v51 }
 0x40b   :  { %8495 = vmatpush.bf16.msrb.mxu1 %v11217_v1  ;;  %v12196_v1 = vld [vmem:[#allocation6 + $0x1b70] sm:$0xf] }
 0x40c   :  { %8521 = vmatpush.bf16.msrb.mxu3 %v11665_v20  ;;  %v13808_v20 = vld [vmem:[#allocation6 + $0x1b88] sm:$0xf0] }
 0x40d   :  { %8483 = vmatpush.bf16.msrb.mxu0 %v10965_v44  ;;  %v12421_v44 = vor.u32 %v13864_v9, %v12420_v7  ;;  %v12113_v9 = vor.u32 %v13787_v13, %v12112_v59 }
 0x40e   :  { %8509 = vmatpush.bf16.msrb.mxu2 %v11413_v38  ;;  %v12197_v38 = vor.u32 %v13808_v20, %v12196_v1  ;;  %v13780_v20 = vld [vmem:[#allocation6 + $0x1aa8] sm:$0xf0] }
 0x40f   :  { %8496 = vmatpush.bf16.msrb.mxu1 %v11189_v43  ;;  %v11916_v43 = vld [vmem:[#allocation6 + $0x1940] sm:$0xf] }
 0x410   :  { %8522 = vmatpush.bf16.msrb.mxu3 %v11637_v36 }
 0x411   :  { %8484 = vmatpush.bf16.msrb.mxu0 %v10937_v28 }
 0x412   :  { %8510 = vmatpush.bf16.msrb.mxu2 %v11385_v24  ;;  %v13794_v24 = vld [vmem:[#allocation6 + $0x1b18] sm:$0xf0] }
 0x413   :  { %8497 = vmatpush.bf16.msrb.mxu1 %v11161_v55  ;;  %v8291_v28 = vpop.f32.mrf.mxu1  ;;  %v12141_v55 = vor.u32 %v13794_v24, %v12140_v52  ;;  %v13976_v24 = vld [vmem:[#allocation6 + $0x20c8] sm:$0xf0] }
 0x414   :  { %8523 = vmatpush.bf16.msrb.mxu3 %v11609_v53  ;;  %8485 = vmatmul.bf16.vlgmr.msrb.gmra.mxu0 %v14189_v23  ;;  %v11973_v23 = vor.u32 %v13752_v6, %v11972_v22  ;;  %v12308_v22 = vld [vmem:[#allocation6 + $0x1c50] sm:$0xf]  ;;  %v13836_v6 = vld [vmem:[#allocation6 + $0x1c68] sm:$0xf0] }
 0x415   :  { %8529 = vmatpush.bf16.msra.mxu0 %v12029_v56  ;;  %8511 = vmatmul.bf16.vlgmr.msrb.gmra.mxu2 %v14199_v16  ;;  %v11944_v16 = vld [vmem:[#allocation6 + $0x1978] sm:$0xf]  ;;  %v12588_v56 = vld [vmem:[#allocation6 + $0x1e80] sm:$0xf] }
 0x416   :  { %8555 = vmatpush.bf16.msra.mxu2 %v12477_v57  ;;  %8498 = vmatmul.bf16.vlgmr.msrb.gmra.mxu1 %v14193_v31  ;;  %v12616_v31 = vld [vmem:[#allocation6 + $0x1eb8] sm:$0xf]  ;;  %v11945_v42 = vor.u32 %v13745_v32, %v11944_v16  ;;  %v11917_v57 = vor.u32 %v13738_v17, %v11916_v43  ;;  %v12589_v53 = vor.u32 %v13906_v45, %v12588_v56  ;;  %v13717_v32 = vld [vmem:[#allocation6 + $0x18b0] sm:$0xf0] }
 0x417   :  { %8542 = vmatpush.bf16.msra.mxu1 %v12253_v0  ;;  %8524 = vmatmul.bf16.vlgmr.msrb.gmra.mxu3 %v14203_v29  ;;  %v8278_v29 = vpop.f32.mrf.mxu0  ;;  %v12617_v50 = vor.u32 %v13913_v41, %v12616_v31  ;;  %v13899_v0 = vld [vmem:[#allocation6 + $0x1e60] sm:$0xf0]  ;;  %v11832_v16 = vld [vmem:[#allocation6 + $0x1898] sm:$0xf]  ;;  %v13773_v41 = vld [vmem:[#allocation6 + $0x1a70] sm:$0xf0]  ;;  %v12925_v17 = vor.u32 %v13990_v15, %v12924_v19 }
 0x418   :  { %8568 = vmatpush.bf16.msra.mxu3 %v12701_v2  ;;  %v8279_v36 = vadd.f32 %v8278_v29, %v14414_v12  ;;  %v12336_v12 = vld [vmem:[#allocation6 + $0x1c88] sm:$0xf]  ;;  %v8304_v18 = vpop.f32.mrf.mxu2  ;;  %v12056_v31 = vld [vmem:[#allocation6 + $0x1a58] sm:$0xf]  ;;  %v11833_v43 = vor.u32 %v13717_v32, %v11832_v16 }
 0x419   :  { %8530 = vmatpush.bf16.msra.mxu0 %v12001_v61  ;;  %v12337_v63 = vor.u32 %v13843_v39, %v12336_v12  ;;  %v12504_v29 = vld [vmem:[#allocation6 + $0x1dd8] sm:$0xf]  ;;  %v12057_v49 = vor.u32 %v13773_v41, %v12056_v31  ;;  %v12812_v12 = vld [vmem:[#allocation6 + $0x2040] sm:$0xf]  ;;  %v13962_v39 = vld [vmem:[#allocation6 + $0x2058] sm:$0xf0] }
 0x41a   :  { %8556 = vmatpush.bf16.msra.mxu2 %v12449_v34  ;;  %v8292_v54 = vadd.f32 %v8291_v28, %v8279_v36  ;;  %v8317_v61 = vpop.f32.mrf.mxu3  ;;  %v13724_v34 = vld [vmem:[#allocation6 + $0x18e8] sm:$0xf0]  ;;  %v12281_v36 = vor.u32 %v13829_v35, %v12280_v14  ;;  %v12840_v45 = vld [vmem:[#allocation6 + $0x2078] sm:$0xf] }
 0x41b   :  { %8543 = vmatpush.bf16.msra.mxu1 %v12225_v11  ;;  %v12561_v11 = vor.u32 %v13899_v0, %v12560_v62  ;;  %v8293_v1 = vpop.f32.mrf.mxu1  ;;  %v14011_v62 = vld [vmem:[#allocation8] sm:$0xff] }
 0x41c   :  { %8569 = vmatpush.bf16.msra.mxu3 %v12673_v27  ;;  %v8305_v2 = vadd.f32 %v8304_v18, %v8292_v54  ;;  %v12084_v27 = vld [vmem:[#allocation6 + $0x1a90] sm:$0xf]  ;;  %v13955_v18 = vld [vmem:[#allocation6 + $0x2020] sm:$0xf0]  ;;  %v1318_v0 = vperm.slane %v14011_v62, 6 }
 0x41d   :  { %8531 = vmatpush.bf16.msra.mxu0 %v11973_v23  ;;  %v11861_v23 = vor.u32 %v13724_v34, %v11860_v4  ;;  %v12868_v54 = vld [vmem:[#allocation6 + $0x20b0] sm:$0xf]  ;;  %v13948_v4 = vld [vmem:[#allocation6 + $0x1fe8] sm:$0xf0] }
 0x41e   :  { %8557 = vmatpush.bf16.msra.mxu2 %v12421_v44  ;;  %v8318_v7 = vadd.f32 %v8317_v61, %v8305_v2  ;;  %v12309_v44 = vor.u32 %v13836_v6, %v12308_v22  ;;  %v12869_v56 = vor.u32 %v13976_v24, %v12868_v54 }
 0x41f   :  { %8544 = vmatpush.bf16.msra.mxu1 %v12197_v38  ;;  %v8280_v5 = vpop.f32.mrf.mxu0  ;;  %v12085_v38 = vor.u32 %v13780_v20, %v12084_v27 }
 0x420   :  { %8570 = vmatpush.bf16.msra.mxu3 %v12645_v8  ;;  %v12533_v8 = vor.u32 %v13892_v26, %v12532_v25 }
 0x421   :  { %8532 = vmatpush.bf16.msra.mxu0 %v11945_v42  ;;  %v13885_v42 = vld [vmem:[#allocation6 + $0x1df0] sm:$0xf0] }
 0x422   :  { %8558 = vmatpush.bf16.msra.mxu2 %v12393_v10  ;;  %v8306_v10 = vpop.f32.mrf.mxu2  ;;  %v8319_v46 = vpop.f32.mrf.mxu3  ;;  %v12505_v28 = vor.u32 %v13885_v42, %v12504_v29 }
 0x423   :  { %8545 = vmatpush.bf16.msra.mxu1 %v12169_v48  ;;  %v12896_v48 = vld [vmem:[#allocation6 + $0x20e8] sm:$0xf] }
 0x424   :  { %8571 = vmatpush.bf16.msra.mxu3 %v12617_v50  ;;  %v13983_v50 = vld [vmem:[#allocation6 + $0x2100] sm:$0xf0] }
 0x425   :  { %8533 = vmatpush.bf16.msra.mxu0 %v11917_v57  ;;  %v12897_v52 = vor.u32 %v13983_v50, %v12896_v48  ;;  %v13969_v57 = vld [vmem:[#allocation6 + $0x2090] sm:$0xf0] }
 0x426   :  { %8559 = vmatpush.bf16.msra.mxu2 %v12365_v47  ;;  %v12841_v51 = vor.u32 %v13969_v57, %v12840_v45 }
 0x427   :  { %8546 = vmatpush.bf16.msra.mxu1 %v12141_v55 }
 0x428   :  { %8572 = vmatpush.bf16.msra.mxu3 %v12589_v53  ;;  %v14425_v53 = vld [vmem:[#allocation9] sm:$0xff] }
 0x429   :  { %8534 = vmatpush.bf16.msra.mxu0 %v11889_v3 }
 0x42a   :  { %8560 = vmatpush.bf16.msra.mxu2 %v12337_v63  ;;  %v12756_v63 = vld [vmem:[#allocation6 + $0x1fd0] sm:$0xf] }
 0x42b   :  { %8547 = vmatpush.bf16.msra.mxu1 %v12113_v9  ;;  %v12728_v9 = vld [vmem:[#allocation6 + $0x1f98] sm:$0xf] }
 0x42c   :  { %8573 = vmatpush.bf16.msra.mxu3 %v12561_v11  ;;  %v13941_v11 = vld [vmem:[#allocation6 + $0x1fb0] sm:$0xf0] }
 0x42d   :  { %8535 = vmatpush.bf16.msra.mxu0 %v11861_v23  ;;  %v12729_v1 = vor.u32 %v13941_v11, %v12728_v9 }
 0x42e   :  { %8561 = vmatpush.bf16.msra.mxu2 %v12309_v44 }
 0x42f   :  { %8548 = vmatpush.bf16.msra.mxu1 %v12085_v38 }
 0x430   :  { %8574 = vmatpush.bf16.msra.mxu3 %v12533_v8 }
 0x431   :  { %8536 = vmatpush.bf16.msra.mxu0 %v11833_v43  ;;  %v8330_v47 = vpop.f32.mrf.mxu0 }
 0x432   :  { %8562 = vmatpush.bf16.msra.mxu2 %v12281_v36  ;;  %v8331_v60 = vadd.f32 %v8330_v47, %v8318_v7  ;;  %v12757_v7 = vor.u32 %v13948_v4, %v12756_v63 }
 0x433   :  { %8549 = vmatpush.bf16.msra.mxu1 %v12057_v49  ;;  %v8343_v55 = vpop.f32.mrf.mxu1 }
 0x434   :  { %8575 = vmatpush.bf16.msra.mxu3 %v12505_v28  ;;  %8537 = vmatmul.bf16.vlgmr.msra.gmra.mxu0 %v14201_v21  ;;  %v8344_v21 = vadd.f32 %v8343_v55, %v8331_v60 }
 0x435   :  { %8581 = vmatpush.bf16.msrb.mxu0 %v12925_v17  ;;  %8563 = vmatmul.bf16.vlgmr.msra.gmra.mxu2 %v14211_v30  ;;  %v8609_v30 = vperm.slane %v14425_v53, 5 }
 0x436   :  { %8550 = vmatmul.bf16.vlgmr.msra.gmra.mxu1 %v14205_v33  ;;  %v12813_v33 = vor.u32 %v13962_v39, %v12812_v12  ;;  %v8599_v59 = vmax.f32 %v8344_v21, 0.0  ;;  %v14120_v21 = vmov 0.0  }
 0x437   :  { %8576 = vmatmul.bf16.vlgmr.msra.gmra.mxu3 %v14215_v40  ;;  %v12784_v40 = vld [vmem:[#allocation6 + $0x2008] sm:$0xf]  ;;  %83 = vst.msk [vmem:[#allocation2] sm:$0xff] %vm82_vm0, %v14120_v21 }
 0x438   :  { %v8623_v13 = vmul.f32 %v8609_v30, %v8599_v59  ;;  %v12785_v2 = vor.u32 %v13955_v18, %v12784_v40  ;;  %v8356_v34 = vpop.f32.mrf.mxu2 }
 0x439   :  { %8582 = vmatpush.bf16.msrb.mxu0 %v12897_v52  ;;  %v8332_v3 = vpop.f32.mrf.mxu0  ;;  %v8357_v6 = vadd.f32 %v8356_v34, %v1318_v0 }
 0x43a   :  { %v8369_v5 = vpop.f32.mrf.mxu3  ;;  %v14429_v61 = vadd.f32 %v14393_v58, %v8623_v13 }
 0x43b   :  { %v8345_v22 = vpop.f32.mrf.mxu1  ;;  %v8370_v27 = vadd.f32 %v8369_v5, %v8357_v6  ;;  %v8610_v5 = vperm.slane %v14425_v53, 6 }
 0x43d   :  { %8583 = vmatpush.bf16.msrb.mxu0 %v12869_v56 }
 0x43e   :  { %v8601_v9 = vld [vmem:[#allocation2] sm:$0xff] }
 0x440   :  { %v8358_v25 = vpop.f32.mrf.mxu2 }
 0x441   :  { %8584 = vmatpush.bf16.msrb.mxu0 %v12841_v51 }
 0x442   :  { %v8371_v20 = vpop.f32.mrf.mxu3 }
 0x445   :  { %8585 = vmatpush.bf16.msrb.mxu0 %v12813_v33 }
 0x449   :  { %8586 = vmatpush.bf16.msrb.mxu0 %v12785_v2 }
 0x44d   :  { %8587 = vmatpush.bf16.msrb.mxu0 %v12757_v7 }
 0x451   :  { %8588 = vmatpush.bf16.msrb.mxu0 %v12729_v1  ;;  %v8382_v26 = vpop.f32.mrf.mxu0  ;;  %v8641_v1 = vstv %s14447_s4 }
 0x452   :  { %v8383_v23 = vadd.f32 %v8382_v26, %v8370_v27 }
 0x453   :  { %v8395_v44 = vpop.f32.mrf.mxu1 }
 0x454   :  { %8589 = vmatmul.bf16.vlgmr.msrb.gmra.mxu0 %v14213_v37  ;;  %v8396_v58 = vadd.f32 %v8395_v44, %v8383_v23 }
 0x458   :  { %v8408_v16 = vpop.f32.mrf.mxu2 }
 0x459   :  { %v8409_v32 = vadd.f32 %v8408_v16, %v8396_v58  ;;  %v8384_v38 = vpop.f32.mrf.mxu0 }
 0x45a   :  { %v8421_v14 = vpop.f32.mrf.mxu3 }
 0x45b   :  { %v8422_v35 = vadd.f32 %v8421_v14, %v8409_v32  ;;  %v8397_v8 = vpop.f32.mrf.mxu1 }
 0x460   :  { %v8410_v19 = vpop.f32.mrf.mxu2 }
 0x462   :  { %v8423_v15 = vpop.f32.mrf.mxu3 }
 0x471   :  { %v8434_v31 = vpop.f32.mrf.mxu0 }
 0x472   :  { %v8435_v41 = vadd.f32 %v8434_v31, %v8422_v35 }
 0x473   :  { %v8447_v29 = vpop.f32.mrf.mxu1 }
 0x474   :  { %v8448_v42 = vadd.f32 %v8447_v29, %v8435_v41 }
 0x478   :  { %v8460_v10 = vpop.f32.mrf.mxu2 }
 0x479   :  { %v8436_v36 = vpop.f32.mrf.mxu0  ;;  %v8461_v57 = vadd.f32 %v8460_v10, %v8448_v42 }
 0x47a   :  { %v8473_v43 = vpop.f32.mrf.mxu3 }
 0x47b   :  { %v8449_v37 = vpop.f32.mrf.mxu1  ;;  %v8474_v51 = vadd.f32 %v8473_v43, %v8461_v57 }
 0x480   :  { %v8462_v17 = vpop.f32.mrf.mxu2 }
 0x482   :  { %v8475_v46 = vpop.f32.mrf.mxu3 }
 0x491   :  { %v8486_v49 = vpop.f32.mrf.mxu0 }
 0x492   :  { %v8487_v12 = vadd.f32 %v8486_v49, %v8474_v51 }
 0x493   :  { %v8499_v28 = vpop.f32.mrf.mxu1 }
 0x494   :  { %v8500_v33 = vadd.f32 %v8499_v28, %v8487_v12 }
 0x498   :  { %v8512_v48 = vpop.f32.mrf.mxu2 }
 0x499   :  { %v8488_v52 = vpop.f32.mrf.mxu0  ;;  %v8513_v59 = vadd.f32 %v8512_v48, %v8500_v33 }
 0x49a   :  { %v8525_v50 = vpop.f32.mrf.mxu3 }
 0x49b   :  { %v8501_v54 = vpop.f32.mrf.mxu1  ;;  %v8526_v13 = vadd.f32 %v8525_v50, %v8513_v59 }
 0x4a0   :  { %v8514_v24 = vpop.f32.mrf.mxu2 }
 0x4a2   :  { %v8527_v56 = vpop.f32.mrf.mxu3 }
 0x4b1   :  { %v8538_v45 = vpop.f32.mrf.mxu0 }
 0x4b2   :  { %v8539_v62 = vadd.f32 %v8538_v45, %v8526_v13 }
 0x4b3   :  { %v8551_v47 = vpop.f32.mrf.mxu1 }
 0x4b4   :  { %v8552_v0 = vadd.f32 %v8551_v47, %v8539_v62 }
 0x4b8   :  { %v8564_v60 = vpop.f32.mrf.mxu2 }
 0x4b9   :  { %v8540_v55 = vpop.f32.mrf.mxu0  ;;  %v8565_v2 = vadd.f32 %v8564_v60, %v8552_v0 }
 0x4ba   :  { %v8577_v39 = vpop.f32.mrf.mxu3 }
 0x4bb   :  { %v8553_v30 = vpop.f32.mrf.mxu1  ;;  %v8578_v3 = vadd.f32 %v8577_v39, %v8565_v2 }
 0x4c0   :  { %v8566_v40 = vpop.f32.mrf.mxu2 }
 0x4c2   :  { %v8579_v18 = vpop.f32.mrf.mxu3 }
 0x4d1   :  { %v8590_v63 = vpop.f32.mrf.mxu0 }
 0x4d2   :  { %v8591_v4 = vadd.f32 %v8590_v63, %v8578_v3 }
 0x4d4   :  { %v8600_v34 = vmax.f32 %v8591_v4, 0.0 }
 0x4d6   :  { %v8624_v22 = vmul.f32 %v8610_v5, %v8600_v34 }
 0x4d8   :  { %v8630_v6 = vadd.f32 %v14429_v61, %v8624_v22 }
 0x4d9   :  { %v8592_v7 = vpop.f32.mrf.mxu0 }
 0x4da   :  { %8631 = vadd.xlane.f32.xlu0 %v8630_v6 }
 0x54d   :  { %v8632_v11 = vpop.xlane.xlu0 %8631 }
 0x54e   :  { %v8633_v27 = vadd.f32 %v8632_v11, %v8601_v9 }
 0x550   :  { %8635 = vst.msk [vmem:[#allocation2] sm:$0xff] %vm82_vm0, %v8633_v27 }
 0x557   :  { %v8639_v20 = vld [vmem:[#allocation2] sm:$0xff] }
 0x558   :  { %v8642_v25 = vadd.f32 %v8641_v1, %v8639_v20 }
 0x55a   :  { %v12926_v26 = vmul.f32 -1.442695, %v8642_v25 }
 0x55c   :  { %13998 = vpow2.f32 %v12926_v26 }
 0x562   :  { %v13999_v53 = vpop.eup %13998 }
 0x563   :  { %v8646_v23 = vadd.f32 1.0, %v13999_v53 }
 0x565   :  { %14000 = vrcp.f32 %v8646_v23  ;;  %v8658_v16 = vand.u32 2147483648, %v8646_v23  ;;  %v8656_v14 = vand.u32 2147483647, %v8646_v23  ;;  %vm8652_vm2 = vweird.f32 %v8646_v23 }
 0x567   :  { %v8659_v38 = vor.u32 1.1754944e-38, %v8658_v16  ;;  %vm8657_vm4 = vcmp.eq.f32.partialorder %v8656_v14, 8.507059e+37 }
 0x56b   :  { %v14001_v44 = vpop.eup %14000 }
 0x56c   :  { %v8648_v61 = vmul.f32 %v14001_v44, %v8646_v23  ;;  %vm8653_vm1 = vweird.f32 %v14001_v44 }
 0x56d   :  { %vm8654_vm3 = vmor %vm8652_vm2, %vm8653_vm1 }
 0x56e   :  { %v8649_v58 = vsub.f32 1.0, %v8648_v61 }
 0x570   :  { %v8650_v32 = vmul.f32 %v14001_v44, %v8649_v58 }
 0x572   :  { %v8651_v35 = vadd.f32 %v14001_v44, %v8650_v32 }
 0x574   :  { %v8655_v8 = vsel %vm8654_vm3, %v14001_v44, %v8651_v35 }
 0x575   :  { %v8660_v19 = vsel %vm8657_vm4, %v8659_v38, %v8655_v8 }
 0x576   :  { %8662 = vst.msk [vmem:[%s14448_s5] sm:$0xff] %vm82_vm0, %v8660_v19 }
 0x577   :  { %8667 = vsyncpa [#allocation5], 1 }
 0x578   :  { %8668 = vsyncpa [#allocation7], 1 }
 0x579   :  { %8669 = vsyncpa [#allocation10], 1 }

</bundles_post_ra>
